<compile_context>
chip_gen: v5e
topology: v5e:2x2
jax: 0.10.0
libtpu: 0.0.40
codegen_flags: <defaults>
</compile_context>

<pallas_src>
import functools

import jax
import jax.numpy as jnp
from jax.experimental import pallas as pl
from jax.experimental.pallas import tpu as pltpu

KSIZE = 5
BN_EPS = 1e-5
C = 128              # lane-dense channel width (C_in padded 100 -> 128)
POOLS = (5, 5, 35)
CHUNK = 256          # conv output-row chunk (keeps f32 accumulator small)


# ----------------------------------------------------------------------------
# In-kernel building blocks
# ----------------------------------------------------------------------------
def _conv_bn_relu_into(src_ref, w_ref, scale_ref, shift_ref, stage, dst_ref):
    """Valid Conv1d(k=5) (5 shifted bf16 MXU matmuls) + folded BN + ReLU -> dst_ref."""
    l_out = dst_ref.shape[0]
    scale = scale_ref[pl.ds(stage, 1), :]          # (1, C) f32
    shift = shift_ref[pl.ds(stage, 1), :]          # (1, C) f32
    start = 0
    while start < l_out:                           # static (trace-time) chunk loop
        rows = min(CHUNK, l_out - start)
        acc = jnp.dot(src_ref[pl.ds(start, rows), :], w_ref[0],
                      preferred_element_type=jnp.float32)
        for k in range(1, KSIZE):
            acc = acc + jnp.dot(src_ref[pl.ds(start + k, rows), :], w_ref[k],
                                preferred_element_type=jnp.float32)
        dst_ref[pl.ds(start, rows), :] = jnp.maximum(acc * scale + shift, 0.0)
        start += rows


def _maxpool_into(src_ref, pool, dst_ref):
    """MaxPool1d(pool, stride=pool): `pool` strided sublane loads + one dense store."""
    n_pool = dst_ref.shape[0]
    m = src_ref[pl.ds(0, n_pool, stride=pool), :]
    for r in range(1, pool):
        m = jnp.maximum(m, src_ref[pl.ds(r, n_pool, stride=pool), :])
    dst_ref[...] = m.astype(dst_ref.dtype)


def _fused_model_kernel(x_ref, w1_ref, w2_ref, w3_ref, scale_ref, shift_ref,
                        fc1w_ref, fc1b_ref, fc2w_ref, fc2b_ref, o_ref,
                        y1, p1, y2, p2, y3):
    # x_ref: (L_in, C) bf16 (batch squeezed);  w*_ref: (K, C, C) bf16
    # scale/shift: (3, C) f32 folded BN;       fc*: (C, C) bf16 / (1, C) f32
    # o_ref: (1, C) f32 (num_classes padded to C, sliced in the wrapper)
    # Stage 1: Conv+BN+ReLU -> y1 (f32), MaxPool(5) -> p1 (bf16)
    _conv_bn_relu_into(x_ref, w1_ref, scale_ref, shift_ref, 0, y1)
    _maxpool_into(y1, POOLS[0], p1)
    # Stage 2
    _conv_bn_relu_into(p1, w2_ref, scale_ref, shift_ref, 1, y2)
    _maxpool_into(y2, POOLS[1], p2)
    # Stage 3: Conv+BN+ReLU -> y3 (35 rows), MaxPool(35) == global max over rows
    _conv_bn_relu_into(p2, w3_ref, scale_ref, shift_ref, 2, y3)
    feat = jnp.max(y3[...], axis=0, keepdims=True)                  # (1, C) f32

    # FC head (Dropout is identity at inference)
    h = jnp.dot(feat.astype(jnp.bfloat16), fc1w_ref[...],
                preferred_element_type=jnp.float32) + fc1b_ref[...]
    h = jnp.maximum(h, 0.0)
    o_ref[...] = jnp.dot(h.astype(jnp.bfloat16), fc2w_ref[...],
                         preferred_element_type=jnp.float32) + fc2b_ref[...]


# ----------------------------------------------------------------------------
# pallas_call wrapper (one fused kernel, grid over batch)
# ----------------------------------------------------------------------------
def fused_forward(x_bf, w1, w2, w3, bn_scale, bn_shift, fc1w, fc1b, fc2w, fc2b):
    b_dim, l_in, c = x_bf.shape
    assert c == C
    l1 = l_in - KSIZE + 1
    n1 = l1 // POOLS[0]
    l2 = n1 - KSIZE + 1
    n2 = l2 // POOLS[1]
    l3 = n2 - KSIZE + 1
    out = pl.pallas_call(
        _fused_model_kernel,
        out_shape=jax.ShapeDtypeStruct((b_dim, 1, C), jnp.float32),
        grid_spec=pltpu.PrefetchScalarGridSpec(
            num_scalar_prefetch=0,
            grid=(b_dim,),
            in_specs=[
                pl.BlockSpec((None, l_in, C), lambda b: (b, 0, 0)),   # x (per-batch)
                pl.BlockSpec((KSIZE, C, C), lambda b: (0, 0, 0)),     # conv1 w
                pl.BlockSpec((KSIZE, C, C), lambda b: (0, 0, 0)),     # conv2 w
                pl.BlockSpec((KSIZE, C, C), lambda b: (0, 0, 0)),     # conv3 w
                pl.BlockSpec((3, C), lambda b: (0, 0)),               # bn scale (3 stages)
                pl.BlockSpec((3, C), lambda b: (0, 0)),               # bn shift
                pl.BlockSpec((C, C), lambda b: (0, 0)),               # fc1 w (in,out)
                pl.BlockSpec((1, C), lambda b: (0, 0)),               # fc1 b
                pl.BlockSpec((C, C), lambda b: (0, 0)),               # fc2 w (padded)
                pl.BlockSpec((1, C), lambda b: (0, 0)),               # fc2 b (padded)
            ],
            out_specs=pl.BlockSpec((None, 1, C), lambda b: (b, 0, 0)),
            scratch_shapes=[
                pltpu.VMEM((l1, C), jnp.float32),    # stage-1 pre-pool
                pltpu.VMEM((n1, C), jnp.bfloat16),   # stage-1 pooled
                pltpu.VMEM((l2, C), jnp.float32),    # stage-2 pre-pool
                pltpu.VMEM((n2, C), jnp.bfloat16),   # stage-2 pooled
                pltpu.VMEM((l3, C), jnp.float32),    # stage-3 pre-pool
            ],
        ),
        compiler_params=pltpu.CompilerParams(dimension_semantics=("parallel",)),
    )(x_bf, w1, w2, w3, bn_scale, bn_shift, fc1w, fc1b, fc2w, fc2b)
    return out[:, 0, :]


# ----------------------------------------------------------------------------
# One-time parameter preparation (hoisted transposes / BN folding / padding)
# ----------------------------------------------------------------------------
def prepare_params(p, num_classes):
    dim = p["emb"].shape[1]
    prep = {"emb": jnp.pad(p["emb"], ((0, 0), (0, C - dim)))}      # (V, 128) f32
    scales, shifts = [], []
    for i in range(3):
        w = jnp.transpose(p[f"c{i+1}_w"], (2, 1, 0))               # (K, Cin, Cout)
        cin = w.shape[1]
        if cin < C:
            w = jnp.pad(w, ((0, 0), (0, C - cin), (0, 0)))
        prep[f"w{i+1}"] = w.astype(jnp.bfloat16)
        scale = p[f"bn{i+1}_gamma"] / jnp.sqrt(p[f"bn{i+1}_var"] + BN_EPS)
        shift = p[f"bn{i+1}_beta"] + scale * (p[f"c{i+1}_b"] - p[f"bn{i+1}_mean"])
        scales.append(scale)
        shifts.append(shift)
    prep["bn_scale"] = jnp.stack(scales).astype(jnp.float32)       # (3, 128)
    prep["bn_shift"] = jnp.stack(shifts).astype(jnp.float32)       # (3, 128)
    prep["fc1_w"] = p["fc1_w"].T.astype(jnp.bfloat16)              # (128, 128) (in,out)
    prep["fc1_b"] = p["fc1_b"][None, :].astype(jnp.float32)        # (1, 128)
    prep["fc2_w"] = jnp.pad(p["fc2_w"].T,
                            ((0, 0), (0, C - num_classes))).astype(jnp.bfloat16)
    prep["fc2_b"] = jnp.pad(p["fc2_b"], (0, C - num_classes))[None, :].astype(jnp.float32)
    return prep


@functools.partial(jax.jit, static_argnames=("num_classes",))
def model_forward_pallas(idx, prep, *, num_classes):
    x = jnp.take(prep["emb"], idx, axis=0).astype(jnp.bfloat16)    # (B, L, 128) gather glue
    logits = fused_forward(x, prep["w1"], prep["w2"], prep["w3"],
                           prep["bn_scale"], prep["bn_shift"],
                           prep["fc1_w"], prep["fc1_b"],
                           prep["fc2_w"], prep["fc2_b"])
    return logits[:, :num_classes]


# ----------------------------------------------------------------------------
# Parameter init + pure-JAX reference (mirrors the PyTorch module, eval mode)
# ----------------------------------------------------------------------------
def init_params(key, vocab_size, dim, num_classes):
    keys = iter(jax.random.split(key, 32))

    def uni(k, shape, fan_in):
        bound = 1.0 / float(fan_in) ** 0.5
        return jax.random.uniform(k, shape, jnp.float32, -bound, bound)

    p = {"emb": jax.random.normal(next(keys), (vocab_size, dim), jnp.float32)}
    c_ins = [dim, 128, 128]
    for i in range(3):
        cin = c_ins[i]
        p[f"c{i+1}_w"] = uni(next(keys), (128, cin, KSIZE), cin * KSIZE)   # torch (Cout,Cin,K)
        p[f"c{i+1}_b"] = uni(next(keys), (128,), cin * KSIZE)
        p[f"bn{i+1}_gamma"] = 1.0 + 0.1 * jax.random.normal(next(keys), (128,), jnp.float32)
        p[f"bn{i+1}_beta"] = 0.1 * jax.random.normal(next(keys), (128,), jnp.float32)
        p[f"bn{i+1}_mean"] = 0.1 * jax.random.normal(next(keys), (128,), jnp.float32)
        p[f"bn{i+1}_var"] = jax.random.uniform(next(keys), (128,), jnp.float32, 0.5, 1.5)
    p["fc1_w"] = uni(next(keys), (128, 128), 128)          # torch (out, in)
    p["fc1_b"] = uni(next(keys), (128,), 128)
    p["fc2_w"] = uni(next(keys), (num_classes, 128), 128)
    p["fc2_b"] = uni(next(keys), (num_classes,), 128)
    return p


def model_forward_ref(idx, p):
    """Pure-JAX reference (eval mode), using the same bf16-input / f32-accum matmuls."""
    b_dim = idx.shape[0]
    x = jnp.take(p["emb"], idx, axis=0).astype(jnp.bfloat16)        # (B, L, 100)
    for i in range(3):
        W = p[f"c{i+1}_w"].astype(jnp.bfloat16)                     # (Cout, Cin, K)
        l_out = x.shape[1] - KSIZE + 1
        out = jnp.zeros((b_dim, l_out, W.shape[0]), jnp.float32)
        for k in range(KSIZE):
            out = out + jnp.einsum("blc,oc->blo", x[:, k:k + l_out, :], W[:, :, k],
                                   preferred_element_type=jnp.float32)
        out = out + p[f"c{i+1}_b"][None, None, :]
        scale = p[f"bn{i+1}_gamma"] / jnp.sqrt(p[f"bn{i+1}_var"] + BN_EPS)
        out = (out - p[f"bn{i+1}_mean"]) * scale + p[f"bn{i+1}_beta"]
        out = jnp.maximum(out, 0.0)
        pool = POOLS[i]
        n = l_out // pool
        x = out[:, :n * pool, :].reshape(b_dim, n, pool, -1).max(axis=2).astype(jnp.bfloat16)
    feat = x.reshape(b_dim, -1)                                     # (B, 128) bf16
    h = jnp.dot(feat, p["fc1_w"].T.astype(jnp.bfloat16),
                preferred_element_type=jnp.float32) + p["fc1_b"]
    h = jnp.maximum(h, 0.0)
    return jnp.dot(h.astype(jnp.bfloat16), p["fc2_w"].T.astype(jnp.bfloat16),
                   preferred_element_type=jnp.float32) + p["fc2_b"]


if __name__ == "__main__":
    VOCAB, DIM, NUM_CLASSES = 50, 100, 10
    # L must reduce to spatial size 1 through the conv/pool chain (char-CNN style):
    # 1014 -> 1010 -> 202 -> 198 -> 39 -> 35 -> 1
    B, L = 2, 1014

    root = jax.random.PRNGKey(0)
    k_params, k_idx = jax.random.split(root)
    params = init_params(k_params, VOCAB, DIM, NUM_CLASSES)
    prep = prepare_params(params, NUM_CLASSES)
    img = jax.random.randint(k_idx, (B, L), 0, VOCAB, dtype=jnp.int32)

    out = jax.block_until_ready(model_forward_pallas(img, prep, num_classes=NUM_CLASSES))
    assert out.shape == (B, NUM_CLASSES), out.shape

    ref = jax.block_until_ready(model_forward_ref(img, params))
    max_err = float(jnp.max(jnp.abs(out - ref)))
    if max_err > 1e-2:
        raise AssertionError(f"Pallas kernel mismatch vs reference, max_err={max_err}")
    print("KERNEL_OK")
</pallas_src>

<mosaic_0001>
module attributes {stable_mosaic.version = 11 : i64} {
  func.func @_fused_model_kernel(%arg0: i32, %arg1: memref<1x1014x128xbf16, #tpu.memory_space<vmem>>, %arg2: memref<5x128x128xbf16, #tpu.memory_space<vmem>>, %arg3: memref<5x128x128xbf16, #tpu.memory_space<vmem>>, %arg4: memref<5x128x128xbf16, #tpu.memory_space<vmem>>, %arg5: memref<3x128xf32, #tpu.memory_space<vmem>>, %arg6: memref<3x128xf32, #tpu.memory_space<vmem>>, %arg7: memref<128x128xbf16, #tpu.memory_space<vmem>>, %arg8: memref<1x128xf32, #tpu.memory_space<vmem>>, %arg9: memref<128x128xbf16, #tpu.memory_space<vmem>>, %arg10: memref<1x128xf32, #tpu.memory_space<vmem>>, %arg11: memref<1x1x128xf32, #tpu.memory_space<vmem>>, %arg12: memref<1010x128xf32, #tpu.memory_space<vmem>>, %arg13: memref<202x128xbf16, #tpu.memory_space<vmem>>, %arg14: memref<198x128xf32, #tpu.memory_space<vmem>>, %arg15: memref<39x128xbf16, #tpu.memory_space<vmem>>, %arg16: memref<35x128xf32, #tpu.memory_space<vmem>>) attributes {dimension_semantics = [#tpu.dimension_semantics<parallel>], iteration_bounds = array<i64: 2>, scalar_prefetch = 0 : i64, scratch_operands = 5 : i64, tpu.core_type = #tpu.core_type<tc>, window_params = [{transform_indices = @transform_0, window_bounds = array<i64: 1, 1014, 128>}, {pipeline_mode = #tpu.pipeline_mode<synchronous>, transform_indices = @transform_1, window_bounds = array<i64: 5, 128, 128>}, {pipeline_mode = #tpu.pipeline_mode<synchronous>, transform_indices = @transform_2, window_bounds = array<i64: 5, 128, 128>}, {pipeline_mode = #tpu.pipeline_mode<synchronous>, transform_indices = @transform_3, window_bounds = array<i64: 5, 128, 128>}, {pipeline_mode = #tpu.pipeline_mode<synchronous>, transform_indices = @transform_4, window_bounds = array<i64: 3, 128>}, {pipeline_mode = #tpu.pipeline_mode<synchronous>, transform_indices = @transform_5, window_bounds = array<i64: 3, 128>}, {pipeline_mode = #tpu.pipeline_mode<synchronous>, transform_indices = @transform_6, window_bounds = array<i64: 128, 128>}, {pipeline_mode = #tpu.pipeline_mode<synchronous>, transform_indices = @transform_7, window_bounds = array<i64: 1, 128>}, {pipeline_mode = #tpu.pipeline_mode<synchronous>, transform_indices = @transform_8, window_bounds = array<i64: 128, 128>}, {pipeline_mode = #tpu.pipeline_mode<synchronous>, transform_indices = @transform_9, window_bounds = array<i64: 1, 128>}, {transform_indices = @transform_10, window_bounds = array<i64: 1, 1, 128>}]} {
    %c0 = arith.constant 0 : index
    %c0_0 = arith.constant 0 : index
    %0 = vector.load %arg5[%c0, %c0_0] : memref<3x128xf32, #tpu.memory_space<vmem>>, vector<1x128xf32>
    %c0_1 = arith.constant 0 : index
    %c0_2 = arith.constant 0 : index
    %1 = vector.load %arg6[%c0_1, %c0_2] : memref<3x128xf32, #tpu.memory_space<vmem>>, vector<1x128xf32>
    %c0_3 = arith.constant 0 : index
    %c0_4 = arith.constant 0 : index
    %c0_5 = arith.constant 0 : index
    %2 = vector.load %arg1[%c0_3, %c0_4, %c0_5] : memref<1x1014x128xbf16, #tpu.memory_space<vmem>>, vector<1x256x128xbf16>
    %3 = vector.shape_cast %2 : vector<1x256x128xbf16> to vector<256x128xbf16>
    %c0_6 = arith.constant 0 : index
    %c0_7 = arith.constant 0 : index
    %c0_8 = arith.constant 0 : index
    %4 = vector.load %arg2[%c0_6, %c0_7, %c0_8] : memref<5x128x128xbf16, #tpu.memory_space<vmem>>, vector<1x128x128xbf16>
    %5 = vector.shape_cast %4 : vector<1x128x128xbf16> to vector<128x128xbf16>
    %cst = arith.constant dense<0.000000e+00> : vector<256x128xf32>
    %6 = tpu.matmul %3, %5, %cst {dimension_numbers = #tpu.dot_dimension_numbers<[1], [0], [0], [1], [0, 0, 1, 1], [], []>} : vector<256x128xbf16>, vector<128x128xbf16>, vector<256x128xf32> -> vector<256x128xf32>
    %c0_9 = arith.constant 0 : index
    %c1 = arith.constant 1 : index
    %c0_10 = arith.constant 0 : index
    %7 = vector.load %arg1[%c0_9, %c1, %c0_10] : memref<1x1014x128xbf16, #tpu.memory_space<vmem>>, vector<1x256x128xbf16>
    %8 = vector.shape_cast %7 : vector<1x256x128xbf16> to vector<256x128xbf16>
    %c1_11 = arith.constant 1 : index
    %c0_12 = arith.constant 0 : index
    %c0_13 = arith.constant 0 : index
    %9 = vector.load %arg2[%c1_11, %c0_12, %c0_13] : memref<5x128x128xbf16, #tpu.memory_space<vmem>>, vector<1x128x128xbf16>
    %10 = vector.shape_cast %9 : vector<1x128x128xbf16> to vector<128x128xbf16>
    %cst_14 = arith.constant dense<0.000000e+00> : vector<256x128xf32>
    %11 = tpu.matmul %8, %10, %cst_14 {dimension_numbers = #tpu.dot_dimension_numbers<[1], [0], [0], [1], [0, 0, 1, 1], [], []>} : vector<256x128xbf16>, vector<128x128xbf16>, vector<256x128xf32> -> vector<256x128xf32>
    %12 = arith.addf %6, %11 : vector<256x128xf32>
    %c0_15 = arith.constant 0 : index
    %c2 = arith.constant 2 : index
    %c0_16 = arith.constant 0 : index
    %13 = vector.load %arg1[%c0_15, %c2, %c0_16] : memref<1x1014x128xbf16, #tpu.memory_space<vmem>>, vector<1x256x128xbf16>
    %14 = vector.shape_cast %13 : vector<1x256x128xbf16> to vector<256x128xbf16>
    %c2_17 = arith.constant 2 : index
    %c0_18 = arith.constant 0 : index
    %c0_19 = arith.constant 0 : index
    %15 = vector.load %arg2[%c2_17, %c0_18, %c0_19] : memref<5x128x128xbf16, #tpu.memory_space<vmem>>, vector<1x128x128xbf16>
    %16 = vector.shape_cast %15 : vector<1x128x128xbf16> to vector<128x128xbf16>
    %cst_20 = arith.constant dense<0.000000e+00> : vector<256x128xf32>
    %17 = tpu.matmul %14, %16, %cst_20 {dimension_numbers = #tpu.dot_dimension_numbers<[1], [0], [0], [1], [0, 0, 1, 1], [], []>} : vector<256x128xbf16>, vector<128x128xbf16>, vector<256x128xf32> -> vector<256x128xf32>
    %18 = arith.addf %12, %17 : vector<256x128xf32>
    %c0_21 = arith.constant 0 : index
    %c3 = arith.constant 3 : index
    %c0_22 = arith.constant 0 : index
    %19 = vector.load %arg1[%c0_21, %c3, %c0_22] : memref<1x1014x128xbf16, #tpu.memory_space<vmem>>, vector<1x256x128xbf16>
    %20 = vector.shape_cast %19 : vector<1x256x128xbf16> to vector<256x128xbf16>
    %c3_23 = arith.constant 3 : index
    %c0_24 = arith.constant 0 : index
    %c0_25 = arith.constant 0 : index
    %21 = vector.load %arg2[%c3_23, %c0_24, %c0_25] : memref<5x128x128xbf16, #tpu.memory_space<vmem>>, vector<1x128x128xbf16>
    %22 = vector.shape_cast %21 : vector<1x128x128xbf16> to vector<128x128xbf16>
    %cst_26 = arith.constant dense<0.000000e+00> : vector<256x128xf32>
    %23 = tpu.matmul %20, %22, %cst_26 {dimension_numbers = #tpu.dot_dimension_numbers<[1], [0], [0], [1], [0, 0, 1, 1], [], []>} : vector<256x128xbf16>, vector<128x128xbf16>, vector<256x128xf32> -> vector<256x128xf32>
    %24 = arith.addf %18, %23 : vector<256x128xf32>
    %c0_27 = arith.constant 0 : index
    %c4 = arith.constant 4 : index
    %c0_28 = arith.constant 0 : index
    %25 = vector.load %arg1[%c0_27, %c4, %c0_28] : memref<1x1014x128xbf16, #tpu.memory_space<vmem>>, vector<1x256x128xbf16>
    %26 = vector.shape_cast %25 : vector<1x256x128xbf16> to vector<256x128xbf16>
    %c4_29 = arith.constant 4 : index
    %c0_30 = arith.constant 0 : index
    %c0_31 = arith.constant 0 : index
    %27 = vector.load %arg2[%c4_29, %c0_30, %c0_31] : memref<5x128x128xbf16, #tpu.memory_space<vmem>>, vector<1x128x128xbf16>
    %28 = vector.shape_cast %27 : vector<1x128x128xbf16> to vector<128x128xbf16>
    %cst_32 = arith.constant dense<0.000000e+00> : vector<256x128xf32>
    %29 = tpu.matmul %26, %28, %cst_32 {dimension_numbers = #tpu.dot_dimension_numbers<[1], [0], [0], [1], [0, 0, 1, 1], [], []>} : vector<256x128xbf16>, vector<128x128xbf16>, vector<256x128xf32> -> vector<256x128xf32>
    %30 = arith.addf %24, %29 : vector<256x128xf32>
    %31 = vector.broadcast %0 : vector<1x128xf32> to vector<256x128xf32>
    %32 = arith.mulf %30, %31 : vector<256x128xf32>
    %33 = vector.broadcast %1 : vector<1x128xf32> to vector<256x128xf32>
    %34 = arith.addf %32, %33 : vector<256x128xf32>
    %cst_33 = arith.constant 0.000000e+00 : f32
    %35 = vector.broadcast %cst_33 : f32 to vector<256x128xf32>
    %36 = arith.maximumf %34, %35 : vector<256x128xf32>
    %c0_34 = arith.constant 0 : index
    %c0_35 = arith.constant 0 : index
    %37 = vector.load %arg12[%c0_34, %c0_35] : memref<1010x128xf32, #tpu.memory_space<vmem>>, vector<256x128xf32>
    tpu.vector_store %arg12[%c0_34, %c0_35], %36 {strides = array<i32>} : memref<1010x128xf32, #tpu.memory_space<vmem>>, vector<256x128xf32>,
    %c0_36 = arith.constant 0 : index
    %c256 = arith.constant 256 : index
    %c0_37 = arith.constant 0 : index
    %38 = vector.load %arg1[%c0_36, %c256, %c0_37] : memref<1x1014x128xbf16, #tpu.memory_space<vmem>>, vector<1x256x128xbf16>
    %39 = vector.shape_cast %38 : vector<1x256x128xbf16> to vector<256x128xbf16>
    %c0_38 = arith.constant 0 : index
    %c0_39 = arith.constant 0 : index
    %c0_40 = arith.constant 0 : index
    %40 = vector.load %arg2[%c0_38, %c0_39, %c0_40] : memref<5x128x128xbf16, #tpu.memory_space<vmem>>, vector<1x128x128xbf16>
    %41 = vector.shape_cast %40 : vector<1x128x128xbf16> to vector<128x128xbf16>
    %cst_41 = arith.constant dense<0.000000e+00> : vector<256x128xf32>
    %42 = tpu.matmul %39, %41, %cst_41 {dimension_numbers = #tpu.dot_dimension_numbers<[1], [0], [0], [1], [0, 0, 1, 1], [], []>} : vector<256x128xbf16>, vector<128x128xbf16>, vector<256x128xf32> -> vector<256x128xf32>
    %c0_42 = arith.constant 0 : index
    %c257 = arith.constant 257 : index
    %c0_43 = arith.constant 0 : index
    %43 = vector.load %arg1[%c0_42, %c257, %c0_43] : memref<1x1014x128xbf16, #tpu.memory_space<vmem>>, vector<1x256x128xbf16>
    %44 = vector.shape_cast %43 : vector<1x256x128xbf16> to vector<256x128xbf16>
    %c1_44 = arith.constant 1 : index
    %c0_45 = arith.constant 0 : index
    %c0_46 = arith.constant 0 : index
    %45 = vector.load %arg2[%c1_44, %c0_45, %c0_46] : memref<5x128x128xbf16, #tpu.memory_space<vmem>>, vector<1x128x128xbf16>
    %46 = vector.shape_cast %45 : vector<1x128x128xbf16> to vector<128x128xbf16>
    %cst_47 = arith.constant dense<0.000000e+00> : vector<256x128xf32>
    %47 = tpu.matmul %44, %46, %cst_47 {dimension_numbers = #tpu.dot_dimension_numbers<[1], [0], [0], [1], [0, 0, 1, 1], [], []>} : vector<256x128xbf16>, vector<128x128xbf16>, vector<256x128xf32> -> vector<256x128xf32>
    %48 = arith.addf %42, %47 : vector<256x128xf32>
    %c0_48 = arith.constant 0 : index
    %c258 = arith.constant 258 : index
    %c0_49 = arith.constant 0 : index
    %49 = vector.load %arg1[%c0_48, %c258, %c0_49] : memref<1x1014x128xbf16, #tpu.memory_space<vmem>>, vector<1x256x128xbf16>
    %50 = vector.shape_cast %49 : vector<1x256x128xbf16> to vector<256x128xbf16>
    %c2_50 = arith.constant 2 : index
    %c0_51 = arith.constant 0 : index
    %c0_52 = arith.constant 0 : index
    %51 = vector.load %arg2[%c2_50, %c0_51, %c0_52] : memref<5x128x128xbf16, #tpu.memory_space<vmem>>, vector<1x128x128xbf16>
    %52 = vector.shape_cast %51 : vector<1x128x128xbf16> to vector<128x128xbf16>
    %cst_53 = arith.constant dense<0.000000e+00> : vector<256x128xf32>
    %53 = tpu.matmul %50, %52, %cst_53 {dimension_numbers = #tpu.dot_dimension_numbers<[1], [0], [0], [1], [0, 0, 1, 1], [], []>} : vector<256x128xbf16>, vector<128x128xbf16>, vector<256x128xf32> -> vector<256x128xf32>
    %54 = arith.addf %48, %53 : vector<256x128xf32>
    %c0_54 = arith.constant 0 : index
    %c259 = arith.constant 259 : index
    %c0_55 = arith.constant 0 : index
    %55 = vector.load %arg1[%c0_54, %c259, %c0_55] : memref<1x1014x128xbf16, #tpu.memory_space<vmem>>, vector<1x256x128xbf16>
    %56 = vector.shape_cast %55 : vector<1x256x128xbf16> to vector<256x128xbf16>
    %c3_56 = arith.constant 3 : index
    %c0_57 = arith.constant 0 : index
    %c0_58 = arith.constant 0 : index
    %57 = vector.load %arg2[%c3_56, %c0_57, %c0_58] : memref<5x128x128xbf16, #tpu.memory_space<vmem>>, vector<1x128x128xbf16>
    %58 = vector.shape_cast %57 : vector<1x128x128xbf16> to vector<128x128xbf16>
    %cst_59 = arith.constant dense<0.000000e+00> : vector<256x128xf32>
    %59 = tpu.matmul %56, %58, %cst_59 {dimension_numbers = #tpu.dot_dimension_numbers<[1], [0], [0], [1], [0, 0, 1, 1], [], []>} : vector<256x128xbf16>, vector<128x128xbf16>, vector<256x128xf32> -> vector<256x128xf32>
    %60 = arith.addf %54, %59 : vector<256x128xf32>
    %c0_60 = arith.constant 0 : index
    %c260 = arith.constant 260 : index
    %c0_61 = arith.constant 0 : index
    %61 = vector.load %arg1[%c0_60, %c260, %c0_61] : memref<1x1014x128xbf16, #tpu.memory_space<vmem>>, vector<1x256x128xbf16>
    %62 = vector.shape_cast %61 : vector<1x256x128xbf16> to vector<256x128xbf16>
    %c4_62 = arith.constant 4 : index
    %c0_63 = arith.constant 0 : index
    %c0_64 = arith.constant 0 : index
    %63 = vector.load %arg2[%c4_62, %c0_63, %c0_64] : memref<5x128x128xbf16, #tpu.memory_space<vmem>>, vector<1x128x128xbf16>
    %64 = vector.shape_cast %63 : vector<1x128x128xbf16> to vector<128x128xbf16>
    %cst_65 = arith.constant dense<0.000000e+00> : vector<256x128xf32>
    %65 = tpu.matmul %62, %64, %cst_65 {dimension_numbers = #tpu.dot_dimension_numbers<[1], [0], [0], [1], [0, 0, 1, 1], [], []>} : vector<256x128xbf16>, vector<128x128xbf16>, vector<256x128xf32> -> vector<256x128xf32>
    %66 = arith.addf %60, %65 : vector<256x128xf32>
    %67 = vector.broadcast %0 : vector<1x128xf32> to vector<256x128xf32>
    %68 = arith.mulf %66, %67 : vector<256x128xf32>
    %69 = vector.broadcast %1 : vector<1x128xf32> to vector<256x128xf32>
    %70 = arith.addf %68, %69 : vector<256x128xf32>
    %cst_66 = arith.constant 0.000000e+00 : f32
    %71 = vector.broadcast %cst_66 : f32 to vector<256x128xf32>
    %72 = arith.maximumf %70, %71 : vector<256x128xf32>
    %c256_67 = arith.constant 256 : index
    %c0_68 = arith.constant 0 : index
    %73 = vector.load %arg12[%c256_67, %c0_68] : memref<1010x128xf32, #tpu.memory_space<vmem>>, vector<256x128xf32>
    tpu.vector_store %arg12[%c256_67, %c0_68], %72 {strides = array<i32>} : memref<1010x128xf32, #tpu.memory_space<vmem>>, vector<256x128xf32>,
    %c0_69 = arith.constant 0 : index
    %c512 = arith.constant 512 : index
    %c0_70 = arith.constant 0 : index
    %74 = vector.load %arg1[%c0_69, %c512, %c0_70] : memref<1x1014x128xbf16, #tpu.memory_space<vmem>>, vector<1x256x128xbf16>
    %75 = vector.shape_cast %74 : vector<1x256x128xbf16> to vector<256x128xbf16>
    %c0_71 = arith.constant 0 : index
    %c0_72 = arith.constant 0 : index
    %c0_73 = arith.constant 0 : index
    %76 = vector.load %arg2[%c0_71, %c0_72, %c0_73] : memref<5x128x128xbf16, #tpu.memory_space<vmem>>, vector<1x128x128xbf16>
    %77 = vector.shape_cast %76 : vector<1x128x128xbf16> to vector<128x128xbf16>
    %cst_74 = arith.constant dense<0.000000e+00> : vector<256x128xf32>
    %78 = tpu.matmul %75, %77, %cst_74 {dimension_numbers = #tpu.dot_dimension_numbers<[1], [0], [0], [1], [0, 0, 1, 1], [], []>} : vector<256x128xbf16>, vector<128x128xbf16>, vector<256x128xf32> -> vector<256x128xf32>
    %c0_75 = arith.constant 0 : index
    %c513 = arith.constant 513 : index
    %c0_76 = arith.constant 0 : index
    %79 = vector.load %arg1[%c0_75, %c513, %c0_76] : memref<1x1014x128xbf16, #tpu.memory_space<vmem>>, vector<1x256x128xbf16>
    %80 = vector.shape_cast %79 : vector<1x256x128xbf16> to vector<256x128xbf16>
    %c1_77 = arith.constant 1 : index
    %c0_78 = arith.constant 0 : index
    %c0_79 = arith.constant 0 : index
    %81 = vector.load %arg2[%c1_77, %c0_78, %c0_79] : memref<5x128x128xbf16, #tpu.memory_space<vmem>>, vector<1x128x128xbf16>
    %82 = vector.shape_cast %81 : vector<1x128x128xbf16> to vector<128x128xbf16>
    %cst_80 = arith.constant dense<0.000000e+00> : vector<256x128xf32>
    %83 = tpu.matmul %80, %82, %cst_80 {dimension_numbers = #tpu.dot_dimension_numbers<[1], [0], [0], [1], [0, 0, 1, 1], [], []>} : vector<256x128xbf16>, vector<128x128xbf16>, vector<256x128xf32> -> vector<256x128xf32>
    %84 = arith.addf %78, %83 : vector<256x128xf32>
    %c0_81 = arith.constant 0 : index
    %c514 = arith.constant 514 : index
    %c0_82 = arith.constant 0 : index
    %85 = vector.load %arg1[%c0_81, %c514, %c0_82] : memref<1x1014x128xbf16, #tpu.memory_space<vmem>>, vector<1x256x128xbf16>
    %86 = vector.shape_cast %85 : vector<1x256x128xbf16> to vector<256x128xbf16>
    %c2_83 = arith.constant 2 : index
    %c0_84 = arith.constant 0 : index
    %c0_85 = arith.constant 0 : index
    %87 = vector.load %arg2[%c2_83, %c0_84, %c0_85] : memref<5x128x128xbf16, #tpu.memory_space<vmem>>, vector<1x128x128xbf16>
    %88 = vector.shape_cast %87 : vector<1x128x128xbf16> to vector<128x128xbf16>
    %cst_86 = arith.constant dense<0.000000e+00> : vector<256x128xf32>
    %89 = tpu.matmul %86, %88, %cst_86 {dimension_numbers = #tpu.dot_dimension_numbers<[1], [0], [0], [1], [0, 0, 1, 1], [], []>} : vector<256x128xbf16>, vector<128x128xbf16>, vector<256x128xf32> -> vector<256x128xf32>
    %90 = arith.addf %84, %89 : vector<256x128xf32>
    %c0_87 = arith.constant 0 : index
    %c515 = arith.constant 515 : index
    %c0_88 = arith.constant 0 : index
    %91 = vector.load %arg1[%c0_87, %c515, %c0_88] : memref<1x1014x128xbf16, #tpu.memory_space<vmem>>, vector<1x256x128xbf16>
    %92 = vector.shape_cast %91 : vector<1x256x128xbf16> to vector<256x128xbf16>
    %c3_89 = arith.constant 3 : index
    %c0_90 = arith.constant 0 : index
    %c0_91 = arith.constant 0 : index
    %93 = vector.load %arg2[%c3_89, %c0_90, %c0_91] : memref<5x128x128xbf16, #tpu.memory_space<vmem>>, vector<1x128x128xbf16>
    %94 = vector.shape_cast %93 : vector<1x128x128xbf16> to vector<128x128xbf16>
    %cst_92 = arith.constant dense<0.000000e+00> : vector<256x128xf32>
    %95 = tpu.matmul %92, %94, %cst_92 {dimension_numbers = #tpu.dot_dimension_numbers<[1], [0], [0], [1], [0, 0, 1, 1], [], []>} : vector<256x128xbf16>, vector<128x128xbf16>, vector<256x128xf32> -> vector<256x128xf32>
    %96 = arith.addf %90, %95 : vector<256x128xf32>
    %c0_93 = arith.constant 0 : index
    %c516 = arith.constant 516 : index
    %c0_94 = arith.constant 0 : index
    %97 = vector.load %arg1[%c0_93, %c516, %c0_94] : memref<1x1014x128xbf16, #tpu.memory_space<vmem>>, vector<1x256x128xbf16>
    %98 = vector.shape_cast %97 : vector<1x256x128xbf16> to vector<256x128xbf16>
    %c4_95 = arith.constant 4 : index
    %c0_96 = arith.constant 0 : index
    %c0_97 = arith.constant 0 : index
    %99 = vector.load %arg2[%c4_95, %c0_96, %c0_97] : memref<5x128x128xbf16, #tpu.memory_space<vmem>>, vector<1x128x128xbf16>
    %100 = vector.shape_cast %99 : vector<1x128x128xbf16> to vector<128x128xbf16>
    %cst_98 = arith.constant dense<0.000000e+00> : vector<256x128xf32>
    %101 = tpu.matmul %98, %100, %cst_98 {dimension_numbers = #tpu.dot_dimension_numbers<[1], [0], [0], [1], [0, 0, 1, 1], [], []>} : vector<256x128xbf16>, vector<128x128xbf16>, vector<256x128xf32> -> vector<256x128xf32>
    %102 = arith.addf %96, %101 : vector<256x128xf32>
    %103 = vector.broadcast %0 : vector<1x128xf32> to vector<256x128xf32>
    %104 = arith.mulf %102, %103 : vector<256x128xf32>
    %105 = vector.broadcast %1 : vector<1x128xf32> to vector<256x128xf32>
    %106 = arith.addf %104, %105 : vector<256x128xf32>
    %cst_99 = arith.constant 0.000000e+00 : f32
    %107 = vector.broadcast %cst_99 : f32 to vector<256x128xf32>
    %108 = arith.maximumf %106, %107 : vector<256x128xf32>
    %c512_100 = arith.constant 512 : index
    %c0_101 = arith.constant 0 : index
    %109 = vector.load %arg12[%c512_100, %c0_101] : memref<1010x128xf32, #tpu.memory_space<vmem>>, vector<256x128xf32>
    tpu.vector_store %arg12[%c512_100, %c0_101], %108 {strides = array<i32>} : memref<1010x128xf32, #tpu.memory_space<vmem>>, vector<256x128xf32>,
    %c0_102 = arith.constant 0 : index
    %c768 = arith.constant 768 : index
    %c0_103 = arith.constant 0 : index
    %110 = vector.load %arg1[%c0_102, %c768, %c0_103] : memref<1x1014x128xbf16, #tpu.memory_space<vmem>>, vector<1x242x128xbf16>
    %111 = vector.shape_cast %110 : vector<1x242x128xbf16> to vector<242x128xbf16>
    %c0_104 = arith.constant 0 : index
    %c0_105 = arith.constant 0 : index
    %c0_106 = arith.constant 0 : index
    %112 = vector.load %arg2[%c0_104, %c0_105, %c0_106] : memref<5x128x128xbf16, #tpu.memory_space<vmem>>, vector<1x128x128xbf16>
    %113 = vector.shape_cast %112 : vector<1x128x128xbf16> to vector<128x128xbf16>
    %cst_107 = arith.constant dense<0.000000e+00> : vector<242x128xf32>
    %114 = tpu.matmul %111, %113, %cst_107 {dimension_numbers = #tpu.dot_dimension_numbers<[1], [0], [0], [1], [0, 0, 1, 1], [], []>} : vector<242x128xbf16>, vector<128x128xbf16>, vector<242x128xf32> -> vector<242x128xf32>
    %c0_108 = arith.constant 0 : index
    %c769 = arith.constant 769 : index
    %c0_109 = arith.constant 0 : index
    %115 = vector.load %arg1[%c0_108, %c769, %c0_109] : memref<1x1014x128xbf16, #tpu.memory_space<vmem>>, vector<1x242x128xbf16>
    %116 = vector.shape_cast %115 : vector<1x242x128xbf16> to vector<242x128xbf16>
    %c1_110 = arith.constant 1 : index
    %c0_111 = arith.constant 0 : index
    %c0_112 = arith.constant 0 : index
    %117 = vector.load %arg2[%c1_110, %c0_111, %c0_112] : memref<5x128x128xbf16, #tpu.memory_space<vmem>>, vector<1x128x128xbf16>
    %118 = vector.shape_cast %117 : vector<1x128x128xbf16> to vector<128x128xbf16>
    %cst_113 = arith.constant dense<0.000000e+00> : vector<242x128xf32>
    %119 = tpu.matmul %116, %118, %cst_113 {dimension_numbers = #tpu.dot_dimension_numbers<[1], [0], [0], [1], [0, 0, 1, 1], [], []>} : vector<242x128xbf16>, vector<128x128xbf16>, vector<242x128xf32> -> vector<242x128xf32>
    %120 = arith.addf %114, %119 : vector<242x128xf32>
    %c0_114 = arith.constant 0 : index
    %c770 = arith.constant 770 : index
    %c0_115 = arith.constant 0 : index
    %121 = vector.load %arg1[%c0_114, %c770, %c0_115] : memref<1x1014x128xbf16, #tpu.memory_space<vmem>>, vector<1x242x128xbf16>
    %122 = vector.shape_cast %121 : vector<1x242x128xbf16> to vector<242x128xbf16>
    %c2_116 = arith.constant 2 : index
    %c0_117 = arith.constant 0 : index
    %c0_118 = arith.constant 0 : index
    %123 = vector.load %arg2[%c2_116, %c0_117, %c0_118] : memref<5x128x128xbf16, #tpu.memory_space<vmem>>, vector<1x128x128xbf16>
    %124 = vector.shape_cast %123 : vector<1x128x128xbf16> to vector<128x128xbf16>
    %cst_119 = arith.constant dense<0.000000e+00> : vector<242x128xf32>
    %125 = tpu.matmul %122, %124, %cst_119 {dimension_numbers = #tpu.dot_dimension_numbers<[1], [0], [0], [1], [0, 0, 1, 1], [], []>} : vector<242x128xbf16>, vector<128x128xbf16>, vector<242x128xf32> -> vector<242x128xf32>
    %126 = arith.addf %120, %125 : vector<242x128xf32>
    %c0_120 = arith.constant 0 : index
    %c771 = arith.constant 771 : index
    %c0_121 = arith.constant 0 : index
    %127 = vector.load %arg1[%c0_120, %c771, %c0_121] : memref<1x1014x128xbf16, #tpu.memory_space<vmem>>, vector<1x242x128xbf16>
    %128 = vector.shape_cast %127 : vector<1x242x128xbf16> to vector<242x128xbf16>
    %c3_122 = arith.constant 3 : index
    %c0_123 = arith.constant 0 : index
    %c0_124 = arith.constant 0 : index
    %129 = vector.load %arg2[%c3_122, %c0_123, %c0_124] : memref<5x128x128xbf16, #tpu.memory_space<vmem>>, vector<1x128x128xbf16>
    %130 = vector.shape_cast %129 : vector<1x128x128xbf16> to vector<128x128xbf16>
    %cst_125 = arith.constant dense<0.000000e+00> : vector<242x128xf32>
    %131 = tpu.matmul %128, %130, %cst_125 {dimension_numbers = #tpu.dot_dimension_numbers<[1], [0], [0], [1], [0, 0, 1, 1], [], []>} : vector<242x128xbf16>, vector<128x128xbf16>, vector<242x128xf32> -> vector<242x128xf32>
    %132 = arith.addf %126, %131 : vector<242x128xf32>
    %c0_126 = arith.constant 0 : index
    %c772 = arith.constant 772 : index
    %c0_127 = arith.constant 0 : index
    %133 = vector.load %arg1[%c0_126, %c772, %c0_127] : memref<1x1014x128xbf16, #tpu.memory_space<vmem>>, vector<1x242x128xbf16>
    %134 = vector.shape_cast %133 : vector<1x242x128xbf16> to vector<242x128xbf16>
    %c4_128 = arith.constant 4 : index
    %c0_129 = arith.constant 0 : index
    %c0_130 = arith.constant 0 : index
    %135 = vector.load %arg2[%c4_128, %c0_129, %c0_130] : memref<5x128x128xbf16, #tpu.memory_space<vmem>>, vector<1x128x128xbf16>
    %136 = vector.shape_cast %135 : vector<1x128x128xbf16> to vector<128x128xbf16>
    %cst_131 = arith.constant dense<0.000000e+00> : vector<242x128xf32>
    %137 = tpu.matmul %134, %136, %cst_131 {dimension_numbers = #tpu.dot_dimension_numbers<[1], [0], [0], [1], [0, 0, 1, 1], [], []>} : vector<242x128xbf16>, vector<128x128xbf16>, vector<242x128xf32> -> vector<242x128xf32>
    %138 = arith.addf %132, %137 : vector<242x128xf32>
    %139 = vector.broadcast %0 : vector<1x128xf32> to vector<242x128xf32>
    %140 = arith.mulf %138, %139 : vector<242x128xf32>
    %141 = vector.broadcast %1 : vector<1x128xf32> to vector<242x128xf32>
    %142 = arith.addf %140, %141 : vector<242x128xf32>
    %cst_132 = arith.constant 0.000000e+00 : f32
    %143 = vector.broadcast %cst_132 : f32 to vector<242x128xf32>
    %144 = arith.maximumf %142, %143 : vector<242x128xf32>
    %c768_133 = arith.constant 768 : index
    %c0_134 = arith.constant 0 : index
    %145 = vector.load %arg12[%c768_133, %c0_134] : memref<1010x128xf32, #tpu.memory_space<vmem>>, vector<242x128xf32>
    tpu.vector_store %arg12[%c768_133, %c0_134], %144 {strides = array<i32>} : memref<1010x128xf32, #tpu.memory_space<vmem>>, vector<242x128xf32>,
    %c0_135 = arith.constant 0 : index
    %c0_136 = arith.constant 0 : index
    %146 = tpu.strided_load %arg12[%c0_135, %c0_136] {strides = array<i32: 5, 1>} : memref<1010x128xf32, #tpu.memory_space<vmem>>, vector<202x128xf32>
    %c1_137 = arith.constant 1 : index
    %c0_138 = arith.constant 0 : index
    %147 = tpu.strided_load %arg12[%c1_137, %c0_138] {strides = array<i32: 5, 1>} : memref<1010x128xf32, #tpu.memory_space<vmem>>, vector<202x128xf32>
    %148 = arith.maximumf %146, %147 : vector<202x128xf32>
    %c2_139 = arith.constant 2 : index
    %c0_140 = arith.constant 0 : index
    %149 = tpu.strided_load %arg12[%c2_139, %c0_140] {strides = array<i32: 5, 1>} : memref<1010x128xf32, #tpu.memory_space<vmem>>, vector<202x128xf32>
    %150 = arith.maximumf %148, %149 : vector<202x128xf32>
    %c3_141 = arith.constant 3 : index
    %c0_142 = arith.constant 0 : index
    %151 = tpu.strided_load %arg12[%c3_141, %c0_142] {strides = array<i32: 5, 1>} : memref<1010x128xf32, #tpu.memory_space<vmem>>, vector<202x128xf32>
    %152 = arith.maximumf %150, %151 : vector<202x128xf32>
    %c4_143 = arith.constant 4 : index
    %c0_144 = arith.constant 0 : index
    %153 = tpu.strided_load %arg12[%c4_143, %c0_144] {strides = array<i32: 5, 1>} : memref<1010x128xf32, #tpu.memory_space<vmem>>, vector<202x128xf32>
    %154 = arith.maximumf %152, %153 : vector<202x128xf32>
    %155 = arith.truncf %154 : vector<202x128xf32> to vector<202x128xbf16>
    %c0_145 = arith.constant 0 : index
    %c0_146 = arith.constant 0 : index
    %156 = vector.load %arg13[%c0_145, %c0_146] : memref<202x128xbf16, #tpu.memory_space<vmem>>, vector<202x128xbf16>
    tpu.vector_store %arg13[%c0_145, %c0_146], %155 {strides = array<i32>} : memref<202x128xbf16, #tpu.memory_space<vmem>>, vector<202x128xbf16>,
    %c1_147 = arith.constant 1 : index
    %c0_148 = arith.constant 0 : index
    %157 = vector.load %arg5[%c1_147, %c0_148] : memref<3x128xf32, #tpu.memory_space<vmem>>, vector<1x128xf32>
    %c1_149 = arith.constant 1 : index
    %c0_150 = arith.constant 0 : index
    %158 = vector.load %arg6[%c1_149, %c0_150] : memref<3x128xf32, #tpu.memory_space<vmem>>, vector<1x128xf32>
    %c0_151 = arith.constant 0 : index
    %c0_152 = arith.constant 0 : index
    %159 = vector.load %arg13[%c0_151, %c0_152] : memref<202x128xbf16, #tpu.memory_space<vmem>>, vector<198x128xbf16>
    %c0_153 = arith.constant 0 : index
    %c0_154 = arith.constant 0 : index
    %c0_155 = arith.constant 0 : index
    %160 = vector.load %arg3[%c0_153, %c0_154, %c0_155] : memref<5x128x128xbf16, #tpu.memory_space<vmem>>, vector<1x128x128xbf16>
    %161 = vector.shape_cast %160 : vector<1x128x128xbf16> to vector<128x128xbf16>
    %cst_156 = arith.constant dense<0.000000e+00> : vector<198x128xf32>
    %162 = tpu.matmul %159, %161, %cst_156 {dimension_numbers = #tpu.dot_dimension_numbers<[1], [0], [0], [1], [0, 0, 1, 1], [], []>} : vector<198x128xbf16>, vector<128x128xbf16>, vector<198x128xf32> -> vector<198x128xf32>
    %c1_157 = arith.constant 1 : index
    %c0_158 = arith.constant 0 : index
    %163 = vector.load %arg13[%c1_157, %c0_158] : memref<202x128xbf16, #tpu.memory_space<vmem>>, vector<198x128xbf16>
    %c1_159 = arith.constant 1 : index
    %c0_160 = arith.constant 0 : index
    %c0_161 = arith.constant 0 : index
    %164 = vector.load %arg3[%c1_159, %c0_160, %c0_161] : memref<5x128x128xbf16, #tpu.memory_space<vmem>>, vector<1x128x128xbf16>
    %165 = vector.shape_cast %164 : vector<1x128x128xbf16> to vector<128x128xbf16>
    %cst_162 = arith.constant dense<0.000000e+00> : vector<198x128xf32>
    %166 = tpu.matmul %163, %165, %cst_162 {dimension_numbers = #tpu.dot_dimension_numbers<[1], [0], [0], [1], [0, 0, 1, 1], [], []>} : vector<198x128xbf16>, vector<128x128xbf16>, vector<198x128xf32> -> vector<198x128xf32>
    %167 = arith.addf %162, %166 : vector<198x128xf32>
    %c2_163 = arith.constant 2 : index
    %c0_164 = arith.constant 0 : index
    %168 = vector.load %arg13[%c2_163, %c0_164] : memref<202x128xbf16, #tpu.memory_space<vmem>>, vector<198x128xbf16>
    %c2_165 = arith.constant 2 : index
    %c0_166 = arith.constant 0 : index
    %c0_167 = arith.constant 0 : index
    %169 = vector.load %arg3[%c2_165, %c0_166, %c0_167] : memref<5x128x128xbf16, #tpu.memory_space<vmem>>, vector<1x128x128xbf16>
    %170 = vector.shape_cast %169 : vector<1x128x128xbf16> to vector<128x128xbf16>
    %cst_168 = arith.constant dense<0.000000e+00> : vector<198x128xf32>
    %171 = tpu.matmul %168, %170, %cst_168 {dimension_numbers = #tpu.dot_dimension_numbers<[1], [0], [0], [1], [0, 0, 1, 1], [], []>} : vector<198x128xbf16>, vector<128x128xbf16>, vector<198x128xf32> -> vector<198x128xf32>
    %172 = arith.addf %167, %171 : vector<198x128xf32>
    %c3_169 = arith.constant 3 : index
    %c0_170 = arith.constant 0 : index
    %173 = vector.load %arg13[%c3_169, %c0_170] : memref<202x128xbf16, #tpu.memory_space<vmem>>, vector<198x128xbf16>
    %c3_171 = arith.constant 3 : index
    %c0_172 = arith.constant 0 : index
    %c0_173 = arith.constant 0 : index
    %174 = vector.load %arg3[%c3_171, %c0_172, %c0_173] : memref<5x128x128xbf16, #tpu.memory_space<vmem>>, vector<1x128x128xbf16>
    %175 = vector.shape_cast %174 : vector<1x128x128xbf16> to vector<128x128xbf16>
    %cst_174 = arith.constant dense<0.000000e+00> : vector<198x128xf32>
    %176 = tpu.matmul %173, %175, %cst_174 {dimension_numbers = #tpu.dot_dimension_numbers<[1], [0], [0], [1], [0, 0, 1, 1], [], []>} : vector<198x128xbf16>, vector<128x128xbf16>, vector<198x128xf32> -> vector<198x128xf32>
    %177 = arith.addf %172, %176 : vector<198x128xf32>
    %c4_175 = arith.constant 4 : index
    %c0_176 = arith.constant 0 : index
    %178 = vector.load %arg13[%c4_175, %c0_176] : memref<202x128xbf16, #tpu.memory_space<vmem>>, vector<198x128xbf16>
    %c4_177 = arith.constant 4 : index
    %c0_178 = arith.constant 0 : index
    %c0_179 = arith.constant 0 : index
    %179 = vector.load %arg3[%c4_177, %c0_178, %c0_179] : memref<5x128x128xbf16, #tpu.memory_space<vmem>>, vector<1x128x128xbf16>
    %180 = vector.shape_cast %179 : vector<1x128x128xbf16> to vector<128x128xbf16>
    %cst_180 = arith.constant dense<0.000000e+00> : vector<198x128xf32>
    %181 = tpu.matmul %178, %180, %cst_180 {dimension_numbers = #tpu.dot_dimension_numbers<[1], [0], [0], [1], [0, 0, 1, 1], [], []>} : vector<198x128xbf16>, vector<128x128xbf16>, vector<198x128xf32> -> vector<198x128xf32>
    %182 = arith.addf %177, %181 : vector<198x128xf32>
    %183 = vector.broadcast %157 : vector<1x128xf32> to vector<198x128xf32>
    %184 = arith.mulf %182, %183 : vector<198x128xf32>
    %185 = vector.broadcast %158 : vector<1x128xf32> to vector<198x128xf32>
    %186 = arith.addf %184, %185 : vector<198x128xf32>
    %cst_181 = arith.constant 0.000000e+00 : f32
    %187 = vector.broadcast %cst_181 : f32 to vector<198x128xf32>
    %188 = arith.maximumf %186, %187 : vector<198x128xf32>
    %c0_182 = arith.constant 0 : index
    %c0_183 = arith.constant 0 : index
    %189 = vector.load %arg14[%c0_182, %c0_183] : memref<198x128xf32, #tpu.memory_space<vmem>>, vector<198x128xf32>
    tpu.vector_store %arg14[%c0_182, %c0_183], %188 {strides = array<i32>} : memref<198x128xf32, #tpu.memory_space<vmem>>, vector<198x128xf32>,
    %c0_184 = arith.constant 0 : index
    %c0_185 = arith.constant 0 : index
    %190 = tpu.strided_load %arg14[%c0_184, %c0_185] {strides = array<i32: 5, 1>} : memref<198x128xf32, #tpu.memory_space<vmem>>, vector<39x128xf32>
    %c1_186 = arith.constant 1 : index
    %c0_187 = arith.constant 0 : index
    %191 = tpu.strided_load %arg14[%c1_186, %c0_187] {strides = array<i32: 5, 1>} : memref<198x128xf32, #tpu.memory_space<vmem>>, vector<39x128xf32>
    %192 = arith.maximumf %190, %191 : vector<39x128xf32>
    %c2_188 = arith.constant 2 : index
    %c0_189 = arith.constant 0 : index
    %193 = tpu.strided_load %arg14[%c2_188, %c0_189] {strides = array<i32: 5, 1>} : memref<198x128xf32, #tpu.memory_space<vmem>>, vector<39x128xf32>
    %194 = arith.maximumf %192, %193 : vector<39x128xf32>
    %c3_190 = arith.constant 3 : index
    %c0_191 = arith.constant 0 : index
    %195 = tpu.strided_load %arg14[%c3_190, %c0_191] {strides = array<i32: 5, 1>} : memref<198x128xf32, #tpu.memory_space<vmem>>, vector<39x128xf32>
    %196 = arith.maximumf %194, %195 : vector<39x128xf32>
    %c4_192 = arith.constant 4 : index
    %c0_193 = arith.constant 0 : index
    %197 = tpu.strided_load %arg14[%c4_192, %c0_193] {strides = array<i32: 5, 1>} : memref<198x128xf32, #tpu.memory_space<vmem>>, vector<39x128xf32>
    %198 = arith.maximumf %196, %197 : vector<39x128xf32>
    %199 = arith.truncf %198 : vector<39x128xf32> to vector<39x128xbf16>
    %c0_194 = arith.constant 0 : index
    %c0_195 = arith.constant 0 : index
    %200 = vector.load %arg15[%c0_194, %c0_195] : memref<39x128xbf16, #tpu.memory_space<vmem>>, vector<39x128xbf16>
    tpu.vector_store %arg15[%c0_194, %c0_195], %199 {strides = array<i32>} : memref<39x128xbf16, #tpu.memory_space<vmem>>, vector<39x128xbf16>,
    %c2_196 = arith.constant 2 : index
    %c0_197 = arith.constant 0 : index
    %201 = vector.load %arg5[%c2_196, %c0_197] : memref<3x128xf32, #tpu.memory_space<vmem>>, vector<1x128xf32>
    %c2_198 = arith.constant 2 : index
    %c0_199 = arith.constant 0 : index
    %202 = vector.load %arg6[%c2_198, %c0_199] : memref<3x128xf32, #tpu.memory_space<vmem>>, vector<1x128xf32>
    %c0_200 = arith.constant 0 : index
    %c0_201 = arith.constant 0 : index
    %203 = vector.load %arg15[%c0_200, %c0_201] : memref<39x128xbf16, #tpu.memory_space<vmem>>, vector<35x128xbf16>
    %c0_202 = arith.constant 0 : index
    %c0_203 = arith.constant 0 : index
    %c0_204 = arith.constant 0 : index
    %204 = vector.load %arg4[%c0_202, %c0_203, %c0_204] : memref<5x128x128xbf16, #tpu.memory_space<vmem>>, vector<1x128x128xbf16>
    %205 = vector.shape_cast %204 : vector<1x128x128xbf16> to vector<128x128xbf16>
    %cst_205 = arith.constant dense<0.000000e+00> : vector<35x128xf32>
    %206 = tpu.matmul %203, %205, %cst_205 {dimension_numbers = #tpu.dot_dimension_numbers<[1], [0], [0], [1], [0, 0, 1, 1], [], []>} : vector<35x128xbf16>, vector<128x128xbf16>, vector<35x128xf32> -> vector<35x128xf32>
    %c1_206 = arith.constant 1 : index
    %c0_207 = arith.constant 0 : index
    %207 = vector.load %arg15[%c1_206, %c0_207] : memref<39x128xbf16, #tpu.memory_space<vmem>>, vector<35x128xbf16>
    %c1_208 = arith.constant 1 : index
    %c0_209 = arith.constant 0 : index
    %c0_210 = arith.constant 0 : index
    %208 = vector.load %arg4[%c1_208, %c0_209, %c0_210] : memref<5x128x128xbf16, #tpu.memory_space<vmem>>, vector<1x128x128xbf16>
    %209 = vector.shape_cast %208 : vector<1x128x128xbf16> to vector<128x128xbf16>
    %cst_211 = arith.constant dense<0.000000e+00> : vector<35x128xf32>
    %210 = tpu.matmul %207, %209, %cst_211 {dimension_numbers = #tpu.dot_dimension_numbers<[1], [0], [0], [1], [0, 0, 1, 1], [], []>} : vector<35x128xbf16>, vector<128x128xbf16>, vector<35x128xf32> -> vector<35x128xf32>
    %211 = arith.addf %206, %210 : vector<35x128xf32>
    %c2_212 = arith.constant 2 : index
    %c0_213 = arith.constant 0 : index
    %212 = vector.load %arg15[%c2_212, %c0_213] : memref<39x128xbf16, #tpu.memory_space<vmem>>, vector<35x128xbf16>
    %c2_214 = arith.constant 2 : index
    %c0_215 = arith.constant 0 : index
    %c0_216 = arith.constant 0 : index
    %213 = vector.load %arg4[%c2_214, %c0_215, %c0_216] : memref<5x128x128xbf16, #tpu.memory_space<vmem>>, vector<1x128x128xbf16>
    %214 = vector.shape_cast %213 : vector<1x128x128xbf16> to vector<128x128xbf16>
    %cst_217 = arith.constant dense<0.000000e+00> : vector<35x128xf32>
    %215 = tpu.matmul %212, %214, %cst_217 {dimension_numbers = #tpu.dot_dimension_numbers<[1], [0], [0], [1], [0, 0, 1, 1], [], []>} : vector<35x128xbf16>, vector<128x128xbf16>, vector<35x128xf32> -> vector<35x128xf32>
    %216 = arith.addf %211, %215 : vector<35x128xf32>
    %c3_218 = arith.constant 3 : index
    %c0_219 = arith.constant 0 : index
    %217 = vector.load %arg15[%c3_218, %c0_219] : memref<39x128xbf16, #tpu.memory_space<vmem>>, vector<35x128xbf16>
    %c3_220 = arith.constant 3 : index
    %c0_221 = arith.constant 0 : index
    %c0_222 = arith.constant 0 : index
    %218 = vector.load %arg4[%c3_220, %c0_221, %c0_222] : memref<5x128x128xbf16, #tpu.memory_space<vmem>>, vector<1x128x128xbf16>
    %219 = vector.shape_cast %218 : vector<1x128x128xbf16> to vector<128x128xbf16>
    %cst_223 = arith.constant dense<0.000000e+00> : vector<35x128xf32>
    %220 = tpu.matmul %217, %219, %cst_223 {dimension_numbers = #tpu.dot_dimension_numbers<[1], [0], [0], [1], [0, 0, 1, 1], [], []>} : vector<35x128xbf16>, vector<128x128xbf16>, vector<35x128xf32> -> vector<35x128xf32>
    %221 = arith.addf %216, %220 : vector<35x128xf32>
    %c4_224 = arith.constant 4 : index
    %c0_225 = arith.constant 0 : index
    %222 = vector.load %arg15[%c4_224, %c0_225] : memref<39x128xbf16, #tpu.memory_space<vmem>>, vector<35x128xbf16>
    %c4_226 = arith.constant 4 : index
    %c0_227 = arith.constant 0 : index
    %c0_228 = arith.constant 0 : index
    %223 = vector.load %arg4[%c4_226, %c0_227, %c0_228] : memref<5x128x128xbf16, #tpu.memory_space<vmem>>, vector<1x128x128xbf16>
    %224 = vector.shape_cast %223 : vector<1x128x128xbf16> to vector<128x128xbf16>
    %cst_229 = arith.constant dense<0.000000e+00> : vector<35x128xf32>
    %225 = tpu.matmul %222, %224, %cst_229 {dimension_numbers = #tpu.dot_dimension_numbers<[1], [0], [0], [1], [0, 0, 1, 1], [], []>} : vector<35x128xbf16>, vector<128x128xbf16>, vector<35x128xf32> -> vector<35x128xf32>
    %226 = arith.addf %221, %225 : vector<35x128xf32>
    %227 = vector.broadcast %201 : vector<1x128xf32> to vector<35x128xf32>
    %228 = arith.mulf %226, %227 : vector<35x128xf32>
    %229 = vector.broadcast %202 : vector<1x128xf32> to vector<35x128xf32>
    %230 = arith.addf %228, %229 : vector<35x128xf32>
    %cst_230 = arith.constant 0.000000e+00 : f32
    %231 = vector.broadcast %cst_230 : f32 to vector<35x128xf32>
    %232 = arith.maximumf %230, %231 : vector<35x128xf32>
    %c0_231 = arith.constant 0 : index
    %c0_232 = arith.constant 0 : index
    %233 = vector.load %arg16[%c0_231, %c0_232] : memref<35x128xf32, #tpu.memory_space<vmem>>, vector<35x128xf32>
    tpu.vector_store %arg16[%c0_231, %c0_232], %232 {strides = array<i32>} : memref<35x128xf32, #tpu.memory_space<vmem>>, vector<35x128xf32>,
    %c0_233 = arith.constant 0 : index
    %c0_234 = arith.constant 0 : index
    %234 = vector.load %arg16[%c0_233, %c0_234] : memref<35x128xf32, #tpu.memory_space<vmem>>, vector<35x128xf32>
    %cst_235 = arith.constant dense<0xFF800000> : vector<128xf32>
    %235 = vector.multi_reduction <maximumf>, %234, %cst_235 [0] : vector<35x128xf32> to vector<128xf32>
    %236 = vector.shape_cast %235 : vector<128xf32> to vector<1x128xf32>
    %237 = arith.truncf %236 : vector<1x128xf32> to vector<1x128xbf16>
    %c0_236 = arith.constant 0 : index
    %c0_237 = arith.constant 0 : index
    %238 = vector.load %arg7[%c0_236, %c0_237] : memref<128x128xbf16, #tpu.memory_space<vmem>>, vector<128x128xbf16>
    %cst_238 = arith.constant dense<0.000000e+00> : vector<1x128xf32>
    %239 = tpu.matmul %237, %238, %cst_238 {dimension_numbers = #tpu.dot_dimension_numbers<[1], [0], [0], [1], [0, 0, 1, 1], [], []>} : vector<1x128xbf16>, vector<128x128xbf16>, vector<1x128xf32> -> vector<1x128xf32>
    %c0_239 = arith.constant 0 : index
    %c0_240 = arith.constant 0 : index
    %240 = vector.load %arg8[%c0_239, %c0_240] : memref<1x128xf32, #tpu.memory_space<vmem>>, vector<1x128xf32>
    %241 = arith.addf %239, %240 : vector<1x128xf32>
    %cst_241 = arith.constant 0.000000e+00 : f32
    %242 = vector.broadcast %cst_241 : f32 to vector<1x128xf32>
    %243 = arith.maximumf %241, %242 : vector<1x128xf32>
    %244 = arith.truncf %243 : vector<1x128xf32> to vector<1x128xbf16>
    %c0_242 = arith.constant 0 : index
    %c0_243 = arith.constant 0 : index
    %245 = vector.load %arg9[%c0_242, %c0_243] : memref<128x128xbf16, #tpu.memory_space<vmem>>, vector<128x128xbf16>
    %cst_244 = arith.constant dense<0.000000e+00> : vector<1x128xf32>
    %246 = tpu.matmul %244, %245, %cst_244 {dimension_numbers = #tpu.dot_dimension_numbers<[1], [0], [0], [1], [0, 0, 1, 1], [], []>} : vector<1x128xbf16>, vector<128x128xbf16>, vector<1x128xf32> -> vector<1x128xf32>
    %c0_245 = arith.constant 0 : index
    %c0_246 = arith.constant 0 : index
    %247 = vector.load %arg10[%c0_245, %c0_246] : memref<1x128xf32, #tpu.memory_space<vmem>>, vector<1x128xf32>
    %248 = arith.addf %246, %247 : vector<1x128xf32>
    %c0_247 = arith.constant 0 : index
    %c0_248 = arith.constant 0 : index
    %c0_249 = arith.constant 0 : index
    %249 = vector.load %arg11[%c0_247, %c0_248, %c0_249] : memref<1x1x128xf32, #tpu.memory_space<vmem>>, vector<1x1x128xf32>
    %250 = vector.shape_cast %249 : vector<1x1x128xf32> to vector<1x128xf32>
    %251 = vector.shape_cast %248 : vector<1x128xf32> to vector<1x1x128xf32>
    tpu.vector_store %arg11[%c0_247, %c0_248, %c0_249], %251 {strides = array<i32>} : memref<1x1x128xf32, #tpu.memory_space<vmem>>, vector<1x1x128xf32>,
    return
  }
  func.func @transform_0(%arg0: i32) -> (i32, i32, i32) {
    %c0_i32 = arith.constant 0 : i32
    %c0_i32_0 = arith.constant 0 : i32
    %c0_i32_1 = arith.constant 0 : i32
    return %arg0, %c0_i32, %c0_i32_0 : i32, i32, i32
  }
  func.func @transform_1(%arg0: i32) -> (i32, i32, i32) {
    %c0_i32 = arith.constant 0 : i32
    %c0_i32_0 = arith.constant 0 : i32
    %c0_i32_1 = arith.constant 0 : i32
    %c0_i32_2 = arith.constant 0 : i32
    return %c0_i32, %c0_i32_0, %c0_i32_1 : i32, i32, i32
  }
  func.func @transform_2(%arg0: i32) -> (i32, i32, i32) {
    %c0_i32 = arith.constant 0 : i32
    %c0_i32_0 = arith.constant 0 : i32
    %c0_i32_1 = arith.constant 0 : i32
    %c0_i32_2 = arith.constant 0 : i32
    return %c0_i32, %c0_i32_0, %c0_i32_1 : i32, i32, i32
  }
  func.func @transform_3(%arg0: i32) -> (i32, i32, i32) {
    %c0_i32 = arith.constant 0 : i32
    %c0_i32_0 = arith.constant 0 : i32
    %c0_i32_1 = arith.constant 0 : i32
    %c0_i32_2 = arith.constant 0 : i32
    return %c0_i32, %c0_i32_0, %c0_i32_1 : i32, i32, i32
  }
  func.func @transform_4(%arg0: i32) -> (i32, i32) {
    %c0_i32 = arith.constant 0 : i32
    %c0_i32_0 = arith.constant 0 : i32
    %c0_i32_1 = arith.constant 0 : i32
    return %c0_i32, %c0_i32_0 : i32, i32
  }
  func.func @transform_5(%arg0: i32) -> (i32, i32) {
    %c0_i32 = arith.constant 0 : i32
    %c0_i32_0 = arith.constant 0 : i32
    %c0_i32_1 = arith.constant 0 : i32
    return %c0_i32, %c0_i32_0 : i32, i32
  }
  func.func @transform_6(%arg0: i32) -> (i32, i32) {
    %c0_i32 = arith.constant 0 : i32
    %c0_i32_0 = arith.constant 0 : i32
    %c0_i32_1 = arith.constant 0 : i32
    return %c0_i32, %c0_i32_0 : i32, i32
  }
  func.func @transform_7(%arg0: i32) -> (i32, i32) {
    %c0_i32 = arith.constant 0 : i32
    %c0_i32_0 = arith.constant 0 : i32
    %c0_i32_1 = arith.constant 0 : i32
    return %c0_i32, %c0_i32_0 : i32, i32
  }
  func.func @transform_8(%arg0: i32) -> (i32, i32) {
    %c0_i32 = arith.constant 0 : i32
    %c0_i32_0 = arith.constant 0 : i32
    %c0_i32_1 = arith.constant 0 : i32
    return %c0_i32, %c0_i32_0 : i32, i32
  }
  func.func @transform_9(%arg0: i32) -> (i32, i32) {
    %c0_i32 = arith.constant 0 : i32
    %c0_i32_0 = arith.constant 0 : i32
    %c0_i32_1 = arith.constant 0 : i32
    return %c0_i32, %c0_i32_0 : i32, i32
  }
  func.func @transform_10(%arg0: i32) -> (i32, i32, i32) {
    %c0_i32 = arith.constant 0 : i32
    %c0_i32_0 = arith.constant 0 : i32
    %c0_i32_1 = arith.constant 0 : i32
    return %arg0, %c0_i32, %c0_i32_0 : i32, i32, i32
  }
}

</mosaic_0001>

<bundles_post_ra>
// kernel: model_forward_pallas.1
= control target key start
LH: loop header
LB: loop body
LE: loop exit
PB: predicated region body
PF: predicated region fallthrough
CT: control target
= control target key end

     0   :  { %s15446_s0 = inlined_call_operand.vmem [shape: bf16[2,1014,128], index: 0, kind: input, shape index: {}]   ;;  %s15447_s1 = inlined_call_operand.vmem [shape: bf16[5,128,128], index: 1, kind: input, shape index: {}]   ;;  %s15448_s2 = inlined_call_operand.vmem [shape: bf16[5,128,128], index: 2, kind: input, shape index: {}]   ;;  %s15449_s3 = inlined_call_operand.vmem [shape: bf16[5,128,128], index: 3, kind: input, shape index: {}]   ;;  %s15450_s4 = inlined_call_operand.vmem [shape: f32[3,128], index: 4, kind: input, shape index: {}]   ;;  %s15451_s5 = inlined_call_operand.vmem [shape: f32[3,128], index: 5, kind: input, shape index: {}]   ;;  %s15452_s6 = inlined_call_operand.vmem [shape: bf16[128,128], index: 6, kind: input, shape index: {}]   ;;  %s15453_s7 = inlined_call_operand.vmem [shape: f32[1,128], index: 7, kind: input, shape index: {}]   ;;  %s15454_s8 = inlined_call_operand.vmem [shape: bf16[128,128], index: 8, kind: input, shape index: {}]   ;;  %s15455_s9 = inlined_call_operand.vmem [shape: f32[1,128], index: 9, kind: input, shape index: {}]   ;;  %s15456_s10 = inlined_call_operand.hbm [shape: f32[2,1,128], index: 10, kind: output, shape index: {}]  }
   0x1   :  { %15566 = sst [smem:[#allocation35_spill]] %s15446_s0 }
   0x2   :  { %15 = vsyncpa [#allocation8], 0 }
   0x3   :  { %17 = vsyncpa [#allocation8 + $0x1], 0  ;;  %s11405_s13 = smov 0   ;;  %s11407_s14 = smov 0  }
   0x4   :  { %s11409_s15 = smov 0   ;;  %s11411_s16 = smov 0  }
   0x5 LB: > { %s11426_s17 = sadd.s32 4294967295, %s11348_s16   ;;  %s8947_s18 = sadd.s32 4294967294, %s11348_s16   ;;  %s11348_s16 = sphi %s11411_s16, %s15788_s16   ;;  %s11344_s15 = sphi %s11409_s15, %s15787_s15   ;;  %s11340_s14 = sphi %s11407_s14, %s15786_s14   ;;  %s11336_s13 = sphi %s11405_s13, %s15785_s13  }
   0x6   : > { %s11430_s19 = sadd.s32 1, %s11348_s16   ;;  %s245_s20 = sadd.s32 1, %s11344_s15 }
   0x7   : > { %s242_s21 = ssub.s32 %s11348_s16, %s11430_s19  ;;  %p255_p0 = scmp.ne.s32.totalorder %s11344_s15, %s11340_s14 }
   0x8   : > { %p243_p1 = scmp.eq.s32.totalorder %s242_s21, 0  ;;  %p256_p2 = scmp.eq.s32.totalorder %s11426_s17, 1 }
   0x9   : > { %p261_p3 = scmp.ne.s32.totalorder %s11340_s14, %s11336_s13  ;;  %p262_p4 = scmp.eq.s32.totalorder %s8947_s18, 1 }
   0xa   : > { %s11441_s22 = scalar_select %p243_p1, %s11344_s15, %s245_s20  }
   0xb   : > { %p11443_p5 = por %p256_p2, %p255_p0  ;;  %p11447_p6 = por %p262_p4, %p261_p3 }
   0xc   : > { %p8950_p7 = scmp.ge.s32.totalorder %s11348_s16, 1  ;;  %p315_p8 = scmp.lt.s32.totalorder %s11348_s16, 3 }
   0xe   : > { %p316_p9 = pnand %p8950_p7, %p315_p8 }
  0x10   : > { %319 = sbr.rel (%p316_p9) target bundleno = 2412 (0x96c), region = 60 }
  0x15   : > { %v10724_v0 = vld [vmem:[%s15447_s1 + $0x78] sm:$0xff]  ;;  %p352_p10 = scmp.lt.s32.totalorder %s11426_s17, 1  ;;  %v10723_v1 = vld [vmem:[%s15447_s1 + $0x70] sm:$0xff]  ;;  %v10722_v2 = vld [vmem:[%s15447_s1 + $0x68] sm:$0xff]  ;;  %s15569_s0 = sld [smem:[#allocation35_spill]]  ;;  %vm968_vm2 = vcmask 1046528  }
  0x16   : > { %705 = vmatpush.bf16.msra.mxu0 %v10724_v0  ;;  %11145 = vmatpush.bf16.msra.mxu1 %v10724_v0  ;;  %v10721_v3 = vld [vmem:[%s15447_s1 + $0x60] sm:$0xff]  ;;  %v10720_v5 = vld [vmem:[%s15447_s1 + $0x58] sm:$0xff]  ;;  %v10719_v12 = vld [vmem:[%s15447_s1 + $0x50] sm:$0xff]  ;;  %vm508_vm0 = vsmask.f32 7424  ;;  %vm1492_vm3 = vcmask 1045504   ;;  %s8888_s21 = scalar_lea.hbm %s15456_s10, %s11426_s17 }
  0x17   : > { %11146 = vmatpush.bf16.msra.mxu2 %v10724_v0  ;;  %11147 = vmatpush.bf16.msra.mxu3 %v10724_v0  ;;  %s353_s29 = scalar_select %p352_p10, %s11426_s17, 1  ;;  %v10718_v22 = vld [vmem:[%s15447_s1 + $0x48] sm:$0xff]  ;;  %v10717_v33 = vld [vmem:[%s15447_s1 + $0x40] sm:$0xff]  ;;  %v10740_v40 = vld [vmem:[%s15447_s1 + $0xf8] sm:$0xff]  ;;  %vm1208_vm1 = vsmask.f32 6400 }
  0x18   : > { %v10732_v41 = vld [vmem:[%s15447_s1 + $0xb8] sm:$0xff]  ;;  %v10739_v48 = vld [vmem:[%s15447_s1 + $0xf0] sm:$0xff]  ;;  %v10738_v53 = vld [vmem:[%s15447_s1 + $0xe8] sm:$0xff]  ;;  %vm8115_vm4 = vcmask 1043456   ;;  %vm8116_vm5 = vsmask.f32 3328 }
  0x19   : > { %s11169_s12 = smul.u32 508, %s353_s29  ;;  %v10716_v46 = vld [vmem:[%s15447_s1 + $0x38] sm:$0xff]  ;;  %v10731_v49 = vld [vmem:[%s15447_s1 + $0xb0] sm:$0xff]  ;;  %v10730_v54 = vld [vmem:[%s15447_s1 + $0xa8] sm:$0xff]  ;;  %vm8707_vm7 = vcmask 1042432   ;;  %s350_s18 = sand.u32 1, %s11340_s14  }
  0x1a   : > { %706 = vmatpush.bf16.msra.mxu0 %v10723_v1  ;;  %11148 = vmatpush.bf16.msra.mxu1 %v10723_v1  ;;  %v10715_v51 = vld [vmem:[%s15447_s1 + $0x30] sm:$0xff]  ;;  %v10714_v56 = vld [vmem:[%s15447_s1 + $0x28] sm:$0xff]  ;;  %v10737_v62 = vld [vmem:[%s15447_s1 + $0xe0] sm:$0xff]  ;;  %s351_s28 = scalar_lea.vmem [#allocation7], %s350_s18  ;;  %s8892_s30 = sshll.u32 %s8888_s21, 4  ;;  %s8893_s30 = int_to_ptr.hbm [resolvable:$true] %s8892_s30 }
  0x1b   : > { %11149 = vmatpush.bf16.msra.mxu2 %v10723_v1  ;;  %11150 = vmatpush.bf16.msra.mxu3 %v10723_v1  ;;  %s11470_s26 = scalar_lea.vmem %s15569_s0, %s11169_s12  ;;  %v10729_v63 = vld [vmem:[%s15447_s1 + $0xa0] sm:$0xff]  ;;  %vm8117_vm6 = vmand %vm8115_vm4, %vm8116_vm5  ;;  %s8890_s29 = sshll.u32 %s351_s28, 4  ;;  %s8891_s29 = int_to_ptr.vmem [resolvable:$true] %s8890_s29 }
  0x1c   : > { %v407_v4 = vld [vmem:[%s11470_s26 + $0x80] sm:$0x1]  ;;  %v11477_v6 = vld [vmem:[%s11470_s26 + $0x58] sm:$0xff]  ;;  %v11483_v8 = vld [vmem:[%s11470_s26 + $0x68] sm:$0xff]  ;;  %s8880_s11 = scalar_lea.sflag [#allocation8], %s350_s18  ;;  %s11300_s12 = sshra.s32 %s8893_s30, 4  ;;  %s11301_s12 = int_to_ptr.hbm [resolvable:$true] %s11300_s12 }
  0x1d   : > { %v11480_v7 = vld [vmem:[%s11470_s26] sm:$0xff]   ;;  %v11486_v9 = vld [vmem:[%s11470_s26 + $0x78] sm:$0xff]  ;;  %v490_v10 = vunpack.c.l.b16 %v407_v4  ;;  %v11489_v11 = vld [vmem:[%s11470_s26 + $0x8] sm:$0xff]  ;;  %v597_v15 = vshll.u32 %v11477_v6, 16  ;;  %v613_v17 = vshll.u32 %v11483_v8, 16  ;;  %v601_v25 = vshrl.u32 %v11477_v6, 16  ;;  %p11307_p0 = scmp.lt.s32.totalorder %s11301_s12, %s15456_s10 }
  0x1e   : > { %707 = vmatpush.bf16.msra.mxu0 %v10722_v2  ;;  %11151 = vmatpush.bf16.msra.mxu1 %v10722_v2  ;;  %v512_v13 = vshll.u32 %v11480_v7, 16  ;;  %v11496_v14 = vld [vmem:[%s11470_s26 + $0x60] sm:$0xff]  ;;  %v11500_v16 = vld [vmem:[%s11470_s26 + $0x70] sm:$0xff]  ;;  %v629_v19 = vshll.u32 %v11486_v9, 16  ;;  %v510_v20 = vshrl.u32 %v11480_v7, 16  ;;  %v517_v21 = vshll.u32 %v11489_v11, 16 }
  0x1f   : > { %11152 = vmatpush.bf16.msra.mxu2 %v10722_v2  ;;  %11153 = vmatpush.bf16.msra.mxu3 %v10722_v2  ;;  %v11503_v18 = vpack.c.b16 %v490_v10, %v490_v10  ;;  %v11513_v24 = vrot.slane %v597_v15, 1  ;;  %v605_v26 = vshll.u32 %v11496_v14, 16  ;;  %v11519_v27 = vrot.slane %v613_v17, 1  ;;  %v11570_v52 = vld [vmem:[%s11470_s26 + $0x10] sm:$0xff]  ;;  %v947_v55 = vld [vmem:[%s11470_s26] sm:$0xe] }
  0x20   : > { %v514_v23 = vrot.slane %v512_v13, 1  ;;  %v617_v28 = vshrl.u32 %v11483_v8, 16  ;;  %v621_v29 = vshll.u32 %v11500_v16, 16  ;;  %v11525_v30 = vrot.slane %v629_v19, 1  ;;  %v10713_v1 = vld [vmem:[%s15447_s1 + $0x20] sm:$0xff]  ;;  %v10736_v10 = vld [vmem:[%s15447_s1 + $0xd8] sm:$0xff] }
  0x21   : > { %v633_v31 = vshrl.u32 %v11486_v9, 16  ;;  %v637_v32 = vshll.u32 %v11503_v18, 16  ;;  %v519_v35 = vrot.slane %v517_v21, 1  ;;  %v603_v36 = vor.u32 %v601_v25, %v11513_v24  ;;  %s11302_s0 = scalar_lea.hbm %s11301_s12, 1 }
  0x22   : > { %708 = vmatpush.bf16.msra.mxu0 %v10721_v3  ;;  %11154 = vmatpush.bf16.msra.mxu1 %v10721_v3  ;;  %v515_v34 = vor.u32 %v514_v23, %v510_v20  ;;  %v607_v37 = vrot.slane %v605_v26, 1  ;;  %v619_v38 = vor.u32 %v617_v28, %v11519_v27  ;;  %v623_v39 = vrot.slane %v621_v29, 1  ;;  %v10712_v23 = vld [vmem:[%s15447_s1 + $0x18] sm:$0xff]  ;;  %p11303_p11 = scmp.ne.s32.totalorder %s11301_s12, %s11302_s0 }
  0x23   : > { %11155 = vmatpush.bf16.msra.mxu2 %v10721_v3  ;;  %11156 = vmatpush.bf16.msra.mxu3 %v10721_v3  ;;  %v635_v42 = vor.u32 %v633_v31, %v11525_v30  ;;  %v639_v43 = vrot.slane %v637_v32, 1  ;;  %v521_v57 = vshrl.u32 %v11489_v11, 16  ;;  %v525_v58 = vshll.u32 %v11570_v52, 16 }
  0x24   : > { %v520_v44 = vsel %vm508_vm0, %v515_v34, %v519_v35  ;;  %v608_v45 = vsel %vm508_vm0, %v603_v36, %v607_v37  ;;  %v624_v47 = vsel %vm508_vm0, %v619_v38, %v623_v39  ;;  %v609_v59 = vshrl.u32 %v11496_v14, 16  ;;  %v10727_v34 = vld [vmem:[%s15447_s1 + $0x90] sm:$0xff]  ;;  %v10726_v38 = vld [vmem:[%s15447_s1 + $0x88] sm:$0xff]  ;;  %p11304_p12 = pnand %p11303_p11, %p11443_p5 }
  0x25   : > { %v640_v50 = vsel %vm508_vm0, %v635_v42, %v639_v43  ;;  %v625_v60 = vshrl.u32 %v11500_v16, 16  ;;  %v11036_v61 = vunpack.c.h.b16 %v11480_v7  ;;  %v966_v0 = vunpack.c.l.b16 %v947_v55  ;;  %v10710_v43 = vld [vmem:[%s15447_s1 + $0x8] sm:$0xff] }
  0x26   : > { %709 = vmatpush.bf16.msra.mxu0 %v10720_v5  ;;  %11157 = vmatpush.bf16.msra.mxu1 %v10720_v5  ;;  %v523_v2 = vor.u32 %v521_v57, %v519_v35  ;;  %v527_v3 = vrot.slane %v525_v58, 1  ;;  %v611_v4 = vor.u32 %v609_v59, %v607_v37  ;;  %v10734_v37 = vld [vmem:[%s15447_s1 + $0xc8] sm:$0xff]  ;;  %v1218_v42 = vrot.slane %v517_v21, 2  ;;  %p11305_p13 = pneg %p11304_p12 }
  0x27   : > { %11158 = vmatpush.bf16.msra.mxu2 %v10720_v5  ;;  %11159 = vmatpush.bf16.msra.mxu3 %v10720_v5  ;;  %v627_v5 = vor.u32 %v625_v60, %v623_v39  ;;  %v967_v13 = vpack.c.b16 %v11036_v61, %v966_v0 }
  0x28   : > { %v528_v20 = vsel %vm508_vm0, %v523_v2, %v527_v3  ;;  %v10770_v2 = vld [vmem:[%s15447_s1 + $0x30] sm:$0xff] }
  0x29   : > { %v632_v32 = vsel %vm508_vm0, %v627_v5, %v11525_v30  ;;  %v1210_v35 = vshrl.u32 %v967_v13, 16  ;;  %v1213_v36 = vshll.u32 %v967_v13, 16  ;;  %v11628_v30 = vld [vmem:[%s11470_s26 + $0x18] sm:$0xff]  ;;  %v969_v55 = vrot.slane %v967_v13, 1 }
  0x2a   : > { %710 = vmatpush.bf16.msra.mxu0 %v10719_v12  ;;  %11160 = vmatpush.bf16.msra.mxu1 %v10719_v12 }
  0x2b   : > { %11161 = vmatpush.bf16.msra.mxu2 %v10719_v12  ;;  %11162 = vmatpush.bf16.msra.mxu3 %v10719_v12  ;;  %v10728_v12 = vld [vmem:[%s15447_s1 + $0x98] sm:$0xff]  ;;  %v1212_v39 = vrot.slane %v1210_v35, 1  ;;  %v11688_v35 = vld [vmem:[%s11470_s26 + $0x28] sm:$0xff] }
  0x2e   : > { %711 = vmatpush.bf16.msra.mxu0 %v10718_v22  ;;  %11163 = vmatpush.bf16.msra.mxu1 %v10718_v22 }
  0x2f   : > { %11164 = vmatpush.bf16.msra.mxu2 %v10718_v22  ;;  %11165 = vmatpush.bf16.msra.mxu3 %v10718_v22  ;;  %v616_v22 = vsel %vm508_vm0, %v611_v4, %v11519_v27  ;;  %v10711_v27 = vld [vmem:[%s15447_s1 + $0x10] sm:$0xff] }
  0x30   : > { %v10778_v4 = vld [vmem:[%s15447_s1 + $0x70] sm:$0xff] }
  0x32   : > { %712 = vmatpush.bf16.msra.mxu0 %v10717_v33  ;;  %11166 = vmatpush.bf16.msra.mxu1 %v10717_v33 }
  0x33   : > { %11167 = vmatpush.bf16.msra.mxu2 %v10717_v33  ;;  %11168 = vmatpush.bf16.msra.mxu3 %v10717_v33  ;;  %v10735_v33 = vld [vmem:[%s15447_s1 + $0xd0] sm:$0xff] }
  0x35   : > { %713 = vmatmul.bf16.vlgmr.msra.gmra.mxu0 %v520_v44  ;;  %768 = vmatmul.bf16.vlgmr.msra.gmra.mxu1 %v608_v45  ;;  %v529_v44 = vshrl.u32 %v11570_v52, 16  ;;  %v533_v45 = vshll.u32 %v11628_v30, 16 }
  0x36   : > { %778 = vmatmul.bf16.vlgmr.msra.gmra.mxu2 %v624_v47  ;;  %858 = vmatpush.bf16.msrb.mxu1 %v10716_v46  ;;  %v10733_v46 = vld [vmem:[%s15447_s1 + $0xc0] sm:$0xff] }
  0x37   : > { %1350 = vmatpush.bf16.msrb.mxu3 %v10740_v40  ;;  %1066 = vmatpush.bf16.msrb.mxu2 %v10732_v41  ;;  %v1215_v40 = vrot.slane %v1213_v36, 2  ;;  %v1217_v41 = vrot.slane %v521_v57, 1  ;;  %v10725_v47 = vld [vmem:[%s15447_s1 + $0x80] sm:$0xff]  ;;  %v10779_v57 = vld [vmem:[%s15447_s1 + $0x78] sm:$0xff]  ;;  %v1221_v5 = vrot.slane %v529_v44, 1 }
  0x38   : > { %788 = vmatmul.bf16.vlgmr.msra.gmra.mxu3 %v640_v50  ;;  %v10787_v50 = vld [vmem:[%s15447_s1 + $0xb8] sm:$0xff] }
  0x39   : > { %v1216_v21 = vor.u32 %v1215_v40, %v1212_v39  ;;  %v10748_v36 = vld [vmem:[%s15447_s1 + $0x138] sm:$0xff]  ;;  %v549_v39 = vshll.u32 %v11688_v35, 16 }
  0x3a   : > { %859 = vmatpush.bf16.msrb.mxu1 %v10715_v51  ;;  %v10709_v51 = vld [vmem:[%s15447_s1] sm:$0xff]  ;;  %1590 = vmatpush.bf16.msrb.mxu0 %v10748_v36  ;;  %v10746_v36 = vld [vmem:[%s15447_s1 + $0x128] sm:$0xff] }
  0x3b   : > { %1351 = vmatpush.bf16.msrb.mxu3 %v10739_v48  ;;  %1067 = vmatpush.bf16.msrb.mxu2 %v10731_v49  ;;  %v1219_v48 = vor.u32 %v1218_v42, %v1217_v41  ;;  %v10771_v49 = vld [vmem:[%s15447_s1 + $0x38] sm:$0xff]  ;;  %v551_v42 = vrot.slane %v549_v39, 1 }
  0x3e   : > { %860 = vmatpush.bf16.msrb.mxu1 %v10714_v56  ;;  %v970_v56 = vrot.slane %v11489_v11, 1 }
  0x3f   : > { %1352 = vmatpush.bf16.msrb.mxu3 %v10738_v53  ;;  %1068 = vmatpush.bf16.msrb.mxu2 %v10730_v54  ;;  %v531_v53 = vor.u32 %v529_v44, %v527_v3  ;;  %v535_v54 = vrot.slane %v533_v45, 1  ;;  %v10786_v3 = vld [vmem:[%s15447_s1 + $0xb0] sm:$0xff] }
  0x40   : > { %v971_v0 = vsel %vm968_vm2, %v969_v55, %v970_v56 }
  0x42   : > { %861 = vmatpush.bf16.msrb.mxu1 %v10713_v1  ;;  %v11667_v1 = vld [vmem:[%s11470_s26 + $0x20] sm:$0xff] }
  0x43   : > { %1353 = vmatpush.bf16.msrb.mxu3 %v10737_v62  ;;  %1069 = vmatpush.bf16.msrb.mxu2 %v10729_v63  ;;  %v1220_v62 = vsel %vm1208_vm1, %v1216_v21, %v1219_v48  ;;  %v536_v63 = vsel %vm508_vm0, %v531_v53, %v535_v54  ;;  %v541_v13 = vshll.u32 %v11667_v1, 16  ;;  %v10769_v21 = vld [vmem:[%s15447_s1 + $0x28] sm:$0xff] }
  0x45   : > { %718 = vmatmul.bf16.gmra.mxu0 %v528_v20  ;;  %773 = vmatmul.bf16.gmra.mxu1 %v616_v22  ;;  %v1230_v53 = vrot.slane %v541_v13, 2 }
  0x46   : > { %783 = vmatmul.bf16.gmra.mxu2 %v632_v32  ;;  %862 = vmatpush.bf16.msrb.mxu1 %v10712_v23  ;;  %v543_v23 = vrot.slane %v541_v13, 1  ;;  %v972_v32 = vrot.slane %v11570_v52, 1 }
  0x47   : > { %1354 = vmatpush.bf16.msrb.mxu3 %v10736_v10  ;;  %1070 = vmatpush.bf16.msrb.mxu2 %v10728_v12  ;;  %v1222_v10 = vrot.slane %v525_v58, 2  ;;  %v537_v12 = vshrl.u32 %v11628_v30, 16 }
  0x48   : > { %v973_v58 = vsel %vm968_vm2, %v970_v56, %v972_v32 }
  0x49   : > { %v1223_v20 = vor.u32 %v1222_v10, %v1221_v5  ;;  %v539_v22 = vor.u32 %v537_v12, %v535_v54  ;;  %v553_v54 = vshrl.u32 %v11688_v35, 16  ;;  %v1234_v10 = vrot.slane %v549_v39, 2 }
  0x4a   : > { %863 = vmatpush.bf16.msrb.mxu1 %v10711_v27  ;;  %v1225_v27 = vrot.slane %v537_v12, 1 }
  0x4b   : > { %1355 = vmatpush.bf16.msrb.mxu3 %v10735_v33  ;;  %1071 = vmatpush.bf16.msrb.mxu2 %v10727_v34  ;;  %v1224_v33 = vsel %vm1208_vm1, %v1219_v48, %v1223_v20  ;;  %v544_v34 = vsel %vm508_vm0, %v539_v22, %v543_v23  ;;  %v10785_v48 = vld [vmem:[%s15447_s1 + $0xa8] sm:$0xff]  ;;  %v1233_v5 = vrot.slane %v553_v54, 1 }
  0x4e   : > { %864 = vmatpush.bf16.msrb.mxu1 %v10710_v43  ;;  %v974_v43 = vrot.slane %v11628_v30, 1 }
  0x4f   : > { %1356 = vmatpush.bf16.msrb.mxu3 %v10734_v37  ;;  %1072 = vmatpush.bf16.msrb.mxu2 %v10726_v38  ;;  %v1226_v37 = vrot.slane %v533_v45, 2  ;;  %v545_v38 = vshrl.u32 %v11667_v1, 16  ;;  %v11701_v45 = vld [vmem:[%s11470_s26 + $0x30] sm:$0xff] }
  0x50   : > { %v557_v55 = vshll.u32 %v11701_v45, 16  ;;  %v561_v12 = vshrl.u32 %v11701_v45, 16 }
  0x51   : > { %v1227_v40 = vor.u32 %v1226_v37, %v1225_v27  ;;  %v547_v41 = vor.u32 %v545_v38, %v543_v23  ;;  %v11736_v27 = vld [vmem:[%s11470_s26 + $0x40] sm:$0xff] }
  0x52   : > { %865 = vmatpush.bf16.msrb.mxu1 %v10709_v51  ;;  %v1229_v51 = vrot.slane %v545_v38, 1  ;;  %v10768_v37 = vld [vmem:[%s15447_s1 + $0x20] sm:$0xff]  ;;  %v1237_v39 = vrot.slane %v561_v12, 1 }
  0x53   : > { %1357 = vmatpush.bf16.msrb.mxu3 %v10733_v46  ;;  %1073 = vmatpush.bf16.msrb.mxu2 %v10725_v47  ;;  %v1228_v44 = vsel %vm1208_vm1, %v1223_v20, %v1227_v40  ;;  %v552_v46 = vsel %vm508_vm0, %v547_v41, %v551_v42  ;;  %v975_v47 = vsel %vm968_vm2, %v972_v32, %v974_v43  ;;  %v978_v32 = vrot.slane %v11688_v35, 1  ;;  %v10784_v38 = vld [vmem:[%s15447_s1 + $0xa0] sm:$0xff] }
  0x54   : > { %v1231_v56 = vor.u32 %v1230_v53, %v1229_v51  ;;  %v1235_v20 = vor.u32 %v1234_v10, %v1233_v5  ;;  %v10776_v41 = vld [vmem:[%s15447_s1 + $0x60] sm:$0xff]  ;;  %v11755_v51 = vld [vmem:[%s11470_s26 + $0x48] sm:$0xff] }
  0x55   : > { %723 = vmatmul.bf16.gmra.mxu0 %v536_v63  ;;  %866 = vmatmul.bf16.vlgmr.msrb.gmra.mxu1 %v11480_v7  ;;  %v976_v63 = vrot.slane %v11667_v1, 1 }
  0x56   : > { %1358 = vmatmul.bf16.vlgmr.msrb.gmra.mxu3 %v1220_v62  ;;  %2185 = vmatpush.bf16.msra.mxu1 %v10779_v57  ;;  %v555_v57 = vor.u32 %v553_v54, %v551_v42  ;;  %v559_v62 = vrot.slane %v557_v55, 1 }
  0x57   : > { %2338 = vmatpush.bf16.msra.mxu2 %v10771_v49  ;;  %2544 = vmatpush.bf16.msra.mxu3 %v10787_v50  ;;  %v10777_v49 = vld [vmem:[%s15447_s1 + $0x68] sm:$0xff]  ;;  %v10747_v50 = vld [vmem:[%s15447_s1 + $0x130] sm:$0xff] }
  0x58   : > { %1074 = vmatmul.bf16.vlgmr.msrb.gmra.mxu2 %v971_v0  ;;  %1591 = vmatpush.bf16.msrb.mxu0 %v10747_v50  ;;  %v1232_v0 = vsel %vm1208_vm1, %v1227_v40, %v1231_v56  ;;  %v563_v22 = vor.u32 %v561_v12, %v559_v62  ;;  %v1238_v40 = vrot.slane %v557_v55, 2  ;;  %v10745_v55 = vld [vmem:[%s15447_s1 + $0x120] sm:$0xff] }
  0x5a   : > { %2186 = vmatpush.bf16.msra.mxu1 %v10778_v4  ;;  %v11723_v4 = vld [vmem:[%s11470_s26 + $0x38] sm:$0xff] }
  0x5b   : > { %2339 = vmatpush.bf16.msra.mxu2 %v10770_v2  ;;  %2545 = vmatpush.bf16.msra.mxu3 %v10786_v3  ;;  %v560_v2 = vsel %vm508_vm0, %v555_v57, %v559_v62  ;;  %v977_v3 = vsel %vm968_vm2, %v974_v43, %v976_v63  ;;  %v565_v13 = vshll.u32 %v11723_v4, 16  ;;  %v569_v42 = vshrl.u32 %v11723_v4, 16 }
  0x5c   : > { %1592 = vmatpush.bf16.msrb.mxu0 %v10746_v36  ;;  %v573_v43 = vshll.u32 %v11736_v27, 16  ;;  %v581_v57 = vshll.u32 %v11755_v51, 16  ;;  %v10743_v36 = vld [vmem:[%s15447_s1 + $0x110] sm:$0xff] }
  0x5d   : > { %v567_v23 = vrot.slane %v565_v13, 1  ;;  %v1241_v53 = vrot.slane %v569_v42, 1  ;;  %v1242_v54 = vrot.slane %v565_v13, 2 }
  0x5e   : > { %2187 = vmatpush.bf16.msra.mxu1 %v10777_v49 }
  0x5f   : > { %2340 = vmatpush.bf16.msra.mxu2 %v10769_v21  ;;  %2546 = vmatpush.bf16.msra.mxu3 %v10785_v48  ;;  %v980_v21 = vrot.slane %v11701_v45, 1  ;;  %v1243_v62 = vor.u32 %v1242_v54, %v1241_v53 }
  0x60   : > { %1593 = vmatpush.bf16.msrb.mxu0 %v10745_v55 }
  0x61   : > { %v981_v50 = vsel %vm968_vm2, %v978_v32, %v980_v21 }
  0x62   : > { %2188 = vmatpush.bf16.msra.mxu1 %v10776_v41  ;;  %v10775_v41 = vld [vmem:[%s15447_s1 + $0x58] sm:$0xff] }
  0x63   : > { %2341 = vmatpush.bf16.msra.mxu2 %v10768_v37  ;;  %2547 = vmatpush.bf16.msra.mxu3 %v10784_v38 }
  0x65   : > { %728 = vmatmul.bf16.gmra.mxu0 %v544_v34  ;;  %871 = vmatmul.bf16.gmra.mxu1 %v11489_v11  ;;  %v568_v34 = vsel %vm508_vm0, %v563_v22, %v567_v23  ;;  %v11773_v22 = vld [vmem:[%s11470_s26 + $0x50] sm:$0xff] }
  0x66   : > { %1363 = vmatmul.bf16.gmra.mxu3 %v1224_v33  ;;  %v1236_v33 = vsel %vm1208_vm1, %v1231_v56, %v1235_v20  ;;  %v577_v56 = vshrl.u32 %v11736_v27, 16  ;;  %2189 = vmatpush.bf16.msra.mxu1 %v10775_v41 }
  0x68   : > { %1079 = vmatmul.bf16.gmra.mxu2 %v973_v58  ;;  %v979_v58 = vsel %vm968_vm2, %v976_v63, %v978_v32  ;;  %v10783_v32 = vld [vmem:[%s15447_s1 + $0x98] sm:$0xff] }
  0x69   : > { %2548 = vmatpush.bf16.msra.mxu3 %v10783_v32  ;;  %v986_v32 = vrot.slane %v11755_v51, 1 }
  0x75   : > { %733 = vmatmul.bf16.gmra.mxu0 %v552_v46  ;;  %876 = vmatmul.bf16.gmra.mxu1 %v11570_v52  ;;  %v571_v46 = vor.u32 %v569_v42, %v567_v23  ;;  %v10767_v23 = vld [vmem:[%s15447_s1 + $0x18] sm:$0xff] }
  0x76   : > { %1368 = vmatmul.bf16.gmra.mxu3 %v1228_v44  ;;  %v1239_v44 = vor.u32 %v1238_v40, %v1237_v39  ;;  %2342 = vmatpush.bf16.msra.mxu2 %v10767_v23  ;;  %v585_v39 = vshrl.u32 %v11755_v51, 16  ;;  %v589_v40 = vshll.u32 %v11773_v22, 16 }
  0x78   : > { %1084 = vmatmul.bf16.gmra.mxu2 %v975_v47  ;;  %v575_v47 = vrot.slane %v573_v43, 1  ;;  %v1240_v48 = vsel %vm1208_vm1, %v1235_v20, %v1239_v44  ;;  %v10744_v20 = vld [vmem:[%s15447_s1 + $0x118] sm:$0xff] }
  0x79   : > { %1594 = vmatpush.bf16.msrb.mxu0 %v10744_v20 }
  0x7a   : > { %v576_v49 = vsel %vm508_vm0, %v571_v46, %v575_v47  ;;  %v579_v63 = vor.u32 %v577_v56, %v575_v47  ;;  %v591_v46 = vrot.slane %v589_v40, 1  ;;  %v984_v47 = vrot.slane %v11736_v27, 1 }
  0x7d   : > { %1595 = vmatpush.bf16.msrb.mxu0 %v10743_v36 }
  0x85   : > { %738 = vmatmul.bf16.gmra.mxu0 %v560_v2  ;;  %881 = vmatmul.bf16.gmra.mxu1 %v11628_v30  ;;  %v982_v2 = vrot.slane %v11723_v4, 1 }
  0x86   : > { %1373 = vmatmul.bf16.gmra.mxu3 %v1232_v0  ;;  %v583_v0 = vrot.slane %v581_v57, 1 }
  0x87   : > { %v983_v13 = vsel %vm968_vm2, %v980_v21, %v982_v2  ;;  %v985_v55 = vsel %vm968_vm2, %v982_v2, %v984_v47 }
  0x88   : > { %1089 = vmatmul.bf16.gmra.mxu2 %v977_v3  ;;  %v1244_v3 = vsel %vm1208_vm1, %v1239_v44, %v1243_v62  ;;  %v584_v12 = vsel %vm508_vm0, %v579_v63, %v583_v0  ;;  %v587_v44 = vor.u32 %v585_v39, %v583_v0  ;;  %v1250_v63 = vrot.slane %v581_v57, 2 }
  0x8a   : > { %v592_v54 = vsel %vm508_vm0, %v587_v44, %v591_v46  ;;  %v1471_v44 = vld [vmem:[%s11470_s26] sm:$0xc] }
  0x95   : > { %743 = vmatmul.bf16.gmra.mxu0 %v568_v34  ;;  %886 = vmatmul.bf16.gmra.mxu1 %v11667_v1  ;;  %v1246_v34 = vrot.slane %v573_v43, 2  ;;  %v10742_v43 = vld [vmem:[%s15447_s1 + $0x108] sm:$0xff] }
  0x96   : > { %1378 = vmatmul.bf16.gmra.mxu3 %v1236_v33  ;;  %v1245_v33 = vrot.slane %v577_v56, 1  ;;  %1596 = vmatpush.bf16.msrb.mxu0 %v10742_v43  ;;  %v987_v43 = vsel %vm968_vm2, %v984_v47, %v986_v32 }
  0x98   : > { %1094 = vmatmul.bf16.gmra.mxu2 %v979_v58  ;;  %v1247_v42 = vor.u32 %v1246_v34, %v1245_v33 }
  0x9a   : > { %v1248_v21 = vsel %vm1208_vm1, %v1243_v62, %v1247_v42  ;;  %v1249_v62 = vrot.slane %v585_v39, 1 }
  0x9c   : > { %v1251_v20 = vor.u32 %v1250_v63, %v1249_v62 }
  0x9e   : > { %v1252_v33 = vsel %vm1208_vm1, %v1247_v42, %v1251_v20  ;;  %v10766_v42 = vld [vmem:[%s15447_s1 + $0x10] sm:$0xff] }
  0x9f   : > { %2343 = vmatpush.bf16.msra.mxu2 %v10766_v42 }
  0xa5   : > { %748 = vmatmul.bf16.gmra.mxu0 %v576_v49  ;;  %891 = vmatmul.bf16.gmra.mxu1 %v11688_v35  ;;  %v10741_v49 = vld [vmem:[%s15447_s1 + $0x100] sm:$0xff] }
  0xa6   : > { %1383 = vmatmul.bf16.gmra.mxu3 %v1240_v48  ;;  %1597 = vmatpush.bf16.msrb.mxu0 %v10741_v49  ;;  %v10782_v49 = vld [vmem:[%s15447_s1 + $0x90] sm:$0xff] }
  0xa7   : > { %2549 = vmatpush.bf16.msra.mxu3 %v10782_v49 }
  0xa8   : > { %1099 = vmatmul.bf16.gmra.mxu2 %v981_v50 }
  0xb2   : > { %v714_v5 = vpop.f32.mrf.mxu0  ;;  %v11764_v10 = vpop.f32.mrf.mxu1 }
  0xb5   : > { %753 = vmatmul.bf16.gmra.mxu0 %v584_v12  ;;  %896 = vmatmul.bf16.gmra.mxu1 %v11701_v45 }
  0xb6   : > { %1388 = vmatmul.bf16.gmra.mxu3 %v1244_v3 }
  0xb8   : > { %1104 = vmatmul.bf16.gmra.mxu2 %v983_v13  ;;  %v593_v13 = vshrl.u32 %v11773_v22, 16 }
  0xb9   : > { %v11781_v58 = vpop.f32.mrf.mxu2 }
  0xba   : > { %v716_v37 = vpop.f32.mrf.mxu0  ;;  %v11786_v38 = vpop.f32.mrf.mxu1  ;;  %v595_v2 = vor.u32 %v593_v13, %v591_v46 }
  0xbb   : > { %v11807_v56 = vpop.f32.mrf.mxu3 }
  0xbc   : > { %v600_v39 = vsel %vm508_vm0, %v595_v2, %v11513_v24  ;;  %v1253_v24 = vrot.slane %v593_v13, 1  ;;  %v10774_v2 = vld [vmem:[%s15447_s1 + $0x50] sm:$0xff] }
  0xbd   : > { %2190 = vmatpush.bf16.msra.mxu1 %v10774_v2 }
  0xc1   : > { %v11798_v48 = vpop.f32.mrf.mxu2 }
  0xc2   : > { %v719_v50 = vpop.f32.mrf.mxu0  ;;  %v11803_v53 = vpop.f32.mrf.mxu1 }
  0xc3   : > { %v11815_v23 = vpop.f32.mrf.mxu3 }
  0xc5   : > { %758 = vmatmul.bf16.gmra.mxu0 %v592_v54  ;;  %901 = vmatmul.bf16.gmra.mxu1 %v11723_v4 }
  0xc6   : > { %1393 = vmatmul.bf16.gmra.mxu3 %v1248_v21  ;;  %v1490_v21 = vunpack.c.l.b16 %v1471_v44 }
  0xc8   : > { %1109 = vmatmul.bf16.gmra.mxu2 %v985_v55  ;;  %v1491_v63 = vpack.c.b16 %v11036_v61, %v1490_v21 }
  0xc9   : > { %v11810_v0 = vpop.f32.mrf.mxu2 }
  0xca   : > { %v721_v3 = vpop.f32.mrf.mxu0  ;;  %v11812_v12 = vpop.f32.mrf.mxu1  ;;  %v1493_v13 = vrot.slane %v1491_v63, 2 }
  0xd1   : > { %v11819_v34 = vpop.f32.mrf.mxu2 }
  0xd2   : > { %v11821_v36 = vpop.f32.mrf.mxu0  ;;  %v867_v57 = vpop.f32.mrf.mxu1 }
  0xd3   : > { %v868_v41 = vadd.f32 %v867_v57, %v714_v5  ;;  %v1254_v5 = vrot.slane %v589_v40, 2 }
  0xd5   : > { %763 = vmatmul.bf16.gmra.mxu0 %v600_v39  ;;  %906 = vmatmul.bf16.gmra.mxu1 %v11736_v27  ;;  %v1255_v57 = vor.u32 %v1254_v5, %v1253_v24  ;;  %v1258_v5 = vrot.slane %v597_v15, 2 }
  0xd6   : > { %1398 = vmatmul.bf16.gmra.mxu3 %v1252_v33 }
  0xd7   : > { %v1256_v44 = vsel %vm1208_vm1, %v1251_v20, %v1255_v57  ;;  %v1257_v20 = vrot.slane %v601_v25, 1 }
  0xd8   : > { %1114 = vmatmul.bf16.gmra.mxu2 %v987_v43  ;;  %v1494_v43 = vrot.slane %v11489_v11, 2 }
  0xd9   : > { %v1359_v46 = vpop.f32.mrf.mxu3  ;;  %v1259_v2 = vor.u32 %v1258_v5, %v1257_v20 }
  0xda   : > { %v11834_v55 = vpop.f32.mrf.mxu0  ;;  %v869_v62 = vpop.f32.mrf.mxu1  ;;  %v1495_v49 = vsel %vm1492_vm3, %v1493_v13, %v1494_v43  ;;  %v990_v13 = vrot.slane %v11477_v6, 1 }
  0xdb   : > { %v1075_v47 = vpop.f32.mrf.mxu2  ;;  %v870_v33 = vadd.f32 %v869_v62, %v716_v37 }
  0xdc   : > { %v1155_v54 = vadd.f32 %v1075_v47, %v868_v41  ;;  %v988_v41 = vrot.slane %v11773_v22, 1 }
  0xde   : > { %v11841_v39 = vadd.f32 %v1359_v46, %v1155_v54  ;;  %v989_v46 = vsel %vm968_vm2, %v986_v32, %v988_v41 }
  0xe1   : > { %v1361_v40 = vpop.f32.mrf.mxu3 }
  0xe2   : > { %v729_v21 = vpop.f32.mrf.mxu0  ;;  %v872_v42 = vpop.f32.mrf.mxu1 }
  0xe3   : > { %v1077_v7 = vpop.f32.mrf.mxu2  ;;  %v873_v37 = vadd.f32 %v872_v42, %v719_v50 }
  0xe4   : > { %v1156_v61 = vadd.f32 %v1077_v7, %v870_v33 }
  0xe5   : > { %911 = vmatmul.bf16.gmra.mxu1 %v11755_v51  ;;  %1598 = vmatmul.bf16.vlgmr.msrb.gmra.mxu0 %v1495_v49 }
  0xe6   : > { %1403 = vmatmul.bf16.gmra.mxu3 %v1256_v44  ;;  %v11848_v24 = vadd.f32 %v1361_v40, %v1156_v61  ;;  %v1496_v40 = vrot.slane %v11570_v52, 2  ;;  %v1260_v44 = vsel %vm1208_vm1, %v1255_v57, %v1259_v2  ;;  %v10765_v57 = vld [vmem:[%s15447_s1 + $0x8] sm:$0xff] }
  0xe7   : > { %2344 = vmatpush.bf16.msra.mxu2 %v10765_v57  ;;  %v1266_v57 = vrot.slane %v613_v17, 2 }
  0xe8   : > { %1119 = vmatmul.bf16.gmra.mxu2 %v989_v46  ;;  %v1497_v15 = vsel %vm1492_vm3, %v1494_v43, %v1496_v40  ;;  %v10781_v43 = vld [vmem:[%s15447_s1 + $0x88] sm:$0xff] }
  0xe9   : > { %v1364_v11 = vpop.f32.mrf.mxu3  ;;  %2550 = vmatpush.bf16.msra.mxu3 %v10781_v43 }
  0xea   : > { %v731_v62 = vpop.f32.mrf.mxu0  ;;  %v874_v50 = vpop.f32.mrf.mxu1 }
  0xeb   : > { %v1080_v47 = vpop.f32.mrf.mxu2  ;;  %v875_v63 = vadd.f32 %v874_v50, %v721_v3  ;;  %v991_v3 = vsel %vm968_vm2, %v988_v41, %v990_v13  ;;  %v1262_v41 = vrot.slane %v605_v26, 2  ;;  %v1498_v26 = vrot.slane %v11628_v30, 2 }
  0xec   : > { %v1157_v54 = vadd.f32 %v1080_v47, %v873_v37  ;;  %v10773_v47 = vld [vmem:[%s15447_s1 + $0x48] sm:$0xff] }
  0xed   : > { %2191 = vmatpush.bf16.msra.mxu1 %v10773_v47 }
  0xee   : > { %v11855_v32 = vadd.f32 %v1364_v11, %v1157_v54 }
  0xf1   : > { %v1366_v33 = vpop.f32.mrf.mxu3 }
  0xf2   : > { %v734_v61 = vpop.f32.mrf.mxu0  ;;  %v877_v42 = vpop.f32.mrf.mxu1 }
  0xf3   : > { %v1082_v7 = vpop.f32.mrf.mxu2  ;;  %v878_v49 = vadd.f32 %v877_v42, %v11821_v36  ;;  %v1261_v36 = vrot.slane %v609_v59, 1 }
  0xf4   : > { %v1158_v25 = vadd.f32 %v1082_v7, %v875_v63 }
  0xf5   : > { %916 = vmatmul.bf16.gmra.mxu1 %v11773_v22  ;;  %1603 = vmatmul.bf16.gmra.mxu0 %v1497_v15  ;;  %v1263_v50 = vor.u32 %v1262_v41, %v1261_v36 }
  0xf6   : > { %1408 = vmatmul.bf16.gmra.mxu3 %v1260_v44  ;;  %v11863_v37 = vadd.f32 %v1366_v33, %v1158_v25  ;;  %v992_v33 = vrot.slane %v11496_v14, 1 }
  0xf7   : > { %v1264_v44 = vsel %vm1208_vm1, %v1259_v2, %v1263_v50  ;;  %v1265_v2 = vrot.slane %v617_v28, 1 }
  0xf8   : > { %1124 = vmatmul.bf16.gmra.mxu2 %v991_v3 }
  0xf9   : > { %v1369_v52 = vpop.f32.mrf.mxu3 }
  0xfa   : > { %v11876_v20 = vpop.f32.mrf.mxu0  ;;  %v879_v5 = vpop.f32.mrf.mxu1 }
  0xfb   : > { %v1085_v46 = vpop.f32.mrf.mxu2  ;;  %v880_v54 = vadd.f32 %v879_v5, %v11834_v55  ;;  %v993_v55 = vsel %vm968_vm2, %v990_v13, %v992_v33  ;;  %v1267_v13 = vor.u32 %v1266_v57, %v1265_v2  ;;  %v994_v5 = vrot.slane %v11483_v8, 1 }
  0xfc   : > { %v1159_v11 = vadd.f32 %v1085_v46, %v878_v49  ;;  %v1499_v49 = vsel %vm1492_vm3, %v1496_v40, %v1498_v26 }
  0xfd   : > { %v1268_v47 = vsel %vm1208_vm1, %v1263_v50, %v1267_v13  ;;  %v10764_v50 = vld [vmem:[%s15447_s1] sm:$0xff] }
  0xfe   : > { %v11882_v63 = vadd.f32 %v1369_v52, %v1159_v11  ;;  %2345 = vmatpush.bf16.msra.mxu2 %v10764_v50 }
 0x101   : > { %v1371_v59 = vpop.f32.mrf.mxu3 }
 0x102   : > { %v11887_v42 = vpop.f32.mrf.mxu0  ;;  %v882_v15 = vpop.f32.mrf.mxu1 }
 0x103   : > { %v1087_v7 = vpop.f32.mrf.mxu2  ;;  %v883_v3 = vadd.f32 %v882_v15, %v729_v21  ;;  %v10795_v15 = vld [vmem:[%s15447_s1 + $0xf8] sm:$0xff] }
 0x104   : > { %v1160_v25 = vadd.f32 %v1087_v7, %v880_v54  ;;  %2826 = vmatpush.bf16.msra.mxu0 %v10795_v15 }
 0x105   : > { %921 = vmatmul.bf16.gmra.mxu1 %v11477_v6  ;;  %1608 = vmatmul.bf16.gmra.mxu0 %v1499_v49  ;;  %v1500_v6 = vrot.slane %v11667_v1, 2 }
 0x106   : > { %1413 = vmatmul.bf16.gmra.mxu3 %v1264_v44  ;;  %v11891_v52 = vadd.f32 %v1371_v59, %v1160_v25 }
 0x107   : > { %v1501_v44 = vsel %vm1492_vm3, %v1498_v26, %v1500_v6  ;;  %v1269_v26 = vrot.slane %v625_v60, 1 }
 0x108   : > { %1129 = vmatmul.bf16.gmra.mxu2 %v993_v55 }
 0x109   : > { %v1374_v30 = vpop.f32.mrf.mxu3 }
 0x10a   : > { %v11898_v40 = vpop.f32.mrf.mxu0  ;;  %v884_v21 = vpop.f32.mrf.mxu1 }
 0x10b   : > { %v1090_v43 = vpop.f32.mrf.mxu2  ;;  %v885_v41 = vadd.f32 %v884_v21, %v731_v62  ;;  %v995_v62 = vsel %vm968_vm2, %v992_v33, %v994_v5 }
 0x10c   : > { %v1161_v36 = vadd.f32 %v1090_v43, %v883_v3 }
 0x10e   : > { %v11900_v46 = vadd.f32 %v1374_v30, %v1161_v36  ;;  %v10772_v30 = vld [vmem:[%s15447_s1 + $0x40] sm:$0xff]  ;;  %v996_v36 = vrot.slane %v11500_v16, 1 }
 0x10f   : > { %2192 = vmatpush.bf16.msra.mxu1 %v10772_v30 }
 0x111   : > { %v1376_v11 = vpop.f32.mrf.mxu3 }
 0x112   : > { %v11905_v59 = vpop.f32.mrf.mxu0  ;;  %v887_v17 = vpop.f32.mrf.mxu1 }
 0x113   : > { %v1092_v28 = vpop.f32.mrf.mxu2  ;;  %v888_v7 = vadd.f32 %v887_v17, %v734_v61  ;;  %v10780_v61 = vld [vmem:[%s15447_s1 + $0x80] sm:$0xff]  ;;  %v997_v17 = vsel %vm968_vm2, %v994_v5, %v996_v36 }
 0x114   : > { %v1162_v54 = vadd.f32 %v1092_v28, %v885_v41  ;;  %2551 = vmatpush.bf16.msra.mxu3 %v10780_v61 }
 0x115   : > { %926 = vmatmul.bf16.gmra.mxu1 %v11496_v14  ;;  %1613 = vmatmul.bf16.gmra.mxu0 %v1501_v44  ;;  %v1270_v14 = vrot.slane %v621_v29, 2  ;;  %v1502_v29 = vrot.slane %v11688_v35, 2 }
 0x116   : > { %1418 = vmatmul.bf16.gmra.mxu3 %v1268_v47  ;;  %v11909_v25 = vadd.f32 %v1376_v11, %v1162_v54 }
 0x117   : > { %v1271_v57 = vor.u32 %v1270_v14, %v1269_v26  ;;  %v1503_v54 = vsel %vm1492_vm3, %v1500_v6, %v1502_v29  ;;  %v1187_v6 = vld [vmem:[%s11470_s26 + $0x80] sm:$0x3]  ;;  %v1504_v14 = vrot.slane %v11701_v45, 2 }
 0x118   : > { %1134 = vmatmul.bf16.gmra.mxu2 %v995_v62  ;;  %v1206_v61 = vunpack.c.l.b16 %v1187_v6 }
 0x119   : > { %v1379_v1 = vpop.f32.mrf.mxu3  ;;  %v1272_v21 = vsel %vm1208_vm1, %v1267_v13, %v1271_v57  ;;  %v1273_v13 = vrot.slane %v633_v31, 1  ;;  %v998_v31 = vrot.slane %v11486_v9, 1 }
 0x11a   : > { %v11925_v3 = vpop.f32.mrf.mxu0  ;;  %v889_v55 = vpop.f32.mrf.mxu1 }
 0x11b   : > { %v1095_v33 = vpop.f32.mrf.mxu2  ;;  %v890_v2 = vadd.f32 %v889_v55, %v11876_v20 }
 0x11c   : > { %v1163_v49 = vadd.f32 %v1095_v33, %v888_v7  ;;  %v1274_v7 = vrot.slane %v629_v19, 2  ;;  %v11957_v19 = vpack.c.b16 %v1206_v61, %v1206_v61 }
 0x11e   : > { %v11931_v60 = vadd.f32 %v1379_v1, %v1163_v49  ;;  %v1275_v15 = vor.u32 %v1274_v7, %v1273_v13  ;;  %v1278_v45 = vshrl.u32 %v11957_v19, 16  ;;  %v1281_v9 = vshll.u32 %v11957_v19, 16 }
 0x120   : > { %v1276_v33 = vsel %vm1208_vm1, %v1271_v57, %v1275_v15 }
 0x121   : > { %v1381_v43 = vpop.f32.mrf.mxu3 }
 0x122   : > { %v11936_v47 = vpop.f32.mrf.mxu0  ;;  %v892_v28 = vpop.f32.mrf.mxu1 }
 0x123   : > { %v1097_v41 = vpop.f32.mrf.mxu2  ;;  %v893_v20 = vadd.f32 %v892_v28, %v11887_v42  ;;  %v1283_v28 = vrot.slane %v1281_v9, 2  ;;  %v12006_v9 = vld [vmem:[%s11470_s26 + $0x88] sm:$0xff] }
 0x124   : > { %v1164_v11 = vadd.f32 %v1097_v41, %v890_v2 }
 0x125   : > { %931 = vmatmul.bf16.gmra.mxu1 %v11483_v8  ;;  %1618 = vmatmul.bf16.gmra.mxu0 %v1503_v54 }
 0x126   : > { %1423 = vmatmul.bf16.gmra.mxu3 %v1272_v21  ;;  %v11941_v44 = vadd.f32 %v1381_v43, %v1164_v11  ;;  %v999_v21 = vsel %vm968_vm2, %v996_v36, %v998_v31  ;;  %v10826_v36 = vld [vmem:[%s15447_s1 + $0x38] sm:$0xff]  ;;  %v1280_v11 = vrot.slane %v1278_v45, 1 }
 0x127   : > { %3810 = vmatpush.bf16.msrb.mxu3 %v10826_v36 }
 0x128   : > { %1139 = vmatmul.bf16.gmra.mxu2 %v997_v17  ;;  %v1284_v7 = vor.u32 %v1283_v28, %v1280_v11  ;;  %v1997_v28 = vshll.u32 %v12006_v9, 16 }
 0x129   : > { %v1384_v35 = vpop.f32.mrf.mxu3 }
 0x12a   : > { %v11949_v42 = vpop.f32.mrf.mxu0  ;;  %v894_v50 = vpop.f32.mrf.mxu1 }
 0x12b   : > { %v1100_v62 = vpop.f32.mrf.mxu2  ;;  %v895_v5 = vadd.f32 %v894_v50, %v11898_v40  ;;  %v1505_v40 = vsel %vm1492_vm3, %v1502_v29, %v1504_v14  ;;  %v10834_v29 = vld [vmem:[%s15447_s1 + $0x78] sm:$0xff]  ;;  %v1000_v50 = vrot.slane %v11503_v18, 1 }
 0x12c   : > { %v1165_v1 = vadd.f32 %v1100_v62, %v893_v20  ;;  %3657 = vmatpush.bf16.msrb.mxu2 %v10834_v29 }
 0x12e   : > { %v11952_v8 = vadd.f32 %v1384_v35, %v1165_v1  ;;  %v10803_v35 = vld [vmem:[%s15447_s1 + $0x138] sm:$0xff]  ;;  %v1506_v1 = vrot.slane %v11723_v4, 2  ;;  %v1001_v4 = vsel %vm968_vm2, %v998_v31, %v1000_v50  ;;  %v1999_v50 = vrot.slane %v1997_v28, 1 }
 0x12f   : > { %3064 = vmatpush.bf16.msrb.mxu1 %v10803_v35 }
 0x131   : > { %v1386_v26 = vpop.f32.mrf.mxu3 }
 0x132   : > { %v11959_v30 = vpop.f32.mrf.mxu0  ;;  %v897_v2 = vpop.f32.mrf.mxu1 }
 0x133   : > { %v1102_v49 = vpop.f32.mrf.mxu2  ;;  %v898_v43 = vadd.f32 %v897_v2, %v11905_v59  ;;  %v10794_v59 = vld [vmem:[%s15447_s1 + $0xf0] sm:$0xff]  ;;  %v1507_v2 = vsel %vm1492_vm3, %v1504_v14, %v1506_v1 }
 0x134   : > { %v1166_v55 = vadd.f32 %v1102_v49, %v895_v5  ;;  %2827 = vmatpush.bf16.msra.mxu0 %v10794_v59  ;;  %v1285_v5 = vsel %vm1208_vm1, %v1275_v15, %v1284_v7  ;;  %v1508_v7 = vrot.slane %v11736_v27, 2 }
 0x135   : > { %936 = vmatmul.bf16.gmra.mxu1 %v11500_v16  ;;  %1623 = vmatmul.bf16.gmra.mxu0 %v1505_v40 }
 0x136   : > { %1428 = vmatmul.bf16.gmra.mxu3 %v1276_v33  ;;  %v11966_v41 = vadd.f32 %v1386_v26, %v1166_v55  ;;  %v11990_v26 = vld [vmem:[%s11470_s26 + $0x80] sm:$0xff]  }
 0x137   : > { %v2427_v33 = vld [vmem:[%s11470_s26 + $0x80] sm:$0xe]  ;;  %v15457_v18 = vunpack.c.h.b16 %v11990_v26  ;;  %v1992_v14 = vshll.u32 %v11990_v26, 16  ;;  %v1990_v36 = vshrl.u32 %v11990_v26, 16 }
 0x138   : > { %1144 = vmatmul.bf16.gmra.mxu2 %v999_v21  ;;  %v12002_v21 = vld [vmem:[%s11470_s26 + $0x78] sm:$0xff] }
 0x139   : > { %v1389_v57 = vpop.f32.mrf.mxu3  ;;  %v1994_v11 = vrot.slane %v1992_v14, 1 }
 0x13a   : > { %v11978_v20 = vpop.f32.mrf.mxu0  ;;  %v899_v17 = vpop.f32.mrf.mxu1 }
 0x13b   : > { %v1105_v16 = vpop.f32.mrf.mxu2  ;;  %v900_v13 = vadd.f32 %v899_v17, %v11925_v3  ;;  %v2448_v17 = vrot.slane %v12006_v9, 1 }
 0x13c   : > { %v1167_v54 = vadd.f32 %v1105_v16, %v898_v43  ;;  %v2445_v43 = vunpack.c.l.b16 %v2427_v33 }
 0x13e   : > { %v11984_v62 = vadd.f32 %v1389_v57, %v1167_v54 }
 0x141   : > { %v1391_v6 = vpop.f32.mrf.mxu3 }
 0x142   : > { %v11993_v55 = vpop.f32.mrf.mxu0  ;;  %v902_v3 = vpop.f32.mrf.mxu1 }
 0x143   : > { %v1107_v61 = vpop.f32.mrf.mxu2  ;;  %v903_v40 = vadd.f32 %v902_v3, %v11936_v47  ;;  %v12011_v47 = vpack.c.b16 %v15457_v18, %v2445_v43  ;;  %v1509_v3 = vsel %vm1492_vm3, %v1506_v1, %v1508_v7  ;;  %v12035_v43 = vld [vmem:[%s11470_s26 + $0x90] sm:$0xff]  ;;  %v2001_v1 = vshrl.u32 %v12006_v9, 16 }
 0x144   : > { %v1168_v49 = vadd.f32 %v1107_v61, %v900_v13 }
 0x145   : > { %941 = vmatmul.bf16.gmra.mxu1 %v12002_v21  ;;  %1628 = vmatmul.bf16.gmra.mxu0 %v1507_v2  ;;  %v2447_v54 = vrot.slane %v12011_v47, 1 }
 0x146   : > { %1433 = vmatmul.bf16.gmra.mxu3 %v1285_v5  ;;  %v11999_v15 = vadd.f32 %v1391_v6, %v1168_v49  ;;  %v1995_v6 = vor.u32 %v1994_v11, %v1990_v36  ;;  %v10833_v36 = vld [vmem:[%s15447_s1 + $0x70] sm:$0xff]  ;;  %v10793_v11 = vld [vmem:[%s15447_s1 + $0xe8] sm:$0xff] }
 0x147   : > { %v2449_v5 = vsel %vm968_vm2, %v2447_v54, %v2448_v17  ;;  %v2450_v54 = vrot.slane %v12035_v43, 1  ;;  %3658 = vmatpush.bf16.msrb.mxu2 %v10833_v36  ;;  %2828 = vmatpush.bf16.msra.mxu0 %v10793_v11 }
 0x148   : > { %1149 = vmatmul.bf16.gmra.mxu2 %v1001_v4  ;;  %v2000_v2 = vsel %vm508_vm0, %v1995_v6, %v1999_v50 }
 0x149   : > { %v1394_v45 = vpop.f32.mrf.mxu3 }
 0x14a   : > { %v12013_v29 = vpop.f32.mrf.mxu0  ;;  %v904_v59 = vpop.f32.mrf.mxu1 }
 0x14b   : > { %v1110_v31 = vpop.f32.mrf.mxu2  ;;  %v905_v16 = vadd.f32 %v904_v59, %v11949_v42  ;;  %v2005_v59 = vshll.u32 %v12035_v43, 16 }
 0x14c   : > { %v1169_v57 = vadd.f32 %v1110_v31, %v903_v40 }
 0x14e   : > { %v12020_v35 = vadd.f32 %v1394_v45, %v1169_v57 }
 0x151   : > { %v1396_v13 = vpop.f32.mrf.mxu3 }
 0x152   : > { %v12026_v49 = vpop.f32.mrf.mxu0  ;;  %v907_v42 = vpop.f32.mrf.mxu1 }
 0x153   : > { %v1112_v61 = vpop.f32.mrf.mxu2  ;;  %v908_v40 = vadd.f32 %v907_v42, %v11959_v30  ;;  %v2451_v42 = vsel %vm968_vm2, %v2448_v17, %v2450_v54  ;;  %v12075_v17 = vld [vmem:[%s15451_s5] ss:$0 sm:$0xff] }
 0x154   : > { %v1170_v33 = vadd.f32 %v1112_v61, %v905_v16  ;;  %v10825_v16 = vld [vmem:[%s15447_s1 + $0x30] sm:$0xff]  ;;  %v2003_v61 = vor.u32 %v2001_v1, %v1999_v50 }
 0x155   : > { %1633 = vmatmul.bf16.gmra.mxu0 %v1509_v3  ;;  %2193 = vmatmul.bf16.vlgmr.msra.gmra.mxu1 %v2000_v2  ;;  %v12066_v2 = vld [vmem:[%s15450_s4] ss:$0 sm:$0xff] }
 0x156   : > { %2552 = vmatmul.bf16.vlgmr.msra.gmra.mxu3 %v2449_v5  ;;  %v12031_v27 = vadd.f32 %v1396_v13, %v1170_v33  ;;  %v10802_v13 = vld [vmem:[%s15447_s1 + $0x130] sm:$0xff]  ;;  %v1510_v5 = vrot.slane %v11755_v51, 2  ;;  %v2007_v33 = vrot.slane %v2005_v59, 1 }
 0x157   : > { %3811 = vmatpush.bf16.msrb.mxu3 %v10825_v16  ;;  %3065 = vmatpush.bf16.msrb.mxu1 %v10802_v13 }
 0x158   : > { %2346 = vmatmul.bf16.vlgmr.msra.gmra.mxu2 %v11990_v26  ;;  %v2008_v50 = vsel %vm508_vm0, %v2003_v61, %v2007_v33 }
 0x159   : > { %v1399_v4 = vpop.f32.mrf.mxu3 }
 0x15a   : > { %v12037_v31 = vpop.f32.mrf.mxu0  ;;  %v909_v57 = vpop.f32.mrf.mxu1 }
 0x15b   : > { %v1115_v45 = vpop.f32.mrf.mxu2  ;;  %v910_v30 = vadd.f32 %v909_v57, %v11978_v20 }
 0x15c   : > { %v1171_v14 = vadd.f32 %v1115_v45, %v908_v40  ;;  %v1511_v45 = vsel %vm1492_vm3, %v1508_v7, %v1510_v5  ;;  %v12082_v7 = vld [vmem:[%s11470_s26 + $0x98] sm:$0xff] }
 0x15e   : > { %v12055_v6 = vadd.f32 %v1399_v4, %v1171_v14 }
 0x161   : > { %v1401_v20 = vpop.f32.mrf.mxu3 }
 0x162   : > { %v912_v4 = vpop.f32.mrf.mxu1  ;;  %v1599_v51 = vpop.f32.mrf.mxu0 }
 0x163   : > { %v1117_v3 = vpop.f32.mrf.mxu2  ;;  %v913_v14 = vadd.f32 %v912_v4, %v11993_v55  ;;  %v1679_v57 = vadd.f32 %v1599_v51, %v11841_v39  ;;  %v2452_v51 = vrot.slane %v12082_v7, 1 }
 0x164   : > { %v1172_v40 = vadd.f32 %v1117_v3, %v910_v30 }
 0x165   : > { %v1712_v30 = vmul.f32 %v12066_v2, %v1679_v57  ;;  %1638 = vmatmul.bf16.gmra.mxu0 %v1511_v45  ;;  %2198 = vmatmul.bf16.gmra.mxu1 %v2008_v50 }
 0x166   : > { %2557 = vmatmul.bf16.gmra.mxu3 %v2451_v42  ;;  %v12077_v36 = vadd.f32 %v1401_v20, %v1172_v40  ;;  %v2009_v42 = vshrl.u32 %v12035_v43, 16  ;;  %v15458_v20 = vshll.u32 %v12082_v7, 16 }
 0x167   : > { %v1745_v55 = vadd.f32 %v12075_v17, %v1712_v30 }
 0x168   : > { %2351 = vmatmul.bf16.gmra.mxu2 %v12006_v9  ;;  %v2011_v30 = vor.u32 %v2009_v42, %v2007_v33 }
 0x169   : > { %v1404_v11 = vpop.f32.mrf.mxu3  ;;  %v1777_v39 = vmax.f32 %v1745_v55, 0.0  ;;  %v2015_v55 = vrot.slane %v15458_v20, 1 }
 0x16a   : > { %v914_v61 = vpop.f32.mrf.mxu1  ;;  %v1601_v3 = vpop.f32.mrf.mxu0 }
 0x16b   : > { %v1120_v16 = vpop.f32.mrf.mxu2  ;;  %1809 = vst [vmem:[#allocation2] sm:$0xff] %v1777_v39  ;;  %v915_v40 = vadd.f32 %v914_v61, %v12013_v29  ;;  %v1680_v4 = vadd.f32 %v1601_v3, %v11848_v24  ;;  %v2453_v29 = vsel %vm968_vm2, %v2450_v54, %v2452_v51 }
 0x16c   : > { %v1173_v13 = vadd.f32 %v1120_v16, %v913_v14  ;;  %v1512_v14 = vrot.slane %v11773_v22, 2  ;;  %v2016_v22 = vsel %vm508_vm0, %v2011_v30, %v2015_v55 }
 0x16d   : > { %v1713_v50 = vmul.f32 %v12066_v2, %v1680_v4 }
 0x16e   : > { %v12090_v45 = vadd.f32 %v1404_v11, %v1173_v13  ;;  %v1513_v3 = vsel %vm1492_vm3, %v1510_v5, %v1512_v14 }
 0x16f   : > { %v1746_v39 = vadd.f32 %v12075_v17, %v1713_v50 }
 0x171   : > { %v1406_v57 = vpop.f32.mrf.mxu3  ;;  %v1778_v24 = vmax.f32 %v1746_v39, 0.0 }
 0x172   : > { %v917_v13 = vpop.f32.mrf.mxu1  ;;  %v1604_v61 = vpop.f32.mrf.mxu0 }
 0x173   : > { %v1122_v16 = vpop.f32.mrf.mxu2  ;;  %1810 = vst [vmem:[#allocation2 + $0x8] sm:$0xff] %v1778_v24  ;;  %v918_v33 = vadd.f32 %v917_v13, %v12026_v49  ;;  %v1681_v4 = vadd.f32 %v1604_v61, %v11855_v32  ;;  %v15466_v32 = vshrl.u32 %v12082_v7, 16  ;;  %v10832_v13 = vld [vmem:[%s15447_s1 + $0x68] sm:$0xff]  ;;  %v10792_v61 = vld [vmem:[%s15447_s1 + $0xe0] sm:$0xff] }
 0x174   : > { %v1174_v11 = vadd.f32 %v1122_v16, %v915_v40  ;;  %v12109_v40 = vld [vmem:[%s11470_s26 + $0xa0] sm:$0xff]  ;;  %3659 = vmatpush.bf16.msrb.mxu2 %v10832_v13  ;;  %2829 = vmatpush.bf16.msra.mxu0 %v10792_v61 }
 0x175   : > { %v1714_v54 = vmul.f32 %v12066_v2, %v1681_v4  ;;  %1643 = vmatmul.bf16.gmra.mxu0 %v1513_v3  ;;  %2203 = vmatmul.bf16.gmra.mxu1 %v2016_v22  ;;  %v10824_v3 = vld [vmem:[%s15447_s1 + $0x28] sm:$0xff]  ;;  %v2454_v22 = vrot.slane %v12109_v40, 1 }
 0x176   : > { %2562 = vmatmul.bf16.gmra.mxu3 %v2453_v29  ;;  %v12104_v18 = vadd.f32 %v1406_v57, %v1174_v11  ;;  %v15459_v57 = vshll.u32 %v12109_v40, 16 }
 0x177   : > { %v1747_v5 = vadd.f32 %v12075_v17, %v1714_v54  ;;  %v11216_v54 = vld [vmem:[%s11470_s26 + $0x58] sm:$0xff]  ;;  %3812 = vmatpush.bf16.msrb.mxu3 %v10824_v3 }
 0x178   : > { %2356 = vmatmul.bf16.gmra.mxu2 %v12035_v43 }
 0x179   : > { %v1409_v50 = vpop.f32.mrf.mxu3  ;;  %v1779_v30 = vmax.f32 %v1747_v5, 0.0  ;;  %v1514_v5 = vrot.slane %v11216_v54, 2 }
 0x17a   : > { %v919_v49 = vpop.f32.mrf.mxu1  ;;  %v1606_v16 = vpop.f32.mrf.mxu0 }
 0x17b   : > { %v1125_v39 = vpop.f32.mrf.mxu2  ;;  %1811 = vst [vmem:[#allocation2 + $0x10] sm:$0xff] %v1779_v30  ;;  %v920_v29 = vadd.f32 %v919_v49, %v12037_v31  ;;  %v1682_v11 = vadd.f32 %v1606_v16, %v11863_v37  ;;  %v10801_v31 = vld [vmem:[%s15447_s1 + $0x128] sm:$0xff]  ;;  %v2019_v30 = vor.u32 %v15466_v32, %v2015_v55  ;;  %v1515_v54 = vsel %vm1492_vm3, %v1512_v14, %v1514_v5 }
 0x17c   : > { %v1175_v24 = vadd.f32 %v1125_v39, %v918_v33  ;;  %v2023_v39 = vrot.slane %v15459_v57, 1  ;;  %3066 = vmatpush.bf16.msrb.mxu1 %v10801_v31 }
 0x17d   : > { %v1715_v37 = vmul.f32 %v12066_v2, %v1682_v11 }
 0x17e   : > { %v12129_v33 = vadd.f32 %v1409_v50, %v1175_v24  ;;  %v2455_v50 = vsel %vm968_vm2, %v2452_v51, %v2454_v22  ;;  %v2024_v20 = vsel %vm508_vm0, %v2019_v30, %v2023_v39 }
 0x17f   : > { %v1748_v49 = vadd.f32 %v12075_v17, %v1715_v37 }
 0x181   : > { %v1411_v4 = vpop.f32.mrf.mxu3  ;;  %v1780_v24 = vmax.f32 %v1748_v49, 0.0 }
 0x182   : > { %v922_v13 = vpop.f32.mrf.mxu1  ;;  %v1609_v61 = vpop.f32.mrf.mxu0 }
 0x183   : > { %v1127_v16 = vpop.f32.mrf.mxu2  ;;  %1812 = vst [vmem:[#allocation2 + $0x18] sm:$0xff] %v1780_v24  ;;  %v1683_v55 = vadd.f32 %v1609_v61, %v11882_v63  ;;  %v923_v37 = vadd.f32 %v922_v13, %v11764_v10  ;;  %v15465_v24 = vshrl.u32 %v12109_v40, 16  ;;  %v11217_v10 = vld [vmem:[%s11470_s26 + $0x60] sm:$0xff] }
 0x184   : > { %v1176_v11 = vadd.f32 %v1127_v16, %v920_v29  ;;  %v12147_v29 = vld [vmem:[%s11470_s26 + $0xa8] sm:$0xff]  ;;  %v1516_v13 = vrot.slane %v11217_v10, 2 }
 0x185   : > { %v1716_v31 = vmul.f32 %v12066_v2, %v1683_v55  ;;  %1648 = vmatmul.bf16.gmra.mxu0 %v1515_v54  ;;  %2208 = vmatmul.bf16.gmra.mxu1 %v2024_v20  ;;  %v15460_v16 = vshll.u32 %v12147_v29, 16 }
 0x186   : > { %2567 = vmatmul.bf16.gmra.mxu3 %v2455_v50  ;;  %v12142_v3 = vadd.f32 %v1411_v4, %v1176_v11  ;;  %v2456_v11 = vrot.slane %v12147_v29, 1  ;;  %v1517_v10 = vsel %vm1492_vm3, %v1514_v5, %v1516_v13 }
 0x187   : > { %v1749_v14 = vadd.f32 %v12075_v17, %v1716_v31  ;;  %v2027_v31 = vor.u32 %v15465_v24, %v2023_v39 }
 0x188   : > { %2361 = vmatmul.bf16.gmra.mxu2 %v12082_v7 }
 0x189   : > { %v1414_v51 = vpop.f32.mrf.mxu3  ;;  %v1781_v30 = vmax.f32 %v1749_v14, 0.0  ;;  %v2031_v14 = vrot.slane %v15460_v16, 1 }
 0x18a   : > { %v924_v50 = vpop.f32.mrf.mxu1  ;;  %v1611_v4 = vpop.f32.mrf.mxu0 }
 0x18b   : > { %v1130_v49 = vpop.f32.mrf.mxu2  ;;  %1813 = vst [vmem:[#allocation2 + $0x20] sm:$0xff] %v1781_v30  ;;  %v1684_v20 = vadd.f32 %v1611_v4, %v11891_v52  ;;  %v925_v30 = vadd.f32 %v924_v50, %v11786_v38  ;;  %v2457_v52 = vsel %vm968_vm2, %v2454_v22, %v2456_v11  ;;  %v2032_v57 = vsel %vm508_vm0, %v2027_v31, %v2031_v14  ;;  %v12174_v50 = vld [vmem:[%s11470_s26 + $0xb0] sm:$0xff] }
 0x18c   : > { %v1177_v63 = vadd.f32 %v1130_v49, %v923_v37 }
 0x18d   : > { %v1717_v54 = vmul.f32 %v12066_v2, %v1684_v20 }
 0x18e   : > { %v12155_v61 = vadd.f32 %v1414_v51, %v1177_v63 }
 0x18f   : > { %v1750_v37 = vadd.f32 %v12075_v17, %v1717_v54 }
 0x191   : > { %v1416_v55 = vpop.f32.mrf.mxu3  ;;  %v1782_v49 = vmax.f32 %v1750_v37, 0.0 }
 0x192   : > { %v927_v4 = vpop.f32.mrf.mxu1  ;;  %v1614_v20 = vpop.f32.mrf.mxu0 }
 0x193   : > { %v1132_v51 = vpop.f32.mrf.mxu2  ;;  %1814 = vst [vmem:[#allocation2 + $0x28] sm:$0xff] %v1782_v49  ;;  %v1685_v39 = vadd.f32 %v1614_v20, %v11900_v46  ;;  %v928_v54 = vadd.f32 %v927_v4, %v11803_v53  ;;  %v15461_v49 = vshll.u32 %v12174_v50, 16  ;;  %v12186_v53 = vld [vmem:[%s11470_s26 + $0x68] sm:$0xff] }
 0x194   : > { %v1178_v63 = vadd.f32 %v1132_v51, %v925_v30  ;;  %v2458_v51 = vrot.slane %v12174_v50, 1  ;;  %v1518_v4 = vrot.slane %v12186_v53, 2 }
 0x195   : > { %v1718_v38 = vmul.f32 %v12066_v2, %v1685_v39  ;;  %1653 = vmatmul.bf16.gmra.mxu0 %v1517_v10  ;;  %2213 = vmatmul.bf16.gmra.mxu1 %v2032_v57 }
 0x196   : > { %2572 = vmatmul.bf16.gmra.mxu3 %v2457_v52  ;;  %v12169_v16 = vadd.f32 %v1416_v55, %v1178_v63  ;;  %v15462_v52 = vshrl.u32 %v12147_v29, 16 }
 0x197   : > { %v1751_v5 = vadd.f32 %v12075_v17, %v1718_v38  ;;  %v2039_v38 = vrot.slane %v15461_v49, 1 }
 0x198   : > { %2366 = vmatmul.bf16.gmra.mxu2 %v12109_v40  ;;  %v2035_v39 = vor.u32 %v15462_v52, %v2031_v14 }
 0x199   : > { %v1419_v22 = vpop.f32.mrf.mxu3  ;;  %v1783_v31 = vmax.f32 %v1751_v5, 0.0 }
 0x19a   : > { %v929_v30 = vpop.f32.mrf.mxu1  ;;  %v1616_v55 = vpop.f32.mrf.mxu0  ;;  %v2040_v53 = vsel %vm508_vm0, %v2035_v39, %v2039_v38 }
 0x19b   : > { %v1135_v37 = vpop.f32.mrf.mxu2  ;;  %1815 = vst [vmem:[#allocation2 + $0x30] sm:$0xff] %v1783_v31  ;;  %v1686_v57 = vadd.f32 %v1616_v55, %v11909_v25  ;;  %v930_v25 = vadd.f32 %v929_v30, %v11812_v12  ;;  %v10823_v30 = vld [vmem:[%s15447_s1 + $0x20] sm:$0xff] }
 0x19c   : > { %v1179_v46 = vadd.f32 %v1135_v37, %v928_v54  ;;  %3813 = vmatpush.bf16.msrb.mxu3 %v10823_v30 }
 0x19d   : > { %v1719_v20 = vmul.f32 %v12066_v2, %v1686_v57  ;;  %v1519_v57 = vsel %vm1492_vm3, %v1516_v13, %v1518_v4  ;;  %v10791_v13 = vld [vmem:[%s15447_s1 + $0xd8] sm:$0xff] }
 0x19e   : > { %v12182_v63 = vadd.f32 %v1419_v22, %v1179_v46  ;;  %v2459_v22 = vsel %vm968_vm2, %v2456_v11, %v2458_v51  ;;  %v10831_v11 = vld [vmem:[%s15447_s1 + $0x60] sm:$0xff]  ;;  %2830 = vmatpush.bf16.msra.mxu0 %v10791_v13 }
 0x19f   : > { %v1752_v5 = vadd.f32 %v12075_v17, %v1719_v20  ;;  %v12213_v20 = vld [vmem:[%s11470_s26 + $0xb8] sm:$0xff]  ;;  %3660 = vmatpush.bf16.msrb.mxu2 %v10831_v11  ;;  %v12228_v11 = vld [vmem:[%s11470_s26 + $0x70] sm:$0xff] }
 0x1a0   : > { %v1520_v13 = vrot.slane %v12228_v11, 2  ;;  %v12294_v11 = vld [vmem:[%s11470_s26 + $0xc8] sm:$0xff] }
 0x1a1   : > { %v1421_v10 = vpop.f32.mrf.mxu3  ;;  %v1784_v54 = vmax.f32 %v1752_v5, 0.0 }
 0x1a2   : > { %v932_v46 = vpop.f32.mrf.mxu1  ;;  %v1619_v55 = vpop.f32.mrf.mxu0 }
 0x1a3   : > { %v1137_v31 = vpop.f32.mrf.mxu2  ;;  %1816 = vst [vmem:[#allocation2 + $0x38] sm:$0xff] %v1784_v54  ;;  %v1687_v14 = vadd.f32 %v1619_v55, %v11931_v60  ;;  %v933_v5 = vadd.f32 %v932_v46, %v11781_v58  ;;  %v15464_v55 = vshrl.u32 %v12174_v50, 16 }
 0x1a4   : > { %v1180_v37 = vadd.f32 %v1137_v31, %v930_v25 }
 0x1a5   : > { %v1720_v12 = vmul.f32 %v12066_v2, %v1687_v14  ;;  %1658 = vmatmul.bf16.gmra.mxu0 %v1519_v57  ;;  %2218 = vmatmul.bf16.gmra.mxu1 %v2040_v53  ;;  %v15463_v57 = vshll.u32 %v12213_v20, 16  ;;  %v2460_v14 = vrot.slane %v12213_v20, 1  ;;  %v2043_v30 = vor.u32 %v15464_v55, %v2039_v38 }
 0x1a6   : > { %2577 = vmatmul.bf16.gmra.mxu3 %v2459_v22  ;;  %v12199_v49 = vadd.f32 %v1421_v10, %v1180_v37  ;;  %v10800_v10 = vld [vmem:[%s15447_s1 + $0x120] sm:$0xff]  ;;  %v1521_v38 = vsel %vm1492_vm3, %v1518_v4, %v1520_v13 }
 0x1a7   : > { %v1753_v39 = vadd.f32 %v12075_v17, %v1720_v12  ;;  %3067 = vmatpush.bf16.msrb.mxu1 %v10800_v10  ;;  %v2047_v10 = vrot.slane %v15463_v57, 1  ;;  %v6359_v57 = vld [vmem:[#allocation2 + $0x2] ss:$5 sm:$0xff] }
 0x1a8   : > { %2371 = vmatmul.bf16.gmra.mxu2 %v12147_v29 }
 0x1a9   : > { %v1424_v60 = vpop.f32.mrf.mxu3  ;;  %v1785_v25 = vmax.f32 %v1753_v39, 0.0 }
 0x1aa   : > { %v934_v31 = vpop.f32.mrf.mxu1  ;;  %v1621_v37 = vpop.f32.mrf.mxu0 }
 0x1ab   : > { %v1140_v22 = vpop.f32.mrf.mxu2  ;;  %1817 = vst [vmem:[#allocation2 + $0x40] sm:$0xff] %v1785_v25  ;;  %v1688_v53 = vadd.f32 %v1621_v37, %v11941_v44  ;;  %v935_v44 = vadd.f32 %v934_v31, %v11798_v48 }
 0x1ac   : > { %v1181_v54 = vadd.f32 %v1140_v22, %v933_v5  ;;  %v6229_v22 = vld [vmem:[#allocation2] ss:$5 sm:$0xff] }
 0x1ad   : > { %v1721_v58 = vmul.f32 %v12066_v2, %v1688_v53 }
 0x1ae   : > { %v12224_v12 = vadd.f32 %v1424_v60, %v1181_v54  ;;  %v2461_v60 = vsel %vm968_vm2, %v2458_v51, %v2460_v14  ;;  %v6281_v54 = vld [vmem:[#allocation2 + $0x1] ss:$5 sm:$0xff] }
 0x1af   : > { %v1754_v39 = vadd.f32 %v12075_v17, %v1721_v58  ;;  %v2048_v58 = vsel %vm508_vm0, %v2043_v30, %v2047_v10  ;;  %v6332_v51 = vmax.f32 %v6229_v22, %v6281_v54 }
 0x1b1   : > { %v1426_v46 = vpop.f32.mrf.mxu3  ;;  %v1786_v5 = vmax.f32 %v1754_v39, 0.0 }
 0x1b2   : > { %v937_v53 = vpop.f32.mrf.mxu1  ;;  %v1624_v52 = vpop.f32.mrf.mxu0 }
 0x1b3   : > { %v1142_v25 = vpop.f32.mrf.mxu2  ;;  %1818 = vst [vmem:[#allocation2 + $0x48] sm:$0xff] %v1786_v5  ;;  %v1689_v48 = vadd.f32 %v1624_v52, %v11952_v8  ;;  %v938_v30 = vadd.f32 %v937_v53, %v11810_v0  ;;  %v6410_v5 = vmax.f32 %v6332_v51, %v6359_v57  ;;  %v6437_v57 = vld [vmem:[#allocation2 + $0x3] ss:$5 sm:$0xff] }
 0x1b4   : > { %v1182_v37 = vadd.f32 %v1142_v25, %v935_v44  ;;  %v12250_v25 = vld [vmem:[%s11470_s26 + $0xc0] sm:$0xff] }
 0x1b5   : > { %v1722_v39 = vmul.f32 %v12066_v2, %v1689_v48  ;;  %1663 = vmatmul.bf16.gmra.mxu0 %v1521_v38  ;;  %2223 = vmatmul.bf16.gmra.mxu1 %v2048_v58  ;;  %v2049_v58 = vshrl.u32 %v12213_v20, 16  ;;  %v2053_v48 = vshll.u32 %v12250_v25, 16  ;;  %v2462_v51 = vrot.slane %v12250_v25, 1 }
 0x1b6   : > { %2582 = vmatmul.bf16.gmra.mxu3 %v2461_v60  ;;  %v12245_v31 = vadd.f32 %v1426_v46, %v1182_v37  ;;  %v10790_v46 = vld [vmem:[%s15447_s1 + $0xd0] sm:$0xff]  ;;  %v6488_v55 = vmax.f32 %v6410_v5, %v6437_v57 }
 0x1b7   : > { %v1755_v4 = vadd.f32 %v12075_v17, %v1722_v39  ;;  %2831 = vmatpush.bf16.msra.mxu0 %v10790_v46  ;;  %v2055_v46 = vrot.slane %v2053_v48, 1 }
 0x1b8   : > { %2376 = vmatmul.bf16.gmra.mxu2 %v12174_v50 }
 0x1b9   : > { %v1429_v44 = vpop.f32.mrf.mxu3  ;;  %v1787_v8 = vmax.f32 %v1755_v4, 0.0 }
 0x1ba   : > { %v6231_v60 = vld [vmem:[#allocation2 + $0x28] ss:$5 sm:$0xff]  ;;  %v6283_v22 = vld [vmem:[#allocation2 + $0x29] ss:$5 sm:$0xff]  ;;  %v939_v37 = vpop.f32.mrf.mxu1  ;;  %v1626_v38 = vpop.f32.mrf.mxu0 }
 0x1bb   : > { %v1145_v52 = vpop.f32.mrf.mxu2  ;;  %v6333_v39 = vmax.f32 %v6231_v60, %v6283_v22  ;;  %1819 = vst [vmem:[#allocation2 + $0x50] sm:$0xff] %v1787_v8  ;;  %v1690_v0 = vadd.f32 %v1626_v38, %v11966_v41  ;;  %v6361_v53 = vld [vmem:[#allocation2 + $0x2a] ss:$5 sm:$0xff]  ;;  %v6439_v32 = vld [vmem:[#allocation2 + $0x2b] ss:$5 sm:$0xff]  ;;  %v1522_v8 = vrot.slane %v12002_v21, 2  ;;  %v2051_v41 = vor.u32 %v2049_v58, %v2047_v10 }
 0x1bc   : > { %v1183_v54 = vadd.f32 %v1145_v52, %v938_v30  ;;  %v10789_v52 = vld [vmem:[%s15447_s1 + $0xc8] sm:$0xff]  ;;  %v940_v38 = vadd.f32 %v939_v37, %v11819_v34  ;;  %v2686_v21 = vshrl.u32 %v12011_v47, 16 }
 0x1bd   : > { %v6411_v24 = vmax.f32 %v6333_v39, %v6361_v53  ;;  %v1723_v30 = vmul.f32 %v12066_v2, %v1690_v0  ;;  %2832 = vmatpush.bf16.msra.mxu0 %v10789_v52  ;;  %v6515_v22 = vld [vmem:[#allocation2 + $0x4] ss:$5 sm:$0xff]  ;;  %v2463_v39 = vsel %vm968_vm2, %v2460_v14, %v2462_v51  ;;  %v1523_v34 = vsel %vm1492_vm3, %v1520_v13, %v1522_v8 }
 0x1be   : > { %v12261_v4 = vadd.f32 %v1429_v44, %v1183_v54  ;;  %v6517_v54 = vld [vmem:[#allocation2 + $0x2c] ss:$5 sm:$0xff]  ;;  %v6566_v0 = vmax.f32 %v6488_v55, %v6515_v22  ;;  %v2056_v14 = vsel %vm508_vm0, %v2051_v41, %v2055_v46 }
 0x1bf   : > { %v6489_v44 = vmax.f32 %v6411_v24, %v6439_v32  ;;  %v1756_v5 = vadd.f32 %v12075_v17, %v1723_v30  ;;  %v10788_v32 = vld [vmem:[%s15447_s1 + $0xc0] sm:$0xff] }
 0x1c1   : > { %v1431_v60 = vpop.f32.mrf.mxu3  ;;  %v6567_v57 = vmax.f32 %v6489_v44, %v6517_v54  ;;  %v1788_v10 = vmax.f32 %v1756_v5, 0.0  ;;  %2833 = vmatpush.bf16.msra.mxu0 %v10788_v32 }
 0x1c2   : > { %v942_v30 = vpop.f32.mrf.mxu1  ;;  %v1629_v52 = vpop.f32.mrf.mxu0 }
 0x1c3   : > { %v1147_v53 = vpop.f32.mrf.mxu2  ;;  %v11052_v55 = vpack.c.bf16 %v6567_v57, %v6566_v0  ;;  %1820 = vst [vmem:[#allocation2 + $0x58] sm:$0xff] %v1788_v10  ;;  %v1691_v37 = vadd.f32 %v1629_v52, %v11984_v62  ;;  %v943_v41 = vadd.f32 %v942_v30, %v11807_v56  ;;  %v2061_v56 = vshll.u32 %v12294_v11, 16 }
 0x1c4   : > { %v1184_v24 = vadd.f32 %v1147_v53, %v940_v38  ;;  %v10830_v38 = vld [vmem:[%s15447_s1 + $0x58] sm:$0xff]  ;;  %v2057_v53 = vshrl.u32 %v12250_v25, 16 }
 0x1c5   : > { %11053 = vst [vmem:[#allocation3] sm:$0xff] %v11052_v55   ;;  %v1724_v44 = vmul.f32 %v12066_v2, %v1691_v37  ;;  %1668 = vmatmul.bf16.gmra.mxu0 %v1523_v34  ;;  %2228 = vmatmul.bf16.gmra.mxu1 %v2056_v14  ;;  %v1524_v14 = vrot.slane %v11957_v19, 2  ;;  %v2063_v37 = vrot.slane %v2061_v56, 1 }
 0x1c6   : > { %2587 = vmatmul.bf16.gmra.mxu3 %v2463_v39  ;;  %v12290_v5 = vadd.f32 %v1431_v60, %v1184_v24  ;;  %v10822_v60 = vld [vmem:[%s15447_s1 + $0x18] sm:$0xff]  ;;  %3661 = vmatpush.bf16.msrb.mxu2 %v10830_v38  ;;  %v2464_v24 = vrot.slane %v12294_v11, 1  ;;  %v2059_v55 = vor.u32 %v2057_v53, %v2055_v46 }
 0x1c7   : > { %v1757_v13 = vadd.f32 %v12075_v17, %v1724_v44  ;;  %v10799_v39 = vld [vmem:[%s15447_s1 + $0x118] sm:$0xff]  ;;  %3814 = vmatpush.bf16.msrb.mxu3 %v10822_v60  ;;  %v1525_v46 = vsel %vm1492_vm3, %v1522_v8, %v1524_v14  ;;  %v2689_v8 = vshll.u32 %v12011_v47, 16 }
 0x1c8   : > { %2381 = vmatmul.bf16.gmra.mxu2 %v12213_v20  ;;  %3068 = vmatpush.bf16.msrb.mxu1 %v10799_v39  ;;  %v2064_v38 = vsel %vm508_vm0, %v2059_v55, %v2063_v37 }
 0x1c9   : > { %v1434_v22 = vpop.f32.mrf.mxu3  ;;  %v1789_v54 = vmax.f32 %v1757_v13, 0.0 }
 0x1ca   : > { %v944_v57 = vpop.f32.mrf.mxu1  ;;  %v1631_v10 = vpop.f32.mrf.mxu0 }
 0x1cb   : > { %v1150_v62 = vpop.f32.mrf.mxu2  ;;  %1821 = vst [vmem:[#allocation2 + $0x60] sm:$0xff] %v1789_v54  ;;  %v1692_v32 = vadd.f32 %v1631_v10, %v11999_v15  ;;  %v945_v44 = vadd.f32 %v944_v57, %v11815_v23 }
 0x1cc   : > { %v1185_v0 = vadd.f32 %v1150_v62, %v943_v41 }
 0x1cd   : > { %v1725_v52 = vmul.f32 %v12066_v2, %v1692_v32 }
 0x1ce   : > { %v12311_v30 = vadd.f32 %v1434_v22, %v1185_v0  ;;  %v2465_v22 = vsel %vm968_vm2, %v2462_v51, %v2464_v24  ;;  %v12333_v51 = vld [vmem:[%s11470_s26 + $0xd0] sm:$0xff] }
 0x1cf   : > { %v1758_v15 = vadd.f32 %v12075_v17, %v1725_v52  ;;  %v2065_v52 = vshrl.u32 %v12294_v11, 16 }
 0x1d1   : > { %v1436_v34 = vpop.f32.mrf.mxu3  ;;  %v1790_v13 = vmax.f32 %v1758_v15, 0.0 }
 0x1d2   : > { %v1634_v62 = vpop.f32.mrf.mxu0  ;;  %v2194_v19 = vpop.f32.mrf.mxu1 }
 0x1d3   : > { %v1152_v41 = vpop.f32.mrf.mxu2  ;;  %1822 = vst [vmem:[#allocation2 + $0x68] sm:$0xff] %v1790_v13  ;;  %v1693_v60 = vadd.f32 %v1634_v62, %v12020_v35  ;;  %v2693_v35 = vrot.slane %v2001_v1, 1  ;;  %v2694_v13 = vrot.slane %v1997_v28, 2  ;;  %v10829_v1 = vld [vmem:[%s15447_s1 + $0x50] sm:$0xff]  ;;  %v2466_v62 = vrot.slane %v12333_v51, 1 }
 0x1d4   : > { %v1186_v54 = vadd.f32 %v1152_v41, %v945_v44  ;;  %v2688_v44 = vrot.slane %v2686_v21, 1  ;;  %v10821_v41 = vld [vmem:[%s15447_s1 + $0x10] sm:$0xff]  ;;  %3662 = vmatpush.bf16.msrb.mxu2 %v10829_v1  ;;  %v2073_v1 = vshrl.u32 %v12333_v51, 16 }
 0x1d5   : > { %v1726_v39 = vmul.f32 %v12066_v2, %v1693_v60  ;;  %1673 = vmatmul.bf16.gmra.mxu0 %v1525_v46  ;;  %2233 = vmatmul.bf16.gmra.mxu1 %v2064_v38  ;;  %v2695_v60 = vor.u32 %v2694_v13, %v2693_v35  ;;  %v2467_v21 = vsel %vm968_vm2, %v2464_v24, %v2466_v62 }
 0x1d6   : > { %2592 = vmatmul.bf16.gmra.mxu3 %v2465_v22  ;;  %v12329_v23 = vadd.f32 %v1436_v34, %v1186_v54  ;;  %v15470_v34 = vshll.u32 %v12333_v51, 16  ;;  %v2691_v22 = vrot.slane %v2689_v8, 2  ;;  %v10798_v54 = vld [vmem:[%s15447_s1 + $0x110] sm:$0xff] }
 0x1d7   : > { %v1759_v57 = vadd.f32 %v12075_v17, %v1726_v39  ;;  %3815 = vmatpush.bf16.msrb.mxu3 %v10821_v41  ;;  %3069 = vmatpush.bf16.msrb.mxu1 %v10798_v54 }
 0x1d8   : > { %2386 = vmatmul.bf16.gmra.mxu2 %v12250_v25  ;;  %v2071_v46 = vrot.slane %v15470_v34, 1  ;;  %v2692_v38 = vor.u32 %v2691_v22, %v2688_v44 }
 0x1d9   : > { %v2553_v0 = vpop.f32.mrf.mxu3  ;;  %v1791_v10 = vmax.f32 %v1759_v57, 0.0 }
 0x1da   : > { %v1636_v55 = vpop.f32.mrf.mxu0  ;;  %v2196_v15 = vpop.f32.mrf.mxu1 }
 0x1db   : > { %v2347_v32 = vpop.f32.mrf.mxu2  ;;  %1823 = vst [vmem:[#allocation2 + $0x70] sm:$0xff] %v1791_v10  ;;  %v1694_v47 = vadd.f32 %v1636_v55, %v12031_v27  ;;  %v2067_v27 = vor.u32 %v2065_v52, %v2063_v37  ;;  %v2696_v37 = vsel %vm1208_vm1, %v2692_v38, %v2695_v60 }
 0x1dc   : > { %v2348_v14 = vadd.f32 %v2347_v32, %v2194_v19 }
 0x1dd   : > { %v1727_v9 = vmul.f32 %v12066_v2, %v1694_v47 }
 0x1de   : > { %v12356_v19 = vadd.f32 %v2553_v0, %v2348_v14  ;;  %v2072_v14 = vsel %vm508_vm0, %v2067_v27, %v2071_v46  ;;  %v2698_v27 = vrot.slane %v2005_v59, 2 }
 0x1df   : > { %v1760_v39 = vadd.f32 %v12075_v17, %v1727_v9 }
 0x1e1   : > { %v2555_v28 = vpop.f32.mrf.mxu3  ;;  %v1792_v0 = vmax.f32 %v1760_v39, 0.0 }
 0x1e2   : > { %v1639_v10 = vpop.f32.mrf.mxu0  ;;  %v2199_v32 = vpop.f32.mrf.mxu1 }
 0x1e3   : > { %v2349_v8 = vpop.f32.mrf.mxu2  ;;  %1824 = vst [vmem:[#allocation2 + $0x78] sm:$0xff] %v1792_v0  ;;  %v1695_v55 = vadd.f32 %v1639_v10, %v12055_v6 }
 0x1e4   : > { %v2350_v57 = vadd.f32 %v2349_v8, %v2196_v15  ;;  %v12373_v15 = vld [vmem:[%s11470_s26 + $0xd8] sm:$0xff] }
 0x1e5   : > { %v1728_v44 = vmul.f32 %v12066_v2, %v1695_v55  ;;  %2238 = vmatmul.bf16.gmra.mxu1 %v2072_v14  ;;  %2834 = vmatmul.bf16.vlgmr.msra.gmra.mxu0 %v2696_v37  ;;  %v15468_v9 = vshll.u32 %v12373_v15, 16  ;;  %v2468_v39 = vrot.slane %v12373_v15, 1 }
 0x1e6   : > { %2597 = vmatmul.bf16.gmra.mxu3 %v2467_v21  ;;  %v12368_v35 = vadd.f32 %v2555_v28, %v2350_v57  ;;  %v2697_v28 = vrot.slane %v2009_v42, 1  ;;  %v2075_v57 = vor.u32 %v2073_v1, %v2071_v46 }
 0x1e7   : > { %v1761_v22 = vadd.f32 %v12075_v17, %v1728_v44  ;;  %v2079_v10 = vrot.slane %v15468_v9, 1  ;;  %v2469_v59 = vsel %vm968_vm2, %v2466_v62, %v2468_v39 }
 0x1e8   : > { %2391 = vmatmul.bf16.gmra.mxu2 %v12294_v11  ;;  %v2699_v42 = vor.u32 %v2698_v27, %v2697_v28 }
 0x1e9   : > { %v2558_v24 = vpop.f32.mrf.mxu3  ;;  %v1793_v13 = vmax.f32 %v1761_v22, 0.0  ;;  %v2080_v44 = vsel %vm508_vm0, %v2075_v57, %v2079_v10  ;;  %v15571_v57 = vshll.u32 %v12082_v7, 16 }
 0x1ea   : > { %v1641_v6 = vpop.f32.mrf.mxu0  ;;  %v2201_v54 = vpop.f32.mrf.mxu1 }
 0x1eb   : > { %v2352_v47 = vpop.f32.mrf.mxu2  ;;  %1825 = vst [vmem:[#allocation2 + $0x80] sm:$0xff] %v1793_v13  ;;  %v1696_v38 = vadd.f32 %v1641_v6, %v12077_v36 }
 0x1ec   : > { %v2353_v41 = vadd.f32 %v2352_v47, %v2199_v32  ;;  %v12401_v47 = vld [vmem:[%s11470_s26 + $0xe0] sm:$0xff] }
 0x1ed   : > { %v1729_v0 = vmul.f32 %v12066_v2, %v1696_v38  ;;  %v15467_v38 = vshll.u32 %v12401_v47, 16 }
 0x1ee   : > { %v12384_v21 = vadd.f32 %v2558_v24, %v2353_v41  ;;  %v2700_v24 = vsel %vm1208_vm1, %v2695_v60, %v2699_v42  ;;  %v15469_v60 = vshrl.u32 %v12373_v15, 16 }
 0x1ef   : > { %v1762_v43 = vadd.f32 %v12075_v17, %v1729_v0  ;;  %v15570_v0 = vshrl.u32 %v12082_v7, 16 }
 0x1f1   : > { %v2560_v8 = vpop.f32.mrf.mxu3  ;;  %v1794_v32 = vmax.f32 %v1762_v43, 0.0  ;;  %v2702_v43 = vrot.slane %v15571_v57, 2 }
 0x1f2   : > { %v1644_v37 = vpop.f32.mrf.mxu0  ;;  %v2204_v55 = vpop.f32.mrf.mxu1 }
 0x1f3   : > { %v2354_v36 = vpop.f32.mrf.mxu2  ;;  %1826 = vst [vmem:[#allocation2 + $0x88] sm:$0xff] %v1794_v32  ;;  %v1697_v46 = vadd.f32 %v1644_v37, %v12090_v45  ;;  %v10828_v32 = vld [vmem:[%s15447_s1 + $0x48] sm:$0xff]  ;;  %v2470_v37 = vrot.slane %v12401_v47, 1 }
 0x1f4   : > { %v2355_v14 = vadd.f32 %v2354_v36, %v2201_v54  ;;  %v10820_v36 = vld [vmem:[%s15447_s1 + $0x8] sm:$0xff]  ;;  %3663 = vmatpush.bf16.msrb.mxu2 %v10828_v32 }
 0x1f5   : > { %v1730_v13 = vmul.f32 %v12066_v2, %v1697_v46  ;;  %2243 = vmatmul.bf16.gmra.mxu1 %v2080_v44  ;;  %2839 = vmatmul.bf16.gmra.mxu0 %v2700_v24  ;;  %v2083_v44 = vor.u32 %v15469_v60, %v2079_v10  ;;  %v2087_v24 = vrot.slane %v15467_v38, 1 }
 0x1f6   : > { %2602 = vmatmul.bf16.gmra.mxu3 %v2469_v59  ;;  %v12396_v22 = vadd.f32 %v2560_v8, %v2355_v14  ;;  %v2701_v8 = vrot.slane %v15570_v0, 1  ;;  %v10797_v14 = vld [vmem:[%s15447_s1 + $0x108] sm:$0xff] }
 0x1f7   : > { %v1763_v41 = vadd.f32 %v12075_v17, %v1730_v13  ;;  %3816 = vmatpush.bf16.msrb.mxu3 %v10820_v36  ;;  %3070 = vmatpush.bf16.msrb.mxu1 %v10797_v14  ;;  %v2088_v57 = vsel %vm508_vm0, %v2083_v44, %v2087_v24  ;;  %v12442_v36 = vld [vmem:[%s11470_s26 + $0xe8] sm:$0xff] }
 0x1f8   : > { %2396 = vmatmul.bf16.gmra.mxu2 %v12333_v51  ;;  %v12428_v46 = vor.u32 %v2702_v43, %v2701_v8 }
 0x1f9   : > { %v2563_v62 = vpop.f32.mrf.mxu3  ;;  %v1795_v6 = vmax.f32 %v1763_v41, 0.0 }
 0x1fa   : > { %v1646_v45 = vpop.f32.mrf.mxu0  ;;  %v2206_v27 = vpop.f32.mrf.mxu1  ;;  %v2704_v8 = vsel %vm1208_vm1, %v2699_v42, %v12428_v46 }
 0x1fb   : > { %v2357_v54 = vpop.f32.mrf.mxu2  ;;  %1827 = vst [vmem:[#allocation2 + $0x90] sm:$0xff] %v1795_v6  ;;  %v1698_v59 = vadd.f32 %v1646_v45, %v12104_v18 }
 0x1fc   : > { %v2358_v28 = vadd.f32 %v2357_v54, %v2204_v55  ;;  %v6233_v54 = vld [vmem:[#allocation2 + $0x50] ss:$5 sm:$0xff] }
 0x1fd   : > { %v1731_v7 = vmul.f32 %v12066_v2, %v1698_v59 }
 0x1fe   : > { %v12421_v55 = vadd.f32 %v2563_v62, %v2358_v28  ;;  %v2471_v62 = vsel %vm968_vm2, %v2468_v39, %v2470_v37  ;;  %v6285_v28 = vld [vmem:[#allocation2 + $0x51] ss:$5 sm:$0xff] }
 0x1ff   : > { %v1764_v13 = vadd.f32 %v12075_v17, %v1731_v7  ;;  %v6334_v39 = vmax.f32 %v6233_v54, %v6285_v28  ;;  %v6363_v7 = vld [vmem:[#allocation2 + $0x52] ss:$5 sm:$0xff] }
 0x201   : > { %v2565_v18 = vpop.f32.mrf.mxu3  ;;  %v1796_v41 = vmax.f32 %v1764_v13, 0.0  ;;  %v6412_v42 = vmax.f32 %v6334_v39, %v6363_v7  ;;  %v2472_v7 = vrot.slane %v12442_v36, 1 }
 0x202   : > { %v1649_v0 = vpop.f32.mrf.mxu0  ;;  %v2209_v10 = vpop.f32.mrf.mxu1 }
 0x203   : > { %v2359_v6 = vpop.f32.mrf.mxu2  ;;  %1828 = vst [vmem:[#allocation2 + $0x98] sm:$0xff] %v1796_v41  ;;  %v1699_v43 = vadd.f32 %v1649_v0, %v12129_v33  ;;  %v15475_v33 = vshrl.u32 %v12401_v47, 16 }
 0x204   : > { %v2360_v45 = vadd.f32 %v2359_v6, %v2206_v27 }
 0x205   : > { %v1732_v32 = vmul.f32 %v12066_v2, %v1699_v43  ;;  %2248 = vmatmul.bf16.gmra.mxu1 %v2088_v57  ;;  %2844 = vmatmul.bf16.gmra.mxu0 %v2704_v8  ;;  %v15573_v57 = vshll.u32 %v12109_v40, 16 }
 0x206   : > { %2607 = vmatmul.bf16.gmra.mxu3 %v2471_v62  ;;  %v12438_v59 = vadd.f32 %v2565_v18, %v2360_v45  ;;  %v15473_v18 = vshll.u32 %v12442_v36, 16  ;;  %v15572_v45 = vshrl.u32 %v12109_v40, 16  ;;  %v2091_v40 = vor.u32 %v15475_v33, %v2087_v24 }
 0x207   : > { %v1765_v14 = vadd.f32 %v12075_v17, %v1732_v32  ;;  %v2706_v8 = vrot.slane %v15573_v57, 2  ;;  %v6441_v32 = vld [vmem:[#allocation2 + $0x53] ss:$5 sm:$0xff] }
 0x208   : > { %2401 = vmatmul.bf16.gmra.mxu2 %v12373_v15  ;;  %v2705_v0 = vrot.slane %v15572_v45, 1  ;;  %v6490_v9 = vmax.f32 %v6412_v42, %v6441_v32 }
 0x209   : > { %v2568_v27 = vpop.f32.mrf.mxu3  ;;  %v1797_v44 = vmax.f32 %v1765_v14, 0.0 }
 0x20a   : > { %v6235_v62 = vld [vmem:[#allocation2 + $0x78] ss:$5 sm:$0xff]  ;;  %v6287_v41 = vld [vmem:[#allocation2 + $0x79] ss:$5 sm:$0xff]  ;;  %v1651_v54 = vpop.f32.mrf.mxu0  ;;  %v2211_v28 = vpop.f32.mrf.mxu1 }
 0x20b   : > { %v2362_v13 = vpop.f32.mrf.mxu2  ;;  %v6335_v43 = vmax.f32 %v6235_v62, %v6287_v41  ;;  %1829 = vst [vmem:[#allocation2 + $0xa0] sm:$0xff] %v1797_v44  ;;  %v1700_v39 = vadd.f32 %v1651_v54, %v12142_v3  ;;  %v6365_v14 = vld [vmem:[#allocation2 + $0x7a] ss:$5 sm:$0xff]  ;;  %v6443_v60 = vld [vmem:[#allocation2 + $0x7b] ss:$5 sm:$0xff]  ;;  %v2095_v44 = vrot.slane %v15473_v18, 1  ;;  %v12461_v62 = vor.u32 %v2706_v8, %v2705_v0 }
 0x20c   : > { %v2363_v6 = vadd.f32 %v2362_v13, %v2209_v10  ;;  %v6519_v54 = vld [vmem:[#allocation2 + $0x54] ss:$5 sm:$0xff] }
 0x20d   : > { %v6413_v10 = vmax.f32 %v6335_v43, %v6365_v14  ;;  %v1733_v13 = vmul.f32 %v12066_v2, %v1700_v39  ;;  %v2473_v2 = vsel %vm968_vm2, %v2470_v37, %v2472_v7  ;;  %v6568_v42 = vmax.f32 %v6490_v9, %v6519_v54  ;;  %v12479_v9 = vld [vmem:[%s15450_s4] ss:$0 sm:$0xff]  ;;  %v12484_v14 = vld [vmem:[%s11470_s26 + $0xf0] sm:$0xff] }
 0x20e   : > { %v12454_v38 = vadd.f32 %v2568_v27, %v2363_v6  ;;  %v6521_v27 = vld [vmem:[#allocation2 + $0x7c] ss:$5 sm:$0xff]  ;;  %v2708_v8 = vsel %vm1208_vm1, %v12428_v46, %v12461_v62 }
 0x20f   : > { %v6491_v3 = vmax.f32 %v6413_v10, %v6443_v60  ;;  %v1766_v41 = vadd.f32 %v12075_v17, %v1733_v13  ;;  %v2096_v60 = vsel %vm508_vm0, %v2091_v40, %v2095_v44  ;;  %v12487_v10 = vld [vmem:[#allocation3 + $0x4] sm:$0xf] }
 0x210   : > { %15574 = vst [vmem:[#allocation10_spill] sm:$0xff] %v12487_v10 }
 0x211   : > { %v2570_v34 = vpop.f32.mrf.mxu3  ;;  %v6569_v6 = vmax.f32 %v6491_v3, %v6521_v27  ;;  %v1798_v45 = vmax.f32 %v1766_v41, 0.0  ;;  %v15474_v3 = vshrl.u32 %v12442_v36, 16 }
 0x212   : > { %v1654_v43 = vpop.f32.mrf.mxu0  ;;  %v2214_v0 = vpop.f32.mrf.mxu1 }
 0x213   : > { %v2364_v24 = vpop.f32.mrf.mxu2  ;;  %v11057_v39 = vpack.c.bf16 %v6569_v6, %v6568_v42  ;;  %1830 = vst [vmem:[#allocation2 + $0xa8] sm:$0xff] %v1798_v45  ;;  %v1701_v32 = vadd.f32 %v1654_v43, %v12155_v61  ;;  %v15575_v42 = vshrl.u32 %v12147_v29, 16  ;;  %v15576_v45 = vshll.u32 %v12147_v29, 16  ;;  %v10842_v43 = vld [vmem:[%s15447_s1 + $0xb8] sm:$0xff] }
 0x214   : > { %v2365_v57 = vadd.f32 %v2364_v24, %v2211_v28  ;;  %v2474_v29 = vrot.slane %v12484_v14, 1  ;;  %4016 = vmatpush.bf16.msrb.mxu0 %v10842_v43 }
 0x215   : > { %11130 = vst [vmem:[#allocation3 + $0x8] sm:$0xff] %v11057_v39   ;;  %v1734_v28 = vmul.f32 %v12479_v9, %v1701_v32  ;;  %2253 = vmatmul.bf16.gmra.mxu1 %v2096_v60  ;;  %2849 = vmatmul.bf16.gmra.mxu0 %v2708_v8  ;;  %v2709_v6 = vrot.slane %v15575_v42, 1  ;;  %v2710_v24 = vrot.slane %v15576_v45, 2  ;;  %v15471_v60 = vunpack.c.l.b16 %v12487_v10  ;;  %v11230_v10 = vld [vmem:[%s11470_s26 + $0xc8] sm:$0xff] }
 0x216   : > { %2612 = vmatmul.bf16.gmra.mxu3 %v2473_v2  ;;  %v12474_v37 = vadd.f32 %v2570_v34, %v2365_v57  ;;  %v7730_v34 = vld [vmem:[#allocation3] sm:$0xc]  ;;  %v15472_v2 = vshll.u32 %v12484_v14, 16  ;;  %v10827_v57 = vld [vmem:[%s15447_s1 + $0x40] sm:$0xff] }
 0x217   : > { %v1767_v61 = vadd.f32 %v12075_v17, %v1734_v28  ;;  %v7749_v8 = vunpack.c.l.b16 %v7730_v34  ;;  %3664 = vmatpush.bf16.msrb.mxu2 %v10827_v57 }
 0x218   : > { %2406 = vmatmul.bf16.gmra.mxu2 %v12401_v47  ;;  %v2103_v34 = vrot.slane %v15472_v2, 1 }
 0x219   : > { %v2573_v46 = vpop.f32.mrf.mxu3  ;;  %v1799_v13 = vmax.f32 %v1767_v61, 0.0 }
 0x21a   : > { %v1656_v54 = vpop.f32.mrf.mxu0  ;;  %v2216_v27 = vpop.f32.mrf.mxu1 }
 0x21b   : > { %v2367_v40 = vpop.f32.mrf.mxu2  ;;  %1831 = vst [vmem:[#allocation2 + $0xb0] sm:$0xff] %v1799_v13  ;;  %v1702_v17 = vadd.f32 %v1656_v54, %v12169_v16  ;;  %v10796_v16 = vld [vmem:[%s15447_s1 + $0x100] sm:$0xff]  ;;  %v2099_v13 = vor.u32 %v15474_v3, %v2095_v44  ;;  %v7750_v54 = vpack.c.b16 %v15471_v60, %v7749_v8  ;;  %v2475_v44 = vsel %vm968_vm2, %v2472_v7, %v2474_v29 }
 0x21c   : > { %v2368_v41 = vadd.f32 %v2367_v40, %v2214_v0  ;;  %v10819_v0 = vld [vmem:[%s15447_s1] sm:$0xff]  ;;  %v2711_v40 = vor.u32 %v2710_v24, %v2709_v6  ;;  %3071 = vmatpush.bf16.msrb.mxu1 %v10796_v16 }
 0x21d   : > { %v1735_v32 = vmul.f32 %v12479_v9, %v1702_v17  ;;  %v12513_v28 = vld [vmem:[#allocation3 + $0x8] sm:$0xff]  ;;  %3817 = vmatpush.bf16.msrb.mxu3 %v10819_v0  ;;  %v2104_v43 = vsel %vm508_vm0, %v2099_v13, %v2103_v34  ;;  %v7751_v16 = vrot.slane %v7750_v54, 2 }
 0x21e   : > { %v12510_v39 = vadd.f32 %v2573_v46, %v2368_v41  ;;  %v12522_v46 = vld [vmem:[%s15451_s5] ss:$0 sm:$0xff]  ;;  %v7752_v6 = vrot.slane %v12513_v28, 2  ;;  %v2712_v0 = vsel %vm1208_vm1, %v12461_v62, %v2711_v40  ;;  %v12545_v62 = vld [vmem:[%s11470_s26 + $0xf8] sm:$0xff] }
 0x21f   : > { %v1768_v41 = vadd.f32 %v12522_v46, %v1735_v32 }
 0x221   : > { %v2575_v61 = vpop.f32.mrf.mxu3  ;;  %v1800_v42 = vmax.f32 %v1768_v41, 0.0 }
 0x222   : > { %v1659_v17 = vpop.f32.mrf.mxu0  ;;  %v2219_v57 = vpop.f32.mrf.mxu1 }
 0x223   : > { %v2369_v45 = vpop.f32.mrf.mxu2  ;;  %1832 = vst [vmem:[#allocation2 + $0xb8] sm:$0xff] %v1800_v42  ;;  %v1703_v8 = vadd.f32 %v1659_v17, %v12182_v63  ;;  %v15578_v17 = vshrl.u32 %v12174_v50, 16 }
 0x224   : > { %v2370_v24 = vadd.f32 %v2369_v45, %v2216_v27  ;;  %v12541_v27 = vsel %vm1492_vm3, %v7751_v16, %v7752_v6 }
 0x225   : > { %v1736_v7 = vmul.f32 %v12479_v9, %v1703_v8  ;;  %2258 = vmatmul.bf16.gmra.mxu1 %v2104_v43  ;;  %2854 = vmatmul.bf16.gmra.mxu0 %v2712_v0  ;;  %15577 = vst [vmem:[#allocation11_spill] sm:$0xff] %v12541_v27  ;;  %v2713_v43 = vrot.slane %v15578_v17, 1  ;;  %v15579_v0 = vshll.u32 %v12174_v50, 16 }
 0x226   : > { %2617 = vmatmul.bf16.gmra.mxu3 %v2475_v44  ;;  %v12535_v32 = vadd.f32 %v2575_v61, %v2370_v24  ;;  %v2105_v61 = vshrl.u32 %v12484_v14, 16  ;;  %v15486_v24 = vshll.u32 %v12545_v62, 16 }
 0x227   : > { %v1769_v63 = vadd.f32 %v12522_v46, %v1736_v7  ;;  %v2714_v8 = vrot.slane %v15579_v0, 2  ;;  %v2476_v7 = vrot.slane %v12545_v62, 1  ;;  %v1889_v0 = vld [vmem:[%s11470_s26 + $0x100] sm:$0x1] }
 0x228   : > { %2411 = vmatmul.bf16.gmra.mxu2 %v12442_v36  ;;  %v2107_v60 = vor.u32 %v2105_v61, %v2103_v34  ;;  %v2111_v2 = vrot.slane %v15486_v24, 1  ;;  %v1971_v33 = vunpack.c.l.b16 %v1889_v0 }
 0x229   : > { %v2578_v13 = vpop.f32.mrf.mxu3  ;;  %v1801_v41 = vmax.f32 %v1769_v63, 0.0  ;;  %v2715_v17 = vor.u32 %v2714_v8, %v2713_v43 }
 0x22a   : > { %v1661_v42 = vpop.f32.mrf.mxu0  ;;  %v2221_v45 = vpop.f32.mrf.mxu1  ;;  %v1988_v8 = vpack.c.b16 %v1971_v33, %v1971_v33 }
 0x22b   : > { %v2372_v54 = vpop.f32.mrf.mxu2  ;;  %1833 = vst [vmem:[#allocation2 + $0xc0] sm:$0xff] %v1801_v41  ;;  %v1704_v16 = vadd.f32 %v1661_v42, %v12199_v49  ;;  %v2477_v41 = vsel %vm968_vm2, %v2474_v29, %v2476_v7  ;;  %v2716_v3 = vsel %vm1208_vm1, %v2711_v40, %v2715_v17  ;;  %v2113_v40 = vshrl.u32 %v12545_v62, 16 }
 0x22c   : > { %v2373_v44 = vadd.f32 %v2372_v54, %v2219_v57 }
 0x22d   : > { %v1737_v57 = vmul.f32 %v12479_v9, %v1704_v16  ;;  %v2112_v16 = vsel %vm508_vm0, %v2107_v60, %v2111_v2 }
 0x22e   : > { %v12556_v63 = vadd.f32 %v2578_v13, %v2373_v44 }
 0x22f   : > { %v1770_v50 = vadd.f32 %v12522_v46, %v1737_v57 }
 0x231   : > { %v2580_v54 = vpop.f32.mrf.mxu3  ;;  %v1802_v49 = vmax.f32 %v1770_v50, 0.0 }
 0x232   : > { %v1664_v13 = vpop.f32.mrf.mxu0  ;;  %v2224_v44 = vpop.f32.mrf.mxu1 }
 0x233   : > { %v2374_v42 = vpop.f32.mrf.mxu2  ;;  %1834 = vst [vmem:[#allocation2 + $0xc8] sm:$0xff] %v1802_v49  ;;  %v1705_v34 = vadd.f32 %v1664_v13, %v12224_v12 }
 0x234   : > { %v2375_v18 = vadd.f32 %v2374_v42, %v2221_v45  ;;  %v2717_v42 = vrot.slane %v2049_v58, 1 }
 0x235   : > { %v1738_v43 = vmul.f32 %v12479_v9, %v1705_v34  ;;  %2263 = vmatmul.bf16.gmra.mxu1 %v2112_v16  ;;  %2859 = vmatmul.bf16.gmra.mxu0 %v2716_v3  ;;  %v15580_v3 = vshll.u32 %v12213_v20, 16 }
 0x236   : > { %2622 = vmatmul.bf16.gmra.mxu3 %v2477_v41  ;;  %v12571_v45 = vadd.f32 %v2580_v54, %v2375_v18  ;;  %v2117_v41 = vshll.u32 %v1988_v8, 16  ;;  %v2478_v18 = vrot.slane %v1988_v8, 1 }
 0x237   : > { %v1771_v57 = vadd.f32 %v12522_v46, %v1738_v43  ;;  %v2718_v13 = vrot.slane %v15580_v3, 2 }
 0x238   : > { %2416 = vmatmul.bf16.gmra.mxu2 %v12484_v14  ;;  %v2119_v43 = vrot.slane %v2117_v41, 1  ;;  %v2479_v58 = vsel %vm968_vm2, %v2476_v7, %v2478_v18  ;;  %v2947_v41 = vld [vmem:[%s11470_s26 + $0x80] sm:$0xc]  ;;  %v10850_v18 = vld [vmem:[%s15447_s1 + $0xf8] sm:$0xff] }
 0x239   : > { %v2583_v29 = vpop.f32.mrf.mxu3  ;;  %v1803_v60 = vmax.f32 %v1771_v57, 0.0  ;;  %v12585_v57 = vor.u32 %v2718_v13, %v2717_v42  ;;  %v12595_v42 = vld [vmem:[%s11470_s26 + $0x100] sm:$0xff]   ;;  %v2965_v13 = vunpack.c.l.b16 %v2947_v41  ;;  %4298 = vmatpush.bf16.msra.mxu1 %v10850_v18 }
 0x23a   : > { %v1666_v49 = vpop.f32.mrf.mxu0  ;;  %v2226_v12 = vpop.f32.mrf.mxu1  ;;  %v3462_v41 = vshrl.u32 %v12595_v42, 16 }
 0x23b   : > { %v2377_v50 = vpop.f32.mrf.mxu2  ;;  %1835 = vst [vmem:[#allocation2 + $0xd0] sm:$0xff] %v1803_v60  ;;  %v1706_v33 = vadd.f32 %v1666_v49, %v12245_v31  ;;  %v2720_v49 = vsel %vm1208_vm1, %v2715_v17, %v12585_v57  ;;  %v10841_v17 = vld [vmem:[%s15447_s1 + $0xb0] sm:$0xff] }
 0x23c   : > { %v2378_v0 = vadd.f32 %v2377_v50, %v2224_v44  ;;  %v2115_v44 = vor.u32 %v2113_v40, %v2111_v2  ;;  %4017 = vmatpush.bf16.msrb.mxu0 %v10841_v17 }
 0x23d   : > { %v1739_v16 = vmul.f32 %v12479_v9, %v1706_v33  ;;  %v10888_v33 = vld [vmem:[%s15447_s1 + $0x78] sm:$0xff] }
 0x23e   : > { %v12580_v54 = vadd.f32 %v2583_v29, %v2378_v0  ;;  %v2120_v0 = vsel %vm508_vm0, %v2115_v44, %v2119_v43  ;;  %v12616_v44 = vld [vmem:[%s11470_s26 + $0x108] sm:$0xff]  ;;  %5118 = vmatpush.bf16.msra.mxu3 %v10888_v33 }
 0x23f   : > { %v1772_v20 = vadd.f32 %v12522_v46, %v1739_v16 }
 0x241   : > { %v2585_v34 = vpop.f32.mrf.mxu3  ;;  %v1804_v60 = vmax.f32 %v1772_v20, 0.0 }
 0x242   : > { %v1669_v29 = vpop.f32.mrf.mxu0  ;;  %v2229_v50 = vpop.f32.mrf.mxu1 }
 0x243   : > { %v2379_v31 = vpop.f32.mrf.mxu2  ;;  %1836 = vst [vmem:[#allocation2 + $0xd8] sm:$0xff] %v1804_v60  ;;  %v1707_v2 = vadd.f32 %v1669_v29, %v12261_v4  ;;  %v2722_v29 = vrot.slane %v2053_v48, 2  ;;  %v12633_v48 = vld [vmem:[%s11470_s26 + $0x88] sm:$0xff] }
 0x244   : > { %v2380_v8 = vadd.f32 %v2379_v31, %v2226_v12  ;;  %v10858_v12 = vld [vmem:[%s15447_s1 + $0x138] sm:$0xff] }
 0x245   : > { %v1740_v7 = vmul.f32 %v12479_v9, %v1707_v2  ;;  %2268 = vmatmul.bf16.gmra.mxu1 %v2120_v0  ;;  %2864 = vmatmul.bf16.gmra.mxu0 %v2720_v49  ;;  %v15581_v0 = vunpack.c.h.b16 %v11990_v26  ;;  %v2968_v26 = vrot.slane %v12633_v48, 2 }
 0x246   : > { %2627 = vmatmul.bf16.gmra.mxu3 %v2479_v58  ;;  %v12597_v3 = vadd.f32 %v2585_v34, %v2380_v8  ;;  %v3464_v34 = vshll.u32 %v12595_v42, 16  ;;  %4536 = vmatpush.bf16.msra.mxu2 %v10858_v12  ;;  %v2721_v8 = vrot.slane %v2057_v53, 1 }
 0x247   : > { %v1773_v16 = vadd.f32 %v12522_v46, %v1740_v7  ;;  %v2966_v49 = vpack.c.b16 %v15581_v0, %v2965_v13 }
 0x248   : > { %2421 = vmatmul.bf16.gmra.mxu2 %v12545_v62  ;;  %v3466_v7 = vrot.slane %v3464_v34, 1  ;;  %v12630_v53 = vor.u32 %v2722_v29, %v2721_v8 }
 0x249   : > { %v2588_v4 = vpop.f32.mrf.mxu3  ;;  %v1805_v43 = vmax.f32 %v1773_v16, 0.0  ;;  %v2967_v25 = vrot.slane %v2966_v49, 2 }
 0x24a   : > { %v1671_v60 = vpop.f32.mrf.mxu0  ;;  %v2231_v31 = vpop.f32.mrf.mxu1  ;;  %v2724_v8 = vsel %vm1208_vm1, %v12585_v57, %v12630_v53 }
 0x24b   : > { %v2382_v20 = vpop.f32.mrf.mxu2  ;;  %1837 = vst [vmem:[#allocation2 + $0xe0] sm:$0xff] %v1805_v43  ;;  %v1708_v2 = vadd.f32 %v1671_v60, %v12290_v5  ;;  %v3467_v5 = vor.u32 %v3466_v7, %v3462_v41  ;;  %v6289_v43 = vld [vmem:[#allocation2 + $0xa1] ss:$5 sm:$0xff]  ;;  %v2969_v29 = vsel %vm1492_vm3, %v2967_v25, %v2968_v26 }
 0x24c   : > { %v2383_v58 = vadd.f32 %v2382_v20, %v2229_v50  ;;  %v15476_v50 = vshll.u32 %v12616_v44, 16  ;;  %v10857_v7 = vld [vmem:[%s15447_s1 + $0x130] sm:$0xff] }
 0x24d   : > { %v1741_v17 = vmul.f32 %v12479_v9, %v1708_v2  ;;  %v12662_v25 = vld [vmem:[%s11470_s26 + $0x110] sm:$0xff]  ;;  %4537 = vmatpush.bf16.msra.mxu2 %v10857_v7 }
 0x24e   : > { %v12627_v12 = vadd.f32 %v2588_v4, %v2383_v58  ;;  %v3471_v18 = vrot.slane %v15476_v50, 1  ;;  %v6237_v4 = vld [vmem:[#allocation2 + $0xa0] ss:$5 sm:$0xff]  ;;  %v15478_v7 = vshll.u32 %v12662_v25, 16 }
 0x24f   : > { %v1774_v13 = vadd.f32 %v12522_v46, %v1741_v17  ;;  %v10887_v17 = vld [vmem:[%s15447_s1 + $0x70] sm:$0xff] }
 0x250   : > { %v3472_v49 = vsel %vm508_vm0, %v3467_v5, %v3471_v18  ;;  %5119 = vmatpush.bf16.msra.mxu3 %v10887_v17 }
 0x251   : > { %v2590_v33 = vpop.f32.mrf.mxu3  ;;  %v1806_v16 = vmax.f32 %v1774_v13, 0.0  ;;  %v6367_v13 = vld [vmem:[#allocation2 + $0xa2] ss:$5 sm:$0xff] }
 0x252   : > { %v1674_v58 = vpop.f32.mrf.mxu0  ;;  %v2234_v60 = vpop.f32.mrf.mxu1 }
 0x253   : > { %v2384_v34 = vpop.f32.mrf.mxu2  ;;  %1838 = vst [vmem:[#allocation2 + $0xe8] sm:$0xff] %v1806_v16  ;;  %v1709_v0 = vadd.f32 %v1674_v58, %v12311_v30  ;;  %v10840_v30 = vld [vmem:[%s15447_s1 + $0xa8] sm:$0xff] }
 0x254   : > { %v2385_v20 = vadd.f32 %v2384_v34, %v2231_v31  ;;  %v6336_v31 = vmax.f32 %v6237_v4, %v6289_v43  ;;  %4018 = vmatpush.bf16.msrb.mxu0 %v10840_v30  ;;  %v6445_v30 = vld [vmem:[#allocation2 + $0xa3] ss:$5 sm:$0xff] }
 0x255   : > { %v1742_v41 = vmul.f32 %v12479_v9, %v1709_v0  ;;  %2869 = vmatmul.bf16.gmra.mxu0 %v2724_v8  ;;  %3072 = vmatmul.bf16.vlgmr.msrb.gmra.mxu1 %v2969_v29  ;;  %v2725_v29 = vrot.slane %v2065_v52, 1  ;;  %v2726_v0 = vrot.slane %v2061_v56, 2 }
 0x256   : > { %3818 = vmatmul.bf16.vlgmr.msrb.gmra.mxu3 %v12595_v42  ;;  %v12648_v2 = vadd.f32 %v2590_v33, %v2385_v20  ;;  %v6414_v5 = vmax.f32 %v6336_v31, %v6367_v13  ;;  %v15484_v31 = vshrl.u32 %v12616_v44, 16 }
 0x257   : > { %v1775_v33 = vadd.f32 %v12522_v46, %v1742_v41 }
 0x258   : > { %3665 = vmatmul.bf16.vlgmr.msrb.gmra.mxu2 %v3472_v49  ;;  %v6492_v52 = vmax.f32 %v6414_v5, %v6445_v30  ;;  %v3475_v50 = vor.u32 %v15484_v31, %v3471_v18 }
 0x259   : > { %v2593_v57 = vpop.f32.mrf.mxu3  ;;  %v1807_v16 = vmax.f32 %v1775_v33, 0.0 }
 0x25a   : > { %v6239_v4 = vld [vmem:[#allocation2 + $0xc8] ss:$5 sm:$0xff]  ;;  %v6291_v43 = vld [vmem:[#allocation2 + $0xc9] ss:$5 sm:$0xff]  ;;  %v1676_v58 = vpop.f32.mrf.mxu0  ;;  %v2236_v8 = vpop.f32.mrf.mxu1 }
 0x25b   : > { %v2387_v34 = vpop.f32.mrf.mxu2  ;;  %v6337_v49 = vmax.f32 %v6239_v4, %v6291_v43  ;;  %1839 = vst [vmem:[#allocation2 + $0xf0] sm:$0xff] %v1807_v16  ;;  %v1710_v41 = vadd.f32 %v1676_v58, %v12329_v23  ;;  %v6369_v17 = vld [vmem:[#allocation2 + $0xca] ss:$5 sm:$0xff]  ;;  %v6447_v13 = vld [vmem:[#allocation2 + $0xcb] ss:$5 sm:$0xff]  ;;  %v2727_v23 = vor.u32 %v2726_v0, %v2725_v29 }
 0x25c   : > { %v2388_v20 = vadd.f32 %v2387_v34, %v2234_v60  ;;  %v10849_v60 = vld [vmem:[%s15447_s1 + $0xf0] sm:$0xff] }
 0x25d   : > { %v6415_v11 = vmax.f32 %v6337_v49, %v6369_v17  ;;  %v1743_v56 = vmul.f32 %v12479_v9, %v1710_v41  ;;  %4299 = vmatpush.bf16.msra.mxu1 %v10849_v60  ;;  %v11223_v34 = vld [vmem:[%s11470_s26 + $0x90] sm:$0xff] }
 0x25e   : > { %v12674_v33 = vadd.f32 %v2593_v57, %v2388_v20  ;;  %v2970_v4 = vrot.slane %v11223_v34, 2  ;;  %v3479_v57 = vrot.slane %v15478_v7, 1  ;;  %v6523_v20 = vld [vmem:[#allocation2 + $0xa4] ss:$5 sm:$0xff]  ;;  %v6525_v5 = vld [vmem:[#allocation2 + $0xcc] ss:$5 sm:$0xff] }
 0x25f   : > { %v6493_v43 = vmax.f32 %v6415_v11, %v6447_v13  ;;  %v1776_v58 = vadd.f32 %v12522_v46, %v1743_v56  ;;  %v6570_v49 = vmax.f32 %v6492_v52, %v6523_v20  ;;  %v2728_v11 = vsel %vm1208_vm1, %v12630_v53, %v2727_v23  ;;  %v12696_v53 = vld [vmem:[%s11470_s26 + $0x118] sm:$0xff] }
 0x260   : > { %v2971_v18 = vsel %vm1492_vm3, %v2968_v26, %v2970_v4  ;;  %v3480_v52 = vsel %vm508_vm0, %v3475_v50, %v3479_v57  ;;  %v15582_v20 = vshll.u32 %v12333_v51, 16 }
 0x261   : > { %v2595_v16 = vpop.f32.mrf.mxu3  ;;  %v6571_v30 = vmax.f32 %v6493_v43, %v6525_v5  ;;  %v1808_v41 = vmax.f32 %v1776_v58, 0.0  ;;  %v15481_v5 = vshrl.u32 %v12662_v25, 16 }
 0x262   : > { %v2239_v29 = vpop.f32.mrf.mxu1  ;;  %v2835_v0 = vpop.f32.mrf.mxu0  ;;  %v2730_v50 = vrot.slane %v15582_v20, 2 }
 0x263   : > { %v2389_v60 = vpop.f32.mrf.mxu2  ;;  %v11062_v56 = vpack.c.bf16 %v6571_v30, %v6570_v49  ;;  %1840 = vst [vmem:[#allocation2 + $0xf8] sm:$0xff] %v1808_v41  ;;  %v12689_v13 = vadd.f32 %v2835_v0, %v12356_v19  ;;  %v2729_v19 = vrot.slane %v2073_v1, 1  ;;  %v15477_v49 = vshll.u32 %v12696_v53, 16 }
 0x264   : > { %v2390_v17 = vadd.f32 %v2389_v60, %v2236_v8  ;;  %v3483_v1 = vor.u32 %v15481_v5, %v3479_v57 }
 0x265   : > { %11131 = vst [vmem:[#allocation3 + $0x10] sm:$0xff] %v11062_v56   ;;  %2874 = vmatmul.bf16.gmra.mxu0 %v2728_v11  ;;  %3077 = vmatmul.bf16.gmra.mxu1 %v2971_v18  ;;  %v3487_v51 = vrot.slane %v15477_v49, 1 }
 0x266   : > { %3823 = vmatmul.bf16.gmra.mxu3 %v12616_v44  ;;  %v12693_v8 = vadd.f32 %v2595_v16, %v2390_v17  ;;  %v2731_v17 = vor.u32 %v2730_v50, %v2729_v19 }
 0x268   : > { %3670 = vmatmul.bf16.gmra.mxu2 %v3480_v52 }
 0x269   : > { %v2598_v34 = vpop.f32.mrf.mxu3 }
 0x26a   : > { %v2241_v43 = vpop.f32.mrf.mxu1  ;;  %v2837_v58 = vpop.f32.mrf.mxu0 }
 0x26b   : > { %v2392_v48 = vpop.f32.mrf.mxu2  ;;  %v12703_v16 = vadd.f32 %v2837_v58, %v12368_v35  ;;  %v3488_v58 = vsel %vm508_vm0, %v3483_v1, %v3487_v51 }
 0x26c   : > { %v2393_v26 = vadd.f32 %v2392_v48, %v2239_v29  ;;  %v12709_v41 = vld [vmem:[#allocation3 + $0x10] sm:$0xff]  ;;  %v11224_v29 = vld [vmem:[%s11470_s26 + $0x98] sm:$0xff]  ;;  %v2732_v48 = vsel %vm1208_vm1, %v2727_v23, %v2731_v17  ;;  %v10839_v23 = vld [vmem:[%s15447_s1 + $0xa0] sm:$0xff] }
 0x26d   : > { %v2972_v0 = vrot.slane %v11224_v29, 2  ;;  %v15485_v35 = vrot.slane %v12709_v41, 2  ;;  %4019 = vmatpush.bf16.msrb.mxu0 %v10839_v23  ;;  %v15584_v29 = vshrl.u32 %v12373_v15, 16 }
 0x26e   : > { %v12707_v30 = vadd.f32 %v2598_v34, %v2393_v26 }
 0x26f   : > { %v12722_v18 = vsel %vm1492_vm3, %v7752_v6, %v15485_v35  ;;  %v2973_v57 = vsel %vm1492_vm3, %v2970_v4, %v2972_v0  ;;  %v10856_v6 = vld [vmem:[%s15447_s1 + $0x128] sm:$0xff]  ;;  %v12743_v4 = vld [vmem:[%s11470_s26 + $0x120] sm:$0xff]  ;;  %v2733_v1 = vrot.slane %v15584_v29, 1 }
 0x270   : > { %15583 = vst [vmem:[#allocation12_spill] sm:$0xff] %v12722_v18  ;;  %4538 = vmatpush.bf16.msra.mxu2 %v10856_v6 }
 0x271   : > { %v2600_v60 = vpop.f32.mrf.mxu3 }
 0x272   : > { %v2244_v52 = vpop.f32.mrf.mxu1  ;;  %v2840_v34 = vpop.f32.mrf.mxu0 }
 0x273   : > { %v2394_v11 = vpop.f32.mrf.mxu2  ;;  %v12727_v26 = vadd.f32 %v2840_v34, %v12384_v21  ;;  %v10886_v21 = vld [vmem:[%s15447_s1 + $0x68] sm:$0xff] }
 0x274   : > { %v2395_v56 = vadd.f32 %v2394_v11, %v2241_v43  ;;  %5120 = vmatpush.bf16.msra.mxu3 %v10886_v21  ;;  %v15585_v11 = vshll.u32 %v12373_v15, 16  ;;  %v10848_v34 = vld [vmem:[%s15447_s1 + $0xe8] sm:$0xff]  ;;  %v11225_v21 = vld [vmem:[%s11470_s26 + $0xa0] sm:$0xff] }
 0x275   : > { %2879 = vmatmul.bf16.gmra.mxu0 %v2732_v48  ;;  %3082 = vmatmul.bf16.gmra.mxu1 %v2973_v57  ;;  %v15480_v57 = vshrl.u32 %v12696_v53, 16 }
 0x276   : > { %3828 = vmatmul.bf16.gmra.mxu3 %v12662_v25  ;;  %v12731_v19 = vadd.f32 %v2600_v60, %v2395_v56  ;;  %v2734_v56 = vrot.slane %v15585_v11, 2  ;;  %4300 = vmatpush.bf16.msra.mxu1 %v10848_v34 }
 0x277   : > { %v3491_v15 = vor.u32 %v15480_v57, %v3487_v51 }
 0x278   : > { %3675 = vmatmul.bf16.gmra.mxu2 %v3488_v58  ;;  %v15479_v58 = vshll.u32 %v12743_v4, 16  ;;  %v2735_v23 = vor.u32 %v2734_v56, %v2733_v1 }
 0x279   : > { %v2603_v28 = vpop.f32.mrf.mxu3 }
 0x27a   : > { %v2246_v50 = vpop.f32.mrf.mxu1  ;;  %v2842_v60 = vpop.f32.mrf.mxu0  ;;  %v3495_v29 = vrot.slane %v15479_v58, 1  ;;  %v2736_v7 = vsel %vm1208_vm1, %v2731_v17, %v2735_v23 }
 0x27b   : > { %v2397_v43 = vpop.f32.mrf.mxu2  ;;  %v12753_v48 = vadd.f32 %v2842_v60, %v12396_v22 }
 0x27c   : > { %v2398_v20 = vadd.f32 %v2397_v43, %v2244_v52  ;;  %v2974_v43 = vrot.slane %v11225_v21, 2  ;;  %v3496_v1 = vsel %vm508_vm0, %v3491_v15, %v3495_v29 }
 0x27e   : > { %v12757_v52 = vadd.f32 %v2603_v28, %v2398_v20  ;;  %v2975_v28 = vsel %vm1492_vm3, %v2972_v0, %v2974_v43 }
 0x281   : > { %v2605_v6 = vpop.f32.mrf.mxu3 }
 0x282   : > { %v2249_v11 = vpop.f32.mrf.mxu1  ;;  %v2845_v49 = vpop.f32.mrf.mxu0 }
 0x283   : > { %v2399_v22 = vpop.f32.mrf.mxu2  ;;  %v12767_v20 = vadd.f32 %v2845_v49, %v12421_v55  ;;  %v15586_v55 = vshrl.u32 %v12401_v47, 16 }
 0x284   : > { %v2400_v60 = vadd.f32 %v2399_v22, %v2246_v50  ;;  %v12774_v50 = vld [vmem:[%s11470_s26 + $0x128] sm:$0xff]  ;;  %v15587_v22 = vshll.u32 %v12401_v47, 16 }
 0x285   : > { %2884 = vmatmul.bf16.gmra.mxu0 %v2736_v7  ;;  %3087 = vmatmul.bf16.gmra.mxu1 %v2975_v28  ;;  %v2737_v49 = vrot.slane %v15586_v55, 1  ;;  %v15483_v7 = vshrl.u32 %v12743_v4, 16  ;;  %v15482_v15 = vshll.u32 %v12774_v50, 16 }
 0x286   : > { %3833 = vmatmul.bf16.gmra.mxu3 %v12696_v53  ;;  %v12771_v51 = vadd.f32 %v2605_v6, %v2400_v60  ;;  %v2738_v58 = vrot.slane %v15587_v22, 2 }
 0x287   : > { %v3499_v57 = vor.u32 %v15483_v7, %v3495_v29  ;;  %v3503_v47 = vrot.slane %v15482_v15, 1 }
 0x288   : > { %3680 = vmatmul.bf16.gmra.mxu2 %v3496_v1  ;;  %v2739_v1 = vor.u32 %v2738_v58, %v2737_v49 }
 0x289   : > { %v2608_v56 = vpop.f32.mrf.mxu3  ;;  %v3504_v58 = vsel %vm508_vm0, %v3499_v57, %v3503_v47 }
 0x28a   : > { %v2251_v21 = vpop.f32.mrf.mxu1  ;;  %v2847_v0 = vpop.f32.mrf.mxu0  ;;  %v2740_v5 = vsel %vm1208_vm1, %v2735_v23, %v2739_v1  ;;  %v10838_v23 = vld [vmem:[%s15447_s1 + $0x98] sm:$0xff] }
 0x28b   : > { %v2402_v34 = vpop.f32.mrf.mxu2  ;;  %v12781_v6 = vadd.f32 %v2847_v0, %v12438_v59  ;;  %4020 = vmatpush.bf16.msrb.mxu0 %v10838_v23 }
 0x28c   : > { %v2403_v17 = vadd.f32 %v2402_v34, %v2249_v11  ;;  %v11226_v11 = vld [vmem:[%s11470_s26 + $0xa8] sm:$0xff] }
 0x28d   : > { %v2976_v34 = vrot.slane %v11226_v11, 2 }
 0x28e   : > { %v12785_v60 = vadd.f32 %v2608_v56, %v2403_v17 }
 0x28f   : > { %v2977_v56 = vsel %vm1492_vm3, %v2974_v43, %v2976_v34  ;;  %v12811_v43 = vld [vmem:[%s11470_s26 + $0x130] sm:$0xff] }
 0x290   : > { %v15487_v23 = vshll.u32 %v12811_v43, 16 }
 0x291   : > { %v2610_v28 = vpop.f32.mrf.mxu3 }
 0x292   : > { %v2254_v59 = vpop.f32.mrf.mxu1  ;;  %v2850_v0 = vpop.f32.mrf.mxu0 }
 0x293   : > { %v2404_v55 = vpop.f32.mrf.mxu2  ;;  %v12795_v17 = vadd.f32 %v2850_v0, %v12454_v38  ;;  %v10885_v38 = vld [vmem:[%s15447_s1 + $0x60] sm:$0xff]  ;;  %v15589_v0 = vshll.u32 %v12442_v36, 16 }
 0x294   : > { %v2405_v22 = vadd.f32 %v2404_v55, %v2251_v21  ;;  %v10855_v21 = vld [vmem:[%s15447_s1 + $0x120] sm:$0xff]  ;;  %5121 = vmatpush.bf16.msra.mxu3 %v10885_v38  ;;  %v15588_v55 = vshrl.u32 %v12442_v36, 16 }
 0x295   : > { %2889 = vmatmul.bf16.gmra.mxu0 %v2740_v5  ;;  %3092 = vmatmul.bf16.gmra.mxu1 %v2977_v56  ;;  %v2742_v56 = vrot.slane %v15589_v0, 2  ;;  %v3511_v0 = vrot.slane %v15487_v23, 1 }
 0x296   : > { %3838 = vmatmul.bf16.gmra.mxu3 %v12743_v4  ;;  %v12799_v29 = vadd.f32 %v2610_v28, %v2405_v22  ;;  %4539 = vmatpush.bf16.msra.mxu2 %v10855_v21  ;;  %v2741_v22 = vrot.slane %v15588_v55, 1  ;;  %v15488_v21 = vshrl.u32 %v12774_v50, 16  ;;  %v11227_v55 = vld [vmem:[%s11470_s26 + $0xb0] sm:$0xff] }
 0x297   : > { %v2978_v7 = vrot.slane %v11227_v55, 2 }
 0x298   : > { %3685 = vmatmul.bf16.gmra.mxu2 %v3504_v58  ;;  %v10847_v58 = vld [vmem:[%s15447_s1 + $0xe0] sm:$0xff]  ;;  %v3507_v36 = vor.u32 %v15488_v21, %v3503_v47 }
 0x299   : > { %v2613_v49 = vpop.f32.mrf.mxu3  ;;  %4301 = vmatpush.bf16.msra.mxu1 %v10847_v58 }
 0x29a   : > { %v2256_v28 = vpop.f32.mrf.mxu1  ;;  %v2852_v11 = vpop.f32.mrf.mxu0 }
 0x29b   : > { %v2407_v5 = vpop.f32.mrf.mxu2  ;;  %v12821_v15 = vadd.f32 %v2852_v11, %v12474_v37 }
 0x29c   : > { %v2408_v57 = vadd.f32 %v2407_v5, %v2254_v59  ;;  %v2743_v5 = vor.u32 %v2742_v56, %v2741_v22  ;;  %v3512_v22 = vsel %vm508_vm0, %v3507_v36, %v3511_v0 }
 0x29e   : > { %v12825_v59 = vadd.f32 %v2613_v49, %v2408_v57  ;;  %v2744_v24 = vsel %vm1208_vm1, %v2739_v1, %v2743_v5  ;;  %v2979_v49 = vsel %vm1492_vm3, %v2976_v34, %v2978_v7 }
 0x2a1   : > { %v2615_v38 = vpop.f32.mrf.mxu3 }
 0x2a2   : > { %v2259_v31 = vpop.f32.mrf.mxu1  ;;  %v2855_v35 = vpop.f32.mrf.mxu0 }
 0x2a3   : > { %v2409_v37 = vpop.f32.mrf.mxu2  ;;  %v12835_v57 = vadd.f32 %v2855_v35, %v12510_v39  ;;  %v2745_v39 = vrot.slane %v2105_v61, 1  ;;  %v15590_v35 = vshll.u32 %v12484_v14, 16 }
 0x2a4   : > { %v2410_v11 = vadd.f32 %v2409_v37, %v2256_v28  ;;  %v12842_v28 = vld [vmem:[%s11470_s26 + $0x138] sm:$0xff] }
 0x2a5   : > { %2894 = vmatmul.bf16.gmra.mxu0 %v2744_v24  ;;  %3097 = vmatmul.bf16.gmra.mxu1 %v2979_v49  ;;  %v2746_v37 = vrot.slane %v15590_v35, 2  ;;  %v15490_v24 = vshrl.u32 %v12811_v43, 16  ;;  %v15489_v36 = vshll.u32 %v12842_v28, 16 }
 0x2a6   : > { %3843 = vmatmul.bf16.gmra.mxu3 %v12774_v50  ;;  %v12839_v47 = vadd.f32 %v2615_v38, %v2410_v11 }
 0x2a7   : > { %v3515_v23 = vor.u32 %v15490_v24, %v3511_v0  ;;  %v3519_v14 = vrot.slane %v15489_v36, 1 }
 0x2a8   : > { %3690 = vmatmul.bf16.gmra.mxu2 %v3512_v22  ;;  %v2747_v22 = vor.u32 %v2746_v37, %v2745_v39 }
 0x2a9   : > { %v2618_v56 = vpop.f32.mrf.mxu3  ;;  %v3520_v0 = vsel %vm508_vm0, %v3515_v23, %v3519_v14  ;;  %v2665_v23 = vld [vmem:[%s11470_s26 + $0x100] sm:$0x3] }
 0x2aa   : > { %v2261_v55 = vpop.f32.mrf.mxu1  ;;  %v2857_v34 = vpop.f32.mrf.mxu0  ;;  %v2748_v21 = vsel %vm1208_vm1, %v2743_v5, %v2747_v22  ;;  %v2683_v24 = vunpack.c.l.b16 %v2665_v23 }
 0x2ab   : > { %v2412_v58 = vpop.f32.mrf.mxu2  ;;  %v12849_v38 = vadd.f32 %v2857_v34, %v12535_v32 }
 0x2ac   : > { %v2413_v1 = vadd.f32 %v2412_v58, %v2259_v31  ;;  %v11228_v31 = vld [vmem:[%s11470_s26 + $0xb8] sm:$0xff] }
 0x2ad   : > { %v2980_v58 = vrot.slane %v11228_v31, 2 }
 0x2ae   : > { %v12853_v11 = vadd.f32 %v2618_v56, %v2413_v1 }
 0x2af   : > { %v2981_v56 = vsel %vm1492_vm3, %v2978_v7, %v2980_v58 }
 0x2b1   : > { %v2620_v49 = vpop.f32.mrf.mxu3 }
 0x2b2   : > { %v2264_v34 = vpop.f32.mrf.mxu1  ;;  %v2860_v35 = vpop.f32.mrf.mxu0 }
 0x2b3   : > { %v2414_v61 = vpop.f32.mrf.mxu2  ;;  %v12863_v1 = vadd.f32 %v2860_v35, %v12556_v63  ;;  %v2749_v63 = vrot.slane %v2113_v40, 1  ;;  %v15591_v35 = vshll.u32 %v12545_v62, 16  ;;  %v10884_v62 = vld [vmem:[%s15447_s1 + $0x58] sm:$0xff] }
 0x2b4   : > { %v2415_v32 = vadd.f32 %v2414_v61, %v2261_v55  ;;  %v12870_v55 = vld [vmem:[%s11470_s26 + $0x140] sm:$0xff]  ;;  %5122 = vmatpush.bf16.msra.mxu3 %v10884_v62  ;;  %v12906_v62 = vpack.c.b16 %v2683_v24, %v2683_v24 }
 0x2b5   : > { %2899 = vmatmul.bf16.gmra.mxu0 %v2748_v21  ;;  %3102 = vmatmul.bf16.gmra.mxu1 %v2981_v56  ;;  %v2750_v36 = vrot.slane %v15591_v35, 2  ;;  %v15491_v21 = vshrl.u32 %v12842_v28, 16  ;;  %v10837_v56 = vld [vmem:[%s15447_s1 + $0x90] sm:$0xff]  ;;  %v15593_v18 = vshll.u32 %v12870_v55, 16 }
 0x2b6   : > { %3848 = vmatmul.bf16.gmra.mxu3 %v12811_v43  ;;  %v12867_v39 = vadd.f32 %v2620_v49, %v2415_v32  ;;  %4021 = vmatpush.bf16.msrb.mxu0 %v10837_v56  ;;  %v2754_v24 = vshrl.u32 %v12906_v62, 16 }
 0x2b7   : > { %v3523_v32 = vor.u32 %v15491_v21, %v3519_v14  ;;  %v3527_v27 = vrot.slane %v15593_v18, 1 }
 0x2b8   : > { %3695 = vmatmul.bf16.gmra.mxu2 %v3520_v0 }
 0x2b9   : > { %v2623_v37 = vpop.f32.mrf.mxu3  ;;  %v3528_v18 = vsel %vm508_vm0, %v3523_v32, %v3527_v27 }
 0x2ba   : > { %v2266_v61 = vpop.f32.mrf.mxu1  ;;  %v2862_v7 = vpop.f32.mrf.mxu0 }
 0x2bb   : > { %v2417_v31 = vpop.f32.mrf.mxu2  ;;  %v12878_v49 = vadd.f32 %v2862_v7, %v12571_v45  ;;  %v10846_v45 = vld [vmem:[%s15447_s1 + $0xd8] sm:$0xff]  ;;  %v11229_v7 = vld [vmem:[%s11470_s26 + $0xc0] sm:$0xff] }
 0x2bc   : > { %v2418_v5 = vadd.f32 %v2417_v31, %v2264_v34  ;;  %v10854_v34 = vld [vmem:[%s15447_s1 + $0x118] sm:$0xff]  ;;  %v2751_v31 = vor.u32 %v2750_v36, %v2749_v63  ;;  %v2982_v35 = vrot.slane %v11229_v7, 2  ;;  %4302 = vmatpush.bf16.msra.mxu1 %v10846_v45 }
 0x2bd   : > { %4540 = vmatpush.bf16.msra.mxu2 %v10854_v34 }
 0x2be   : > { %v12894_v40 = vadd.f32 %v2623_v37, %v2418_v5  ;;  %v10836_v37 = vld [vmem:[%s15447_s1 + $0x88] sm:$0xff]  ;;  %v2752_v63 = vsel %vm1208_vm1, %v2747_v22, %v2751_v31  ;;  %v2983_v23 = vsel %vm1492_vm3, %v2980_v58, %v2982_v35 }
 0x2bf   : > { %4022 = vmatpush.bf16.msrb.mxu0 %v10836_v37  ;;  %v12921_v58 = vld [vmem:[%s11470_s26 + $0x148] sm:$0xff] }
 0x2c0   : > { %15592 = vst [vmem:[#allocation13_spill] sm:$0xff] %v12894_v40 }
 0x2c1   : > { %v2625_v0 = vpop.f32.mrf.mxu3 }
 0x2c2   : > { %v2269_v56 = vpop.f32.mrf.mxu1  ;;  %v2865_v36 = vpop.f32.mrf.mxu0 }
 0x2c3   : > { %v2419_v5 = vpop.f32.mrf.mxu2  ;;  %v12909_v14 = vadd.f32 %v2865_v36, %v12580_v54  ;;  %v2757_v54 = vshll.u32 %v12906_v62, 16  ;;  %v2756_v36 = vrot.slane %v2754_v24, 1 }
 0x2c4   : > { %v2420_v34 = vadd.f32 %v2419_v5, %v2266_v61  ;;  %v10835_v61 = vld [vmem:[%s15447_s1 + $0x80] sm:$0xff] }
 0x2c5   : > { %2904 = vmatmul.bf16.gmra.mxu0 %v2752_v63  ;;  %3107 = vmatmul.bf16.gmra.mxu1 %v2983_v23  ;;  %v2759_v21 = vrot.slane %v2757_v54, 2  ;;  %v15493_v63 = vshll.u32 %v12921_v58, 16 }
 0x2c6   : > { %3853 = vmatmul.bf16.gmra.mxu3 %v12842_v28  ;;  %v12916_v45 = vadd.f32 %v2625_v0, %v2420_v34  ;;  %4023 = vmatpush.bf16.msrb.mxu0 %v10835_v61  ;;  %v15494_v34 = vshrl.u32 %v12870_v55, 16 }
 0x2c7   : > { %v2760_v61 = vor.u32 %v2759_v21, %v2756_v36  ;;  %v3535_v24 = vrot.slane %v15493_v63, 1 }
 0x2c8   : > { %15594 = vst [vmem:[#allocation14_spill] sm:$0xff] %v12916_v45  ;;  %3700 = vmatmul.bf16.gmra.mxu2 %v3528_v18  ;;  %v2984_v45 = vrot.slane %v11230_v10, 2 }
 0x2c9   : > { %v2628_v22 = vpop.f32.mrf.mxu3  ;;  %v2761_v40 = vsel %vm1208_vm1, %v2751_v31, %v2760_v61  ;;  %v15495_v31 = vunpack.c.h.b16 %v12595_v42 }
 0x2ca   : > { %v2271_v37 = vpop.f32.mrf.mxu1  ;;  %v2867_v5 = vpop.f32.mrf.mxu0 }
 0x2cb   : > { %v2422_v7 = vpop.f32.mrf.mxu2  ;;  %v12924_v0 = vadd.f32 %v2867_v5, %v12597_v3 }
 0x2cc   : > { %v2423_v32 = vadd.f32 %v2422_v7, %v2269_v56  ;;  %v3531_v56 = vor.u32 %v15494_v34, %v3527_v27 }
 0x2ce   : > { %v12928_v23 = vadd.f32 %v2628_v22, %v2423_v32  ;;  %v2985_v22 = vsel %vm1492_vm3, %v2982_v35, %v2984_v45  ;;  %v3899_v32 = vld [vmem:[%s11470_s26 + $0x100] sm:$0xe]  ;;  %v3536_v27 = vsel %vm508_vm0, %v3531_v56, %v3535_v24 }
 0x2cf   : > { %v3917_v61 = vunpack.c.l.b16 %v3899_v32 }
 0x2d1   : > { %v2630_v18 = vpop.f32.mrf.mxu3  ;;  %v12954_v56 = vpack.c.b16 %v15495_v31, %v3917_v61 }
 0x2d2   : > { %v2870_v7 = vpop.f32.mrf.mxu0  ;;  %v3073_v5 = vpop.f32.mrf.mxu1 }
 0x2d3   : > { %v2424_v54 = vpop.f32.mrf.mxu2  ;;  %v12939_v21 = vadd.f32 %v2870_v7, %v12627_v12  ;;  %v3153_v10 = vadd.f32 %v3073_v5, %v12689_v13 }
 0x2d4   : > { %v2425_v3 = vadd.f32 %v2424_v54, %v2271_v37  ;;  %v12950_v54 = vld [vmem:[%s11470_s26 + $0x150] sm:$0xff] }
 0x2d5   : > { %v3185_v37 = vmul.f32 %v12479_v9, %v3153_v10  ;;  %2909 = vmatmul.bf16.gmra.mxu0 %v2761_v40  ;;  %3112 = vmatmul.bf16.gmra.mxu1 %v2985_v22  ;;  %v15497_v22 = vshrl.u32 %v12921_v58, 16  ;;  %v15496_v32 = vshll.u32 %v12950_v54, 16  ;;  %v10853_v10 = vld [vmem:[%s15447_s1 + $0x110] sm:$0xff] }
 0x2d6   : > { %3858 = vmatmul.bf16.gmra.mxu3 %v12870_v55  ;;  %v12944_v36 = vadd.f32 %v2630_v18, %v2425_v3  ;;  %4541 = vmatpush.bf16.msra.mxu2 %v10853_v10 }
 0x2d7   : > { %v3217_v12 = vadd.f32 %v12522_v46, %v3185_v37  ;;  %v10845_v37 = vld [vmem:[%s15447_s1 + $0xd0] sm:$0xff]  ;;  %v3543_v63 = vrot.slane %v15496_v32, 1 }
 0x2d8   : > { %3705 = vmatmul.bf16.gmra.mxu2 %v3536_v27  ;;  %v10883_v27 = vld [vmem:[%s15447_s1 + $0x50] sm:$0xff]  ;;  %4303 = vmatpush.bf16.msra.mxu1 %v10845_v37 }
 0x2d9   : > { %v3819_v35 = vpop.f32.mrf.mxu3  ;;  %v3249_v13 = vmax.f32 %v3217_v12, 0.0  ;;  %5123 = vmatpush.bf16.msra.mxu3 %v10883_v27 }
 0x2da   : > { %v2872_v9 = vpop.f32.mrf.mxu0  ;;  %v3075_v40 = vpop.f32.mrf.mxu1 }
 0x2db   : > { %v3666_v7 = vpop.f32.mrf.mxu2  ;;  %3281 = vst [vmem:[#allocation2 + $0x100] sm:$0xff] %v3249_v13  ;;  %v12959_v3 = vadd.f32 %v2872_v9, %v12648_v2  ;;  %v3154_v5 = vadd.f32 %v3075_v40, %v12703_v16  ;;  %v12976_v2 = vld [vmem:[%s15450_s4] ss:$0 sm:$0xff]  ;;  %v3919_v13 = vrot.slane %v12954_v56, 1  ;;  %v3539_v40 = vor.u32 %v15497_v22, %v3535_v24 }
 0x2dc   : > { %v12956_v18 = vadd.f32 %v3819_v35, %v3666_v7  ;;  %v11232_v35 = vld [vmem:[%s11470_s26 + $0xd0] sm:$0xff]  ;;  %v3920_v7 = vrot.slane %v12616_v44, 1 }
 0x2dd   : > { %v3186_v16 = vmul.f32 %v12976_v2, %v3154_v5  ;;  %v2986_v12 = vrot.slane %v11232_v35, 2  ;;  %v3544_v37 = vsel %vm508_vm0, %v3539_v40, %v3543_v63 }
 0x2de   : > { %15595 = vst [vmem:[#allocation15_spill] sm:$0xff] %v12956_v18  ;;  %v3921_v18 = vsel %vm968_vm2, %v3919_v13, %v3920_v7 }
 0x2df   : > { %v3218_v9 = vadd.f32 %v12522_v46, %v3186_v16  ;;  %v2987_v31 = vsel %vm1492_vm3, %v2984_v45, %v2986_v12  ;;  %v13001_v45 = vld [vmem:[%s15451_s5] ss:$0 sm:$0xff] }
 0x2e1   : > { %v3821_v61 = vpop.f32.mrf.mxu3  ;;  %v3250_v34 = vmax.f32 %v3218_v9, 0.0 }
 0x2e2   : > { %v2875_v27 = vpop.f32.mrf.mxu0  ;;  %v3078_v35 = vpop.f32.mrf.mxu1 }
 0x2e3   : > { %v3668_v5 = vpop.f32.mrf.mxu2  ;;  %3282 = vst [vmem:[#allocation2 + $0x108] sm:$0xff] %v3250_v34  ;;  %v12992_v46 = vadd.f32 %v2875_v27, %v12674_v33  ;;  %v3155_v24 = vadd.f32 %v3078_v35, %v12727_v26  ;;  %v13005_v34 = vld [vmem:[%s11470_s26 + $0x158] sm:$0xff]  ;;  %v15499_v27 = vshrl.u32 %v12950_v54, 16 }
 0x2e4   : > { %v12987_v10 = vadd.f32 %v3821_v61, %v3668_v5  ;;  %v15498_v35 = vshll.u32 %v13005_v34, 16 }
 0x2e5   : > { %v3187_v16 = vmul.f32 %v12976_v2, %v3155_v24  ;;  %3117 = vmatmul.bf16.gmra.mxu1 %v2987_v31  ;;  %4024 = vmatmul.bf16.vlgmr.msrb.gmra.mxu0 %v3921_v18 }
 0x2e6   : > { %3863 = vmatmul.bf16.gmra.mxu3 %v12921_v58 }
 0x2e7   : > { %v3219_v33 = vadd.f32 %v13001_v45, %v3187_v16  ;;  %v11234_v16 = vld [vmem:[%s11470_s26 + $0xd8] sm:$0xff] }
 0x2e8   : > { %3710 = vmatmul.bf16.gmra.mxu2 %v3544_v37 }
 0x2e9   : > { %v3824_v61 = vpop.f32.mrf.mxu3  ;;  %v3251_v26 = vmax.f32 %v3219_v33, 0.0  ;;  %v2988_v33 = vrot.slane %v11234_v16, 2 }
 0x2ea   : > { %v2877_v40 = vpop.f32.mrf.mxu0  ;;  %v3080_v5 = vpop.f32.mrf.mxu1 }
 0x2eb   : > { %v3671_v13 = vpop.f32.mrf.mxu2  ;;  %3283 = vst [vmem:[#allocation2 + $0x110] sm:$0xff] %v3251_v26  ;;  %v13010_v31 = vadd.f32 %v2877_v40, %v12693_v8  ;;  %v3156_v18 = vadd.f32 %v3080_v5, %v12753_v48  ;;  %v3547_v26 = vor.u32 %v15499_v27, %v3543_v63  ;;  %v3551_v8 = vrot.slane %v15498_v35, 1  ;;  %v11235_v35 = vld [vmem:[%s11470_s26 + $0xe0] sm:$0xff] }
 0x2ec   : > { %v13007_v9 = vadd.f32 %v3824_v61, %v3671_v13  ;;  %v3922_v61 = vrot.slane %v12662_v25, 1  ;;  %v2989_v22 = vsel %vm1492_vm3, %v2986_v12, %v2988_v33 }
 0x2ed   : > { %v3188_v24 = vmul.f32 %v12976_v2, %v3156_v18 }
 0x2ee   : > { %v3923_v16 = vsel %vm968_vm2, %v3920_v7, %v3922_v61  ;;  %v13036_v7 = vld [vmem:[%s11470_s26 + $0x160] sm:$0xff] }
 0x2ef   : > { %v3220_v13 = vadd.f32 %v13001_v45, %v3188_v24  ;;  %15596 = vst [vmem:[#allocation16_spill] sm:$0xff] %v13036_v7 }
 0x2f1   : > { %v3826_v37 = vpop.f32.mrf.mxu3  ;;  %v3252_v48 = vmax.f32 %v3220_v13, 0.0  ;;  %v3552_v13 = vsel %vm508_vm0, %v3547_v26, %v3551_v8 }
 0x2f2   : > { %v2880_v32 = vpop.f32.mrf.mxu0  ;;  %v3083_v18 = vpop.f32.mrf.mxu1 }
 0x2f3   : > { %v3673_v40 = vpop.f32.mrf.mxu2  ;;  %3284 = vst [vmem:[#allocation2 + $0x118] sm:$0xff] %v3252_v48  ;;  %v13028_v24 = vadd.f32 %v2880_v32, %v12707_v30  ;;  %v3157_v63 = vadd.f32 %v3083_v18, %v12767_v20 }
 0x2f4   : > { %v13023_v5 = vadd.f32 %v3826_v37, %v3673_v40 }
 0x2f5   : > { %v3189_v37 = vmul.f32 %v12976_v2, %v3157_v63  ;;  %3122 = vmatmul.bf16.gmra.mxu1 %v2989_v22  ;;  %4029 = vmatmul.bf16.gmra.mxu0 %v3923_v16  ;;  %v15501_v16 = vshrl.u32 %v13005_v34, 16  ;;  %v15500_v63 = vshll.u32 %v13036_v7, 16 }
 0x2f6   : > { %3868 = vmatmul.bf16.gmra.mxu3 %v12950_v54 }
 0x2f7   : > { %v3221_v12 = vadd.f32 %v13001_v45, %v3189_v37 }
 0x2f8   : > { %3715 = vmatmul.bf16.gmra.mxu2 %v3552_v13 }
 0x2f9   : > { %v3829_v40 = vpop.f32.mrf.mxu3  ;;  %v3253_v48 = vmax.f32 %v3221_v12, 0.0  ;;  %v2990_v12 = vrot.slane %v11235_v35, 2 }
 0x2fa   : > { %v2882_v20 = vpop.f32.mrf.mxu0  ;;  %v3085_v18 = vpop.f32.mrf.mxu1 }
 0x2fb   : > { %v3676_v30 = vpop.f32.mrf.mxu2  ;;  %3285 = vst [vmem:[#allocation2 + $0x120] sm:$0xff] %v3253_v48  ;;  %v13041_v26 = vadd.f32 %v2882_v20, %v12731_v19  ;;  %v3158_v22 = vadd.f32 %v3085_v18, %v12781_v6  ;;  %v3555_v48 = vor.u32 %v15501_v16, %v3551_v8  ;;  %v3559_v19 = vrot.slane %v15500_v63, 1  ;;  %v6293_v16 = vld [vmem:[#allocation2 + $0xf1] ss:$5 sm:$0xff] }
 0x2fc   : > { %v13038_v32 = vadd.f32 %v3829_v40, %v3676_v30  ;;  %v3924_v40 = vrot.slane %v12696_v53, 1 }
 0x2fd   : > { %v3190_v13 = vmul.f32 %v12976_v2, %v3158_v22  ;;  %v2991_v22 = vsel %vm1492_vm3, %v2988_v33, %v2990_v12  ;;  %v10852_v33 = vld [vmem:[%s15447_s1 + $0x108] sm:$0xff] }
 0x2fe   : > { %15597 = vst [vmem:[#allocation17_spill] sm:$0xff] %v13038_v32  ;;  %v3925_v35 = vsel %vm968_vm2, %v3922_v61, %v3924_v40  ;;  %v10882_v61 = vld [vmem:[%s15447_s1 + $0x48] sm:$0xff]  ;;  %4542 = vmatpush.bf16.msra.mxu2 %v10852_v33 }
 0x2ff   : > { %v3222_v30 = vadd.f32 %v13001_v45, %v3190_v13  ;;  %5124 = vmatpush.bf16.msra.mxu3 %v10882_v61 }
 0x301   : > { %v3831_v37 = vpop.f32.mrf.mxu3  ;;  %v3254_v6 = vmax.f32 %v3222_v30, 0.0  ;;  %v3560_v30 = vsel %vm508_vm0, %v3555_v48, %v3559_v19 }
 0x302   : > { %v2885_v27 = vpop.f32.mrf.mxu0  ;;  %v3088_v32 = vpop.f32.mrf.mxu1 }
 0x303   : > { %v3678_v20 = vpop.f32.mrf.mxu2  ;;  %3286 = vst [vmem:[#allocation2 + $0x128] sm:$0xff] %v3254_v6  ;;  %v13059_v13 = vadd.f32 %v2885_v27, %v12757_v52  ;;  %v3159_v8 = vadd.f32 %v3088_v32, %v12795_v17  ;;  %v10844_v52 = vld [vmem:[%s15447_s1 + $0xc8] sm:$0xff] }
 0x304   : > { %v13054_v18 = vadd.f32 %v3831_v37, %v3678_v20  ;;  %v13076_v32 = vld [vmem:[%s11470_s26 + $0x168] sm:$0xff]  ;;  %4304 = vmatpush.bf16.msra.mxu1 %v10844_v52 }
 0x305   : > { %v3191_v37 = vmul.f32 %v12976_v2, %v3159_v8  ;;  %3127 = vmatmul.bf16.gmra.mxu1 %v2991_v22  ;;  %4034 = vmatmul.bf16.gmra.mxu0 %v3925_v35  ;;  %v15502_v63 = vshll.u32 %v13076_v32, 16  ;;  %v13088_v52 = vld [vmem:[%s11470_s26 + $0xe8] sm:$0xff] }
 0x306   : > { %15598 = vst [vmem:[#allocation18_spill] sm:$0xff] %v13054_v18  ;;  %3873 = vmatmul.bf16.gmra.mxu3 %v13005_v34 }
 0x307   : > { %v3223_v27 = vadd.f32 %v13001_v45, %v3191_v37  ;;  %v15503_v37 = vshrl.u32 %v13036_v7, 16 }
 0x308   : > { %3720 = vmatmul.bf16.gmra.mxu2 %v3560_v30 }
 0x309   : > { %v3834_v17 = vpop.f32.mrf.mxu3  ;;  %v3255_v48 = vmax.f32 %v3223_v27, 0.0 }
 0x30a   : > { %v2887_v22 = vpop.f32.mrf.mxu0  ;;  %v3090_v35 = vpop.f32.mrf.mxu1 }
 0x30b   : > { %v3681_v6 = vpop.f32.mrf.mxu2  ;;  %3287 = vst [vmem:[#allocation2 + $0x130] sm:$0xff] %v3255_v48  ;;  %v13081_v8 = vadd.f32 %v2887_v22, %v12771_v51  ;;  %v3160_v30 = vadd.f32 %v3090_v35, %v12821_v15  ;;  %v3563_v51 = vor.u32 %v15503_v37, %v3559_v19  ;;  %v3567_v15 = vrot.slane %v15502_v63, 1  ;;  %v6241_v35 = vld [vmem:[#allocation2 + $0xf0] ss:$5 sm:$0xff] }
 0x30c   : > { %v13078_v20 = vadd.f32 %v3834_v17, %v3681_v6  ;;  %v15504_v17 = vrot.slane %v13088_v52, 2 }
 0x30d   : > { %v3192_v33 = vmul.f32 %v12976_v2, %v3160_v30 }
 0x30e   : > { %15599 = vst [vmem:[#allocation19_spill] sm:$0xff] %v13078_v20  ;;  %v2993_v27 = vsel %vm1492_vm3, %v2990_v12, %v15504_v17  ;;  %v13113_v17 = vld [vmem:[%s11470_s26 + $0x170] sm:$0xff] }
 0x30f   : > { %v3224_v48 = vadd.f32 %v13001_v45, %v3192_v33  ;;  %v15601_v33 = vrot.slane %v12743_v4, 1 }
 0x311   : > { %v3836_v61 = vpop.f32.mrf.mxu3  ;;  %v3256_v6 = vmax.f32 %v3224_v48, 0.0  ;;  %v3927_v19 = vsel %vm968_vm2, %v3924_v40, %v15601_v33 }
 0x312   : > { %v2890_v20 = vpop.f32.mrf.mxu0  ;;  %v3093_v18 = vpop.f32.mrf.mxu1 }
 0x313   : > { %v3683_v22 = vpop.f32.mrf.mxu2  ;;  %3288 = vst [vmem:[#allocation2 + $0x138] sm:$0xff] %v3256_v6  ;;  %v13106_v63 = vadd.f32 %v2890_v20, %v12785_v60  ;;  %v3161_v48 = vadd.f32 %v3093_v18, %v12835_v57  ;;  %v6371_v6 = vld [vmem:[#allocation2 + $0xf2] ss:$5 sm:$0xff] }
 0x314   : > { %v13097_v30 = vadd.f32 %v3836_v61, %v3683_v22  ;;  %v3568_v61 = vsel %vm508_vm0, %v3563_v51, %v3567_v15  ;;  %v6338_v22 = vmax.f32 %v6241_v35, %v6293_v16  ;;  %v15507_v35 = vshll.u32 %v13113_v17, 16 }
 0x315   : > { %15602 = vst [vmem:[#allocation21_spill] sm:$0xff] %v13106_v63  ;;  %v3193_v37 = vmul.f32 %v12976_v2, %v3161_v48  ;;  %3132 = vmatmul.bf16.gmra.mxu1 %v2993_v27  ;;  %4039 = vmatmul.bf16.gmra.mxu0 %v3927_v19 }
 0x316   : > { %15600 = vst [vmem:[#allocation20_spill] sm:$0xff] %v13097_v30  ;;  %3878 = vmatmul.bf16.gmra.mxu3 %v13036_v7  ;;  %v6416_v60 = vmax.f32 %v6338_v22, %v6371_v6  ;;  %v13126_v7 = vld [vmem:[%s11470_s26 + $0xf0] sm:$0xff] }
 0x317   : > { %v3225_v40 = vadd.f32 %v13001_v45, %v3193_v37 }
 0x318   : > { %3725 = vmatmul.bf16.gmra.mxu2 %v3568_v61  ;;  %v6449_v61 = vld [vmem:[#allocation2 + $0xf3] ss:$5 sm:$0xff] }
 0x319   : > { %v3839_v12 = vpop.f32.mrf.mxu3  ;;  %v3257_v20 = vmax.f32 %v3225_v40, 0.0  ;;  %v6494_v40 = vmax.f32 %v6416_v60, %v6449_v61 }
 0x31a   : > { %v6243_v57 = vld [vmem:[#allocation2 + $0x118] ss:$5 sm:$0xff]  ;;  %v6295_v18 = vld [vmem:[#allocation2 + $0x119] ss:$5 sm:$0xff]  ;;  %v2892_v16 = vpop.f32.mrf.mxu0  ;;  %v3095_v51 = vpop.f32.mrf.mxu1 }
 0x31b   : > { %v3686_v33 = vpop.f32.mrf.mxu2  ;;  %v6339_v19 = vmax.f32 %v6243_v57, %v6295_v18  ;;  %3289 = vst [vmem:[#allocation2 + $0x140] sm:$0xff] %v3257_v20  ;;  %v13121_v48 = vadd.f32 %v2892_v16, %v12799_v29  ;;  %v3162_v37 = vadd.f32 %v3095_v51, %v12849_v38  ;;  %v6373_v22 = vld [vmem:[#allocation2 + $0x11a] ss:$5 sm:$0xff]  ;;  %v15605_v57 = vshrl.u32 %v13076_v32, 16  ;;  %v6527_v16 = vld [vmem:[#allocation2 + $0xf4] ss:$5 sm:$0xff] }
 0x31c   : > { %v13116_v30 = vadd.f32 %v3839_v12, %v3686_v33  ;;  %v6451_v33 = vld [vmem:[#allocation2 + $0x11b] ss:$5 sm:$0xff]  ;;  %v3575_v29 = vrot.slane %v15507_v35, 1  ;;  %v3928_v38 = vrot.slane %v12774_v50, 1  ;;  %v6529_v51 = vld [vmem:[#allocation2 + $0x11c] ss:$5 sm:$0xff] }
 0x31d   : > { %15604 = vst [vmem:[#allocation23_spill] sm:$0xff] %v13121_v48  ;;  %v6417_v6 = vmax.f32 %v6339_v19, %v6373_v22  ;;  %v3194_v12 = vmul.f32 %v12976_v2, %v3162_v37  ;;  %v3571_v20 = vor.u32 %v15605_v57, %v3567_v15  ;;  %v6572_v19 = vmax.f32 %v6494_v40, %v6527_v16 }
 0x31e   : > { %15603 = vst [vmem:[#allocation22_spill] sm:$0xff] %v13116_v30  ;;  %v15606_v15 = vrot.slane %v13126_v7, 2  ;;  %v15607_v57 = vrot.slane %v13088_v52, 2  ;;  %v15608_v40 = vrot.slane %v12743_v4, 1 }
 0x31f   : > { %v6495_v18 = vmax.f32 %v6417_v6, %v6451_v33  ;;  %v3226_v60 = vadd.f32 %v13001_v45, %v3194_v12  ;;  %v3576_v6 = vsel %vm508_vm0, %v3571_v20, %v3575_v29 }
 0x320   : > { %v2995_v35 = vsel %vm1492_vm3, %v15607_v57, %v15606_v15  ;;  %v3929_v12 = vsel %vm968_vm2, %v15608_v40, %v3928_v38  ;;  %v10843_v15 = vld [vmem:[%s15447_s1 + $0xc0] sm:$0xff] }
 0x321   : > { %v3841_v30 = vpop.f32.mrf.mxu3  ;;  %v6573_v37 = vmax.f32 %v6495_v18, %v6529_v51  ;;  %v3258_v61 = vmax.f32 %v3226_v60, 0.0  ;;  %v13155_v60 = vld [vmem:[%s11470_s26 + $0x178] sm:$0xff]  ;;  %4305 = vmatpush.bf16.msra.mxu1 %v10843_v15 }
 0x322   : > { %v2895_v27 = vpop.f32.mrf.mxu0  ;;  %v3098_v63 = vpop.f32.mrf.mxu1 }
 0x323   : > { %v3688_v22 = vpop.f32.mrf.mxu2  ;;  %v11067_v33 = vpack.c.bf16 %v6573_v37, %v6572_v19  ;;  %3290 = vst [vmem:[#allocation2 + $0x148] sm:$0xff] %v3258_v61  ;;  %v3163_v18 = vadd.f32 %v3098_v63, %v12863_v1  ;;  %v10880_v1 = vld [vmem:[%s15447_s1 + $0x38] sm:$0xff]  ;;  %v10881_v63 = vld [vmem:[%s15447_s1 + $0x40] sm:$0xff]  ;;  %v15509_v61 = vshrl.u32 %v13113_v17, 16 }
 0x324   : > { %v13135_v48 = vadd.f32 %v3841_v30, %v3688_v22  ;;  %v13149_v30 = vadd.f32 %v2895_v27, %v12825_v59  ;;  %v10851_v59 = vld [vmem:[%s15447_s1 + $0x100] sm:$0xff]  ;;  %v15508_v22 = vshll.u32 %v13155_v60, 16  ;;  %5273 = vmatpush.bf16.msra.mxu0 %v10880_v1  ;;  %5125 = vmatpush.bf16.msra.mxu3 %v10881_v63 }
 0x325   : > { %11132 = vst [vmem:[#allocation3 + $0x18] sm:$0xff] %v11067_v33   ;;  %v3195_v52 = vmul.f32 %v12976_v2, %v3163_v18  ;;  %3137 = vmatmul.bf16.gmra.mxu1 %v2995_v35  ;;  %4044 = vmatmul.bf16.gmra.mxu0 %v3929_v12  ;;  %v13180_v33 = vld [vmem:[%s11470_s26 + $0xf8] sm:$0xff] }
 0x326   : > { %3883 = vmatmul.bf16.gmra.mxu3 %v13076_v32  ;;  %4543 = vmatpush.bf16.msra.mxu2 %v10851_v59  ;;  %v2996_v18 = vrot.slane %v13180_v33, 2 }
 0x327   : > { %v3227_v16 = vadd.f32 %v13001_v45, %v3195_v52  ;;  %v3579_v52 = vor.u32 %v15509_v61, %v3575_v29 }
 0x328   : > { %3730 = vmatmul.bf16.gmra.mxu2 %v3576_v6 }
 0x329   : > { %v3844_v20 = vpop.f32.mrf.mxu3  ;;  %v3259_v51 = vmax.f32 %v3227_v16, 0.0 }
 0x32a   : > { %v2897_v35 = vpop.f32.mrf.mxu0  ;;  %v3100_v37 = vpop.f32.mrf.mxu1 }
 0x32b   : > { %v3691_v19 = vpop.f32.mrf.mxu2  ;;  %3291 = vst [vmem:[#allocation2 + $0x150] sm:$0xff] %v3259_v51  ;;  %v13175_v57 = vadd.f32 %v2897_v35, %v12839_v47  ;;  %v3164_v6 = vadd.f32 %v3100_v37, %v12878_v49  ;;  %v3583_v47 = vrot.slane %v15508_v22, 1  ;;  %v3361_v51 = vld [vmem:[%s11470_s26 + $0x180] sm:$0x1]  ;;  %v15609_v37 = vrot.slane %v13126_v7, 2 }
 0x32c   : > { %v13167_v27 = vadd.f32 %v3844_v20, %v3691_v19  ;;  %v3930_v20 = vrot.slane %v12811_v43, 1  ;;  %v13189_v16 = vld [vmem:[#allocation3 + $0x18] sm:$0xff] }
 0x32d   : > { %v3196_v40 = vmul.f32 %v12976_v2, %v3164_v6  ;;  %v2997_v29 = vsel %vm1492_vm3, %v15609_v37, %v2996_v18  ;;  %v3584_v15 = vsel %vm508_vm0, %v3579_v52, %v3583_v47 }
 0x32e   : > { %v3931_v6 = vsel %vm968_vm2, %v3928_v38, %v3930_v20 }
 0x32f   : > { %v3228_v49 = vadd.f32 %v13001_v45, %v3196_v40 }
 0x331   : > { %v3846_v12 = vpop.f32.mrf.mxu3  ;;  %v3260_v19 = vmax.f32 %v3228_v49, 0.0  ;;  %v15511_v49 = vrot.slane %v13189_v16, 2 }
 0x332   : > { %v2900_v63 = vpop.f32.mrf.mxu0  ;;  %v3103_v35 = vpop.f32.mrf.mxu1 }
 0x333   : > { %v3693_v59 = vpop.f32.mrf.mxu2  ;;  %3292 = vst [vmem:[#allocation2 + $0x158] sm:$0xff] %v3260_v19  ;;  %v13202_v40 = vadd.f32 %v2900_v63, %v12853_v11  ;;  %v3165_v33 = vadd.f32 %v3103_v35, %v12909_v14  ;;  %v15610_v11 = vrot.slane %v12709_v41, 2  ;;  %v10904_v41 = vld [vmem:[%s15447_s1 + $0xf8] sm:$0xff] }
 0x334   : > { %v13192_v1 = vadd.f32 %v3846_v12, %v3693_v59  ;;  %v3443_v12 = vunpack.c.l.b16 %v3361_v51  ;;  %5752 = vmatpush.bf16.msrb.mxu2 %v10904_v41 }
 0x335   : > { %v3197_v7 = vmul.f32 %v12976_v2, %v3165_v33  ;;  %3142 = vmatmul.bf16.gmra.mxu1 %v2997_v29  ;;  %4049 = vmatmul.bf16.gmra.mxu0 %v3931_v6  ;;  %v13216_v14 = vsel %vm1492_vm3, %v15610_v11, %v15511_v49  ;;  %v15510_v6 = vshrl.u32 %v13155_v60, 16  ;;  %v15512_v11 = vrot.slane %v12842_v28, 1 }
 0x336   : > { %3888 = vmatmul.bf16.gmra.mxu3 %v13113_v17  ;;  %v13209_v38 = vpack.c.b16 %v3443_v12, %v3443_v12  ;;  %15611 = vst [vmem:[#allocation24_spill] sm:$0xff] %v13216_v14  ;;  %v10879_v12 = vld [vmem:[%s15447_s1 + $0x30] sm:$0xff]  ;;  %v15618_v14 = vld [vmem:[#allocation14_spill] sm:$0xff] }
 0x337   : > { %v3229_v59 = vadd.f32 %v13001_v45, %v3197_v7  ;;  %5274 = vmatpush.bf16.msra.mxu0 %v10879_v12 }
 0x338   : > { %3735 = vmatmul.bf16.gmra.mxu2 %v3584_v15  ;;  %v3589_v33 = vshll.u32 %v13209_v38, 16 }
 0x339   : > { %v3849_v52 = vpop.f32.mrf.mxu3  ;;  %v3261_v51 = vmax.f32 %v3229_v59, 0.0  ;;  %v2998_v59 = vrot.slane %v12906_v62, 2 }
 0x33a   : > { %v2902_v35 = vpop.f32.mrf.mxu0  ;;  %v3105_v37 = vpop.f32.mrf.mxu1 }
 0x33b   : > { %v3696_v19 = vpop.f32.mrf.mxu2  ;;  %3293 = vst [vmem:[#allocation2 + $0x160] sm:$0xff] %v3261_v51  ;;  %v13221_v29 = vadd.f32 %v2902_v35, %v12867_v39  ;;  %v3166_v15 = vadd.f32 %v3105_v37, %v12924_v0  ;;  %v10912_v39 = vld [vmem:[%s15447_s1 + $0x138] sm:$0xff]  ;;  %v3591_v35 = vrot.slane %v3589_v33, 1  ;;  %v2999_v61 = vsel %vm1492_vm3, %v2996_v18, %v2998_v59 }
 0x33c   : > { %v13218_v63 = vadd.f32 %v3849_v52, %v3696_v19  ;;  %v10896_v0 = vld [vmem:[%s15447_s1 + $0xb8] sm:$0xff]  ;;  %5986 = vmatpush.bf16.msrb.mxu3 %v10912_v39  ;;  %v3587_v19 = vor.u32 %v15510_v6, %v3583_v47  ;;  %v3933_v39 = vsel %vm968_vm2, %v3930_v20, %v15512_v11  ;;  %v4158_v59 = vshrl.u32 %v12954_v56, 16 }
 0x33d   : > { %v3198_v7 = vmul.f32 %v12976_v2, %v3166_v15  ;;  %5476 = vmatpush.bf16.msrb.mxu1 %v10896_v0  ;;  %v13245_v15 = vld [vmem:[%s11470_s26 + $0x180] sm:$0xff]  }
 0x33e   : > { %15612 = vst [vmem:[#allocation25_spill] sm:$0xff] %v13245_v15  ;;  %v15613_v0 = vld [vmem:[#allocation13_spill] sm:$0xff]  ;;  %v3592_v33 = vsel %vm508_vm0, %v3587_v19, %v3591_v35  ;;  %v4928_v19 = vshrl.u32 %v13245_v15, 16  ;;  %v4160_v11 = vrot.slane %v4158_v59, 1 }
 0x33f   : > { %v3230_v51 = vadd.f32 %v13001_v45, %v3198_v7 }
 0x341   : > { %v3851_v52 = vpop.f32.mrf.mxu3  ;;  %v3262_v37 = vmax.f32 %v3230_v51, 0.0  ;;  %v4419_v51 = vld [vmem:[%s11470_s26 + $0x100] sm:$0xc] }
 0x342   : > { %v2905_v12 = vpop.f32.mrf.mxu0  ;;  %v3108_v62 = vpop.f32.mrf.mxu1 }
 0x343   : > { %v3698_v22 = vpop.f32.mrf.mxu2  ;;  %3294 = vst [vmem:[#allocation2 + $0x168] sm:$0xff] %v3262_v37  ;;  %v13254_v7 = vadd.f32 %v2905_v12, %v15613_v0  ;;  %v3167_v47 = vadd.f32 %v3108_v62, %v12939_v21  ;;  %v4161_v37 = vshll.u32 %v12954_v56, 16  ;;  %v4437_v12 = vunpack.c.l.b16 %v4419_v51 }
 0x344   : > { %v13247_v41 = vadd.f32 %v3851_v52, %v3698_v22  ;;  %v13260_v22 = vld [vmem:[%s11470_s26 + $0x188] sm:$0xff]  ;;  %v4930_v52 = vshll.u32 %v13245_v15, 16  ;;  %v15615_v0 = vshrl.u32 %v12616_v44, 16 }
 0x345   : > { %15614 = vst [vmem:[#allocation13_spill] sm:$0xff] %v13260_v22  ;;  %v3199_v18 = vmul.f32 %v12976_v2, %v3167_v47  ;;  %3147 = vmatmul.bf16.gmra.mxu1 %v2999_v61  ;;  %4054 = vmatmul.bf16.gmra.mxu0 %v3933_v39  ;;  %v4163_v56 = vrot.slane %v4161_v37, 2  ;;  %v3934_v37 = vrot.slane %v12870_v55, 1 }
 0x346   : > { %3893 = vmatmul.bf16.gmra.mxu3 %v13155_v60  ;;  %v4932_v35 = vrot.slane %v4930_v52, 1  ;;  %v4165_v6 = vrot.slane %v15615_v0, 1  ;;  %v15619_v0 = vunpack.c.h.b16 %v12595_v42 }
 0x347   : > { %v3231_v21 = vadd.f32 %v13001_v45, %v3199_v18  ;;  %v15617_v18 = vshll.u32 %v12616_v44, 16  ;;  %v4164_v44 = vor.u32 %v4163_v56, %v4160_v11 }
 0x348   : > { %3740 = vmatmul.bf16.gmra.mxu2 %v3592_v33  ;;  %v4933_v15 = vor.u32 %v4932_v35, %v4928_v19 }
 0x349   : > { %v3854_v20 = vpop.f32.mrf.mxu3  ;;  %v3263_v47 = vmax.f32 %v3231_v21, 0.0  ;;  %v4166_v51 = vrot.slane %v15617_v18, 2  ;;  %v4438_v21 = vpack.c.b16 %v15619_v0, %v4437_v12  ;;  %v13311_v0 = vld [vmem:[%s11470_s26 + $0x190] sm:$0xff] }
 0x34a   : > { %v2907_v33 = vpop.f32.mrf.mxu0  ;;  %v3110_v49 = vpop.f32.mrf.mxu1  ;;  %15622 = vst [vmem:[#allocation14_spill] sm:$0xff] %v13311_v0 }
 0x34b   : > { %v3701_v61 = vpop.f32.mrf.mxu2  ;;  %3295 = vst [vmem:[#allocation2 + $0x170] sm:$0xff] %v3263_v47  ;;  %v13277_v52 = vadd.f32 %v2907_v33, %v15618_v14  ;;  %v3168_v62 = vadd.f32 %v3110_v49, %v12959_v3  ;;  %v13286_v18 = vor.u32 %v4166_v51, %v4165_v6  ;;  %v4439_v47 = vrot.slane %v4438_v21, 2  ;;  %v13290_v3 = vld [vmem:[%s11470_s26 + $0x108] sm:$0xff] }
 0x34c   : > { %v13272_v39 = vadd.f32 %v3854_v20, %v3701_v61  ;;  %v15620_v20 = vshll.u32 %v13260_v22, 16  ;;  %v4440_v42 = vrot.slane %v13290_v3, 2  ;;  %v15621_v6 = vrot.slane %v12842_v28, 1 }
 0x34d   : > { %v3200_v59 = vmul.f32 %v12976_v2, %v3168_v62  ;;  %v4168_v56 = vsel %vm1208_vm1, %v4164_v44, %v13286_v18  ;;  %v15514_v44 = vshll.u32 %v13311_v0, 16 }
 0x34e   : > { %15616 = vst [vmem:[#allocation26_spill] sm:$0xff] %v13272_v39  ;;  %v4937_v61 = vrot.slane %v15620_v20, 1  ;;  %v3935_v11 = vsel %vm968_vm2, %v15621_v6, %v3934_v37 }
 0x34f   : > { %v3232_v14 = vadd.f32 %v13001_v45, %v3200_v59 }
 0x350   : > { %v4938_v49 = vsel %vm508_vm0, %v4933_v15, %v4937_v61 }
 0x351   : > { %v3856_v39 = vpop.f32.mrf.mxu3  ;;  %v3264_v12 = vmax.f32 %v3232_v14, 0.0 }
 0x352   : > { %v2910_v62 = vpop.f32.mrf.mxu0  ;;  %v3113_v33 = vpop.f32.mrf.mxu1 }
 0x353   : > { %v3703_v19 = vpop.f32.mrf.mxu2  ;;  %3296 = vst [vmem:[#allocation2 + $0x178] sm:$0xff] %v3264_v12  ;;  %v13304_v51 = vadd.f32 %v2910_v62, %v12928_v23  ;;  %v3169_v15 = vadd.f32 %v3113_v33, %v12992_v46  ;;  %v15515_v23 = vshrl.u32 %v13260_v22, 16  ;;  %v15624_v33 = vshll.u32 %v12662_v25, 16 }
 0x354   : > { %v13294_v35 = vadd.f32 %v3856_v39, %v3703_v19  ;;  %v4441_v39 = vsel %vm1492_vm3, %v4439_v47, %v4440_v42  ;;  %v15623_v19 = vshrl.u32 %v12662_v25, 16  ;;  %v10911_v25 = vld [vmem:[%s15447_s1 + $0x130] sm:$0xff] }
 0x355   : > { %v3201_v21 = vmul.f32 %v12976_v2, %v3169_v15  ;;  %4059 = vmatmul.bf16.gmra.mxu0 %v3935_v11  ;;  %4306 = vmatmul.bf16.vlgmr.msra.gmra.mxu1 %v4168_v56  ;;  %v4170_v6 = vrot.slane %v15624_v33, 2  ;;  %v10903_v15 = vld [vmem:[%s15447_s1 + $0xf0] sm:$0xff] }
 0x356   : > { %5126 = vmatmul.bf16.vlgmr.msra.gmra.mxu3 %v4938_v49  ;;  %v4169_v62 = vrot.slane %v15623_v19, 1  ;;  %5753 = vmatpush.bf16.msrb.mxu2 %v10903_v15  ;;  %v6245_v15 = vld [vmem:[#allocation2 + $0x140] ss:$5 sm:$0xff] }
 0x357   : > { %v3233_v59 = vadd.f32 %v13001_v45, %v3201_v21  ;;  %v4941_v21 = vor.u32 %v15515_v23, %v4937_v61  ;;  %5987 = vmatpush.bf16.msrb.mxu3 %v10911_v25 }
 0x358   : > { %4544 = vmatmul.bf16.vlgmr.msra.gmra.mxu2 %v4441_v39  ;;  %v10878_v39 = vld [vmem:[%s15447_s1 + $0x28] sm:$0xff] }
 0x359   : > { %v3859_v20 = vpop.f32.mrf.mxu3  ;;  %v3265_v46 = vmax.f32 %v3233_v59, 0.0  ;;  %5275 = vmatpush.bf16.msra.mxu0 %v10878_v39  ;;  %v6297_v39 = vld [vmem:[#allocation2 + $0x141] ss:$5 sm:$0xff] }
 0x35a   : > { %v2912_v12 = vpop.f32.mrf.mxu0  ;;  %v3115_v47 = vpop.f32.mrf.mxu1 }
 0x35b   : > { %v3706_v14 = vpop.f32.mrf.mxu2  ;;  %3297 = vst [vmem:[#allocation2 + $0x180] sm:$0xff] %v3265_v46  ;;  %v13324_v11 = vadd.f32 %v2912_v12, %v12944_v36  ;;  %v3170_v56 = vadd.f32 %v3115_v47, %v13010_v31  ;;  %v4945_v36 = vrot.slane %v15514_v44, 1  ;;  %v10895_v31 = vld [vmem:[%s15447_s1 + $0xb0] sm:$0xff]  ;;  %v15517_v46 = vrot.slane %v12921_v58, 1 }
 0x35c   : > { %v13317_v49 = vadd.f32 %v3859_v20, %v3706_v14  ;;  %v13345_v14 = vor.u32 %v4170_v6, %v4169_v62  ;;  %5477 = vmatpush.bf16.msrb.mxu1 %v10895_v31  ;;  %v13349_v12 = vld [vmem:[%s11470_s26 + $0x110] sm:$0xff] }
 0x35d   : > { %v3202_v20 = vmul.f32 %v12976_v2, %v3170_v56  ;;  %v15516_v47 = vrot.slane %v13349_v12, 2  ;;  %v4946_v19 = vsel %vm508_vm0, %v4941_v21, %v4945_v36  ;;  %v3937_v6 = vsel %vm968_vm2, %v3934_v37, %v15517_v46  ;;  %v15625_v31 = vld [vmem:[#allocation15_spill] sm:$0xff] }
 0x35e   : > { %v4172_v25 = vsel %vm1208_vm1, %v13286_v18, %v13345_v14  ;;  %v6340_v37 = vmax.f32 %v6245_v15, %v6297_v39 }
 0x35f   : > { %v3234_v61 = vadd.f32 %v13001_v45, %v3202_v20 }
 0x361   : > { %v3861_v59 = vpop.f32.mrf.mxu3  ;;  %v3266_v33 = vmax.f32 %v3234_v61, 0.0  ;;  %v13373_v61 = vld [vmem:[%s11470_s26 + $0x198] sm:$0xff] }
 0x362   : > { %v3118_v23 = vpop.f32.mrf.mxu1  ;;  %v4025_v62 = vpop.f32.mrf.mxu0  ;;  %15626 = vst [vmem:[#allocation15_spill] sm:$0xff] %v13373_v61 }
 0x363   : > { %v3708_v56 = vpop.f32.mrf.mxu2  ;;  %3298 = vst [vmem:[#allocation2 + $0x188] sm:$0xff] %v3266_v33  ;;  %v3171_v21 = vadd.f32 %v3118_v23, %v13028_v24  ;;  %v13365_v20 = vadd.f32 %v4025_v62, %v15625_v31  ;;  %v6375_v23 = vld [vmem:[#allocation2 + $0x142] ss:$5 sm:$0xff] }
 0x364   : > { %v13353_v44 = vadd.f32 %v3861_v59, %v3708_v56  ;;  %v4443_v59 = vsel %vm1492_vm3, %v4440_v42, %v15516_v47  ;;  %v6418_v62 = vmax.f32 %v6340_v37, %v6375_v23 }
 0x365   : > { %v3203_v56 = vmul.f32 %v12976_v2, %v3171_v21  ;;  %4064 = vmatmul.bf16.gmra.mxu0 %v3937_v6  ;;  %4311 = vmatmul.bf16.gmra.mxu1 %v4172_v25  ;;  %v15628_v6 = vshrl.u32 %v12696_v53, 16  ;;  %v15629_v21 = vshll.u32 %v12696_v53, 16 }
 0x366   : > { %5131 = vmatmul.bf16.gmra.mxu3 %v4946_v19  ;;  %v15520_v19 = vshrl.u32 %v13311_v0, 16 }
 0x367   : > { %v3235_v24 = vadd.f32 %v13001_v45, %v3203_v56  ;;  %v4173_v25 = vrot.slane %v15628_v6, 1 }
 0x368   : > { %4549 = vmatmul.bf16.gmra.mxu2 %v4443_v59  ;;  %v4174_v59 = vrot.slane %v15629_v21, 2 }
 0x369   : > { %v3864_v18 = vpop.f32.mrf.mxu3  ;;  %v3267_v3 = vmax.f32 %v3235_v24, 0.0  ;;  %v6453_v24 = vld [vmem:[#allocation2 + $0x143] ss:$5 sm:$0xff] }
 0x36a   : > { %v6247_v42 = vld [vmem:[#allocation2 + $0x168] ss:$5 sm:$0xff]  ;;  %v6299_v47 = vld [vmem:[#allocation2 + $0x169] ss:$5 sm:$0xff]  ;;  %v3120_v15 = vpop.f32.mrf.mxu1  ;;  %v4027_v39 = vpop.f32.mrf.mxu0  ;;  %v6496_v6 = vmax.f32 %v6418_v62, %v6453_v24 }
 0x36b   : > { %v3711_v31 = vpop.f32.mrf.mxu2  ;;  %v6341_v56 = vmax.f32 %v6247_v42, %v6299_v47  ;;  %3299 = vst [vmem:[#allocation2 + $0x190] sm:$0xff] %v3267_v3  ;;  %v3172_v33 = vadd.f32 %v3120_v15, %v13041_v26  ;;  %v13387_v37 = vadd.f32 %v4027_v39, %v12987_v10  ;;  %v6377_v23 = vld [vmem:[#allocation2 + $0x16a] ss:$5 sm:$0xff]  ;;  %v6455_v21 = vld [vmem:[#allocation2 + $0x16b] ss:$5 sm:$0xff]  ;;  %v3938_v3 = vrot.slane %v12950_v54, 1 }
 0x36c   : > { %v13379_v46 = vadd.f32 %v3864_v18, %v3711_v31  ;;  %v4949_v18 = vor.u32 %v15520_v19, %v4945_v36  ;;  %v15630_v31 = vshll.u32 %v13373_v61, 16  ;;  %v13395_v26 = vor.u32 %v4174_v59, %v4173_v25  ;;  %v13398_v10 = vld [vmem:[%s11470_s26 + $0x118] sm:$0xff] }
 0x36d   : > { %v3204_v53 = vmul.f32 %v12976_v2, %v3172_v33  ;;  %v6531_v39 = vld [vmem:[#allocation2 + $0x144] ss:$5 sm:$0xff]  ;;  %v6533_v19 = vld [vmem:[#allocation2 + $0x16c] ss:$5 sm:$0xff]  ;;  %v15631_v42 = vrot.slane %v12921_v58, 1 }
 0x36e   : > { %15627 = vst [vmem:[#allocation27_spill] sm:$0xff] %v13379_v46  ;;  %v4953_v22 = vrot.slane %v15630_v31, 1  ;;  %v6419_v46 = vmax.f32 %v6341_v56, %v6377_v23  ;;  %v6574_v56 = vmax.f32 %v6496_v6, %v6531_v39  ;;  %v15522_v39 = vshrl.u32 %v13373_v61, 16 }
 0x36f   : > { %v3236_v36 = vadd.f32 %v13001_v45, %v3204_v53  ;;  %v4176_v53 = vsel %vm1208_vm1, %v13345_v14, %v13395_v26 }
 0x370   : > { %v6497_v15 = vmax.f32 %v6419_v46, %v6455_v21  ;;  %v4954_v62 = vsel %vm508_vm0, %v4949_v18, %v4953_v22  ;;  %v3939_v46 = vsel %vm968_vm2, %v15631_v42, %v3938_v3  ;;  %v15632_v18 = vrot.slane %v13398_v10, 2 }
 0x371   : > { %v3866_v47 = vpop.f32.mrf.mxu3  ;;  %v3268_v24 = vmax.f32 %v3236_v36, 0.0  ;;  %v13423_v36 = vld [vmem:[%s11470_s26 + $0x1a0] sm:$0xff] }
 0x372   : > { %v6575_v33 = vmax.f32 %v6497_v15, %v6533_v19  ;;  %v3123_v25 = vpop.f32.mrf.mxu1  ;;  %v4030_v59 = vpop.f32.mrf.mxu0  ;;  %v15633_v19 = vrot.slane %v13349_v12, 2  ;;  %15634 = vst [vmem:[#allocation28_spill] sm:$0xff] %v13423_v36 }
 0x373   : > { %v3713_v23 = vpop.f32.mrf.mxu2  ;;  %3300 = vst [vmem:[#allocation2 + $0x198] sm:$0xff] %v3268_v24  ;;  %v13420_v15 = vadd.f32 %v4030_v59, %v13007_v9  ;;  %v15636_v59 = vshll.u32 %v12743_v4, 16 }
 0x374   : > { %v13403_v31 = vadd.f32 %v3866_v47, %v3713_v23  ;;  %v4445_v6 = vsel %vm1492_vm3, %v15633_v19, %v15632_v18  ;;  %v11072_v21 = vpack.c.bf16 %v6575_v33, %v6574_v56  ;;  %v3173_v47 = vadd.f32 %v3123_v25, %v13059_v13  ;;  %v10902_v19 = vld [vmem:[%s15447_s1 + $0xe8] sm:$0xff] }
 0x375   : > { %4069 = vmatmul.bf16.gmra.mxu0 %v3939_v46  ;;  %4316 = vmatmul.bf16.gmra.mxu1 %v4176_v53  ;;  %v15521_v56 = vshll.u32 %v13423_v36, 16  ;;  %v15635_v23 = vshrl.u32 %v12743_v4, 16  ;;  %v4178_v46 = vrot.slane %v15636_v59, 2  ;;  %v10910_v4 = vld [vmem:[%s15447_s1 + $0x128] sm:$0xff] }
 0x376   : > { %5136 = vmatmul.bf16.gmra.mxu3 %v4954_v62  ;;  %11133 = vst [vmem:[#allocation3 + $0x20] sm:$0xff] %v11072_v21   ;;  %v3205_v42 = vmul.f32 %v12976_v2, %v3173_v47  ;;  %v4957_v21 = vor.u32 %v15522_v39, %v4953_v22  ;;  %5754 = vmatpush.bf16.msrb.mxu2 %v10902_v19 }
 0x377   : > { %v4177_v25 = vrot.slane %v15635_v23, 1  ;;  %5988 = vmatpush.bf16.msrb.mxu3 %v10910_v4 }
 0x378   : > { %4554 = vmatmul.bf16.gmra.mxu2 %v4445_v6  ;;  %v3237_v12 = vadd.f32 %v13001_v45, %v3205_v42  ;;  %v10877_v6 = vld [vmem:[%s15447_s1 + $0x20] sm:$0xff] }
 0x379   : > { %v3869_v14 = vpop.f32.mrf.mxu3  ;;  %5276 = vmatpush.bf16.msra.mxu0 %v10877_v6 }
 0x37a   : > { %v3269_v13 = vmax.f32 %v3237_v12, 0.0  ;;  %v3125_v62 = vpop.f32.mrf.mxu1  ;;  %v4032_v24 = vpop.f32.mrf.mxu0  ;;  %v3940_v12 = vrot.slane %v13005_v34, 1 }
 0x37b   : > { %v3716_v33 = vpop.f32.mrf.mxu2  ;;  %v3174_v53 = vadd.f32 %v3125_v62, %v13081_v8  ;;  %v13437_v18 = vadd.f32 %v4032_v24, %v13023_v5  ;;  %v4961_v5 = vrot.slane %v15521_v56, 1  ;;  %v10894_v8 = vld [vmem:[%s15447_s1 + $0xa8] sm:$0xff] }
 0x37c   : > { %v13429_v9 = vadd.f32 %v3869_v14, %v3716_v33  ;;  %3301 = vst [vmem:[#allocation2 + $0x1a0] sm:$0xff] %v3269_v13  ;;  %v4179_v13 = vor.u32 %v4178_v46, %v4177_v25  ;;  %5478 = vmatpush.bf16.msrb.mxu1 %v10894_v8  ;;  %v11242_v33 = vld [vmem:[%s11470_s26 + $0x120] sm:$0xff]  ;;  %v3941_v4 = vsel %vm968_vm2, %v3938_v3, %v3940_v12 }
 0x37d   : > { %v13455_v47 = vld [vmem:[#allocation3 + $0x20] sm:$0xff]  ;;  %v3206_v42 = vmul.f32 %v12976_v2, %v3174_v53  ;;  %v4446_v62 = vrot.slane %v11242_v33, 2  ;;  %v4962_v23 = vsel %vm508_vm0, %v4957_v21, %v4961_v5  ;;  %v15637_v53 = vrot.slane %v13189_v16, 2 }
 0x37e   : > { %v15525_v24 = vrot.slane %v13455_v47, 2  ;;  %v4180_v21 = vsel %vm1208_vm1, %v13395_v26, %v4179_v13  ;;  %v15639_v8 = vld [vmem:[#allocation21_spill] sm:$0xff]  ;;  %v15641_v16 = vrot.slane %v13398_v10, 2 }
 0x37f   : > { %v3238_v22 = vadd.f32 %v13001_v45, %v3206_v42 }
 0x380   : > { %v13468_v19 = vsel %vm1492_vm3, %v15637_v53, %v15525_v24 }
 0x381   : > { %v3871_v14 = vpop.f32.mrf.mxu3  ;;  %v3270_v59 = vmax.f32 %v3238_v22, 0.0  ;;  %15638 = vst [vmem:[#allocation29_spill] sm:$0xff] %v13468_v19  ;;  %v15640_v22 = vld [vmem:[#allocation17_spill] sm:$0xff] }
 0x382   : > { %v3128_v46 = vpop.f32.mrf.mxu1  ;;  %v4035_v6 = vpop.f32.mrf.mxu0 }
 0x383   : > { %v3718_v56 = vpop.f32.mrf.mxu2  ;;  %3302 = vst [vmem:[#allocation2 + $0x1a8] sm:$0xff] %v3270_v59  ;;  %v3175_v42 = vadd.f32 %v3128_v46, %v15639_v8  ;;  %v13479_v33 = vadd.f32 %v4035_v6, %v15640_v22  ;;  %v15523_v59 = vshrl.u32 %v13423_v36, 16 }
 0x384   : > { %v13470_v25 = vadd.f32 %v3871_v14, %v3718_v56  ;;  %v4447_v56 = vsel %vm1492_vm3, %v15641_v16, %v4446_v62  ;;  %v13485_v14 = vld [vmem:[%s11470_s26 + $0x1a8] sm:$0xff]  ;;  %v15643_v16 = vshrl.u32 %v12774_v50, 16 }
 0x385   : > { %15642 = vst [vmem:[#allocation21_spill] sm:$0xff] %v13485_v14  ;;  %v3207_v53 = vmul.f32 %v12976_v2, %v3175_v42  ;;  %4074 = vmatmul.bf16.gmra.mxu0 %v3941_v4  ;;  %4321 = vmatmul.bf16.gmra.mxu1 %v4180_v21  ;;  %v15524_v46 = vshll.u32 %v13485_v14, 16  ;;  %v15644_v4 = vshll.u32 %v12774_v50, 16  ;;  %v15645_v42 = vld [vmem:[#allocation23_spill] sm:$0xff] }
 0x386   : > { %5141 = vmatmul.bf16.gmra.mxu3 %v4962_v23  ;;  %v4181_v2 = vrot.slane %v15643_v16, 1 }
 0x387   : > { %v3239_v26 = vadd.f32 %v13001_v45, %v3207_v53  ;;  %v4182_v21 = vrot.slane %v15644_v4, 2  ;;  %v15646_v53 = vld [vmem:[#allocation18_spill] sm:$0xff] }
 0x388   : > { %4559 = vmatmul.bf16.gmra.mxu2 %v4447_v56 }
 0x389   : > { %v3874_v3 = vpop.f32.mrf.mxu3  ;;  %v3271_v6 = vmax.f32 %v3239_v26, 0.0  ;;  %v4965_v26 = vor.u32 %v15523_v59, %v4961_v5 }
 0x38a   : > { %v3130_v10 = vpop.f32.mrf.mxu1  ;;  %v4037_v22 = vpop.f32.mrf.mxu0 }
 0x38b   : > { %v3721_v23 = vpop.f32.mrf.mxu2  ;;  %3303 = vst [vmem:[#allocation2 + $0x1b0] sm:$0xff] %v3271_v6  ;;  %v3176_v56 = vadd.f32 %v3130_v10, %v15645_v42  ;;  %v13499_v39 = vadd.f32 %v4037_v22, %v15646_v53  ;;  %v15647_v6 = vld [vmem:[#allocation16_spill] sm:$0xff]  ;;  %v4183_v10 = vor.u32 %v4182_v21, %v4181_v2  ;;  %v11244_v42 = vld [vmem:[%s11470_s26 + $0x128] sm:$0xff] }
 0x38c   : > { %v13491_v8 = vadd.f32 %v3874_v3, %v3721_v23  ;;  %v4969_v3 = vrot.slane %v15524_v46, 1  ;;  %v13508_v23 = vld [vmem:[%s15450_s4] ss:$0 sm:$0xff]  ;;  %v3942_v4 = vrot.slane %v15647_v6, 1  ;;  %v4448_v53 = vrot.slane %v11244_v42, 2  ;;  %v15648_v21 = vld [vmem:[#allocation19_spill] sm:$0xff] }
 0x38d   : > { %v3208_v50 = vmul.f32 %v13508_v23, %v3176_v56  ;;  %v4184_v56 = vsel %vm1208_vm1, %v4179_v13, %v4183_v10  ;;  %v15651_v42 = vshrl.u32 %v12811_v43, 16 }
 0x38e   : > { %v4970_v5 = vsel %vm508_vm0, %v4965_v26, %v4969_v3  ;;  %v3943_v61 = vsel %vm968_vm2, %v3940_v12, %v3942_v4  ;;  %v13525_v26 = vld [vmem:[%s11470_s26 + $0x1b0] sm:$0xff]  ;;  %v13531_v12 = vld [vmem:[%s15451_s5] ss:$0 sm:$0xff] }
 0x38f   : > { %v3240_v22 = vadd.f32 %v13001_v45, %v3208_v50  ;;  %v4449_v50 = vsel %vm1492_vm3, %v4446_v62, %v4448_v53  ;;  %15649 = vst [vmem:[#allocation17_spill] sm:$0xff] %v13525_v26  ;;  %v15532_v13 = vshll.u32 %v13525_v26, 16 }
 0x391   : > { %v3876_v16 = vpop.f32.mrf.mxu3  ;;  %v3272_v59 = vmax.f32 %v3240_v22, 0.0 }
 0x392   : > { %v3133_v19 = vpop.f32.mrf.mxu1  ;;  %v4040_v36 = vpop.f32.mrf.mxu0 }
 0x393   : > { %v3723_v46 = vpop.f32.mrf.mxu2  ;;  %3304 = vst [vmem:[#allocation2 + $0x1b8] sm:$0xff] %v3272_v59  ;;  %v3177_v2 = vadd.f32 %v3133_v19, %v13149_v30  ;;  %v13521_v45 = vadd.f32 %v4040_v36, %v15648_v21  ;;  %v15533_v36 = vshrl.u32 %v13485_v14, 16  ;;  %v15661_v14 = vshrl.u32 %v12870_v55, 16 }
 0x394   : > { %v13515_v24 = vadd.f32 %v3876_v16, %v3723_v46 }
 0x395   : > { %v3209_v46 = vmul.f32 %v13508_v23, %v3177_v2  ;;  %4079 = vmatmul.bf16.gmra.mxu0 %v3943_v61  ;;  %4326 = vmatmul.bf16.gmra.mxu1 %v4184_v56  ;;  %v15652_v56 = vshll.u32 %v12811_v43, 16 }
 0x396   : > { %5146 = vmatmul.bf16.gmra.mxu3 %v4970_v5  ;;  %v4185_v5 = vrot.slane %v15651_v42, 1  ;;  %v15535_v42 = vrot.slane %v13076_v32, 1 }
 0x397   : > { %v3241_v30 = vadd.f32 %v13531_v12, %v3209_v46  ;;  %v4186_v2 = vrot.slane %v15652_v56, 2 }
 0x398   : > { %4564 = vmatmul.bf16.gmra.mxu2 %v4449_v50  ;;  %v15653_v50 = vld [vmem:[#allocation20_spill] sm:$0xff] }
 0x399   : > { %v3879_v16 = vpop.f32.mrf.mxu3  ;;  %v3273_v62 = vmax.f32 %v3241_v30, 0.0  ;;  %v4973_v30 = vor.u32 %v15533_v36, %v4969_v3 }
 0x39a   : > { %v3135_v61 = vpop.f32.mrf.mxu1  ;;  %v4042_v22 = vpop.f32.mrf.mxu0 }
 0x39b   : > { %v3726_v19 = vpop.f32.mrf.mxu2  ;;  %3305 = vst [vmem:[#allocation2 + $0x1c0] sm:$0xff] %v3273_v62  ;;  %v3178_v21 = vadd.f32 %v3135_v61, %v13175_v57  ;;  %v13544_v46 = vadd.f32 %v4042_v22, %v15653_v50  ;;  %v13556_v57 = vld [vmem:[%s11470_s26 + $0x130] sm:$0xff] }
 0x39c   : > { %v13536_v59 = vadd.f32 %v3879_v16, %v3726_v19  ;;  %v4977_v16 = vrot.slane %v15532_v13, 1  ;;  %v15534_v62 = vrot.slane %v13556_v57, 2  ;;  %v15654_v13 = vld [vmem:[#allocation22_spill] sm:$0xff] }
 0x39d   : > { %v3210_v19 = vmul.f32 %v13508_v23, %v3178_v21 }
 0x39e   : > { %15650 = vst [vmem:[#allocation23_spill] sm:$0xff] %v13536_v59  ;;  %v13552_v59 = vor.u32 %v4186_v2, %v4185_v5  ;;  %v4978_v61 = vsel %vm508_vm0, %v4973_v30, %v4977_v16  ;;  %v3945_v5 = vsel %vm968_vm2, %v3942_v4, %v15535_v42  ;;  %v13575_v30 = vld [vmem:[%s11470_s26 + $0x1b8] sm:$0xff]  ;;  %v10901_v4 = vld [vmem:[%s15447_s1 + $0xe0] sm:$0xff] }
 0x39f   : > { %v3242_v43 = vadd.f32 %v13531_v12, %v3210_v19  ;;  %5755 = vmatpush.bf16.msrb.mxu2 %v10901_v4 }
 0x3a0   : > { %v4188_v2 = vsel %vm1208_vm1, %v4183_v10, %v13552_v59  ;;  %v10909_v10 = vld [vmem:[%s15447_s1 + $0x120] sm:$0xff] }
 0x3a1   : > { %v3881_v0 = vpop.f32.mrf.mxu3  ;;  %v3274_v3 = vmax.f32 %v3242_v43, 0.0  ;;  %5989 = vmatpush.bf16.msrb.mxu3 %v10909_v10 }
 0x3a2   : > { %v3138_v50 = vpop.f32.mrf.mxu1  ;;  %v4045_v21 = vpop.f32.mrf.mxu0 }
 0x3a3   : > { %v3728_v22 = vpop.f32.mrf.mxu2  ;;  %3306 = vst [vmem:[#allocation2 + $0x1c8] sm:$0xff] %v3274_v3  ;;  %v3179_v19 = vadd.f32 %v3138_v50, %v13202_v40  ;;  %v13569_v36 = vadd.f32 %v4045_v21, %v15654_v13  ;;  %v10876_v40 = vld [vmem:[%s15447_s1 + $0x18] sm:$0xff]  ;;  %v15537_v3 = vshrl.u32 %v13525_v26, 16  ;;  %v13637_v26 = vld [vmem:[%s11470_s26 + $0x1c0] sm:$0xff] }
 0x3a4   : > { %v13560_v56 = vadd.f32 %v3881_v0, %v3728_v22  ;;  %v4451_v0 = vsel %vm1492_vm3, %v4448_v53, %v15534_v62  ;;  %v10893_v53 = vld [vmem:[%s15447_s1 + $0xa0] sm:$0xff]  ;;  %5277 = vmatpush.bf16.msra.mxu0 %v10876_v40  ;;  %v15536_v22 = vshll.u32 %v13575_v30, 16 }
 0x3a5   : > { %v3211_v43 = vmul.f32 %v13508_v23, %v3179_v19  ;;  %4084 = vmatmul.bf16.gmra.mxu0 %v3945_v5  ;;  %4331 = vmatmul.bf16.gmra.mxu1 %v4188_v2  ;;  %v4981_v10 = vor.u32 %v15537_v3, %v4977_v16 }
 0x3a6   : > { %5151 = vmatmul.bf16.gmra.mxu3 %v4978_v61  ;;  %5479 = vmatpush.bf16.msrb.mxu1 %v10893_v53 }
 0x3a7   : > { %v3243_v61 = vadd.f32 %v13531_v12, %v3211_v43  ;;  %v15656_v43 = vshll.u32 %v12842_v28, 16 }
 0x3a8   : > { %4569 = vmatmul.bf16.gmra.mxu2 %v4451_v0  ;;  %v15655_v0 = vshrl.u32 %v12842_v28, 16 }
 0x3a9   : > { %v3884_v13 = vpop.f32.mrf.mxu3  ;;  %v3275_v50 = vmax.f32 %v3243_v61, 0.0  ;;  %v4190_v4 = vrot.slane %v15656_v43, 2  ;;  %v6301_v43 = vld [vmem:[#allocation2 + $0x191] ss:$5 sm:$0xff] }
 0x3aa   : > { %v3140_v2 = vpop.f32.mrf.mxu1  ;;  %v4047_v19 = vpop.f32.mrf.mxu0  ;;  %v4189_v62 = vrot.slane %v15655_v0, 1 }
 0x3ab   : > { %v3731_v21 = vpop.f32.mrf.mxu2  ;;  %3307 = vst [vmem:[#allocation2 + $0x1d0] sm:$0xff] %v3275_v50  ;;  %v3180_v40 = vadd.f32 %v3140_v2, %v13221_v29  ;;  %v13601_v42 = vadd.f32 %v4047_v19, %v13135_v48  ;;  %v13613_v50 = vld [vmem:[%s11470_s26 + $0x138] sm:$0xff] }
 0x3ac   : > { %v13593_v5 = vadd.f32 %v3884_v13, %v3731_v21  ;;  %v4985_v13 = vrot.slane %v15536_v22, 1  ;;  %v15540_v21 = vrot.slane %v13113_v17, 1  ;;  %v13609_v0 = vor.u32 %v4190_v4, %v4189_v62  ;;  %v6249_v19 = vld [vmem:[#allocation2 + $0x190] ss:$5 sm:$0xff] }
 0x3ad   : > { %v3212_v53 = vmul.f32 %v13508_v23, %v3180_v40  ;;  %v15541_v48 = vrot.slane %v13613_v50, 2  ;;  %v15658_v62 = vrot.slane %v13076_v32, 1 }
 0x3ae   : > { %v4986_v29 = vsel %vm508_vm0, %v4981_v10, %v4985_v13 }
 0x3af   : > { %v3244_v28 = vadd.f32 %v13531_v12, %v3212_v53  ;;  %v3947_v4 = vsel %vm968_vm2, %v15658_v62, %v15540_v21  ;;  %v4192_v53 = vsel %vm1208_vm1, %v13552_v59, %v13609_v0  ;;  %v6342_v62 = vmax.f32 %v6249_v19, %v6301_v43 }
 0x3b1   : > { %v3886_v61 = vpop.f32.mrf.mxu3  ;;  %v3276_v16 = vmax.f32 %v3244_v28, 0.0 }
 0x3b2   : > { %v3143_v40 = vpop.f32.mrf.mxu1  ;;  %v4050_v3 = vpop.f32.mrf.mxu0 }
 0x3b3   : > { %v3733_v2 = vpop.f32.mrf.mxu2  ;;  %3308 = vst [vmem:[#allocation2 + $0x1d8] sm:$0xff] %v3276_v16  ;;  %v3181_v10 = vadd.f32 %v3143_v40, %v13254_v7  ;;  %v13629_v28 = vadd.f32 %v4050_v3, %v13167_v27  ;;  %v10900_v27 = vld [vmem:[%s15447_s1 + $0xd8] sm:$0xff]  ;;  %v10875_v7 = vld [vmem:[%s15447_s1 + $0x10] sm:$0xff] }
 0x3b4   : > { %v13617_v22 = vadd.f32 %v3886_v61, %v3733_v2  ;;  %v15659_v61 = vrot.slane %v13556_v57, 2  ;;  %v10908_v57 = vld [vmem:[%s15447_s1 + $0x118] sm:$0xff]  ;;  %5756 = vmatpush.bf16.msrb.mxu2 %v10900_v27  ;;  %5278 = vmatpush.bf16.msra.mxu0 %v10875_v7 }
 0x3b5   : > { %v3213_v21 = vmul.f32 %v13508_v23, %v3181_v10  ;;  %4089 = vmatmul.bf16.gmra.mxu0 %v3947_v4  ;;  %4336 = vmatmul.bf16.gmra.mxu1 %v4192_v53  ;;  %v6457_v7 = vld [vmem:[#allocation2 + $0x193] ss:$5 sm:$0xff] }
 0x3b6   : > { %15657 = vst [vmem:[#allocation18_spill] sm:$0xff] %v13617_v22  ;;  %5156 = vmatmul.bf16.gmra.mxu3 %v4986_v29  ;;  %v4453_v2 = vsel %vm1492_vm3, %v15659_v61, %v15541_v48  ;;  %v6379_v29 = vld [vmem:[#allocation2 + $0x192] ss:$5 sm:$0xff]  ;;  %v15662_v22 = vshll.u32 %v12870_v55, 16 }
 0x3b7   : > { %v3245_v3 = vadd.f32 %v13531_v12, %v3213_v21  ;;  %v6420_v43 = vmax.f32 %v6342_v62, %v6379_v29  ;;  %5990 = vmatpush.bf16.msrb.mxu3 %v10908_v57  ;;  %v4193_v21 = vrot.slane %v15661_v14, 1  ;;  %v15664_v29 = vshll.u32 %v13637_v26, 16 }
 0x3b8   : > { %4574 = vmatmul.bf16.gmra.mxu2 %v4453_v2  ;;  %v4194_v16 = vrot.slane %v15662_v22, 2 }
 0x3b9   : > { %v3889_v59 = vpop.f32.mrf.mxu3  ;;  %v3277_v40 = vmax.f32 %v3245_v3, 0.0  ;;  %v6498_v14 = vmax.f32 %v6420_v43, %v6457_v7  ;;  %v10874_v43 = vld [vmem:[%s15447_s1 + $0x8] sm:$0xff] }
 0x3ba   : > { %v6251_v53 = vld [vmem:[#allocation2 + $0x1b8] ss:$5 sm:$0xff]  ;;  %v6303_v10 = vld [vmem:[#allocation2 + $0x1b9] ss:$5 sm:$0xff]  ;;  %v3145_v2 = vpop.f32.mrf.mxu1  ;;  %v4052_v48 = vpop.f32.mrf.mxu0  ;;  %5279 = vmatpush.bf16.msra.mxu0 %v10874_v43 }
 0x3bb   : > { %v3736_v4 = vpop.f32.mrf.mxu2  ;;  %v6343_v19 = vmax.f32 %v6251_v53, %v6303_v10  ;;  %3309 = vst [vmem:[#allocation2 + $0x1e0] sm:$0xff] %v3277_v40  ;;  %v3182_v62 = vadd.f32 %v3145_v2, %v13277_v52  ;;  %v13660_v27 = vadd.f32 %v4052_v48, %v13192_v1  ;;  %v6381_v57 = vld [vmem:[#allocation2 + $0x1ba] ss:$5 sm:$0xff]  ;;  %v6459_v22 = vld [vmem:[#allocation2 + $0x1bb] ss:$5 sm:$0xff]  ;;  %v3948_v40 = vrot.slane %v13155_v60, 1 }
 0x3bc   : > { %v13652_v61 = vadd.f32 %v3889_v59, %v3736_v4  ;;  %v15663_v59 = vshrl.u32 %v13575_v30, 16  ;;  %v4993_v4 = vrot.slane %v15664_v29, 1  ;;  %v13668_v52 = vor.u32 %v4194_v16, %v4193_v21  ;;  %v13671_v1 = vld [vmem:[%s11470_s26 + $0x140] sm:$0xff] }
 0x3bd   : > { %v3214_v55 = vmul.f32 %v13508_v23, %v3182_v62  ;;  %v4454_v48 = vrot.slane %v13671_v1, 2  ;;  %v6537_v2 = vld [vmem:[#allocation2 + $0x1bc] ss:$5 sm:$0xff] }
 0x3be   : > { %15660 = vst [vmem:[#allocation16_spill] sm:$0xff] %v13652_v61  ;;  %v4989_v3 = vor.u32 %v15663_v59, %v4985_v13  ;;  %v6421_v61 = vmax.f32 %v6343_v19, %v6381_v57  ;;  %v6535_v19 = vld [vmem:[#allocation2 + $0x194] ss:$5 sm:$0xff] }
 0x3bf   : > { %v3246_v13 = vadd.f32 %v13531_v12, %v3214_v55  ;;  %v6576_v7 = vmax.f32 %v6498_v14, %v6535_v19  ;;  %v15665_v55 = vrot.slane %v13113_v17, 1  ;;  %v15666_v14 = vrot.slane %v13613_v50, 2  ;;  %v10873_v19 = vld [vmem:[%s15447_s1] sm:$0xff] }
 0x3c0   : > { %v6499_v10 = vmax.f32 %v6421_v61, %v6459_v22  ;;  %v4994_v62 = vsel %vm508_vm0, %v4989_v3, %v4993_v4  ;;  %v4196_v3 = vsel %vm1208_vm1, %v13609_v0, %v13668_v52  ;;  %5280 = vmatpush.bf16.msra.mxu0 %v10873_v19 }
 0x3c1   : > { %v3891_v53 = vpop.f32.mrf.mxu3  ;;  %v3278_v16 = vmax.f32 %v3246_v13, 0.0  ;;  %v3949_v22 = vsel %vm968_vm2, %v15665_v55, %v3948_v40 }
 0x3c2   : > { %v6577_v57 = vmax.f32 %v6499_v10, %v6537_v2  ;;  %v3148_v29 = vpop.f32.mrf.mxu1  ;;  %v4055_v61 = vpop.f32.mrf.mxu0  ;;  %v4455_v10 = vsel %vm1492_vm3, %v15666_v14, %v4454_v48  ;;  %v13702_v2 = vld [vmem:[%s11470_s26 + $0x1c8] sm:$0xff] }
 0x3c3   : > { %v3738_v21 = vpop.f32.mrf.mxu2  ;;  %3310 = vst [vmem:[#allocation2 + $0x1e8] sm:$0xff] %v3278_v16  ;;  %v3183_v13 = vadd.f32 %v3148_v29, %v13304_v51  ;;  %v13696_v43 = vadd.f32 %v4055_v61, %v13218_v63  ;;  %v15545_v63 = vshrl.u32 %v13637_v26, 16  ;;  %v15667_v61 = vshrl.u32 %v12921_v58, 16 }
 0x3c4   : > { %v13679_v59 = vadd.f32 %v3891_v53, %v3738_v21  ;;  %v11077_v53 = vpack.c.bf16 %v6577_v57, %v6576_v7 }
 0x3c5   : > { %v3215_v0 = vmul.f32 %v13508_v23, %v3183_v13  ;;  %4094 = vmatmul.bf16.gmra.mxu0 %v3949_v22  ;;  %4341 = vmatmul.bf16.gmra.mxu1 %v4196_v3  ;;  %v4197_v55 = vrot.slane %v15667_v61, 1  ;;  %v15668_v22 = vshll.u32 %v12921_v58, 16  ;;  %v3950_v58 = vrot.slane %v13209_v38, 1 }
 0x3c6   : > { %5161 = vmatmul.bf16.gmra.mxu3 %v4994_v62  ;;  %11134 = vst [vmem:[#allocation3 + $0x28] sm:$0xff] %v11077_v53   ;;  %v15544_v62 = vshll.u32 %v13702_v2, 16  ;;  %v4997_v53 = vor.u32 %v15545_v63, %v4993_v4  ;;  %v15669_v38 = vrot.slane %v13455_v47, 2 }
 0x3c7   : > { %v3247_v51 = vadd.f32 %v13531_v12, %v3215_v0  ;;  %v4198_v3 = vrot.slane %v15668_v22, 2 }
 0x3c8   : > { %4579 = vmatmul.bf16.gmra.mxu2 %v4455_v10  ;;  %v5001_v13 = vrot.slane %v15544_v62, 1 }
 0x3c9   : > { %v3894_v50 = vpop.f32.mrf.mxu3  ;;  %v3279_v7 = vmax.f32 %v3247_v51, 0.0  ;;  %v4199_v51 = vor.u32 %v4198_v3, %v4197_v55 }
 0x3ca   : > { %v3150_v21 = vpop.f32.mrf.mxu1  ;;  %v4057_v29 = vpop.f32.mrf.mxu0  ;;  %v5002_v4 = vsel %vm508_vm0, %v4997_v53, %v5001_v13  ;;  %v3951_v53 = vsel %vm968_vm2, %v3948_v40, %v3950_v58 }
 0x3cb   : > { %v3741_v57 = vpop.f32.mrf.mxu2  ;;  %3311 = vst [vmem:[#allocation2 + $0x1f0] sm:$0xff] %v3279_v7  ;;  %v3184_v14 = vadd.f32 %v3150_v21, %v13324_v11  ;;  %v13716_v10 = vadd.f32 %v4057_v29, %v13247_v41  ;;  %v11249_v11 = vld [vmem:[%s11470_s26 + $0x148] sm:$0xff]  ;;  %v10892_v21 = vld [vmem:[%s15447_s1 + $0x98] sm:$0xff] }
 0x3cc   : > { %v13708_v16 = vadd.f32 %v3894_v50, %v3741_v57  ;;  %v4456_v57 = vrot.slane %v11249_v11, 2  ;;  %5480 = vmatpush.bf16.msrb.mxu1 %v10892_v21 }
 0x3cd   : > { %v13722_v19 = vld [vmem:[#allocation3 + $0x28] sm:$0xff]  ;;  %v3216_v0 = vmul.f32 %v13508_v23, %v3184_v14 }
 0x3ce   : > { %v15552_v41 = vrot.slane %v13722_v19, 2  ;;  %v4457_v47 = vsel %vm1492_vm3, %v4454_v48, %v4456_v57  ;;  %v15672_v48 = vshrl.u32 %v12950_v54, 16 }
 0x3cf   : > { %v3248_v7 = vadd.f32 %v13531_v12, %v3216_v0  ;;  %v4200_v0 = vsel %vm1208_vm1, %v13668_v52, %v4199_v51  ;;  %v15546_v52 = vshrl.u32 %v13702_v2, 16 }
 0x3d0   : > { %v13738_v55 = vsel %vm1492_vm3, %v15669_v38, %v15552_v41  ;;  %v4201_v38 = vrot.slane %v15672_v48, 1 }
 0x3d1   : > { %v3896_v50 = vpop.f32.mrf.mxu3  ;;  %v3280_v29 = vmax.f32 %v3248_v7, 0.0  ;;  %15670 = vst [vmem:[#allocation19_spill] sm:$0xff] %v13738_v55  ;;  %v15671_v7 = vld [vmem:[#allocation26_spill] sm:$0xff] }
 0x3d2   : > { %v4060_v3 = vpop.f32.mrf.mxu0  ;;  %v4307_v14 = vpop.f32.mrf.mxu1 }
 0x3d3   : > { %v3743_v61 = vpop.f32.mrf.mxu2  ;;  %3312 = vst [vmem:[#allocation2 + $0x1f8] sm:$0xff] %v3280_v29  ;;  %v13748_v11 = vadd.f32 %v4060_v3, %v15671_v7  ;;  %v4387_v40 = vadd.f32 %v4307_v14, %v13365_v20  ;;  %v15673_v3 = vshll.u32 %v12950_v54, 16  ;;  %v10907_v20 = vld [vmem:[%s15447_s1 + $0x110] sm:$0xff] }
 0x3d4   : > { %v13740_v22 = vadd.f32 %v3896_v50, %v3743_v61  ;;  %v13754_v50 = vld [vmem:[%s11470_s26 + $0x1d0] sm:$0xff]  ;;  %5991 = vmatpush.bf16.msrb.mxu3 %v10907_v20 }
 0x3d5   : > { %4099 = vmatmul.bf16.gmra.mxu0 %v3951_v53  ;;  %4346 = vmatmul.bf16.gmra.mxu1 %v4200_v0  ;;  %v15547_v58 = vshll.u32 %v13754_v50, 16  ;;  %v4202_v53 = vrot.slane %v15673_v3, 2  ;;  %v10899_v0 = vld [vmem:[%s15447_s1 + $0xd0] sm:$0xff] }
 0x3d6   : > { %5166 = vmatmul.bf16.gmra.mxu3 %v5002_v4  ;;  %5757 = vmatpush.bf16.msrb.mxu2 %v10899_v0  ;;  %v11250_v3 = vld [vmem:[%s11470_s26 + $0x150] sm:$0xff] }
 0x3d7   : > { %v5009_v54 = vrot.slane %v15547_v58, 1  ;;  %v4203_v48 = vor.u32 %v4202_v53, %v4201_v38  ;;  %v4458_v62 = vrot.slane %v11250_v3, 2  ;;  %v10891_v20 = vld [vmem:[%s15447_s1 + $0x90] sm:$0xff] }
 0x3d8   : > { %4584 = vmatmul.bf16.gmra.mxu2 %v4457_v47  ;;  %v5005_v47 = vor.u32 %v15546_v52, %v5001_v13  ;;  %5481 = vmatpush.bf16.msrb.mxu1 %v10891_v20 }
 0x3d9   : > { %v13756_v61 = vpop.f32.mrf.mxu3  ;;  %v4204_v0 = vsel %vm1208_vm1, %v4199_v51, %v4203_v48  ;;  %v4459_v53 = vsel %vm1492_vm3, %v4456_v57, %v4458_v62 }
 0x3da   : > { %v4062_v4 = vpop.f32.mrf.mxu0  ;;  %v4309_v1 = vpop.f32.mrf.mxu1 }
 0x3db   : > { %v4545_v21 = vpop.f32.mrf.mxu2  ;;  %v13772_v14 = vadd.f32 %v4062_v4, %v13294_v35  ;;  %v4388_v4 = vadd.f32 %v4309_v1, %v13387_v37  ;;  %v13795_v1 = vld [vmem:[%s11470_s26 + $0x1d8] sm:$0xff] }
 0x3dc   : > { %v4625_v29 = vadd.f32 %v4545_v21, %v4387_v40  ;;  %v15548_v57 = vshll.u32 %v13795_v1, 16 }
 0x3de   : > { %v4657_v7 = vmul.f32 %v13508_v23, %v4625_v29  ;;  %v5010_v29 = vsel %vm508_vm0, %v5005_v47, %v5009_v54 }
 0x3e0   : > { %v4689_v40 = vadd.f32 %v13531_v12, %v4657_v7 }
 0x3e1   : > { %v13780_v21 = vpop.f32.mrf.mxu3 }
 0x3e2   : > { %v4721_v35 = vmax.f32 %v4689_v40, 0.0  ;;  %v4065_v52 = vpop.f32.mrf.mxu0  ;;  %v4312_v58 = vpop.f32.mrf.mxu1 }
 0x3e3   : > { %v4547_v63 = vpop.f32.mrf.mxu2  ;;  %v13790_v38 = vadd.f32 %v4065_v52, %v13317_v49  ;;  %v4389_v49 = vadd.f32 %v4312_v58, %v13420_v15  ;;  %v15549_v52 = vshrl.u32 %v13754_v50, 16 }
 0x3e4   : > { %4753 = vst [vmem:[#allocation2 + $0x200] sm:$0xff] %v4721_v35  ;;  %v4626_v13 = vadd.f32 %v4547_v63, %v4388_v4  ;;  %v15674_v63 = vld [vmem:[#allocation25_spill] sm:$0xff] }
 0x3e5   : > { %4351 = vmatmul.bf16.gmra.mxu1 %v4204_v0  ;;  %5281 = vmatmul.bf16.vlgmr.msra.gmra.mxu0 %v15674_v63  ;;  %v15676_v0 = vshll.u32 %v13005_v34, 16  ;;  %v5013_v58 = vor.u32 %v15549_v52, %v5009_v54 }
 0x3e6   : > { %5171 = vmatmul.bf16.gmra.mxu3 %v5010_v29  ;;  %v4658_v37 = vmul.f32 %v13508_v23, %v4626_v13  ;;  %v15675_v29 = vshrl.u32 %v13005_v34, 16 }
 0x3e7   : > { %v4206_v20 = vrot.slane %v15676_v0, 2 }
 0x3e8   : > { %v4690_v51 = vadd.f32 %v13531_v12, %v4658_v37  ;;  %4589 = vmatmul.bf16.gmra.mxu2 %v4459_v53  ;;  %v4205_v13 = vrot.slane %v15675_v29, 1  ;;  %v5017_v37 = vrot.slane %v15548_v57, 1 }
 0x3e9   : > { %v13799_v7 = vpop.f32.mrf.mxu3 }
 0x3ea   : > { %v4722_v47 = vmax.f32 %v4690_v51, 0.0  ;;  %v4067_v35 = vpop.f32.mrf.mxu0  ;;  %v4314_v4 = vpop.f32.mrf.mxu1 }
 0x3eb   : > { %v4550_v40 = vpop.f32.mrf.mxu2  ;;  %v13809_v53 = vadd.f32 %v4067_v35, %v13353_v44  ;;  %v4390_v44 = vadd.f32 %v4314_v4, %v13437_v18  ;;  %v13832_v18 = vld [vmem:[%s11470_s26 + $0x188] sm:$0xff] }
 0x3ec   : > { %4754 = vst [vmem:[#allocation2 + $0x208] sm:$0xff] %v4722_v47  ;;  %v4627_v3 = vadd.f32 %v4550_v40, %v4389_v49  ;;  %v4207_v47 = vor.u32 %v4206_v20, %v4205_v13  ;;  %v11251_v49 = vld [vmem:[%s11470_s26 + $0x158] sm:$0xff] }
 0x3ed   : > { %v4460_v34 = vrot.slane %v11251_v49, 2 }
 0x3ee   : > { %v4659_v15 = vmul.f32 %v13508_v23, %v4627_v3  ;;  %v5018_v3 = vsel %vm508_vm0, %v5013_v58, %v5017_v37  ;;  %v4208_v57 = vsel %vm1208_vm1, %v4203_v48, %v4207_v47 }
 0x3ef   : > { %v4461_v13 = vsel %vm1492_vm3, %v4458_v62, %v4460_v34 }
 0x3f0   : > { %v4691_v63 = vadd.f32 %v13531_v12, %v4659_v15  ;;  %v15677_v15 = vld [vmem:[#allocation27_spill] sm:$0xff] }
 0x3f1   : > { %v13817_v51 = vpop.f32.mrf.mxu3 }
 0x3f2   : > { %v4723_v40 = vmax.f32 %v4691_v63, 0.0  ;;  %v4070_v29 = vpop.f32.mrf.mxu0  ;;  %v4317_v0 = vpop.f32.mrf.mxu1  ;;  %v13829_v63 = vld [vmem:[%s11470_s26 + $0x1e0] sm:$0xff] }
 0x3f3   : > { %v4552_v35 = vpop.f32.mrf.mxu2  ;;  %v13824_v52 = vadd.f32 %v4070_v29, %v15677_v15  ;;  %v4391_v49 = vadd.f32 %v4317_v0, %v13479_v33  ;;  %v15550_v62 = vshll.u32 %v13829_v63, 16  ;;  %v15679_v15 = vshll.u32 %v15647_v6, 16 }
 0x3f4   : > { %4755 = vst [vmem:[#allocation2 + $0x210] sm:$0xff] %v4723_v40  ;;  %v4628_v54 = vadd.f32 %v4552_v35, %v4390_v44  ;;  %v15551_v40 = vshrl.u32 %v13795_v1, 16 }
 0x3f5   : > { %4356 = vmatmul.bf16.gmra.mxu1 %v4208_v57  ;;  %5286 = vmatmul.bf16.gmra.mxu0 %v13832_v18 }
 0x3f6   : > { %5176 = vmatmul.bf16.gmra.mxu3 %v5018_v3  ;;  %v4660_v20 = vmul.f32 %v13508_v23, %v4628_v54  ;;  %v15678_v54 = vshrl.u32 %v15647_v6, 16  ;;  %v5021_v0 = vor.u32 %v15551_v40, %v5017_v37  ;;  %v10906_v6 = vld [vmem:[%s15447_s1 + $0x108] sm:$0xff]  ;;  %v13865_v37 = vld [vmem:[%s11470_s26 + $0x160] sm:$0xff] }
 0x3f7   : > { %5992 = vmatpush.bf16.msrb.mxu3 %v10906_v6  ;;  %v6305_v6 = vld [vmem:[#allocation2 + $0x1e1] ss:$5 sm:$0xff] }
 0x3f8   : > { %v4692_v4 = vadd.f32 %v13531_v12, %v4660_v20  ;;  %4594 = vmatmul.bf16.gmra.mxu2 %v4461_v13  ;;  %v4209_v29 = vrot.slane %v15678_v54, 1  ;;  %v4210_v13 = vrot.slane %v15679_v15, 2 }
 0x3f9   : > { %v13836_v58 = vpop.f32.mrf.mxu3 }
 0x3fa   : > { %v4724_v48 = vmax.f32 %v4692_v4, 0.0  ;;  %v4072_v57 = vpop.f32.mrf.mxu0  ;;  %v4319_v35 = vpop.f32.mrf.mxu1  ;;  %v5025_v4 = vrot.slane %v15550_v62, 1 }
 0x3fb   : > { %v4555_v44 = vpop.f32.mrf.mxu2  ;;  %v13846_v20 = vadd.f32 %v4072_v57, %v13403_v31  ;;  %v4392_v54 = vadd.f32 %v4319_v35, %v13499_v39 }
 0x3fc   : > { %4756 = vst [vmem:[#allocation2 + $0x218] sm:$0xff] %v4724_v48  ;;  %v4629_v3 = vadd.f32 %v4555_v44, %v4391_v49  ;;  %v10898_v48 = vld [vmem:[%s15447_s1 + $0xc8] sm:$0xff]  ;;  %v13862_v44 = vor.u32 %v4210_v13, %v4209_v29  ;;  %v5026_v15 = vsel %vm508_vm0, %v5021_v0, %v5025_v4  ;;  %v13886_v0 = vld [vmem:[%s11470_s26 + $0x190] sm:$0xff] }
 0x3fd   : > { %5758 = vmatpush.bf16.msrb.mxu2 %v10898_v48  ;;  %v10890_v13 = vld [vmem:[%s15447_s1 + $0x88] sm:$0xff] }
 0x3fe   : > { %v4661_v33 = vmul.f32 %v13508_v23, %v4629_v3  ;;  %v15553_v3 = vrot.slane %v13865_v37, 2  ;;  %v4212_v29 = vsel %vm1208_vm1, %v4207_v47, %v13862_v44  ;;  %5482 = vmatpush.bf16.msrb.mxu1 %v10890_v13 }
 0x400   : > { %v4693_v49 = vadd.f32 %v13531_v12, %v4661_v33  ;;  %v4463_v39 = vsel %vm1492_vm3, %v4460_v34, %v15553_v3  ;;  %v15683_v3 = vshll.u32 %v13076_v32, 16 }
 0x401   : > { %v13860_v31 = vpop.f32.mrf.mxu3 }
 0x402   : > { %15680 = vst [vmem:[#allocation20_spill] sm:$0xff] %v13860_v31  ;;  %v4725_v57 = vmax.f32 %v4693_v49, 0.0  ;;  %v4075_v40 = vpop.f32.mrf.mxu0  ;;  %v4322_v41 = vpop.f32.mrf.mxu1  ;;  %v4214_v55 = vrot.slane %v15683_v3, 2  ;;  %v13913_v3 = vld [vmem:[%s11470_s26 + $0x168] sm:$0xff] }
 0x403   : > { %v4557_v62 = vpop.f32.mrf.mxu2  ;;  %v13876_v48 = vadd.f32 %v4075_v40, %v13429_v9  ;;  %v6253_v40 = vld [vmem:[#allocation2 + $0x1e0] ss:$5 sm:$0xff]  ;;  %v4393_v34 = vadd.f32 %v4322_v41, %v13521_v45 }
 0x404   : > { %4757 = vst [vmem:[#allocation2 + $0x220] sm:$0xff] %v4725_v57  ;;  %v4630_v33 = vadd.f32 %v4557_v62, %v4392_v54  ;;  %v13883_v62 = vld [vmem:[%s11470_s26 + $0x1e8] sm:$0xff]  ;;  %v15555_v57 = vshrl.u32 %v13829_v63, 16 }
 0x405   : > { %4361 = vmatmul.bf16.gmra.mxu1 %v4212_v29  ;;  %5291 = vmatmul.bf16.gmra.mxu0 %v13886_v0  ;;  %v15554_v54 = vshll.u32 %v13883_v62, 16 }
 0x406   : > { %5181 = vmatmul.bf16.gmra.mxu3 %v5026_v15  ;;  %v4662_v35 = vmul.f32 %v13508_v23, %v4630_v33  ;;  %v5029_v41 = vor.u32 %v15555_v57, %v5025_v4  ;;  %v6461_v57 = vld [vmem:[#allocation2 + $0x1e3] ss:$5 sm:$0xff] }
 0x408   : > { %v4694_v47 = vadd.f32 %v13531_v12, %v4662_v35  ;;  %4599 = vmatmul.bf16.gmra.mxu2 %v4463_v39  ;;  %v15682_v35 = vshrl.u32 %v13076_v32, 16 }
 0x409   : > { %v13890_v9 = vpop.f32.mrf.mxu3 }
 0x40a   : > { %15681 = vst [vmem:[#allocation22_spill] sm:$0xff] %v13890_v9  ;;  %v4726_v49 = vmax.f32 %v4694_v47, 0.0  ;;  %v4077_v29 = vpop.f32.mrf.mxu0  ;;  %v4324_v13 = vpop.f32.mrf.mxu1  ;;  %v4213_v39 = vrot.slane %v15682_v35, 1  ;;  %v6344_v9 = vmax.f32 %v6253_v40, %v6305_v6 }
 0x40b   : > { %v4560_v15 = vpop.f32.mrf.mxu2  ;;  %v13900_v47 = vadd.f32 %v4077_v29, %v13470_v25  ;;  %v4394_v6 = vadd.f32 %v4324_v13, %v13544_v46  ;;  %v15685_v13 = vrot.slane %v13913_v3, 2 }
 0x40c   : > { %4758 = vst [vmem:[#allocation2 + $0x228] sm:$0xff] %v4726_v49  ;;  %v4631_v33 = vadd.f32 %v4560_v15, %v4393_v34  ;;  %v5033_v49 = vrot.slane %v15554_v54, 1  ;;  %v6383_v34 = vld [vmem:[#allocation2 + $0x1e2] ss:$5 sm:$0xff]  ;;  %v13910_v35 = vor.u32 %v4214_v55, %v4213_v39 }
 0x40d   : > { %v6422_v32 = vmax.f32 %v6344_v9, %v6383_v34 }
 0x40e   : > { %v4663_v45 = vmul.f32 %v13508_v23, %v4631_v33  ;;  %v5034_v4 = vsel %vm508_vm0, %v5029_v41, %v5033_v49  ;;  %v4216_v34 = vsel %vm1208_vm1, %v13862_v44, %v13910_v35  ;;  %v15686_v41 = vrot.slane %v13865_v37, 2  ;;  %v13934_v44 = vld [vmem:[%s11470_s26 + $0x198] sm:$0xff] }
 0x410   : > { %v4695_v15 = vadd.f32 %v13531_v12, %v4663_v45 }
 0x411   : > { %v13908_v31 = vpop.f32.mrf.mxu3 }
 0x412   : > { %15684 = vst [vmem:[#allocation26_spill] sm:$0xff] %v13908_v31  ;;  %v4727_v40 = vmax.f32 %v4695_v15, 0.0  ;;  %v4080_v39 = vpop.f32.mrf.mxu0  ;;  %v4327_v9 = vpop.f32.mrf.mxu1  ;;  %v6500_v15 = vmax.f32 %v6422_v32, %v6461_v57 }
 0x413   : > { %v6255_v33 = vld [vmem:[#allocation2 + $0x208] ss:$5 sm:$0xff]  ;;  %v6307_v29 = vld [vmem:[#allocation2 + $0x209] ss:$5 sm:$0xff]  ;;  %v4562_v54 = vpop.f32.mrf.mxu2  ;;  %v13922_v46 = vadd.f32 %v4080_v39, %v13491_v8 }
 0x414   : > { %v6345_v45 = vmax.f32 %v6255_v33, %v6307_v29  ;;  %4759 = vst [vmem:[#allocation2 + $0x230] sm:$0xff] %v4727_v40  ;;  %v4632_v55 = vadd.f32 %v4562_v54, %v4394_v6  ;;  %v6385_v25 = vld [vmem:[#allocation2 + $0x20a] ss:$5 sm:$0xff]  ;;  %v4465_v33 = vsel %vm1492_vm3, %v15686_v41, %v15685_v13  ;;  %v6463_v29 = vld [vmem:[#allocation2 + $0x20b] ss:$5 sm:$0xff] }
 0x415   : > { %v13931_v6 = vld [vmem:[%s11470_s26 + $0x1f0] sm:$0xff]  ;;  %4366 = vmatmul.bf16.gmra.mxu1 %v4216_v34  ;;  %5296 = vmatmul.bf16.gmra.mxu0 %v13934_v44  ;;  %v4395_v34 = vadd.f32 %v4327_v9, %v13569_v36  ;;  %v15690_v9 = vshrl.u32 %v13883_v62, 16 }
 0x416   : > { %5186 = vmatmul.bf16.gmra.mxu3 %v5034_v4  ;;  %v6423_v40 = vmax.f32 %v6345_v45, %v6385_v25  ;;  %v4664_v54 = vmul.f32 %v13508_v23, %v4632_v55  ;;  %v6539_v8 = vld [vmem:[#allocation2 + $0x1e4] ss:$5 sm:$0xff]  ;;  %v6541_v39 = vld [vmem:[#allocation2 + $0x20c] ss:$5 sm:$0xff]  ;;  %v15556_v13 = vshll.u32 %v13931_v6, 16 }
 0x417   : > { %v6578_v37 = vmax.f32 %v6500_v15, %v6539_v8  ;;  %v15689_v8 = vshll.u32 %v13113_v17, 16 }
 0x418   : > { %v6501_v57 = vmax.f32 %v6423_v40, %v6463_v29  ;;  %v4696_v32 = vadd.f32 %v13531_v12, %v4664_v54  ;;  %4604 = vmatmul.bf16.gmra.mxu2 %v4465_v33  ;;  %v15688_v29 = vshrl.u32 %v13113_v17, 16  ;;  %v13962_v17 = vld [vmem:[%s11470_s26 + $0x170] sm:$0xff] }
 0x419   : > { %v13938_v4 = vpop.f32.mrf.mxu3  ;;  %v4218_v25 = vrot.slane %v15689_v8, 2 }
 0x41a   : > { %15687 = vst [vmem:[#allocation25_spill] sm:$0xff] %v13938_v4  ;;  %v6579_v45 = vmax.f32 %v6501_v57, %v6541_v39  ;;  %v4728_v55 = vmax.f32 %v4696_v32, 0.0  ;;  %v4082_v54 = vpop.f32.mrf.mxu0  ;;  %v4329_v33 = vpop.f32.mrf.mxu1  ;;  %v4217_v15 = vrot.slane %v15688_v29, 1  ;;  %v5037_v32 = vor.u32 %v15690_v9, %v5033_v49  ;;  %v4832_v39 = vld [vmem:[%s11470_s26 + $0x1f8] sm:$0x3]  ;;  %v10889_v9 = vld [vmem:[%s15447_s1 + $0x80] sm:$0xff] }
 0x41b   : > { %v4565_v41 = vpop.f32.mrf.mxu2  ;;  %v13948_v57 = vadd.f32 %v4082_v54, %v13515_v24  ;;  %v15557_v24 = vrot.slane %v13962_v17, 2  ;;  %v4910_v49 = vunpack.c.l.b16 %v4832_v39  ;;  %v10897_v54 = vld [vmem:[%s15447_s1 + $0xc0] sm:$0xff]  ;;  %v10939_v29 = vld [vmem:[%s15448_s2 + $0x78] sm:$0xff]  ;;  %5483 = vmatpush.bf16.msrb.mxu1 %v10889_v9  ;;  %v15696_v9 = vrot.slane %v13722_v19, 2 }
 0x41c   : > { %v11082_v31 = vpack.c.bf16 %v6579_v45, %v6578_v37  ;;  %4760 = vst [vmem:[#allocation2 + $0x238] sm:$0xff] %v4728_v55  ;;  %v4633_v40 = vadd.f32 %v4565_v41, %v4395_v34  ;;  %v5041_v37 = vrot.slane %v15556_v13, 1  ;;  %v13959_v34 = vor.u32 %v4218_v25, %v4217_v15  ;;  %v10905_v25 = vld [vmem:[%s15447_s1 + $0x100] sm:$0xff]  ;;  %5759 = vmatpush.bf16.msrb.mxu2 %v10897_v54 }
 0x41d   : > { %v4396_v41 = vadd.f32 %v4329_v33, %v13601_v42  ;;  %6932 = vmatpush.bf16.msrb.mxu0 %v10939_v29  ;;  %v13993_v54 = vpack.c.b16 %v4910_v49, %v4910_v49  ;;  %5993 = vmatpush.bf16.msrb.mxu3 %v10905_v25  ;;  %v13996_v29 = vld [vmem:[%s11470_s26 + $0x1a0] sm:$0xff] }
 0x41e   : > { %11135 = vst [vmem:[#allocation3 + $0x30] sm:$0xff] %v11082_v31   ;;  %v4665_v36 = vmul.f32 %v13508_v23, %v4633_v40  ;;  %v5042_v40 = vsel %vm508_vm0, %v5037_v32, %v5041_v37  ;;  %v15692_v32 = vld [vmem:[#allocation23_spill] sm:$0xff]  ;;  %v4137_v49 = vld [vmem:[%s11470_s26 + $0x180] sm:$0x3] }
 0x41f   : > { %15694 = vst [vmem:[#allocation23_spill] sm:$0xff] %v13993_v54  ;;  %v5047_v25 = vshll.u32 %v13993_v54, 16 }
 0x420   : > { %v4697_v45 = vadd.f32 %v13531_v12, %v4665_v36  ;;  %v4220_v36 = vsel %vm1208_vm1, %v13910_v35, %v13959_v34 }
 0x421   : > { %v13957_v55 = vpop.f32.mrf.mxu3 }
 0x422   : > { %15691 = vst [vmem:[#allocation27_spill] sm:$0xff] %v13957_v55  ;;  %v4729_v31 = vmax.f32 %v4697_v45, 0.0  ;;  %v4085_v42 = vpop.f32.mrf.mxu0  ;;  %v4332_v33 = vpop.f32.mrf.mxu1  ;;  %v15693_v45 = vrot.slane %v13913_v3, 2 }
 0x423   : > { %v4567_v15 = vpop.f32.mrf.mxu2  ;;  %v13983_v39 = vadd.f32 %v4085_v42, %v15692_v32 }
 0x424   : > { %4761 = vst [vmem:[#allocation2 + $0x240] sm:$0xff] %v4729_v31  ;;  %v4634_v8 = vadd.f32 %v4567_v15, %v4396_v41  ;;  %v4467_v31 = vsel %vm1492_vm3, %v15693_v45, %v15557_v24 }
 0x425   : > { %v13990_v41 = vld [vmem:[#allocation3 + $0x30] sm:$0xff]  ;;  %4371 = vmatmul.bf16.gmra.mxu1 %v4220_v36  ;;  %5301 = vmatmul.bf16.gmra.mxu0 %v13996_v29 }
 0x426   : > { %5191 = vmatmul.bf16.gmra.mxu3 %v5042_v40  ;;  %v4666_v35 = vmul.f32 %v13508_v23, %v4634_v8  ;;  %v15558_v15 = vrot.slane %v13990_v41, 2  ;;  %v4397_v8 = vadd.f32 %v4332_v33, %v13629_v28  ;;  %v15699_v33 = vshll.u32 %v13155_v60, 16 }
 0x428   : > { %v4698_v40 = vadd.f32 %v13531_v12, %v4666_v35  ;;  %4609 = vmatmul.bf16.gmra.mxu2 %v4467_v31  ;;  %v14011_v32 = vsel %vm1492_vm3, %v15696_v9, %v15558_v15  ;;  %v4222_v13 = vrot.slane %v15699_v33, 2  ;;  %v15700_v9 = vshrl.u32 %v13931_v6, 16 }
 0x429   : > { %v14000_v3 = vpop.f32.mrf.mxu3  ;;  %15697 = vst [vmem:[#allocation31_spill] sm:$0xff] %v14011_v32  ;;  %v5049_v32 = vrot.slane %v5047_v25, 1 }
 0x42a   : > { %15695 = vst [vmem:[#allocation30_spill] sm:$0xff] %v14000_v3  ;;  %v4730_v42 = vmax.f32 %v4698_v40, 0.0  ;;  %v4087_v31 = vpop.f32.mrf.mxu0  ;;  %v4334_v35 = vpop.f32.mrf.mxu1  ;;  %v15698_v40 = vshrl.u32 %v13155_v60, 16  ;;  %v5045_v15 = vor.u32 %v15700_v9, %v5041_v37  ;;  %v4155_v3 = vunpack.c.l.b16 %v4137_v49 }
 0x42b   : > { %v4570_v36 = vpop.f32.mrf.mxu2  ;;  %v14018_v24 = vadd.f32 %v4087_v31, %v13560_v56  ;;  %v4398_v56 = vadd.f32 %v4334_v35, %v13660_v27  ;;  %v15702_v49 = vrot.slane %v13962_v17, 2 }
 0x42c   : > { %4762 = vst [vmem:[#allocation2 + $0x248] sm:$0xff] %v4730_v42  ;;  %v4635_v45 = vadd.f32 %v4570_v36, %v4397_v8  ;;  %v4221_v28 = vrot.slane %v15698_v40, 1  ;;  %v11259_v40 = vld [vmem:[%s11470_s26 + $0x178] sm:$0xff]  ;;  %v5050_v31 = vsel %vm508_vm0, %v5045_v15, %v5049_v32  ;;  %v14040_v15 = vld [vmem:[%s11470_s26 + $0x1a8] sm:$0xff] }
 0x42d   : > { %v4468_v55 = vrot.slane %v11259_v40, 2 }
 0x42e   : > { %v4667_v19 = vmul.f32 %v13508_v23, %v4635_v45  ;;  %v4223_v36 = vor.u32 %v4222_v13, %v4221_v28 }
 0x42f   : > { %v4469_v28 = vsel %vm1492_vm3, %v15702_v49, %v4468_v55 }
 0x430   : > { %v4699_v42 = vadd.f32 %v13531_v12, %v4667_v19  ;;  %v4224_v25 = vsel %vm1208_vm1, %v13959_v34, %v4223_v36  ;;  %v4156_v19 = vpack.c.b16 %v4155_v3, %v4155_v3 }
 0x431   : > { %v14025_v8 = vpop.f32.mrf.mxu3 }
 0x432   : > { %15701 = vst [vmem:[#allocation32_spill] sm:$0xff] %v14025_v8  ;;  %v4731_v60 = vmax.f32 %v4699_v42, 0.0  ;;  %v4090_v4 = vpop.f32.mrf.mxu0  ;;  %v4337_v37 = vpop.f32.mrf.mxu1 }
 0x433   : > { %v4572_v33 = vpop.f32.mrf.mxu2  ;;  %v14033_v13 = vadd.f32 %v4090_v4, %v13593_v5  ;;  %v4226_v5 = vshrl.u32 %v4156_v19, 16  ;;  %v4229_v4 = vshll.u32 %v4156_v19, 16  ;;  %v4399_v17 = vadd.f32 %v4337_v37, %v13696_v43  ;;  %v5361_v37 = vld [vmem:[%s11470_s26 + $0x180] sm:$0xe] }
 0x434   : > { %4763 = vst [vmem:[#allocation2 + $0x250] sm:$0xff] %v4731_v60  ;;  %v4636_v45 = vadd.f32 %v4572_v33, %v4398_v56 }
 0x435   : > { %4376 = vmatmul.bf16.gmra.mxu1 %v4224_v25  ;;  %5306 = vmatmul.bf16.gmra.mxu0 %v14040_v15  ;;  %v4228_v60 = vrot.slane %v4226_v5, 1  ;;  %v4231_v56 = vrot.slane %v4229_v4, 2  ;;  %v14054_v25 = vld [vmem:[%s15450_s4] ss:$0 sm:$0xff]  ;;  %v4470_v5 = vrot.slane %v4156_v19, 2 }
 0x436   : > { %5196 = vmatmul.bf16.gmra.mxu3 %v5050_v31  ;;  %v4668_v27 = vmul.f32 %v13508_v23, %v4636_v45  ;;  %v15704_v31 = vld [vmem:[#allocation18_spill] sm:$0xff]  ;;  %v5051_v45 = vshrl.u32 %v13993_v54, 16 }
 0x437   : > { %v11262_v4 = vld [vmem:[%s11470_s26 + $0x180] sm:$0xff]  }
 0x438   : > { %v4700_v35 = vadd.f32 %v13531_v12, %v4668_v27  ;;  %4614 = vmatmul.bf16.gmra.mxu2 %v4469_v28  ;;  %v4232_v27 = vor.u32 %v4231_v56, %v4228_v60 }
 0x439   : > { %v14044_v34 = vpop.f32.mrf.mxu3 }
 0x43a   : > { %15703 = vst [vmem:[#allocation33_spill] sm:$0xff] %v14044_v34  ;;  %v4732_v3 = vmax.f32 %v4700_v35, 0.0  ;;  %v4092_v42 = vpop.f32.mrf.mxu0  ;;  %v4339_v40 = vpop.f32.mrf.mxu1  ;;  %v5053_v35 = vor.u32 %v5051_v45, %v5049_v32  ;;  %v5871_v34 = vld [vmem:[%s11470_s26 + $0x180] sm:$0xc]  ;;  %v4471_v32 = vsel %vm1492_vm3, %v4468_v55, %v4470_v5 }
 0x43b   : > { %v4575_v9 = vpop.f32.mrf.mxu2  ;;  %v14048_v33 = vadd.f32 %v4092_v42, %v15704_v31  ;;  %v4400_v42 = vadd.f32 %v4339_v40, %v13716_v10  ;;  %v5889_v56 = vunpack.c.l.b16 %v5871_v34  ;;  %v14071_v10 = vld [vmem:[%s11470_s26 + $0x1b0] sm:$0xff]  ;;  %v14077_v40 = vld [vmem:[%s15451_s5] ss:$0 sm:$0xff] }
 0x43c   : > { %4764 = vst [vmem:[#allocation2 + $0x258] sm:$0xff] %v4732_v3  ;;  %v4637_v23 = vadd.f32 %v4575_v9, %v4399_v17  ;;  %v11048_v3 = vunpack.c.h.b16 %v11262_v4  ;;  %v5379_v17 = vunpack.c.l.b16 %v5361_v37 }
 0x43e   : > { %v4669_v43 = vmul.f32 %v14054_v25, %v4637_v23  ;;  %v5380_v19 = vpack.c.b16 %v11048_v3, %v5379_v17  ;;  %v5890_v34 = vpack.c.b16 %v11048_v3, %v5889_v56  ;;  %v10938_v3 = vld [vmem:[%s15448_s2 + $0x70] sm:$0xff] }
 0x43f   : > { %6933 = vmatpush.bf16.msrb.mxu0 %v10938_v3 }
 0x440   : > { %v4701_v49 = vadd.f32 %v13531_v12, %v4669_v43  ;;  %v4233_v12 = vsel %vm1208_vm1, %v4223_v36, %v4232_v27  ;;  %v15706_v43 = vld [vmem:[#allocation16_spill] sm:$0xff]  ;;  %v5616_v55 = vshrl.u32 %v5380_v19, 16  ;;  %v5619_v37 = vshll.u32 %v5380_v19, 16 }
 0x441   : > { %v14059_v28 = vpop.f32.mrf.mxu3 }
 0x442   : > { %15705 = vst [vmem:[#allocation18_spill] sm:$0xff] %v14059_v28  ;;  %v4733_v9 = vmax.f32 %v4701_v49, 0.0  ;;  %v4095_v23 = vpop.f32.mrf.mxu0  ;;  %v4342_v8 = vpop.f32.mrf.mxu1 }
 0x443   : > { %v4577_v31 = vpop.f32.mrf.mxu2  ;;  %v14066_v28 = vadd.f32 %v4095_v23, %v15706_v43  ;;  %v5618_v23 = vrot.slane %v5616_v55, 1  ;;  %v5382_v55 = vrot.slane %v13832_v18, 1 }
 0x444   : > { %4765 = vst [vmem:[#allocation2 + $0x260] sm:$0xff] %v4733_v9  ;;  %v4638_v54 = vadd.f32 %v4577_v31, %v4400_v42 }
 0x445   : > { %4381 = vmatmul.bf16.gmra.mxu1 %v4233_v12  ;;  %5311 = vmatmul.bf16.gmra.mxu0 %v14071_v10  ;;  %v5621_v12 = vrot.slane %v5619_v37, 2 }
 0x446   : > { %5201 = vmatmul.bf16.gmra.mxu3 %v5053_v35  ;;  %v4670_v60 = vmul.f32 %v14054_v25, %v4638_v54  ;;  %v4401_v54 = vadd.f32 %v4342_v8, %v13748_v11  ;;  %v15707_v35 = vld [vmem:[#allocation13_spill] sm:$0xff]  ;;  %v5891_v11 = vrot.slane %v5890_v34, 2  ;;  %v5892_v8 = vrot.slane %v13832_v18, 2 }
 0x447   : > { %v15708_v5 = vshrl.u32 %v15707_v35, 16  ;;  %v15709_v43 = vshll.u32 %v15707_v35, 16  ;;  %v5622_v37 = vor.u32 %v5621_v12, %v5618_v23  ;;  %v14108_v23 = vld [vmem:[%s11470_s26 + $0x1b8] sm:$0xff] }
 0x448   : > { %v4702_v36 = vadd.f32 %v14077_v40, %v4670_v60  ;;  %4619 = vmatmul.bf16.gmra.mxu2 %v4471_v32 }
 0x449   : > { %v14080_v45 = vpop.f32.mrf.mxu3  ;;  %v5623_v4 = vrot.slane %v15708_v5, 1  ;;  %v5624_v32 = vrot.slane %v15709_v43, 2 }
 0x44a   : > { %v4734_v49 = vmax.f32 %v4702_v36, 0.0  ;;  %v4097_v9 = vpop.f32.mrf.mxu0  ;;  %v4344_v42 = vpop.f32.mrf.mxu1 }
 0x44b   : > { %v4580_v27 = vpop.f32.mrf.mxu2  ;;  %v14086_v31 = vadd.f32 %v4097_v9, %v13679_v59  ;;  %v5381_v59 = vrot.slane %v5380_v19, 1  ;;  %v4402_v34 = vadd.f32 %v4344_v42, %v13772_v14 }
 0x44c   : > { %4766 = vst [vmem:[#allocation2 + $0x268] sm:$0xff] %v4734_v49  ;;  %v4639_v17 = vadd.f32 %v4580_v27, %v4401_v54  ;;  %v5625_v49 = vor.u32 %v5624_v32, %v5623_v4  ;;  %v5893_v27 = vsel %vm1492_vm3, %v5891_v11, %v5892_v8 }
 0x44d   : > { %v5383_v43 = vsel %vm968_vm2, %v5381_v59, %v5382_v55 }
 0x44e   : > { %v4671_v60 = vmul.f32 %v14054_v25, %v4639_v17  ;;  %v5626_v18 = vsel %vm1208_vm1, %v5622_v37, %v5625_v49  ;;  %v10937_v37 = vld [vmem:[%s15448_s2 + $0x68] sm:$0xff] }
 0x44f   : > { %6934 = vmatpush.bf16.msrb.mxu0 %v10937_v37 }
 0x450   : > { %v4703_v56 = vadd.f32 %v14077_v40, %v4671_v60  ;;  %v6309_v60 = vld [vmem:[#allocation2 + $0x231] ss:$5 sm:$0xff] }
 0x451   : > { %v14096_v36 = vpop.f32.mrf.mxu3 }
 0x452   : > { %v4735_v54 = vmax.f32 %v4703_v56, 0.0  ;;  %v4100_v17 = vpop.f32.mrf.mxu0  ;;  %v4347_v9 = vpop.f32.mrf.mxu1 }
 0x453   : > { %v4582_v35 = vpop.f32.mrf.mxu2  ;;  %v14103_v19 = vadd.f32 %v4100_v17, %v13708_v16  ;;  %v4403_v32 = vadd.f32 %v4347_v9, %v13790_v38  ;;  %v6257_v16 = vld [vmem:[#allocation2 + $0x230] ss:$5 sm:$0xff] }
 0x454   : > { %4767 = vst [vmem:[#allocation2 + $0x270] sm:$0xff] %v4735_v54  ;;  %v4640_v5 = vadd.f32 %v4582_v35, %v4402_v34  ;;  %v15710_v34 = vld [vmem:[#allocation14_spill] sm:$0xff]  ;;  %v6346_v17 = vmax.f32 %v6257_v16, %v6309_v60 }
 0x455   : > { %5316 = vmatmul.bf16.gmra.mxu0 %v14108_v23  ;;  %5484 = vmatmul.bf16.vlgmr.msrb.gmra.mxu1 %v5383_v43  ;;  %v5894_v43 = vrot.slane %v13886_v0, 2 }
 0x456   : > { %5994 = vmatmul.bf16.vlgmr.msrb.gmra.mxu3 %v5893_v27  ;;  %v4672_v4 = vmul.f32 %v14054_v25, %v4640_v5  ;;  %v15711_v27 = vshrl.u32 %v15710_v34, 16  ;;  %v15712_v5 = vshll.u32 %v15710_v34, 16 }
 0x457   : > { %v5895_v34 = vsel %vm1492_vm3, %v5892_v8, %v5894_v43 }
 0x458   : > { %v4704_v14 = vadd.f32 %v14077_v40, %v4672_v4  ;;  %5760 = vmatmul.bf16.vlgmr.msrb.gmra.mxu2 %v5626_v18  ;;  %v5627_v35 = vrot.slane %v15711_v27, 1  ;;  %v5628_v38 = vrot.slane %v15712_v5, 2 }
 0x459   : > { %v14112_v42 = vpop.f32.mrf.mxu3 }
 0x45a   : > { %v4736_v12 = vmax.f32 %v4704_v14, 0.0  ;;  %v4102_v56 = vpop.f32.mrf.mxu0  ;;  %v4349_v59 = vpop.f32.mrf.mxu1  ;;  %v5384_v14 = vrot.slane %v13886_v0, 1 }
 0x45b   : > { %v4585_v11 = vpop.f32.mrf.mxu2  ;;  %v14119_v54 = vadd.f32 %v4102_v56, %v13740_v22  ;;  %v6387_v22 = vld [vmem:[#allocation2 + $0x232] ss:$5 sm:$0xff]  ;;  %v4404_v56 = vadd.f32 %v4349_v59, %v13809_v53 }
 0x45c   : > { %4768 = vst [vmem:[#allocation2 + $0x278] sm:$0xff] %v4736_v12  ;;  %v4641_v3 = vadd.f32 %v4585_v11, %v4403_v32  ;;  %v5629_v12 = vor.u32 %v5628_v38, %v5627_v35  ;;  %v6424_v32 = vmax.f32 %v6346_v17, %v6387_v22  ;;  %v5385_v0 = vsel %vm968_vm2, %v5382_v55, %v5384_v14  ;;  %v6543_v55 = vld [vmem:[#allocation2 + $0x234] ss:$5 sm:$0xff] }
 0x45e   : > { %v4673_v9 = vmul.f32 %v14054_v25, %v4641_v3  ;;  %v5630_v38 = vsel %vm1208_vm1, %v5625_v49, %v5629_v12 }
 0x460   : > { %v4705_v18 = vadd.f32 %v14077_v40, %v4673_v9 }
 0x461   : > { %v14128_v4 = vpop.f32.mrf.mxu3 }
 0x462   : > { %15713 = vst [vmem:[#allocation16_spill] sm:$0xff] %v14128_v4  ;;  %v4737_v11 = vmax.f32 %v4705_v18, 0.0  ;;  %v4352_v5 = vpop.f32.mrf.mxu1  ;;  %v14133_v9 = vpop.f32.mrf.mxu0  ;;  %v6465_v4 = vld [vmem:[#allocation2 + $0x233] ss:$5 sm:$0xff] }
 0x463   : > { %v6259_v16 = vld [vmem:[#allocation2 + $0x258] ss:$5 sm:$0xff]  ;;  %v6311_v60 = vld [vmem:[#allocation2 + $0x259] ss:$5 sm:$0xff]  ;;  %v4587_v3 = vpop.f32.mrf.mxu2  ;;  %v6502_v53 = vmax.f32 %v6424_v32, %v6465_v4  ;;  %v4405_v32 = vadd.f32 %v4352_v5, %v13824_v52 }
 0x464   : > { %v6347_v27 = vmax.f32 %v6259_v16, %v6311_v60  ;;  %4769 = vst [vmem:[#allocation2 + $0x280] sm:$0xff] %v4737_v11  ;;  %v4642_v37 = vadd.f32 %v4587_v3, %v4404_v56  ;;  %v6389_v35 = vld [vmem:[#allocation2 + $0x25a] ss:$5 sm:$0xff]  ;;  %v6467_v17 = vld [vmem:[#allocation2 + $0x25b] ss:$5 sm:$0xff] }
 0x465   : > { %v14139_v18 = vld [vmem:[%s11470_s26 + $0x1c0] sm:$0xff]  ;;  %5489 = vmatmul.bf16.gmra.mxu1 %v5385_v0  ;;  %v6580_v16 = vmax.f32 %v6502_v53, %v6543_v55  ;;  %v15714_v0 = vld [vmem:[#allocation15_spill] sm:$0xff] }
 0x466   : > { %5999 = vmatmul.bf16.gmra.mxu3 %v5895_v34  ;;  %v6425_v59 = vmax.f32 %v6347_v27, %v6389_v35  ;;  %v4674_v8 = vmul.f32 %v14054_v25, %v4642_v37  ;;  %5321 = vmatmul.bf16.gmra.mxu0 %v14139_v18  ;;  %v6545_v34 = vld [vmem:[#allocation2 + $0x25c] ss:$5 sm:$0xff] }
 0x468   : > { %v6503_v22 = vmax.f32 %v6425_v59, %v6467_v17  ;;  %v4706_v11 = vadd.f32 %v14077_v40, %v4674_v8  ;;  %5765 = vmatmul.bf16.gmra.mxu2 %v5630_v38  ;;  %v15715_v59 = vshrl.u32 %v15714_v0, 16  ;;  %v15716_v17 = vshll.u32 %v15714_v0, 16 }
 0x469   : > { %v14143_v56 = vpop.f32.mrf.mxu3 }
 0x46a   : > { %v6581_v49 = vmax.f32 %v6503_v22, %v6545_v34  ;;  %v4738_v4 = vmax.f32 %v4706_v11, 0.0  ;;  %v4354_v37 = vpop.f32.mrf.mxu1  ;;  %v14146_v35 = vpop.f32.mrf.mxu0  ;;  %v5631_v8 = vrot.slane %v15715_v59, 1  ;;  %v5632_v38 = vrot.slane %v15716_v17, 2 }
 0x46b   : > { %v4590_v60 = vpop.f32.mrf.mxu2  ;;  %v5896_v22 = vrot.slane %v13934_v44, 2  ;;  %v5386_v11 = vrot.slane %v13934_v44, 1 }
 0x46c   : > { %v11087_v3 = vpack.c.bf16 %v6581_v49, %v6580_v16  ;;  %4770 = vst [vmem:[#allocation2 + $0x288] sm:$0xff] %v4738_v4  ;;  %v4643_v27 = vadd.f32 %v4590_v60, %v4405_v32  ;;  %v5633_v55 = vor.u32 %v5632_v38, %v5631_v8  ;;  %v4406_v16 = vadd.f32 %v4354_v37, %v13846_v20 }
 0x46d   : > { %v5897_v49 = vsel %vm1492_vm3, %v5894_v43, %v5896_v22 }
 0x46e   : > { %11136 = vst [vmem:[#allocation3 + $0x38] sm:$0xff] %v11087_v3   ;;  %v4675_v53 = vmul.f32 %v14054_v25, %v4643_v27  ;;  %v5387_v27 = vsel %vm968_vm2, %v5384_v14, %v5386_v11  ;;  %v5634_v0 = vsel %vm1208_vm1, %v5629_v12, %v5633_v55  ;;  %v15717_v12 = vrot.slane %v13990_v41, 2 }
 0x470   : > { %v4707_v52 = vadd.f32 %v14077_v40, %v4675_v53 }
 0x471   : > { %v14155_v5 = vpop.f32.mrf.mxu3 }
 0x472   : > { %v4739_v34 = vmax.f32 %v4707_v52, 0.0  ;;  %v4357_v60 = vpop.f32.mrf.mxu1  ;;  %v14160_v3 = vpop.f32.mrf.mxu0 }
 0x473   : > { %v4592_v4 = vpop.f32.mrf.mxu2  ;;  %v4407_v14 = vadd.f32 %v4357_v60, %v13876_v48 }
 0x474   : > { %4771 = vst [vmem:[#allocation2 + $0x290] sm:$0xff] %v4739_v34  ;;  %v4644_v32 = vadd.f32 %v4592_v4, %v4406_v16  ;;  %v10936_v16 = vld [vmem:[%s15448_s2 + $0x60] sm:$0xff] }
 0x475   : > { %v14164_v59 = vld [vmem:[#allocation3 + $0x38] sm:$0xff]  ;;  %5494 = vmatmul.bf16.gmra.mxu1 %v5387_v27  ;;  %v5898_v27 = vrot.slane %v13996_v29, 2  ;;  %6935 = vmatpush.bf16.msrb.mxu0 %v10936_v16 }
 0x476   : > { %6004 = vmatmul.bf16.gmra.mxu3 %v5897_v49  ;;  %v4676_v44 = vmul.f32 %v14054_v25, %v4644_v32  ;;  %5326 = vmatmul.bf16.gmra.mxu0 %v13702_v2  ;;  %v15561_v37 = vrot.slane %v14164_v59, 2  ;;  %v15719_v49 = vld [vmem:[#allocation28_spill] sm:$0xff] }
 0x477   : > { %v15720_v4 = vshrl.u32 %v15719_v49, 16  ;;  %v15721_v32 = vshll.u32 %v15719_v49, 16 }
 0x478   : > { %v4708_v20 = vadd.f32 %v14077_v40, %v4676_v44  ;;  %5770 = vmatmul.bf16.gmra.mxu2 %v5634_v0  ;;  %v14178_v38 = vsel %vm1492_vm3, %v15717_v12, %v15561_v37  ;;  %v5899_v12 = vsel %vm1492_vm3, %v5896_v22, %v5898_v27 }
 0x479   : > { %v14169_v43 = vpop.f32.mrf.mxu3  ;;  %15718 = vst [vmem:[#allocation13_spill] sm:$0xff] %v14178_v38  ;;  %v5635_v48 = vrot.slane %v15720_v4, 1  ;;  %v5636_v60 = vrot.slane %v15721_v32, 2 }
 0x47a   : > { %v4740_v8 = vmax.f32 %v4708_v20, 0.0  ;;  %v4359_v52 = vpop.f32.mrf.mxu1  ;;  %v14180_v34 = vpop.f32.mrf.mxu0  ;;  %v5388_v20 = vrot.slane %v13996_v29, 1 }
 0x47b   : > { %v4595_v17 = vpop.f32.mrf.mxu2 }
 0x47c   : > { %4772 = vst [vmem:[#allocation2 + $0x298] sm:$0xff] %v4740_v8  ;;  %v4645_v53 = vadd.f32 %v4595_v17, %v4407_v14  ;;  %v5637_v8 = vor.u32 %v5636_v60, %v5635_v48  ;;  %v4408_v17 = vadd.f32 %v4359_v52, %v13900_v47  ;;  %v5389_v16 = vsel %vm968_vm2, %v5386_v11, %v5388_v20 }
 0x47e   : > { %v4677_v41 = vmul.f32 %v14054_v25, %v4645_v53 }
 0x480   : > { %v4709_v0 = vadd.f32 %v14077_v40, %v4677_v41  ;;  %v5638_v41 = vsel %vm1208_vm1, %v5633_v55, %v5637_v8  ;;  %v15722_v55 = vld [vmem:[#allocation21_spill] sm:$0xff] }
 0x481   : > { %v14192_v44 = vpop.f32.mrf.mxu3 }
 0x482   : > { %v4741_v14 = vmax.f32 %v4709_v0, 0.0  ;;  %v4362_v32 = vpop.f32.mrf.mxu1  ;;  %v14197_v53 = vpop.f32.mrf.mxu0 }
 0x483   : > { %v4597_v4 = vpop.f32.mrf.mxu2  ;;  %v4409_v52 = vadd.f32 %v4362_v32, %v13922_v46  ;;  %v5390_v46 = vrot.slane %v14040_v15, 1 }
 0x484   : > { %4773 = vst [vmem:[#allocation2 + $0x2a0] sm:$0xff] %v4741_v14  ;;  %v4646_v49 = vadd.f32 %v4597_v4, %v4408_v17  ;;  %v15723_v14 = vshrl.u32 %v15722_v55, 16 }
 0x485   : > { %5499 = vmatmul.bf16.gmra.mxu1 %v5389_v16 }
 0x486   : > { %6009 = vmatmul.bf16.gmra.mxu3 %v5899_v12  ;;  %v4678_v37 = vmul.f32 %v14054_v25, %v4646_v49  ;;  %5331 = vmatmul.bf16.gmra.mxu0 %v13754_v50  ;;  %v5639_v17 = vrot.slane %v15723_v14, 1  ;;  %v15724_v12 = vshll.u32 %v15722_v55, 16  ;;  %v5900_v49 = vrot.slane %v14040_v15, 2 }
 0x488   : > { %v4710_v47 = vadd.f32 %v14077_v40, %v4678_v37  ;;  %5775 = vmatmul.bf16.gmra.mxu2 %v5638_v41  ;;  %v5640_v4 = vrot.slane %v15724_v12, 2 }
 0x489   : > { %v14204_v29 = vpop.f32.mrf.mxu3 }
 0x48a   : > { %v4742_v22 = vmax.f32 %v4710_v47, 0.0  ;;  %v4364_v11 = vpop.f32.mrf.mxu1  ;;  %v14207_v0 = vpop.f32.mrf.mxu0  ;;  %v5641_v32 = vor.u32 %v5640_v4, %v5639_v17 }
 0x48b   : > { %v4600_v48 = vpop.f32.mrf.mxu2 }
 0x48c   : > { %4774 = vst [vmem:[#allocation2 + $0x2a8] sm:$0xff] %v4742_v22  ;;  %v4647_v60 = vadd.f32 %v4600_v48, %v4409_v52  ;;  %v4410_v22 = vadd.f32 %v4364_v11, %v13948_v57  ;;  %v5901_v52 = vsel %vm1492_vm3, %v5898_v27, %v5900_v49 }
 0x48e   : > { %v4679_v37 = vmul.f32 %v14054_v25, %v4647_v60  ;;  %v5391_v60 = vsel %vm968_vm2, %v5388_v20, %v5390_v46 }
 0x490   : > { %v4711_v16 = vadd.f32 %v14077_v40, %v4679_v37  ;;  %v5642_v37 = vsel %vm1208_vm1, %v5637_v8, %v5641_v32  ;;  %v15727_v8 = vld [vmem:[#allocation17_spill] sm:$0xff] }
 0x491   : > { %v14216_v41 = vpop.f32.mrf.mxu3 }
 0x492   : > { %15725 = vst [vmem:[#allocation14_spill] sm:$0xff] %v14216_v41  ;;  %v4743_v47 = vmax.f32 %v4711_v16, 0.0  ;;  %v4367_v14 = vpop.f32.mrf.mxu1  ;;  %v14221_v12 = vpop.f32.mrf.mxu0 }
 0x493   : > { %v4602_v48 = vpop.f32.mrf.mxu2  ;;  %v4411_v11 = vadd.f32 %v4367_v14, %v13983_v39  ;;  %v10935_v39 = vld [vmem:[%s15448_s2 + $0x58] sm:$0xff] }
 0x494   : > { %4775 = vst [vmem:[#allocation2 + $0x2b0] sm:$0xff] %v4743_v47  ;;  %v4648_v55 = vadd.f32 %v4602_v48, %v4410_v22  ;;  %v15728_v47 = vshrl.u32 %v15727_v8, 16  ;;  %6936 = vmatpush.bf16.msrb.mxu0 %v10935_v39  ;;  %v6313_v39 = vld [vmem:[#allocation2 + $0x281] ss:$5 sm:$0xff] }
 0x495   : > { %5504 = vmatmul.bf16.gmra.mxu1 %v5391_v60 }
 0x496   : > { %6014 = vmatmul.bf16.gmra.mxu3 %v5901_v52  ;;  %v4680_v38 = vmul.f32 %v14054_v25, %v4648_v55  ;;  %5336 = vmatmul.bf16.gmra.mxu0 %v13795_v1  ;;  %v5643_v22 = vrot.slane %v15728_v47, 1  ;;  %v15729_v52 = vshll.u32 %v15727_v8, 16  ;;  %v5902_v55 = vrot.slane %v14071_v10, 2 }
 0x498   : > { %v4712_v57 = vadd.f32 %v14077_v40, %v4680_v38  ;;  %5780 = vmatmul.bf16.gmra.mxu2 %v5642_v37  ;;  %v5644_v48 = vrot.slane %v15729_v52, 2  ;;  %v5392_v37 = vrot.slane %v14071_v10, 1 }
 0x499   : > { %v14228_v15 = vpop.f32.mrf.mxu3 }
 0x49a   : > { %15726 = vst [vmem:[#allocation15_spill] sm:$0xff] %v14228_v15  ;;  %v4744_v27 = vmax.f32 %v4712_v57, 0.0  ;;  %v4369_v20 = vpop.f32.mrf.mxu1  ;;  %v14231_v16 = vpop.f32.mrf.mxu0  ;;  %v5645_v57 = vor.u32 %v5644_v48, %v5643_v22  ;;  %v5393_v15 = vsel %vm968_vm2, %v5390_v46, %v5392_v37  ;;  %v6261_v48 = vld [vmem:[#allocation2 + $0x280] ss:$5 sm:$0xff] }
 0x49b   : > { %v4605_v17 = vpop.f32.mrf.mxu2 }
 0x49c   : > { %4776 = vst [vmem:[#allocation2 + $0x2b8] sm:$0xff] %v4744_v27  ;;  %v4649_v4 = vadd.f32 %v4605_v17, %v4411_v11  ;;  %v4412_v11 = vadd.f32 %v4369_v20, %v14018_v24  ;;  %v5903_v17 = vsel %vm1492_vm3, %v5900_v49, %v5902_v55 }
 0x49e   : > { %v4681_v38 = vmul.f32 %v14054_v25, %v4649_v4 }
 0x4a0   : > { %v4713_v14 = vadd.f32 %v14077_v40, %v4681_v38  ;;  %v5646_v38 = vsel %vm1208_vm1, %v5641_v32, %v5645_v57 }
 0x4a1   : > { %v14243_v60 = vpop.f32.mrf.mxu3 }
 0x4a2   : > { %15730 = vst [vmem:[#allocation28_spill] sm:$0xff] %v14243_v60  ;;  %v4745_v27 = vmax.f32 %v4713_v14, 0.0  ;;  %v4372_v47 = vpop.f32.mrf.mxu1  ;;  %v14248_v52 = vpop.f32.mrf.mxu0 }
 0x4a3   : > { %v4607_v4 = vpop.f32.mrf.mxu2  ;;  %v4413_v22 = vadd.f32 %v4372_v47, %v14033_v13 }
 0x4a4   : > { %4777 = vst [vmem:[#allocation2 + $0x2c0] sm:$0xff] %v4745_v27  ;;  %v4650_v8 = vadd.f32 %v4607_v4, %v4412_v11  ;;  %v15732_v11 = vshrl.u32 %v13575_v30, 16 }
 0x4a5   : > { %5509 = vmatmul.bf16.gmra.mxu1 %v5393_v15  ;;  %v15733_v15 = vshll.u32 %v13575_v30, 16 }
 0x4a6   : > { %6019 = vmatmul.bf16.gmra.mxu3 %v5903_v17  ;;  %v4682_v10 = vmul.f32 %v14054_v25, %v4650_v8  ;;  %5341 = vmatmul.bf16.gmra.mxu0 %v13829_v63  ;;  %v5647_v17 = vrot.slane %v15732_v11, 1  ;;  %v6348_v8 = vmax.f32 %v6261_v48, %v6313_v39 }
 0x4a7   : > { %v5648_v4 = vrot.slane %v15733_v15, 2 }
 0x4a8   : > { %v4714_v24 = vadd.f32 %v14077_v40, %v4682_v10  ;;  %5785 = vmatmul.bf16.gmra.mxu2 %v5646_v38  ;;  %v5904_v10 = vrot.slane %v14108_v23, 2 }
 0x4a9   : > { %v14255_v20 = vpop.f32.mrf.mxu3 }
 0x4aa   : > { %15731 = vst [vmem:[#allocation21_spill] sm:$0xff] %v14255_v20  ;;  %v4746_v49 = vmax.f32 %v4714_v24, 0.0  ;;  %v4374_v27 = vpop.f32.mrf.mxu1  ;;  %v14258_v32 = vpop.f32.mrf.mxu0  ;;  %v15562_v24 = vrot.slane %v14108_v23, 1  ;;  %v5905_v30 = vsel %vm1492_vm3, %v5902_v55, %v5904_v10 }
 0x4ab   : > { %v4610_v14 = vpop.f32.mrf.mxu2  ;;  %v4414_v11 = vadd.f32 %v4374_v27, %v14048_v33 }
 0x4ac   : > { %4778 = vst [vmem:[#allocation2 + $0x2c8] sm:$0xff] %v4746_v49  ;;  %v4651_v46 = vadd.f32 %v4610_v14, %v4413_v22  ;;  %v6391_v49 = vld [vmem:[#allocation2 + $0x282] ss:$5 sm:$0xff]  ;;  %v14270_v22 = vor.u32 %v5648_v4, %v5647_v17  ;;  %v5395_v17 = vsel %vm968_vm2, %v5392_v37, %v15562_v24  ;;  %v6469_v4 = vld [vmem:[#allocation2 + $0x283] ss:$5 sm:$0xff] }
 0x4ad   : > { %v6426_v14 = vmax.f32 %v6348_v8, %v6391_v49  ;;  %v6547_v37 = vld [vmem:[#allocation2 + $0x284] ss:$5 sm:$0xff] }
 0x4ae   : > { %v4683_v38 = vmul.f32 %v14054_v25, %v4651_v46  ;;  %v5650_v33 = vsel %vm1208_vm1, %v5645_v57, %v14270_v22 }
 0x4af   : > { %v6504_v55 = vmax.f32 %v6426_v14, %v6469_v4 }
 0x4b0   : > { %v4715_v13 = vadd.f32 %v14077_v40, %v4683_v38 }
 0x4b1   : > { %v14267_v47 = vpop.f32.mrf.mxu3 }
 0x4b2   : > { %v4747_v20 = vmax.f32 %v4715_v13, 0.0  ;;  %v4377_v38 = vpop.f32.mrf.mxu1  ;;  %v14274_v41 = vpop.f32.mrf.mxu0 }
 0x4b3   : > { %v6263_v48 = vld [vmem:[#allocation2 + $0x2a8] ss:$5 sm:$0xff]  ;;  %v6315_v39 = vld [vmem:[#allocation2 + $0x2a9] ss:$5 sm:$0xff]  ;;  %v4612_v46 = vpop.f32.mrf.mxu2  ;;  %v4415_v57 = vadd.f32 %v4377_v38, %v14066_v28  ;;  %v5906_v38 = vrot.slane %v14139_v18, 2 }
 0x4b4   : > { %v6349_v15 = vmax.f32 %v6263_v48, %v6315_v39  ;;  %4779 = vst [vmem:[#allocation2 + $0x2d0] sm:$0xff] %v4747_v20  ;;  %v4652_v60 = vadd.f32 %v4612_v46, %v4414_v11  ;;  %v6393_v8 = vld [vmem:[#allocation2 + $0x2aa] ss:$5 sm:$0xff]  ;;  %v6471_v49 = vld [vmem:[#allocation2 + $0x2ab] ss:$5 sm:$0xff] }
 0x4b5   : > { %5514 = vmatmul.bf16.gmra.mxu1 %v5395_v17  ;;  %v6549_v39 = vld [vmem:[#allocation2 + $0x2ac] ss:$5 sm:$0xff]  ;;  %v15734_v17 = vshrl.u32 %v13637_v26, 16 }
 0x4b6   : > { %6024 = vmatmul.bf16.gmra.mxu3 %v5905_v30  ;;  %v6427_v27 = vmax.f32 %v6349_v15, %v6393_v8  ;;  %v4684_v13 = vmul.f32 %v14054_v25, %v4652_v60  ;;  %5346 = vmatmul.bf16.gmra.mxu0 %v13883_v62  ;;  %v6582_v30 = vmax.f32 %v6504_v55, %v6547_v37  ;;  %v10934_v55 = vld [vmem:[%s15448_s2 + $0x50] sm:$0xff] }
 0x4b7   : > { %6937 = vmatpush.bf16.msrb.mxu0 %v10934_v55 }
 0x4b8   : > { %v6505_v20 = vmax.f32 %v6427_v27, %v6471_v49  ;;  %v4716_v11 = vadd.f32 %v14077_v40, %v4684_v13  ;;  %5790 = vmatmul.bf16.gmra.mxu2 %v5650_v33  ;;  %v5651_v27 = vrot.slane %v15734_v17, 1  ;;  %v15735_v13 = vshll.u32 %v13637_v26, 16  ;;  %v10933_v26 = vld [vmem:[%s15448_s2 + $0x48] sm:$0xff] }
 0x4b9   : > { %v14284_v48 = vpop.f32.mrf.mxu3 }
 0x4ba   : > { %v6583_v46 = vmax.f32 %v6505_v20, %v6549_v39  ;;  %v4748_v24 = vmax.f32 %v4716_v11, 0.0  ;;  %v4379_v4 = vpop.f32.mrf.mxu1  ;;  %v14287_v8 = vpop.f32.mrf.mxu0  ;;  %v5652_v33 = vrot.slane %v15735_v13, 2  ;;  %v5396_v20 = vrot.slane %v14139_v18, 1 }
 0x4bb   : > { %v4615_v14 = vpop.f32.mrf.mxu2  ;;  %v4416_v39 = vadd.f32 %v4379_v4, %v14086_v31  ;;  %6938 = vmatpush.bf16.msrb.mxu0 %v10933_v26  ;;  %v10932_v31 = vld [vmem:[%s15448_s2 + $0x40] sm:$0xff] }
 0x4bc   : > { %v11092_v15 = vpack.c.bf16 %v6583_v46, %v6582_v30  ;;  %4780 = vst [vmem:[#allocation2 + $0x2d8] sm:$0xff] %v4748_v24  ;;  %v4653_v60 = vadd.f32 %v4615_v14, %v4415_v57  ;;  %v5653_v11 = vor.u32 %v5652_v33, %v5651_v27  ;;  %v5907_v30 = vsel %vm1492_vm3, %v5904_v10, %v5906_v38 }
 0x4be   : > { %11137 = vst [vmem:[#allocation3 + $0x40] sm:$0xff] %v11092_v15   ;;  %v4685_v28 = vmul.f32 %v14054_v25, %v4653_v60  ;;  %v15736_v60 = vrot.slane %v14108_v23, 1  ;;  %v5654_v17 = vsel %vm1208_vm1, %v14270_v22, %v5653_v11 }
 0x4bf   : > { %6939 = vmatpush.bf16.msrb.mxu0 %v10932_v31 }
 0x4c0   : > { %v4717_v24 = vadd.f32 %v14077_v40, %v4685_v28  ;;  %v5397_v18 = vsel %vm968_vm2, %v15736_v60, %v5396_v20  ;;  %v15738_v28 = vrot.slane %v14164_v59, 2  ;;  %v15741_v60 = vshll.u32 %v13702_v2, 16 }
 0x4c1   : > { %v14299_v49 = vpop.f32.mrf.mxu3 }
 0x4c2   : > { %v4749_v37 = vmax.f32 %v4717_v24, 0.0  ;;  %v4382_v14 = vpop.f32.mrf.mxu1  ;;  %v14307_v15 = vpop.f32.mrf.mxu0 }
 0x4c3   : > { %v4617_v46 = vpop.f32.mrf.mxu2  ;;  %v4417_v33 = vadd.f32 %v4382_v14, %v14103_v19  ;;  %v5656_v19 = vrot.slane %v15741_v60, 2 }
 0x4c4   : > { %4781 = vst [vmem:[#allocation2 + $0x2e0] sm:$0xff] %v4749_v37  ;;  %v4654_v57 = vadd.f32 %v4617_v46, %v4416_v39  ;;  %v15740_v46 = vshrl.u32 %v13702_v2, 16 }
 0x4c5   : > { %v14317_v10 = vld [vmem:[#allocation3 + $0x40] sm:$0xff]  ;;  %5519 = vmatmul.bf16.gmra.mxu1 %v5397_v18  ;;  %v11267_v18 = vld [vmem:[%s11470_s26 + $0x1c8] sm:$0xff] }
 0x4c6   : > { %6029 = vmatmul.bf16.gmra.mxu3 %v5907_v30  ;;  %v4686_v4 = vmul.f32 %v14054_v25, %v4654_v57  ;;  %5351 = vmatmul.bf16.gmra.mxu0 %v13931_v6  ;;  %v15563_v22 = vrot.slane %v14317_v10, 2  ;;  %v4815_v30 = vld [vmem:[%s11470_s26 + $0x1f8] sm:$0x1]  ;;  %v5655_v57 = vrot.slane %v15740_v46, 1 }
 0x4c7   : > { %v5207_v59 = vunpack.c.l.b16 %v4815_v30 }
 0x4c8   : > { %v4718_v23 = vadd.f32 %v14077_v40, %v4686_v4  ;;  %5795 = vmatmul.bf16.gmra.mxu2 %v5654_v17  ;;  %v14331_v24 = vsel %vm1492_vm3, %v15738_v28, %v15563_v22  ;;  %v5908_v17 = vrot.slane %v11267_v18, 2 }
 0x4c9   : > { %v14322_v27 = vpop.f32.mrf.mxu3  ;;  %15739 = vst [vmem:[#allocation34_spill] sm:$0xff] %v14331_v24  ;;  %v5208_v46 = vpack.c.b16 %v5207_v59, %v5207_v59 }
 0x4ca   : > { %15737 = vst [vmem:[#allocation17_spill] sm:$0xff] %v14322_v27  ;;  %v4750_v13 = vmax.f32 %v4718_v23, 0.0  ;;  %v4384_v37 = vpop.f32.mrf.mxu1  ;;  %v14333_v39 = vpop.f32.mrf.mxu0  ;;  %v5398_v23 = vrot.slane %v11267_v18, 1  ;;  %v5909_v28 = vsel %vm1492_vm3, %v5906_v38, %v5908_v17 }
 0x4cb   : > { %v4620_v55 = vpop.f32.mrf.mxu2 }
 0x4cc   : > { %4782 = vst [vmem:[#allocation2 + $0x2e8] sm:$0xff] %v4750_v13  ;;  %v4655_v26 = vadd.f32 %v4620_v55, %v4417_v33  ;;  %v5657_v13 = vor.u32 %v5656_v19, %v5655_v57  ;;  %v4418_v55 = vadd.f32 %v4384_v37, %v14119_v54  ;;  %v5399_v24 = vsel %vm968_vm2, %v5396_v20, %v5398_v23  ;;  %v14353_v37 = vld [vmem:[#allocation3] sm:$0xff]   ;;  %v14355_v20 = vld [vmem:[#allocation3 + $0x8] sm:$0xff] }
 0x4cd   : > { %v5283_v54 = vadd.f32 %v14133_v9, %v13756_v61  ;;  %v15742_v61 = vshrl.u32 %v13754_v50, 16 }
 0x4ce   : > { %v4687_v14 = vmul.f32 %v14054_v25, %v4655_v26  ;;  %v5658_v30 = vsel %vm1208_vm1, %v5653_v11, %v5657_v13 }
 0x4cf   : > { %v5659_v9 = vrot.slane %v15742_v61, 1 }
 0x4d0   : > { %v4719_v31 = vadd.f32 %v14077_v40, %v4687_v14 }
 0x4d1   : > { %v5204_v4 = vpop.f32.mrf.mxu3 }
 0x4d2   : > { %v4751_v33 = vmax.f32 %v4719_v31, 0.0  ;;  %v14345_v60 = vpop.f32.mrf.mxu0  ;;  %v5485_v26 = vpop.f32.mrf.mxu1  ;;  %v6771_v31 = vshll.u32 %v14353_v37, 16  ;;  %v15743_v4 = vshll.u32 %v13754_v50, 16  ;;  %v6769_v50 = vshrl.u32 %v14353_v37, 16 }
 0x4d3   : > { %v4622_v22 = vpop.f32.mrf.mxu2  ;;  %v5564_v19 = vadd.f32 %v5485_v26, %v5283_v54  ;;  %v5285_v26 = vadd.f32 %v14146_v35, %v13780_v21 }
 0x4d4   : > { %4783 = vst [vmem:[#allocation2 + $0x2f0] sm:$0xff] %v4751_v33  ;;  %v4656_v2 = vadd.f32 %v4622_v22, %v4418_v55  ;;  %v5660_v33 = vrot.slane %v15743_v4, 2 }
 0x4d5   : > { %5524 = vmatmul.bf16.gmra.mxu1 %v5399_v24 }
 0x4d6   : > { %6034 = vmatmul.bf16.gmra.mxu3 %v5909_v28  ;;  %v4688_v14 = vmul.f32 %v14054_v25, %v4656_v2  ;;  %5356 = vmatmul.bf16.gmra.mxu0 %v5208_v46  ;;  %v14365_v28 = vld [vmem:[%s11470_s26 + $0x1d0] sm:$0xff]  ;;  %v6776_v2 = vshll.u32 %v14355_v20, 16 }
 0x4d7   : > { %v5910_v46 = vrot.slane %v14365_v28, 2  ;;  %v5400_v54 = vrot.slane %v14365_v28, 1 }
 0x4d8   : > { %v4720_v38 = vadd.f32 %v14077_v40, %v4688_v14  ;;  %5800 = vmatmul.bf16.gmra.mxu2 %v5658_v30 }
 0x4d9   : > { %v5995_v22 = vpop.f32.mrf.mxu3 }
 0x4da   : > { %v4752_v57 = vmax.f32 %v4720_v38, 0.0  ;;  %v14357_v59 = vpop.f32.mrf.mxu0  ;;  %v5487_v24 = vpop.f32.mrf.mxu1  ;;  %v6773_v38 = vrot.slane %v6771_v31, 1  ;;  %v5401_v31 = vsel %vm968_vm2, %v5398_v23, %v5400_v54 }
 0x4db   : > { %v5761_v18 = vpop.f32.mrf.mxu2 }
 0x4dc   : > { %4784 = vst [vmem:[#allocation2 + $0x2f8] sm:$0xff] %v4752_v57  ;;  %v5840_v11 = vadd.f32 %v5761_v18, %v5564_v19  ;;  %v14373_v57 = vor.u32 %v5660_v33, %v5659_v9  ;;  %v5565_v19 = vadd.f32 %v5487_v24, %v5285_v26  ;;  %v5911_v18 = vsel %vm1492_vm3, %v5908_v17, %v5910_v46 }
 0x4dd   : > { %v6774_v9 = vor.u32 %v6773_v38, %v6769_v50  ;;  %v14390_v38 = vld [vmem:[#allocation3 + $0x10] sm:$0xff] }
 0x4de   : > { %v6074_v55 = vadd.f32 %v5995_v22, %v5840_v11  ;;  %v6778_v11 = vrot.slane %v6776_v2, 1  ;;  %v5662_v33 = vsel %vm1208_vm1, %v5657_v13, %v14373_v57 }
 0x4e0   : > { %v6105_v30 = vmul.f32 %v14054_v25, %v6074_v55  ;;  %v6779_v17 = vsel %vm508_vm0, %v6774_v9, %v6778_v11  ;;  %v5288_v55 = vadd.f32 %v14160_v3, %v13799_v7  ;;  %v15745_v7 = vshll.u32 %v13795_v1, 16 }
 0x4e1   : > { %v5997_v14 = vpop.f32.mrf.mxu3  ;;  %v5290_v9 = vadd.f32 %v14180_v34, %v13817_v51  ;;  %v6780_v51 = vshrl.u32 %v14355_v20, 16 }
 0x4e2   : > { %v6136_v22 = vadd.f32 %v14077_v40, %v6105_v30  ;;  %v5490_v35 = vpop.f32.mrf.mxu1  ;;  %v5664_v3 = vrot.slane %v15745_v7, 2 }
 0x4e3   : > { %v5763_v61 = vpop.f32.mrf.mxu2  ;;  %v14378_v21 = vpop.f32.mrf.mxu0  ;;  %v5566_v30 = vadd.f32 %v5490_v35, %v5288_v55  ;;  %v10967_v55 = vld [vmem:[%s15448_s2 + $0xf8] sm:$0xff] }
 0x4e4   : > { %v6167_v4 = vmax.f32 %v6136_v22, 0.0  ;;  %v5841_v27 = vadd.f32 %v5763_v61, %v5565_v19  ;;  %v15744_v19 = vshrl.u32 %v13795_v1, 16  ;;  %v10947_v1 = vld [vmem:[%s15448_s2 + $0xb8] sm:$0xff]  ;;  %7632 = vmatpush.bf16.msra.mxu3 %v10967_v55 }
 0x4e5   : > { %5529 = vmatmul.bf16.gmra.mxu1 %v5401_v31  ;;  %v6784_v31 = vshll.u32 %v14390_v38, 16  ;;  %7249 = vmatpush.bf16.msra.mxu2 %v10947_v1  ;;  %v14438_v1 = vld [vmem:[#allocation3 + $0x18] sm:$0xff] }
 0x4e6   : > { %6039 = vmatmul.bf16.gmra.mxu3 %v5911_v18  ;;  %6198 = vst [vmem:[#allocation2 + $0x300] sm:$0xff] %v6167_v4  ;;  %v6075_v24 = vadd.f32 %v5997_v14, %v5841_v27  ;;  %6940 = vmatmul.bf16.vlgmr.msrb.gmra.mxu0 %v6779_v17  ;;  %v5663_v18 = vrot.slane %v15744_v19, 1  ;;  %v14399_v4 = vld [vmem:[%s11470_s26 + $0x1d8] sm:$0xff] }
 0x4e7   : > { %v5912_v35 = vrot.slane %v14399_v4, 2  ;;  %v5402_v17 = vrot.slane %v14399_v4, 1  ;;  %v15749_v4 = vld [vmem:[#allocation22_spill] sm:$0xff] }
 0x4e8   : > { %v6106_v2 = vmul.f32 %v14054_v25, %v6075_v24  ;;  %5805 = vmatmul.bf16.gmra.mxu2 %v5662_v33 }
 0x4e9   : > { %v6000_v26 = vpop.f32.mrf.mxu3 }
 0x4ea   : > { %v6137_v23 = vadd.f32 %v14077_v40, %v6106_v2  ;;  %v5492_v22 = vpop.f32.mrf.mxu1  ;;  %v10931_v2 = vld [vmem:[%s15448_s2 + $0x38] sm:$0xff] }
 0x4eb   : > { %v5766_v13 = vpop.f32.mrf.mxu2  ;;  %v14392_v14 = vpop.f32.mrf.mxu0  ;;  %7069 = vmatpush.bf16.msra.mxu1 %v10931_v2 }
 0x4ec   : > { %v6168_v50 = vmax.f32 %v6137_v23, 0.0  ;;  %v5842_v27 = vadd.f32 %v5766_v13, %v5566_v30  ;;  %v5567_v23 = vadd.f32 %v5492_v22, %v5290_v9  ;;  %v5913_v30 = vsel %vm1492_vm3, %v5910_v46, %v5912_v35 }
 0x4ed   : > { %v6786_v13 = vrot.slane %v6784_v31, 1  ;;  %v5403_v22 = vsel %vm968_vm2, %v5400_v54, %v5402_v17  ;;  %v5293_v9 = vadd.f32 %v14197_v53, %v13836_v58  ;;  %v15746_v58 = vshrl.u32 %v13829_v63, 16 }
 0x4ee   : > { %6199 = vst [vmem:[#allocation2 + $0x308] sm:$0xff] %v6168_v50  ;;  %v6076_v61 = vadd.f32 %v6000_v26, %v5842_v27  ;;  %v14416_v26 = vor.u32 %v5664_v3, %v5663_v18  ;;  %v6782_v3 = vor.u32 %v6780_v51, %v6778_v11 }
 0x4ef   : > { %v5667_v53 = vrot.slane %v15746_v58, 1 }
 0x4f0   : > { %v6107_v33 = vmul.f32 %v14054_v25, %v6076_v61  ;;  %v5666_v46 = vsel %vm1208_vm1, %v14373_v57, %v14416_v26  ;;  %v6787_v31 = vsel %vm508_vm0, %v6782_v3, %v6786_v13  ;;  %v15748_v3 = vld [vmem:[#allocation20_spill] sm:$0xff] }
 0x4f1   : > { %v6002_v24 = vpop.f32.mrf.mxu3 }
 0x4f2   : > { %v6138_v34 = vadd.f32 %v14077_v40, %v6107_v33  ;;  %v5495_v18 = vpop.f32.mrf.mxu1 }
 0x4f3   : > { %v5768_v50 = vpop.f32.mrf.mxu2  ;;  %v14423_v7 = vpop.f32.mrf.mxu0  ;;  %v5568_v11 = vadd.f32 %v5495_v18, %v5293_v9 }
 0x4f4   : > { %v6169_v27 = vmax.f32 %v6138_v34, 0.0  ;;  %v5843_v19 = vadd.f32 %v5768_v50, %v5567_v23  ;;  %v6265_v34 = vld [vmem:[#allocation2 + $0x2d0] ss:$5 sm:$0xff]  ;;  %v6317_v23 = vld [vmem:[#allocation2 + $0x2d1] ss:$5 sm:$0xff] }
 0x4f5   : > { %5534 = vmatmul.bf16.gmra.mxu1 %v5403_v22  ;;  %v6792_v22 = vshll.u32 %v14438_v1, 16 }
 0x4f6   : > { %6044 = vmatmul.bf16.gmra.mxu3 %v5913_v30  ;;  %6200 = vst [vmem:[#allocation2 + $0x310] sm:$0xff] %v6169_v27  ;;  %v6077_v61 = vadd.f32 %v6002_v24, %v5843_v19  ;;  %6945 = vmatmul.bf16.gmra.mxu0 %v6787_v31  ;;  %v15747_v30 = vshll.u32 %v13829_v63, 16  ;;  %v14447_v19 = vld [vmem:[%s11470_s26 + $0x1e0] sm:$0xff]  ;;  %v6788_v63 = vshrl.u32 %v14390_v38, 16 }
 0x4f7   : > { %v5914_v18 = vrot.slane %v14447_v19, 2 }
 0x4f8   : > { %v6108_v33 = vmul.f32 %v14054_v25, %v6077_v61  ;;  %5810 = vmatmul.bf16.gmra.mxu2 %v5666_v46  ;;  %v5668_v50 = vrot.slane %v15747_v30, 2  ;;  %v5295_v46 = vadd.f32 %v14207_v0, %v15748_v3  ;;  %v6350_v61 = vmax.f32 %v6265_v34, %v6317_v23  ;;  %v6473_v3 = vld [vmem:[#allocation2 + $0x2d3] ss:$5 sm:$0xff] }
 0x4f9   : > { %v6005_v28 = vpop.f32.mrf.mxu3  ;;  %v14464_v0 = vrot.slane %v6792_v22, 1 }
 0x4fa   : > { %v6139_v54 = vadd.f32 %v14077_v40, %v6108_v33  ;;  %v5497_v51 = vpop.f32.mrf.mxu1  ;;  %v5404_v33 = vrot.slane %v14447_v19, 1 }
 0x4fb   : > { %v5771_v57 = vpop.f32.mrf.mxu2  ;;  %v14440_v2 = vpop.f32.mrf.mxu0 }
 0x4fc   : > { %v6170_v55 = vmax.f32 %v6139_v54, 0.0  ;;  %v5844_v24 = vadd.f32 %v5771_v57, %v5568_v11  ;;  %v14455_v54 = vor.u32 %v5668_v50, %v5667_v53  ;;  %v5569_v11 = vadd.f32 %v5497_v51, %v5295_v46 }
 0x4fd   : > { %v5915_v57 = vsel %vm1492_vm3, %v5912_v35, %v5914_v18 }
 0x4fe   : > { %6201 = vst [vmem:[#allocation2 + $0x318] sm:$0xff] %v6170_v55  ;;  %v6078_v27 = vadd.f32 %v6005_v28, %v5844_v24  ;;  %v6395_v55 = vld [vmem:[#allocation2 + $0x2d2] ss:$5 sm:$0xff]  ;;  %v6790_v24 = vor.u32 %v6788_v63, %v6786_v13  ;;  %v5670_v35 = vsel %vm1208_vm1, %v14416_v26, %v14455_v54  ;;  %v14483_v63 = vld [vmem:[%s15450_s4] ss:$0 sm:$0xff] }
 0x4ff   : > { %v6428_v34 = vmax.f32 %v6350_v61, %v6395_v55 }
 0x500   : > { %v6109_v31 = vmul.f32 %v14054_v25, %v6078_v27  ;;  %v6795_v22 = vsel %vm508_vm0, %v6790_v24, %v14464_v0  ;;  %v6551_v24 = vld [vmem:[#allocation2 + $0x2d4] ss:$5 sm:$0xff] }
 0x501   : > { %v6007_v9 = vpop.f32.mrf.mxu3  ;;  %v6506_v61 = vmax.f32 %v6428_v34, %v6473_v3  ;;  %v15751_v3 = vshll.u32 %v13883_v62, 16 }
 0x502   : > { %v6140_v28 = vadd.f32 %v14077_v40, %v6109_v31  ;;  %v5500_v30 = vpop.f32.mrf.mxu1  ;;  %v5405_v40 = vsel %vm968_vm2, %v5402_v17, %v5404_v33  ;;  %v5298_v17 = vadd.f32 %v14221_v12, %v15749_v4 }
 0x503   : > { %v5773_v25 = vpop.f32.mrf.mxu2  ;;  %v14466_v53 = vpop.f32.mrf.mxu0 }
 0x504   : > { %v6171_v23 = vmax.f32 %v6140_v28, 0.0  ;;  %v5845_v58 = vadd.f32 %v5773_v25, %v5569_v11  ;;  %v5570_v55 = vadd.f32 %v5500_v30, %v5298_v17  ;;  %v14492_v25 = vld [vmem:[#allocation3 + $0x20] sm:$0xff]  ;;  %v14501_v17 = vld [vmem:[%s11470_s26 + $0x1e8] sm:$0xff] }
 0x505   : > { %v6267_v51 = vld [vmem:[#allocation2 + $0x2f8] ss:$5 sm:$0xff]  ;;  %v6319_v50 = vld [vmem:[#allocation2 + $0x2f9] ss:$5 sm:$0xff]  ;;  %5539 = vmatmul.bf16.gmra.mxu1 %v5405_v40 }
 0x506   : > { %6049 = vmatmul.bf16.gmra.mxu3 %v5915_v57  ;;  %v6351_v13 = vmax.f32 %v6267_v51, %v6319_v50  ;;  %6202 = vst [vmem:[#allocation2 + $0x320] sm:$0xff] %v6171_v23  ;;  %v6079_v27 = vadd.f32 %v6007_v9, %v5845_v58  ;;  %v6397_v46 = vld [vmem:[#allocation2 + $0x2fa] ss:$5 sm:$0xff]  ;;  %6950 = vmatmul.bf16.gmra.mxu0 %v6795_v22  ;;  %v6475_v28 = vld [vmem:[#allocation2 + $0x2fb] ss:$5 sm:$0xff] }
 0x507   : > { %v14489_v57 = vld [vmem:[%s15451_s5] ss:$0 sm:$0xff]  ;;  %v6553_v34 = vld [vmem:[#allocation2 + $0x2fc] ss:$5 sm:$0xff]  ;;  %v6584_v58 = vmax.f32 %v6506_v61, %v6551_v24  ;;  %v6800_v61 = vshll.u32 %v14492_v25, 16  ;;  %v6796_v24 = vshrl.u32 %v14438_v1, 16 }
 0x508   : > { %v6429_v31 = vmax.f32 %v6351_v13, %v6397_v46  ;;  %v6110_v26 = vmul.f32 %v14483_v63, %v6079_v27  ;;  %5815 = vmatmul.bf16.gmra.mxu2 %v5670_v35  ;;  %v15750_v27 = vshrl.u32 %v13883_v62, 16  ;;  %v5672_v46 = vrot.slane %v15751_v3, 2  ;;  %v10966_v3 = vld [vmem:[%s15448_s2 + $0xf0] sm:$0xff] }
 0x509   : > { %v6010_v9 = vpop.f32.mrf.mxu3  ;;  %7633 = vmatpush.bf16.msra.mxu3 %v10966_v3 }
 0x50a   : > { %v6507_v11 = vmax.f32 %v6429_v31, %v6475_v28  ;;  %v6141_v12 = vadd.f32 %v14489_v57, %v6110_v26  ;;  %v5502_v13 = vpop.f32.mrf.mxu1  ;;  %v5671_v22 = vrot.slane %v15750_v27, 1  ;;  %v5916_v31 = vrot.slane %v14501_v17, 2  ;;  %v15752_v26 = vld [vmem:[#allocation26_spill] sm:$0xff] }
 0x50b   : > { %v5776_v23 = vpop.f32.mrf.mxu2  ;;  %v14494_v35 = vpop.f32.mrf.mxu0  ;;  %v5300_v28 = vadd.f32 %v14231_v16, %v15752_v26  ;;  %v14518_v16 = vrot.slane %v6800_v61, 1 }
 0x50c   : > { %v6585_v40 = vmax.f32 %v6507_v11, %v6553_v34  ;;  %v6172_v51 = vmax.f32 %v6141_v12, 0.0  ;;  %v5846_v50 = vadd.f32 %v5776_v23, %v5570_v55  ;;  %v5406_v55 = vrot.slane %v14501_v17, 1  ;;  %v10944_v17 = vld [vmem:[%s15448_s2 + $0xa0] sm:$0xff] }
 0x50d   : > { %v14509_v62 = vor.u32 %v5672_v46, %v5671_v22  ;;  %v5571_v34 = vadd.f32 %v5502_v13, %v5300_v28  ;;  %v5917_v23 = vsel %vm1492_vm3, %v5914_v18, %v5916_v31  ;;  %v6798_v22 = vor.u32 %v6796_v24, %v14464_v0  ;;  %v10946_v18 = vld [vmem:[%s15448_s2 + $0xb0] sm:$0xff] }
 0x50e   : > { %v11097_v30 = vpack.c.bf16 %v6585_v40, %v6584_v58  ;;  %6203 = vst [vmem:[#allocation2 + $0x328] sm:$0xff] %v6172_v51  ;;  %v6080_v4 = vadd.f32 %v6010_v9, %v5846_v50  ;;  %v5407_v13 = vsel %vm968_vm2, %v5404_v33, %v5406_v55  ;;  %v10930_v46 = vld [vmem:[%s15448_s2 + $0x30] sm:$0xff]  ;;  %7250 = vmatpush.bf16.msra.mxu2 %v10946_v18 }
 0x50f   : > { %v5674_v19 = vsel %vm1208_vm1, %v14455_v54, %v14509_v62  ;;  %v6803_v0 = vsel %vm508_vm0, %v6798_v22, %v14518_v16  ;;  %7070 = vmatpush.bf16.msra.mxu1 %v10930_v46  ;;  %v14547_v54 = vld [vmem:[#allocation3 + $0x28] sm:$0xff]  ;;  %v14559_v46 = vld [vmem:[%s11470_s26 + $0x1f0] sm:$0xff] }
 0x510   : > { %11138 = vst [vmem:[#allocation3 + $0x48] sm:$0xff] %v11097_v30   ;;  %v6111_v11 = vmul.f32 %v14483_v63, %v6080_v4  ;;  %v15753_v4 = vld [vmem:[#allocation25_spill] sm:$0xff]  ;;  %v6808_v18 = vshll.u32 %v14547_v54, 16 }
 0x511   : > { %v6012_v12 = vpop.f32.mrf.mxu3  ;;  %v5303_v61 = vadd.f32 %v14248_v52, %v15753_v4 }
 0x512   : > { %v6142_v9 = vadd.f32 %v14489_v57, %v6111_v11  ;;  %v5505_v27 = vpop.f32.mrf.mxu1 }
 0x513   : > { %v5778_v58 = vpop.f32.mrf.mxu2  ;;  %v14520_v50 = vpop.f32.mrf.mxu0 }
 0x514   : > { %v6173_v40 = vmax.f32 %v6142_v9, 0.0  ;;  %v5847_v51 = vadd.f32 %v5778_v58, %v5571_v34 }
 0x515   : > { %5544 = vmatmul.bf16.gmra.mxu1 %v5407_v13  ;;  %v15755_v13 = vshll.u32 %v13931_v6, 16 }
 0x516   : > { %6054 = vmatmul.bf16.gmra.mxu3 %v5917_v23  ;;  %6204 = vst [vmem:[#allocation2 + $0x330] sm:$0xff] %v6173_v40  ;;  %v6081_v33 = vadd.f32 %v6012_v12, %v5847_v51  ;;  %6955 = vmatmul.bf16.gmra.mxu0 %v6803_v0  ;;  %v5572_v12 = vadd.f32 %v5505_v27, %v5303_v61  ;;  %v15754_v40 = vshrl.u32 %v13931_v6, 16  ;;  %v5918_v27 = vrot.slane %v14559_v46, 2  ;;  %v10965_v0 = vld [vmem:[%s15448_s2 + $0xe8] sm:$0xff] }
 0x517   : > { %v14542_v30 = vld [vmem:[#allocation3 + $0x48] sm:$0xff]  ;;  %v5676_v22 = vrot.slane %v15755_v13, 2  ;;  %v15756_v6 = vrot.slane %v14317_v10, 2  ;;  %v15757_v61 = vld [vmem:[#allocation27_spill] sm:$0xff]  ;;  %7634 = vmatpush.bf16.msra.mxu3 %v10965_v0 }
 0x518   : > { %v6112_v26 = vmul.f32 %v14483_v63, %v6081_v33  ;;  %5820 = vmatmul.bf16.gmra.mxu2 %v5674_v19  ;;  %v15564_v9 = vrot.slane %v14542_v30, 2  ;;  %v5675_v51 = vrot.slane %v15754_v40, 1  ;;  %v5595_v19 = vld [vmem:[%s11470_s26 + $0x1f8] sm:$0x7]  ;;  %v10945_v10 = vld [vmem:[%s15448_s2 + $0xa8] sm:$0xff]  ;;  %s11306_s26 = scalar_lea.hbm %s15456_s10, 2 }
 0x519   : > { %v6015_v28 = vpop.f32.mrf.mxu3  ;;  %v10975_v33 = vld [vmem:[%s15448_s2 + $0x138] sm:$0xff]  ;;  %7251 = vmatpush.bf16.msra.mxu2 %v10945_v10  ;;  %p11308_p1 = scmp.lt.s32.totalorder %s11306_s26, %s11302_s0 }
 0x51a   : > { %v6143_v11 = vadd.f32 %v14489_v57, %v6112_v26  ;;  %v5507_v52 = vpop.f32.mrf.mxu1  ;;  %v14574_v4 = vsel %vm1492_vm3, %v15756_v6, %v15564_v9  ;;  %v5305_v26 = vadd.f32 %v14258_v32, %v15757_v61  ;;  %7837 = vmatpush.bf16.msra.mxu0 %v10975_v33  ;;  %v10929_v32 = vld [vmem:[%s15448_s2 + $0x28] sm:$0xff] }
 0x51b   : > { %v5781_v24 = vpop.f32.mrf.mxu2  ;;  %v14551_v58 = vpop.f32.mrf.mxu0  ;;  %7071 = vmatpush.bf16.msra.mxu1 %v10929_v32  ;;  %p11309_p2 = por %p11308_p1, %p11307_p0 }
 0x51c   : > { %v6174_v34 = vmax.f32 %v6143_v11, 0.0  ;;  %v5848_v23 = vadd.f32 %v5781_v24, %v5572_v12  ;;  %v5408_v12 = vrot.slane %v14559_v46, 1  ;;  %v14580_v24 = vor.u32 %v5676_v22, %v5675_v51 }
 0x51d   : > { %v5573_v13 = vadd.f32 %v5507_v52, %v5305_v26  ;;  %v5919_v51 = vsel %vm1492_vm3, %v5916_v31, %v5918_v27  ;;  %v14595_v22 = vrot.slane %v6808_v18, 1  ;;  %7252 = vmatpush.bf16.msra.mxu2 %v10944_v17  ;;  %p11310_p3 = pnand %p11309_p2, %p11305_p13 }
 0x51e   : > { %6205 = vst [vmem:[#allocation2 + $0x338] sm:$0xff] %v6174_v34  ;;  %v6082_v3 = vadd.f32 %v6015_v28, %v5848_v23  ;;  %v6804_v34 = vshrl.u32 %v14492_v25, 16  ;;  %v5613_v23 = vunpack.c.l.b16 %v5595_v19  ;;  %v5409_v31 = vsel %vm968_vm2, %v5406_v55, %v5408_v12 }
 0x51f   : > { %v5678_v61 = vsel %vm1208_vm1, %v14509_v62, %v14580_v24  ;;  %v15758_v62 = vld [vmem:[#allocation30_spill] sm:$0xff] }
 0x520   : > { %v6113_v28 = vmul.f32 %v14483_v63, %v6082_v3  ;;  %v10964_v3 = vld [vmem:[%s15448_s2 + $0xe0] sm:$0xff]  ;;  %v6806_v18 = vor.u32 %v6804_v34, %v14518_v16  ;;  %v14611_v26 = vpack.c.b16 %v5613_v23, %v5613_v23  ;;  %v10963_v34 = vld [vmem:[%s15448_s2 + $0xd8] sm:$0xff]  ;;  %v5308_v23 = vadd.f32 %v14274_v41, %v15758_v62  ;;  %v10926_v62 = vld [vmem:[%s15448_s2 + $0x10] sm:$0xff] }
 0x521   : > { %v6017_v11 = vpop.f32.mrf.mxu3  ;;  %7635 = vmatpush.bf16.msra.mxu3 %v10964_v3 }
 0x522   : > { %v6144_v40 = vadd.f32 %v14489_v57, %v6113_v28  ;;  %v5510_v52 = vpop.f32.mrf.mxu1  ;;  %v10928_v28 = vld [vmem:[%s15448_s2 + $0x20] sm:$0xff]  ;;  %v6811_v16 = vsel %vm508_vm0, %v6806_v18, %v14595_v22 }
 0x523   : > { %v5783_v19 = vpop.f32.mrf.mxu2  ;;  %v14600_v6 = vpop.f32.mrf.mxu0  ;;  %7072 = vmatpush.bf16.msra.mxu1 %v10928_v28  ;;  %v5574_v3 = vadd.f32 %v5510_v52, %v5308_v23  ;;  %v5920_v52 = vrot.slane %v14611_v26, 2  ;;  %v10942_v23 = vld [vmem:[%s15448_s2 + $0x90] sm:$0xff] }
 0x524   : > { %v6175_v33 = vmax.f32 %v6144_v40, 0.0  ;;  %v5849_v0 = vadd.f32 %v5783_v19, %v5573_v13  ;;  %v5680_v40 = vshrl.u32 %v14611_v26, 16  ;;  %v10927_v13 = vld [vmem:[%s15448_s2 + $0x18] sm:$0xff]  ;;  %v14636_v19 = vld [vmem:[#allocation3 + $0x30] sm:$0xff] }
 0x525   : > { %5549 = vmatmul.bf16.gmra.mxu1 %v5409_v31  ;;  %7636 = vmatpush.bf16.msra.mxu3 %v10963_v34  ;;  %v6816_v34 = vshll.u32 %v14636_v19, 16 }
 0x526   : > { %6059 = vmatmul.bf16.gmra.mxu3 %v5919_v51  ;;  %6206 = vst [vmem:[#allocation2 + $0x340] sm:$0xff] %v6175_v33  ;;  %v6083_v55 = vadd.f32 %v6017_v11, %v5849_v0  ;;  %6960 = vmatmul.bf16.gmra.mxu0 %v6811_v16  ;;  %v5683_v11 = vshll.u32 %v14611_v26, 16  ;;  %v10943_v51 = vld [vmem:[%s15448_s2 + $0x98] sm:$0xff]  ;;  %v10962_v33 = vld [vmem:[%s15448_s2 + $0xd0] sm:$0xff]  ;;  %v5682_v17 = vrot.slane %v5680_v40, 1 }
 0x527   : > { %7073 = vmatpush.bf16.msra.mxu1 %v10927_v13  ;;  %7253 = vmatpush.bf16.msra.mxu2 %v10943_v51  ;;  %v15759_v40 = vld [vmem:[#allocation32_spill] sm:$0xff]  ;;  %v15760_v51 = vld [vmem:[#allocation23_spill] sm:$0xff] }
 0x528   : > { %v6114_v10 = vmul.f32 %v14483_v63, %v6083_v55  ;;  %5825 = vmatmul.bf16.gmra.mxu2 %v5678_v61  ;;  %v5685_v55 = vrot.slane %v5683_v11, 2  ;;  %v5310_v11 = vadd.f32 %v14287_v8, %v15759_v40  ;;  %v10941_v8 = vld [vmem:[%s15448_s2 + $0x88] sm:$0xff] }
 0x529   : > { %v6020_v32 = vpop.f32.mrf.mxu3  ;;  %7637 = vmatpush.bf16.msra.mxu3 %v10962_v33  ;;  %v6812_v33 = vshrl.u32 %v14547_v54, 16 }
 0x52a   : > { %v6145_v41 = vadd.f32 %v14489_v57, %v6114_v10  ;;  %v5512_v28 = vpop.f32.mrf.mxu1  ;;  %v10961_v10 = vld [vmem:[%s15448_s2 + $0xc8] sm:$0xff] }
 0x52b   : > { %v5786_v0 = vpop.f32.mrf.mxu2  ;;  %v14641_v61 = vpop.f32.mrf.mxu0  ;;  %7074 = vmatpush.bf16.msra.mxu1 %v10926_v62  ;;  %7254 = vmatpush.bf16.msra.mxu2 %v10942_v23 }
 0x52c   : > { %v6176_v31 = vmax.f32 %v6145_v41, 0.0  ;;  %v5850_v18 = vadd.f32 %v5786_v0, %v5574_v3  ;;  %v5410_v41 = vrot.slane %v15760_v51, 1  ;;  %v14658_v3 = vor.u32 %v5685_v55, %v5682_v17  ;;  %v10925_v0 = vld [vmem:[%s15448_s2 + $0x8] sm:$0xff] }
 0x52d   : > { %7638 = vmatpush.bf16.msra.mxu3 %v10961_v10  ;;  %v5921_v17 = vsel %vm1492_vm3, %v5918_v27, %v5920_v52  ;;  %v6818_v55 = vrot.slane %v6816_v34, 1  ;;  %v10924_v34 = vld [vmem:[%s15448_s2] sm:$0xff] }
 0x52e   : > { %6207 = vst [vmem:[#allocation2 + $0x348] sm:$0xff] %v6176_v31  ;;  %v6084_v16 = vadd.f32 %v6020_v32, %v5850_v18  ;;  %v5575_v18 = vadd.f32 %v5512_v28, %v5310_v11  ;;  %v5411_v28 = vsel %vm968_vm2, %v5408_v12, %v5410_v41  ;;  %v6814_v11 = vor.u32 %v6812_v33, %v14595_v22  ;;  %v15761_v22 = vld [vmem:[#allocation33_spill] sm:$0xff] }
 0x52f   : > { %7075 = vmatpush.bf16.msra.mxu1 %v10925_v0  ;;  %v5687_v27 = vsel %vm1208_vm1, %v14580_v24, %v14658_v3  ;;  %7255 = vmatpush.bf16.msra.mxu2 %v10941_v8  ;;  %v5313_v33 = vadd.f32 %v14307_v15, %v15761_v22 }
 0x530   : > { %v6115_v32 = vmul.f32 %v14483_v63, %v6084_v16  ;;  %v10960_v16 = vld [vmem:[%s15448_s2 + $0xc0] sm:$0xff]  ;;  %v6819_v12 = vsel %vm508_vm0, %v6814_v11, %v6818_v55 }
 0x531   : > { %v6022_v13 = vpop.f32.mrf.mxu3  ;;  %7639 = vmatpush.bf16.msra.mxu3 %v10960_v16  ;;  %v15762_v11 = vld [vmem:[#allocation18_spill] sm:$0xff] }
 0x532   : > { %v6146_v31 = vadd.f32 %v14489_v57, %v6115_v32  ;;  %v5515_v9 = vpop.f32.mrf.mxu1  ;;  %v10940_v32 = vld [vmem:[%s15448_s2 + $0x80] sm:$0xff] }
 0x533   : > { %v5788_v62 = vpop.f32.mrf.mxu2  ;;  %v14676_v40 = vpop.f32.mrf.mxu0  ;;  %7076 = vmatpush.bf16.msra.mxu1 %v10924_v34  ;;  %7256 = vmatpush.bf16.msra.mxu2 %v10940_v32 }
 0x534   : > { %v6177_v23 = vmax.f32 %v6146_v31, 0.0  ;;  %v5851_v10 = vadd.f32 %v5788_v62, %v5575_v18  ;;  %v5576_v31 = vadd.f32 %v5515_v9, %v5313_v33  ;;  %v14698_v18 = vld [vmem:[#allocation3 + $0x38] sm:$0xff]  ;;  %v6820_v33 = vshrl.u32 %v14636_v19, 16 }
 0x535   : > { %5554 = vmatmul.bf16.gmra.mxu1 %v5411_v28  ;;  %v6824_v15 = vshll.u32 %v14698_v18, 16  ;;  %v7347_v28 = vld [vmem:[#allocation3] sm:$0xe]  ;;  %v10974_v9 = vld [vmem:[%s15448_s2 + $0x130] sm:$0xff] }
 0x536   : > { %6064 = vmatmul.bf16.gmra.mxu3 %v5921_v17  ;;  %6208 = vst [vmem:[#allocation2 + $0x350] sm:$0xff] %v6177_v23  ;;  %v6085_v46 = vadd.f32 %v6022_v13, %v5851_v10  ;;  %6965 = vmatmul.bf16.gmra.mxu0 %v6819_v12 }
 0x537   : > { %7838 = vmatpush.bf16.msra.mxu0 %v10974_v9 }
 0x538   : > { %v6116_v24 = vmul.f32 %v14483_v63, %v6085_v46  ;;  %5830 = vmatmul.bf16.gmra.mxu2 %v5687_v27  ;;  %v5315_v27 = vadd.f32 %v14333_v39, %v15762_v11  ;;  %v7416_v46 = vunpack.c.l.b16 %v7347_v28  ;;  %v11275_v11 = vld [vmem:[#allocation3 + $0x8] sm:$0xff] }
 0x539   : > { %v6025_v0 = vpop.f32.mrf.mxu3 }
 0x53a   : > { %v6147_v8 = vadd.f32 %v14489_v57, %v6116_v24  ;;  %v5517_v23 = vpop.f32.mrf.mxu1  ;;  %v14711_v24 = vrot.slane %v6824_v15, 1 }
 0x53b   : > { %v5791_v13 = vpop.f32.mrf.mxu2  ;;  %v14700_v16 = vpop.f32.mrf.mxu0  ;;  %v5577_v22 = vadd.f32 %v5517_v23, %v5315_v27  ;;  %v7464_v27 = vshrl.u32 %v11275_v11, 16 }
 0x53c   : > { %v6178_v17 = vmax.f32 %v6147_v8, 0.0  ;;  %v5852_v62 = vadd.f32 %v5791_v13, %v5576_v31 }
 0x53e   : > { %6209 = vst [vmem:[#allocation2 + $0x358] sm:$0xff] %v6178_v17  ;;  %v6086_v10 = vadd.f32 %v6025_v0, %v5852_v62  ;;  %v6822_v17 = vor.u32 %v6820_v33, %v6818_v55  ;;  %v15763_v62 = vld [vmem:[#allocation10_spill] sm:$0xff]  ;;  %v5318_v55 = vadd.f32 %v14345_v60, %v14080_v45 }
 0x53f   : > { %v6269_v60 = vld [vmem:[#allocation2 + $0x320] ss:$5 sm:$0xff] }
 0x540   : > { %v6117_v34 = vmul.f32 %v14483_v63, %v6086_v10  ;;  %v15764_v10 = vunpack.c.l.b16 %v15763_v62  ;;  %v6827_v15 = vsel %vm508_vm0, %v6822_v17, %v14711_v24  ;;  %v6321_v17 = vld [vmem:[#allocation2 + $0x321] ss:$5 sm:$0xff] }
 0x541   : > { %v6027_v32 = vpop.f32.mrf.mxu3 }
 0x542   : > { %v6148_v12 = vadd.f32 %v14489_v57, %v6117_v34  ;;  %v5520_v13 = vpop.f32.mrf.mxu1  ;;  %v7442_v28 = vpack.c.b16 %v15764_v10, %v7416_v46  ;;  %v7467_v34 = vshll.u32 %v11275_v11, 16  ;;  %v5320_v11 = vadd.f32 %v14357_v59, %v14096_v36 }
 0x543   : > { %v5793_v0 = vpop.f32.mrf.mxu2  ;;  %v14713_v39 = vpop.f32.mrf.mxu0  ;;  %v7164_v36 = vrot.slane %v14355_v20, 1 }
 0x544   : > { %v6179_v8 = vmax.f32 %v6148_v12, 0.0  ;;  %v5853_v31 = vadd.f32 %v5793_v0, %v5577_v22  ;;  %v7456_v9 = vshrl.u32 %v7442_v28, 16  ;;  %v5578_v12 = vadd.f32 %v5520_v13, %v5318_v55  ;;  %v14728_v22 = vld [vmem:[#allocation3 + $0x40] sm:$0xff] }
 0x545   : > { %5559 = vmatmul.bf16.gmra.mxu1 %v5410_v41  ;;  %v7466_v41 = vrot.slane %v7464_v27, 1  ;;  %v7469_v33 = vrot.slane %v7467_v34, 2  ;;  %v11142_v13 = vld [vmem:[#allocation3] sm:$0xe]  ;;  %v6352_v27 = vmax.f32 %v6269_v60, %v6321_v17 }
 0x546   : > { %6069 = vmatmul.bf16.gmra.mxu3 %v5920_v52  ;;  %6210 = vst [vmem:[#allocation2 + $0x360] sm:$0xff] %v6179_v8  ;;  %v6087_v23 = vadd.f32 %v6027_v32, %v5853_v31  ;;  %6970 = vmatmul.bf16.gmra.mxu0 %v6827_v15  ;;  %v7459_v32 = vshll.u32 %v7442_v28, 16  ;;  %v7458_v62 = vrot.slane %v7456_v9, 1  ;;  %v6832_v28 = vshll.u32 %v14728_v22, 16 }
 0x547   : > { %v14733_v15 = vor.u32 %v7469_v33, %v7466_v41 }
 0x548   : > { %v6118_v26 = vmul.f32 %v14483_v63, %v6087_v23  ;;  %5835 = vmatmul.bf16.gmra.mxu2 %v14658_v3  ;;  %v7461_v3 = vrot.slane %v7459_v32, 2  ;;  %v11141_v23 = vld [vmem:[#allocation3] sm:$0xf0] }
 0x549   : > { %v6030_v52 = vpop.f32.mrf.mxu3 }
 0x54a   : > { %v6149_v46 = vadd.f32 %v14489_v57, %v6118_v26  ;;  %v5522_v45 = vpop.f32.mrf.mxu1  ;;  %v7462_v26 = vor.u32 %v7461_v3, %v7458_v62 }
 0x54b   : > { %v5796_v51 = vpop.f32.mrf.mxu2  ;;  %v14730_v31 = vpop.f32.mrf.mxu0  ;;  %v5579_v32 = vadd.f32 %v5522_v45, %v5320_v11  ;;  %v6477_v11 = vld [vmem:[#allocation2 + $0x323] ss:$5 sm:$0xff] }
 0x54c   : > { %v6180_v0 = vmax.f32 %v6149_v46, 0.0  ;;  %v5854_v8 = vadd.f32 %v5796_v51, %v5578_v12  ;;  %v11143_v46 = vor.u32 %v11142_v13, %v11141_v23  ;;  %v14740_v12 = vrot.slane %v6832_v28, 1  ;;  %v6399_v51 = vld [vmem:[#allocation2 + $0x322] ss:$5 sm:$0xff] }
 0x54d   : > { %v7471_v41 = vsel %vm1208_vm1, %v7462_v26, %v14733_v15  ;;  %v6430_v59 = vmax.f32 %v6352_v27, %v6399_v51 }
 0x54e   : > { %6211 = vst [vmem:[#allocation2 + $0x368] sm:$0xff] %v6180_v0  ;;  %v6088_v10 = vadd.f32 %v6030_v52, %v5854_v8  ;;  %v6828_v52 = vshrl.u32 %v14698_v18, 16 }
 0x550   : > { %v6119_v34 = vmul.f32 %v14483_v63, %v6088_v10  ;;  %v6830_v62 = vor.u32 %v6828_v52, %v14711_v24  ;;  %v7163_v10 = vrot.slane %v11143_v46, 1  ;;  %v11276_v24 = vld [vmem:[#allocation3 + $0x10] sm:$0xff]  ;;  %v5323_v46 = vadd.f32 %v14378_v21, %v14112_v42 }
 0x551   : > { %v6032_v55 = vpop.f32.mrf.mxu3  ;;  %v7473_v26 = vshrl.u32 %v11276_v24, 16 }
 0x552   : > { %v6150_v9 = vadd.f32 %v14489_v57, %v6119_v34  ;;  %v5525_v17 = vpop.f32.mrf.mxu1  ;;  %v6835_v13 = vsel %vm508_vm0, %v6830_v62, %v14740_v12  ;;  %v7165_v27 = vsel %vm968_vm2, %v7163_v10, %v7164_v36  ;;  %v6555_v62 = vld [vmem:[#allocation2 + $0x324] ss:$5 sm:$0xff] }
 0x553   : > { %v5798_v0 = vpop.f32.mrf.mxu2  ;;  %v14745_v60 = vpop.f32.mrf.mxu0  ;;  %v7475_v10 = vrot.slane %v7473_v26, 1 }
 0x554   : > { %v6181_v33 = vmax.f32 %v6150_v9, 0.0  ;;  %v5855_v8 = vadd.f32 %v5798_v0, %v5579_v32  ;;  %v7476_v9 = vshll.u32 %v11276_v24, 16  ;;  %v6508_v32 = vmax.f32 %v6430_v59, %v6477_v11 }
 0x555   : > { %v6271_v45 = vld [vmem:[#allocation2 + $0x348] ss:$5 sm:$0xff]  ;;  %v6323_v3 = vld [vmem:[#allocation2 + $0x349] ss:$5 sm:$0xff]  ;;  %7077 = vmatmul.bf16.vlgmr.msra.gmra.mxu1 %v14353_v37 }
 0x556   : > { %7640 = vmatmul.bf16.vlgmr.msra.gmra.mxu3 %v7471_v41  ;;  %v6353_v28 = vmax.f32 %v6271_v45, %v6323_v3  ;;  %6212 = vst [vmem:[#allocation2 + $0x370] sm:$0xff] %v6181_v33  ;;  %v6089_v23 = vadd.f32 %v6032_v55, %v5855_v8  ;;  %v6401_v34 = vld [vmem:[#allocation2 + $0x34a] ss:$5 sm:$0xff]  ;;  %6975 = vmatmul.bf16.gmra.mxu0 %v6835_v13  ;;  %v6479_v0 = vld [vmem:[#allocation2 + $0x34b] ss:$5 sm:$0xff]  ;;  %v7478_v13 = vrot.slane %v7476_v9, 2 }
 0x557   : > { %v5580_v33 = vadd.f32 %v5525_v17, %v5323_v46  ;;  %v14758_v8 = vld [vmem:[#allocation3 + $0x48] sm:$0xff]  ;;  %v6586_v24 = vmax.f32 %v6508_v32, %v6555_v62 }
 0x558   : > { %v6431_v55 = vmax.f32 %v6353_v28, %v6401_v34  ;;  %v6120_v52 = vmul.f32 %v14483_v63, %v6089_v23  ;;  %7257 = vmatmul.bf16.vlgmr.msra.gmra.mxu2 %v7165_v27  ;;  %v6557_v45 = vld [vmem:[#allocation2 + $0x34c] ss:$5 sm:$0xff]  ;;  %v6840_v27 = vshll.u32 %v14758_v8, 16  ;;  %v7479_v26 = vor.u32 %v7478_v13, %v7475_v10 }
 0x559   : > { %v6035_v51 = vpop.f32.mrf.mxu3  ;;  %v10973_v10 = vld [vmem:[%s15448_s2 + $0x128] sm:$0xff] }
 0x55a   : > { %v6509_v41 = vmax.f32 %v6431_v55, %v6479_v0  ;;  %v6151_v37 = vadd.f32 %v14489_v57, %v6120_v52  ;;  %v5527_v23 = vpop.f32.mrf.mxu1  ;;  %v15765_v55 = vld [vmem:[#allocation16_spill] sm:$0xff]  ;;  %v6836_v0 = vshrl.u32 %v14728_v22, 16  ;;  %7839 = vmatpush.bf16.msra.mxu0 %v10973_v10 }
 0x55b   : > { %v5801_v3 = vpop.f32.mrf.mxu2  ;;  %v5359_v28 = vpop.f32.mrf.mxu0  ;;  %v5325_v17 = vadd.f32 %v14392_v14, %v15765_v55  ;;  %v7480_v14 = vsel %vm1208_vm1, %v14733_v15, %v7479_v26  ;;  %v11277_v15 = vld [vmem:[#allocation3 + $0x18] sm:$0xff] }
 0x55c   : > { %v6587_v42 = vmax.f32 %v6509_v41, %v6557_v45  ;;  %v6182_v21 = vmax.f32 %v6151_v37, 0.0  ;;  %v5856_v59 = vadd.f32 %v5801_v3, %v5580_v33  ;;  %v6842_v41 = vrot.slane %v6840_v27, 1 }
 0x55d   : > { %v5581_v32 = vadd.f32 %v5527_v23, %v5325_v17  ;;  %v7166_v33 = vrot.slane %v14390_v38, 1  ;;  %v6838_v3 = vor.u32 %v6836_v0, %v14740_v12 }
 0x55e   : > { %v11102_v11 = vpack.c.bf16 %v6587_v42, %v6586_v24  ;;  %6213 = vst [vmem:[#allocation2 + $0x378] sm:$0xff] %v6182_v21  ;;  %v6090_v34 = vadd.f32 %v6035_v51, %v5856_v59  ;;  %v7482_v21 = vshrl.u32 %v11277_v15, 16  ;;  %v5328_v59 = vadd.f32 %v14423_v7, %v14143_v56 }
 0x55f   : > { %v6843_v24 = vsel %vm508_vm0, %v6838_v3, %v6842_v41  ;;  %v7167_v42 = vsel %vm968_vm2, %v7164_v36, %v7166_v33  ;;  %v15766_v56 = vrot.slane %v14542_v30, 2 }
 0x560   : > { %11139 = vst [vmem:[#allocation3 + $0x50] sm:$0xff] %v11102_v11   ;;  %v6121_v46 = vmul.f32 %v14483_v63, %v6090_v34  ;;  %v7485_v11 = vshll.u32 %v11277_v15, 16  ;;  %v7484_v17 = vrot.slane %v7482_v21, 1  ;;  %v7168_v15 = vrot.slane %v14438_v1, 1 }
 0x561   : > { %v6037_v52 = vpop.f32.mrf.mxu3 }
 0x562   : > { %v6152_v9 = vadd.f32 %v14489_v57, %v6121_v46  ;;  %v5530_v45 = vpop.f32.mrf.mxu1 }
 0x563   : > { %v5803_v37 = vpop.f32.mrf.mxu2  ;;  %v5582_v27 = vadd.f32 %v5530_v45, %v5328_v59 }
 0x564   : > { %v6183_v51 = vmax.f32 %v6152_v9, 0.0  ;;  %v5857_v62 = vadd.f32 %v5803_v37, %v5581_v32  ;;  %v7487_v32 = vrot.slane %v7485_v11, 2 }
 0x565   : > { %7082 = vmatmul.bf16.gmra.mxu1 %v14355_v20 }
 0x566   : > { %7645 = vmatmul.bf16.gmra.mxu3 %v7480_v14  ;;  %6214 = vst [vmem:[#allocation2 + $0x380] sm:$0xff] %v6183_v51  ;;  %v6091_v13 = vadd.f32 %v6037_v52, %v5857_v62  ;;  %6980 = vmatmul.bf16.gmra.mxu0 %v6843_v24  ;;  %v10972_v51 = vld [vmem:[%s15448_s2 + $0x120] sm:$0xff]  ;;  %v5330_v62 = vadd.f32 %v14440_v2, %v14155_v5 }
 0x567   : > { %v14778_v12 = vld [vmem:[#allocation3 + $0x50] sm:$0xff]  ;;  %v7488_v3 = vor.u32 %v7487_v32, %v7484_v17  ;;  %7840 = vmatpush.bf16.msra.mxu0 %v10972_v51 }
 0x568   : > { %v6122_v28 = vmul.f32 %v14483_v63, %v6091_v13  ;;  %7262 = vmatmul.bf16.gmra.mxu2 %v7167_v42  ;;  %v14784_v55 = vld [vmem:[#allocation3 + $0x50] sm:$0xff]  ;;  %v7770_v20 = vrot.slane %v14778_v12, 2  ;;  %v6844_v13 = vshrl.u32 %v14758_v8, 16 }
 0x569   : > { %v6040_v23 = vpop.f32.mrf.mxu3  ;;  %v6848_v37 = vshll.u32 %v14784_v55, 16  ;;  %v7489_v5 = vsel %vm1208_vm1, %v7479_v26, %v7488_v3  ;;  %v11278_v26 = vld [vmem:[#allocation3 + $0x20] sm:$0xff] }
 0x56a   : > { %v6153_v34 = vadd.f32 %v14489_v57, %v6122_v28  ;;  %v5532_v9 = vpop.f32.mrf.mxu1  ;;  %v14792_v7 = vsel %vm1492_vm3, %v15766_v56, %v7770_v20  ;;  %v6846_v2 = vor.u32 %v6844_v13, %v6842_v41  ;;  %v7491_v41 = vshrl.u32 %v11278_v26, 16 }
 0x56b   : > { %v5806_v36 = vpop.f32.mrf.mxu2  ;;  %v5583_v10 = vadd.f32 %v5532_v9, %v5330_v62  ;;  %v14803_v24 = vrot.slane %v6848_v37, 1  ;;  %v7170_v13 = vrot.slane %v14492_v25, 1 }
 0x56c   : > { %v6184_v46 = vmax.f32 %v6153_v34, 0.0  ;;  %v5858_v52 = vadd.f32 %v5806_v36, %v5582_v27  ;;  %v7169_v34 = vsel %vm968_vm2, %v7166_v33, %v7168_v15  ;;  %v5333_v27 = vadd.f32 %v14466_v53, %v14169_v43 }
 0x56d   : > { %v6851_v11 = vsel %vm508_vm0, %v6846_v2, %v14803_v24  ;;  %v5335_v43 = vadd.f32 %v14494_v35, %v14192_v44  ;;  %v7171_v44 = vsel %vm968_vm2, %v7168_v15, %v7170_v13  ;;  %v5338_v35 = vadd.f32 %v14520_v50, %v14204_v29  ;;  %v14827_v15 = vpop.f32.mrf.mxu0  ;;  %v15767_v50 = vld [vmem:[#allocation14_spill] sm:$0xff] }
 0x56e   : > { %6215 = vst [vmem:[#allocation2 + $0x388] sm:$0xff] %v6184_v46  ;;  %v6092_v0 = vadd.f32 %v6040_v23, %v5858_v52  ;;  %v7494_v46 = vshll.u32 %v11278_v26, 16 }
 0x570   : > { %v6123_v45 = vmul.f32 %v14483_v63, %v6092_v0  ;;  %v7496_v51 = vrot.slane %v7494_v46, 2 }
 0x571   : > { %v6042_v14 = vpop.f32.mrf.mxu3 }
 0x572   : > { %v6154_v30 = vadd.f32 %v14489_v57, %v6123_v45  ;;  %v5535_v28 = vpop.f32.mrf.mxu1 }
 0x573   : > { %v5808_v42 = vpop.f32.mrf.mxu2  ;;  %v5584_v9 = vadd.f32 %v5535_v28, %v5333_v27 }
 0x574   : > { %v6185_v21 = vmax.f32 %v6154_v30, 0.0  ;;  %v5859_v59 = vadd.f32 %v5808_v42, %v5583_v10 }
 0x575   : > { %7087 = vmatmul.bf16.gmra.mxu1 %v14390_v38  ;;  %v7493_v38 = vrot.slane %v7491_v41, 1 }
 0x576   : > { %7650 = vmatmul.bf16.gmra.mxu3 %v7489_v5  ;;  %6216 = vst [vmem:[#allocation2 + $0x390] sm:$0xff] %v6185_v21  ;;  %v6093_v23 = vadd.f32 %v6042_v14, %v5859_v59  ;;  %6985 = vmatmul.bf16.gmra.mxu0 %v6851_v11  ;;  %v11279_v11 = vld [vmem:[#allocation3 + $0x28] sm:$0xff] }
 0x577   : > { %v7497_v45 = vor.u32 %v7496_v51, %v7493_v38  ;;  %v7503_v27 = vshll.u32 %v11279_v11, 16 }
 0x578   : > { %v6124_v36 = vmul.f32 %v14483_v63, %v6093_v23  ;;  %7267 = vmatmul.bf16.gmra.mxu2 %v7169_v34  ;;  %v7500_v34 = vshrl.u32 %v11279_v11, 16 }
 0x579   : > { %v6045_v17 = vpop.f32.mrf.mxu3  ;;  %v7498_v28 = vsel %vm1208_vm1, %v7488_v3, %v7497_v45 }
 0x57a   : > { %v6155_v52 = vadd.f32 %v14489_v57, %v6124_v36  ;;  %v5537_v37 = vpop.f32.mrf.mxu1 }
 0x57b   : > { %v5811_v32 = vpop.f32.mrf.mxu2  ;;  %v5585_v30 = vadd.f32 %v5537_v37, %v5335_v43  ;;  %v10971_v37 = vld [vmem:[%s15448_s2 + $0x118] sm:$0xff]  ;;  %v7172_v43 = vrot.slane %v14547_v54, 1 }
 0x57c   : > { %v6186_v56 = vmax.f32 %v6155_v52, 0.0  ;;  %v5860_v0 = vadd.f32 %v5811_v32, %v5584_v9  ;;  %v7505_v52 = vrot.slane %v7503_v27, 2  ;;  %v5340_v9 = vadd.f32 %v14551_v58, %v15767_v50  ;;  %7841 = vmatpush.bf16.msra.mxu0 %v10971_v37 }
 0x57e   : > { %6217 = vst [vmem:[#allocation2 + $0x398] sm:$0xff] %v6186_v56  ;;  %v6094_v33 = vadd.f32 %v6045_v17, %v5860_v0 }
 0x580   : > { %v6125_v53 = vmul.f32 %v14483_v63, %v6094_v33 }
 0x581   : > { %v6047_v62 = vpop.f32.mrf.mxu3 }
 0x582   : > { %v6156_v14 = vadd.f32 %v14489_v57, %v6125_v53  ;;  %v5540_v59 = vpop.f32.mrf.mxu1 }
 0x583   : > { %v5813_v10 = vpop.f32.mrf.mxu2  ;;  %v5586_v3 = vadd.f32 %v5540_v59, %v5338_v35  ;;  %v14842_v59 = vpop.f32.mrf.mxu0 }
 0x584   : > { %v6187_v42 = vmax.f32 %v6156_v14, 0.0  ;;  %v5861_v21 = vadd.f32 %v5813_v10, %v5585_v30  ;;  %v7173_v10 = vsel %vm968_vm2, %v7170_v13, %v7172_v43 }
 0x585   : > { %7092 = vmatmul.bf16.gmra.mxu1 %v14438_v1  ;;  %v7502_v1 = vrot.slane %v7500_v34, 1 }
 0x586   : > { %7655 = vmatmul.bf16.gmra.mxu3 %v7498_v28  ;;  %6218 = vst [vmem:[#allocation2 + $0x3a0] sm:$0xff] %v6187_v42  ;;  %v6095_v5 = vadd.f32 %v6047_v62, %v5861_v21  ;;  %v15768_v42 = vld [vmem:[#allocation15_spill] sm:$0xff] }
 0x587   : > { %v7506_v0 = vor.u32 %v7505_v52, %v7502_v1  ;;  %v5343_v21 = vadd.f32 %v14600_v6, %v15768_v42  ;;  %v6325_v6 = vld [vmem:[#allocation2 + $0x371] ss:$5 sm:$0xff] }
 0x588   : > { %v6126_v2 = vmul.f32 %v14483_v63, %v6095_v5  ;;  %7272 = vmatmul.bf16.gmra.mxu2 %v7171_v44  ;;  %v11280_v44 = vld [vmem:[#allocation3 + $0x30] sm:$0xff] }
 0x589   : > { %v6050_v23 = vpop.f32.mrf.mxu3  ;;  %v7507_v58 = vsel %vm1208_vm1, %v7497_v45, %v7506_v0  ;;  %v7509_v35 = vshrl.u32 %v11280_v44, 16  ;;  %v6481_v42 = vld [vmem:[#allocation2 + $0x373] ss:$5 sm:$0xff] }
 0x58a   : > { %v6157_v36 = vadd.f32 %v14489_v57, %v6126_v2  ;;  %v5542_v46 = vpop.f32.mrf.mxu1  ;;  %v7512_v2 = vshll.u32 %v11280_v44, 16 }
 0x58b   : > { %v5816_v17 = vpop.f32.mrf.mxu2  ;;  %v5587_v51 = vadd.f32 %v5542_v46, %v5340_v9  ;;  %v7511_v13 = vrot.slane %v7509_v35, 1  ;;  %v14851_v50 = vpop.f32.mrf.mxu0 }
 0x58c   : > { %v6188_v26 = vmax.f32 %v6157_v36, 0.0  ;;  %v5862_v41 = vadd.f32 %v5816_v17, %v5586_v3  ;;  %v7514_v36 = vrot.slane %v7512_v2, 2  ;;  %v6273_v3 = vld [vmem:[#allocation2 + $0x370] ss:$5 sm:$0xff] }
 0x58d   : > { %v6354_v46 = vmax.f32 %v6273_v3, %v6325_v6  ;;  %v15770_v2 = vld [vmem:[#allocation21_spill] sm:$0xff] }
 0x58e   : > { %6219 = vst [vmem:[#allocation2 + $0x3a8] sm:$0xff] %v6188_v26  ;;  %v6096_v29 = vadd.f32 %v6050_v23, %v5862_v41  ;;  %v15769_v26 = vld [vmem:[#allocation28_spill] sm:$0xff] }
 0x58f   : > { %v5345_v41 = vadd.f32 %v14641_v61, %v15769_v26 }
 0x590   : > { %v6127_v32 = vmul.f32 %v14483_v63, %v6096_v29  ;;  %v14849_v29 = vor.u32 %v7514_v36, %v7511_v13  ;;  %v6559_v36 = vld [vmem:[#allocation2 + $0x374] ss:$5 sm:$0xff] }
 0x591   : > { %v6052_v56 = vpop.f32.mrf.mxu3 }
 0x592   : > { %v6158_v38 = vadd.f32 %v14489_v57, %v6127_v32  ;;  %v5545_v14 = vpop.f32.mrf.mxu1  ;;  %v7516_v61 = vsel %vm1208_vm1, %v7506_v0, %v14849_v29  ;;  %v5348_v0 = vadd.f32 %v14676_v40, %v15770_v2 }
 0x593   : > { %v5818_v33 = vpop.f32.mrf.mxu2  ;;  %v5588_v23 = vadd.f32 %v5545_v14, %v5343_v21 }
 0x594   : > { %v6189_v53 = vmax.f32 %v6158_v38, 0.0  ;;  %v5863_v62 = vadd.f32 %v5818_v33, %v5587_v51  ;;  %v7174_v38 = vrot.slane %v14636_v19, 1 }
 0x595   : > { %7097 = vmatmul.bf16.gmra.mxu1 %v14492_v25 }
 0x596   : > { %7660 = vmatmul.bf16.gmra.mxu3 %v7507_v58  ;;  %6220 = vst [vmem:[#allocation2 + $0x3b0] sm:$0xff] %v6189_v53  ;;  %v6097_v30 = vadd.f32 %v6052_v56, %v5863_v62  ;;  %v6403_v56 = vld [vmem:[#allocation2 + $0x372] ss:$5 sm:$0xff] }
 0x597   : > { %v6432_v51 = vmax.f32 %v6354_v46, %v6403_v56 }
 0x598   : > { %v6128_v28 = vmul.f32 %v14483_v63, %v6097_v30  ;;  %7277 = vmatmul.bf16.gmra.mxu2 %v7173_v10 }
 0x599   : > { %v6055_v5 = vpop.f32.mrf.mxu3 }
 0x59a   : > { %v6159_v45 = vadd.f32 %v14489_v57, %v6128_v28  ;;  %v5547_v27 = vpop.f32.mrf.mxu1  ;;  %v7175_v28 = vsel %vm968_vm2, %v7172_v43, %v7174_v38 }
 0x59b   : > { %v5821_v11 = vpop.f32.mrf.mxu2  ;;  %v5589_v32 = vadd.f32 %v5547_v27, %v5345_v41  ;;  %v14865_v41 = vpop.f32.mrf.mxu0 }
 0x59c   : > { %v6190_v34 = vmax.f32 %v6159_v45, 0.0  ;;  %v5864_v25 = vadd.f32 %v5821_v11, %v5588_v23  ;;  %v6510_v45 = vmax.f32 %v6432_v51, %v6481_v42 }
 0x59e   : > { %6221 = vst [vmem:[#allocation2 + $0x3b8] sm:$0xff] %v6190_v34  ;;  %v6098_v17 = vadd.f32 %v6055_v5, %v5864_v25  ;;  %v11281_v5 = vld [vmem:[#allocation3 + $0x38] sm:$0xff]  ;;  %v6588_v26 = vmax.f32 %v6510_v45, %v6559_v36 }
 0x59f   : > { %v7518_v44 = vshrl.u32 %v11281_v5, 16  ;;  %v7521_v35 = vshll.u32 %v11281_v5, 16  ;;  %v11284_v5 = vld [vmem:[#allocation3 + $0x40] sm:$0xff]  ;;  %v10970_v45 = vld [vmem:[%s15448_s2 + $0x110] sm:$0xff] }
 0x5a0   : > { %v6129_v1 = vmul.f32 %v14483_v63, %v6098_v17  ;;  %7842 = vmatpush.bf16.msra.mxu0 %v10970_v45 }
 0x5a1   : > { %v6057_v52 = vpop.f32.mrf.mxu3  ;;  %v7520_v6 = vrot.slane %v7518_v44, 1  ;;  %v7523_v17 = vrot.slane %v7521_v35, 2  ;;  %v7527_v44 = vshrl.u32 %v11284_v5, 16 }
 0x5a2   : > { %v6160_v9 = vadd.f32 %v14489_v57, %v6129_v1  ;;  %v5550_v62 = vpop.f32.mrf.mxu1 }
 0x5a3   : > { %v5823_v37 = vpop.f32.mrf.mxu2  ;;  %v5590_v13 = vadd.f32 %v5550_v62, %v5348_v0  ;;  %v7524_v51 = vor.u32 %v7523_v17, %v7520_v6 }
 0x5a4   : > { %v6191_v33 = vmax.f32 %v6160_v9, 0.0  ;;  %v5865_v53 = vadd.f32 %v5823_v37, %v5589_v32  ;;  %v5350_v32 = vadd.f32 %v14700_v16, %v14267_v47  ;;  %v7176_v47 = vrot.slane %v14698_v18, 1 }
 0x5a5   : > { %v6275_v14 = vld [vmem:[#allocation2 + $0x398] ss:$5 sm:$0xff]  ;;  %v6327_v58 = vld [vmem:[#allocation2 + $0x399] ss:$5 sm:$0xff]  ;;  %7102 = vmatmul.bf16.gmra.mxu1 %v14547_v54 }
 0x5a6   : > { %7665 = vmatmul.bf16.gmra.mxu3 %v7516_v61  ;;  %v6355_v30 = vmax.f32 %v6275_v14, %v6327_v58  ;;  %6222 = vst [vmem:[#allocation2 + $0x3c0] sm:$0xff] %v6191_v33  ;;  %v6099_v10 = vadd.f32 %v6057_v52, %v5865_v53  ;;  %v6405_v21 = vld [vmem:[#allocation2 + $0x39a] ss:$5 sm:$0xff]  ;;  %v6483_v25 = vld [vmem:[#allocation2 + $0x39b] ss:$5 sm:$0xff] }
 0x5a7   : > { %v6561_v3 = vld [vmem:[#allocation2 + $0x39c] ss:$5 sm:$0xff]  ;;  %v14878_v33 = vld [vmem:[%s15451_s5] ss:$0 sm:$0xff] }
 0x5a8   : > { %v6433_v23 = vmax.f32 %v6355_v30, %v6405_v21  ;;  %v6130_v11 = vmul.f32 %v14483_v63, %v6099_v10  ;;  %7282 = vmatmul.bf16.gmra.mxu2 %v7175_v28  ;;  %v7525_v30 = vsel %vm1208_vm1, %v14849_v29, %v7524_v51  ;;  %v14884_v10 = vpop.f32.mrf.mxu0  ;;  %v7177_v21 = vsel %vm968_vm2, %v7174_v38, %v7176_v47 }
 0x5a9   : > { %v6060_v34 = vpop.f32.mrf.mxu3  ;;  %v5353_v29 = vadd.f32 %v14713_v39, %v14284_v48  ;;  %v6852_v38 = vshrl.u32 %v14784_v55, 16 }
 0x5aa   : > { %v6511_v27 = vmax.f32 %v6433_v23, %v6483_v25  ;;  %v6161_v54 = vadd.f32 %v14489_v57, %v6130_v11  ;;  %v5552_v52 = vpop.f32.mrf.mxu1  ;;  %v14872_v57 = vld [vmem:[%s15450_s4] ss:$0 sm:$0xff] }
 0x5ab   : > { %v5826_v43 = vpop.f32.mrf.mxu2  ;;  %v5591_v62 = vadd.f32 %v5552_v52, %v5350_v32  ;;  %v6854_v39 = vor.u32 %v6852_v38, %v14803_v24  ;;  %v5355_v24 = vadd.f32 %v14730_v31, %v14299_v49  ;;  %v7178_v32 = vrot.slane %v14728_v22, 1  ;;  %v10969_v49 = vld [vmem:[%s15448_s2 + $0x108] sm:$0xff] }
 0x5ac   : > { %v6589_v40 = vmax.f32 %v6511_v27, %v6561_v3  ;;  %v6192_v46 = vmax.f32 %v6161_v54, 0.0  ;;  %v5866_v1 = vadd.f32 %v5826_v43, %v5590_v13  ;;  %v7529_v54 = vrot.slane %v7527_v44, 1  ;;  %7843 = vmatpush.bf16.msra.mxu0 %v10969_v49 }
 0x5ae   : > { %v11107_v63 = vpack.c.bf16 %v6589_v40, %v6588_v26  ;;  %6223 = vst [vmem:[#allocation2 + $0x3c8] sm:$0xff] %v6192_v46  ;;  %v6100_v9 = vadd.f32 %v6060_v34, %v5866_v1 }
 0x5b0   : > { %11140 = vst [vmem:[#allocation3 + $0x58] sm:$0xff] %v11107_v63   ;;  %v6131_v56 = vmul.f32 %v14872_v57, %v6100_v9  ;;  %v14918_v40 = vpop.f32.mrf.mxu0 }
 0x5b1   : > { %v6062_v37 = vpop.f32.mrf.mxu3 }
 0x5b2   : > { %v6162_v53 = vadd.f32 %v14878_v33, %v6131_v56  ;;  %v5555_v58 = vpop.f32.mrf.mxu1 }
 0x5b3   : > { %v5828_v61 = vpop.f32.mrf.mxu2  ;;  %v5592_v34 = vadd.f32 %v5555_v58, %v5353_v29 }
 0x5b4   : > { %v6193_v16 = vmax.f32 %v6162_v53, 0.0  ;;  %v5867_v14 = vadd.f32 %v5828_v61, %v5591_v62  ;;  %v7179_v61 = vsel %vm968_vm2, %v7176_v47, %v7178_v32 }
 0x5b5   : > { %7107 = vmatmul.bf16.gmra.mxu1 %v14636_v19  ;;  %v7530_v19 = vshll.u32 %v11284_v5, 16 }
 0x5b6   : > { %7670 = vmatmul.bf16.gmra.mxu3 %v7525_v30  ;;  %6224 = vst [vmem:[#allocation2 + $0x3d0] sm:$0xff] %v6193_v16  ;;  %v6101_v42 = vadd.f32 %v6062_v37, %v5867_v14  ;;  %v15771_v16 = vld [vmem:[#allocation17_spill] sm:$0xff] }
 0x5b7   : > { %v14890_v28 = vld [vmem:[#allocation3 + $0x58] sm:$0xff]  ;;  %v7532_v43 = vrot.slane %v7530_v19, 2  ;;  %v5358_v14 = vadd.f32 %v14745_v60, %v15771_v16 }
 0x5b8   : > { %v14892_v35 = vld [vmem:[#allocation3 + $0x58] sm:$0xff]  ;;  %v6132_v2 = vmul.f32 %v14872_v57, %v6101_v42  ;;  %7287 = vmatmul.bf16.gmra.mxu2 %v7177_v21  ;;  %v6856_v23 = vshll.u32 %v14890_v28, 16  ;;  %v14932_v5 = vpop.f32.mrf.mxu0 }
 0x5b9   : > { %v6065_v0 = vpop.f32.mrf.mxu3  ;;  %v7772_v25 = vrot.slane %v14892_v35, 2  ;;  %v7533_v52 = vor.u32 %v7532_v43, %v7529_v54 }
 0x5ba   : > { %v6163_v11 = vadd.f32 %v14878_v33, %v6132_v2  ;;  %v14905_v27 = vrot.slane %v6856_v23, 1  ;;  %v5557_v3 = vpop.f32.mrf.mxu1 }
 0x5bb   : > { %v5831_v48 = vpop.f32.mrf.mxu2  ;;  %v14912_v6 = vsel %vm1492_vm3, %v7770_v20, %v7772_v25  ;;  %v5593_v9 = vadd.f32 %v5557_v3, %v5355_v24  ;;  %v7534_v62 = vsel %vm1208_vm1, %v7524_v51, %v7533_v52  ;;  %v11285_v51 = vld [vmem:[#allocation3 + $0x48] sm:$0xff] }
 0x5bc   : > { %v6194_v13 = vmax.f32 %v6163_v11, 0.0  ;;  %v5868_v36 = vadd.f32 %v5831_v48, %v5592_v34  ;;  %v6859_v17 = vsel %vm508_vm0, %v6854_v39, %v14905_v27  ;;  %v7536_v42 = vshrl.u32 %v11285_v51, 16  ;;  %v10968_v34 = vld [vmem:[%s15448_s2 + $0x100] sm:$0xff] }
 0x5bd   : > { %6990 = vmatmul.bf16.gmra.mxu0 %v6859_v17  ;;  %v7539_v21 = vshll.u32 %v11285_v51, 16 }
 0x5be   : > { %6225 = vst [vmem:[#allocation2 + $0x3d8] sm:$0xff] %v6194_v13  ;;  %v6102_v26 = vadd.f32 %v6065_v0, %v5868_v36  ;;  %v7538_v47 = vrot.slane %v7536_v42, 1  ;;  %7844 = vmatpush.bf16.msra.mxu0 %v10968_v34 }
 0x5bf   : > { %v7541_v19 = vrot.slane %v7539_v21, 2 }
 0x5c0   : > { %v6133_v46 = vmul.f32 %v14872_v57, %v6102_v26 }
 0x5c1   : > { %v6067_v1 = vpop.f32.mrf.mxu3  ;;  %v7542_v36 = vor.u32 %v7541_v19, %v7538_v47 }
 0x5c2   : > { %v6164_v63 = vadd.f32 %v14878_v33, %v6133_v46  ;;  %v5560_v53 = vpop.f32.mrf.mxu1  ;;  %v7180_v46 = vrot.slane %v14758_v8, 1 }
 0x5c3   : > { %v5833_v20 = vpop.f32.mrf.mxu2  ;;  %v5594_v29 = vadd.f32 %v5560_v53, %v5358_v14 }
 0x5c4   : > { %v6195_v56 = vmax.f32 %v6164_v63, 0.0  ;;  %v5869_v37 = vadd.f32 %v5833_v20, %v5593_v9 }
 0x5c5   : > { %7112 = vmatmul.bf16.gmra.mxu1 %v14698_v18 }
 0x5c6   : > { %7675 = vmatmul.bf16.gmra.mxu3 %v7534_v62  ;;  %6226 = vst [vmem:[#allocation2 + $0x3e0] sm:$0xff] %v6195_v56  ;;  %v6103_v31 = vadd.f32 %v6067_v1, %v5869_v37  ;;  %v14941_v1 = vpop.f32.mrf.mxu0  ;;  %v7543_v56 = vsel %vm1208_vm1, %v7533_v52, %v7542_v36 }
 0x5c8   : > { %v6134_v58 = vmul.f32 %v14872_v57, %v6103_v31  ;;  %7292 = vmatmul.bf16.gmra.mxu2 %v7179_v61  ;;  %v7545_v31 = vshrl.u32 %v14778_v12, 16  ;;  %v7548_v61 = vshll.u32 %v14778_v12, 16 }
 0x5c9   : > { %v6070_v30 = vpop.f32.mrf.mxu3 }
 0x5ca   : > { %v6165_v44 = vadd.f32 %v14878_v33, %v6134_v58  ;;  %v5562_v45 = vpop.f32.mrf.mxu1  ;;  %v7547_v42 = vrot.slane %v7545_v31, 1  ;;  %v7550_v21 = vrot.slane %v7548_v61, 2 }
 0x5cb   : > { %v5836_v2 = vpop.f32.mrf.mxu2 }
 0x5cc   : > { %v6196_v0 = vmax.f32 %v6165_v44, 0.0  ;;  %v5870_v18 = vadd.f32 %v5836_v2, %v5594_v29  ;;  %v7551_v12 = vor.u32 %v7550_v21, %v7547_v42 }
 0x5cd   : > { %v6277_v38 = vld [vmem:[#allocation2 + $0x3c0] ss:$5 sm:$0xff]  ;;  %v6329_v60 = vld [vmem:[#allocation2 + $0x3c1] ss:$5 sm:$0xff] }
 0x5ce   : > { %v6356_v23 = vmax.f32 %v6277_v38, %v6329_v60  ;;  %6227 = vst [vmem:[#allocation2 + $0x3e8] sm:$0xff] %v6196_v0  ;;  %v6104_v11 = vadd.f32 %v6070_v30, %v5870_v18  ;;  %v6407_v48 = vld [vmem:[#allocation2 + $0x3c2] ss:$5 sm:$0xff]  ;;  %v6485_v3 = vld [vmem:[#allocation2 + $0x3c3] ss:$5 sm:$0xff]  ;;  %v14949_v44 = vpop.f32.mrf.mxu0 }
 0x5cf   : > { %v6563_v26 = vld [vmem:[#allocation2 + $0x3c4] ss:$5 sm:$0xff] }
 0x5d0   : > { %v6434_v39 = vmax.f32 %v6356_v23, %v6407_v48  ;;  %v6135_v54 = vmul.f32 %v14872_v57, %v6104_v11  ;;  %v7182_v23 = vrot.slane %v14784_v55, 1  ;;  %v7552_v48 = vsel %vm1208_vm1, %v7542_v36, %v7551_v12 }
 0x5d1   : > { %v6072_v13 = vpop.f32.mrf.mxu3 }
 0x5d2   : > { %v6512_v43 = vmax.f32 %v6434_v39, %v6485_v3  ;;  %v6166_v17 = vadd.f32 %v14878_v33, %v6135_v54  ;;  %v7078_v20 = vpop.f32.mrf.mxu1  ;;  %v7181_v33 = vsel %vm968_vm2, %v7178_v32, %v7180_v46  ;;  %v6860_v39 = vshrl.u32 %v14890_v28, 16 }
 0x5d3   : > { %v5838_v24 = vpop.f32.mrf.mxu2  ;;  %v7079_v16 = vadd.f32 %v7078_v20, %v14827_v15 }
 0x5d4   : > { %v6590_v63 = vmax.f32 %v6512_v43, %v6563_v26  ;;  %v6197_v9 = vmax.f32 %v6166_v17, 0.0  ;;  %v6862_v13 = vor.u32 %v6860_v39, %v14905_v27  ;;  %v7554_v24 = vshrl.u32 %v14892_v35, 16  ;;  %v15772_v39 = vld [vmem:[#allocation11_spill] sm:$0xff] }
 0x5d5   : > { %v6279_v37 = vld [vmem:[#allocation2 + $0x3e8] ss:$5 sm:$0x3]  ;;  %v6331_v57 = vld [vmem:[#allocation2 + $0x3e9] ss:$5 sm:$0x3]  ;;  %7117 = vmatmul.bf16.gmra.mxu1 %v14728_v22 }
 0x5d6   : > { %7680 = vmatmul.bf16.gmra.mxu3 %v7543_v56  ;;  %v6616_v53 = vpack.c.bf16 %v6590_v63, %v6590_v63  ;;  %6228 = vst [vmem:[#allocation2 + $0x3f0] sm:$0x3] %v6197_v9  ;;  %v6357_v62 = vmax.f32 %v6279_v37, %v6331_v57  ;;  %v6409_v52 = vld [vmem:[#allocation2 + $0x3ea] ss:$5 sm:$0x3]  ;;  %v14965_v17 = vpop.f32.mrf.mxu0  ;;  %v7557_v63 = vshll.u32 %v14892_v35, 16 }
 0x5d8   : > { %6642 = vst [vmem:[#allocation3 + $0x60] sm:$0xf] %v6616_v53  ;;  %7297 = vmatmul.bf16.gmra.mxu2 %v7181_v33  ;;  %v6435_v58 = vmax.f32 %v6357_v62, %v6409_v52  ;;  %v7559_v57 = vrot.slane %v7557_v63, 2  ;;  %v7184_v52 = vrot.slane %v14890_v28, 1 }
 0x5d9   : > { %v7641_v49 = vpop.f32.mrf.mxu3 }
 0x5da   : > { %v7080_v51 = vpop.f32.mrf.mxu1 }
 0x5db   : > { %v7258_v14 = vpop.f32.mrf.mxu2  ;;  %v7081_v19 = vadd.f32 %v7080_v51, %v14842_v59  ;;  %v7183_v59 = vsel %vm968_vm2, %v7180_v46, %v7182_v23  ;;  %v7556_v46 = vrot.slane %v7554_v24, 1  ;;  %v7185_v51 = vsel %vm968_vm2, %v7182_v23, %v7184_v52 }
 0x5dc   : > { %v7322_v30 = vadd.f32 %v7258_v14, %v7079_v16 }
 0x5dd   : > { %v6487_v22 = vld [vmem:[#allocation2 + $0x3eb] ss:$5 sm:$0x3]  ;;  %v6565_v2 = vld [vmem:[#allocation2 + $0x3ec] ss:$5 sm:$0x3]  ;;  %v7560_v31 = vor.u32 %v7559_v57, %v7556_v46 }
 0x5de   : > { %v6513_v32 = vmax.f32 %v6435_v58, %v6487_v22  ;;  %v14951_v29 = vadd.f32 %v7641_v49, %v7322_v30  ;;  %v14987_v61 = vpop.f32.mrf.mxu0 }
 0x5df   : > { %v6687_v0 = vld [vmem:[#allocation3 + $0x60] sm:$0xf]  ;;  %v7561_v58 = vsel %vm1208_vm1, %v7551_v12, %v7560_v31 }
 0x5e0   : > { %v6591_v18 = vmax.f32 %v6513_v32, %v6565_v2  ;;  %v6754_v47 = vunpack.c.l.b16 %v6687_v0  ;;  %v10318_v20 = vld [vmem:[#allocation3 + $0x60] sm:$0xf] }
 0x5e1   : > { %v7643_v45 = vpop.f32.mrf.mxu3 }
 0x5e2   : > { %v6617_v15 = vpack.c.bf16 %v6591_v18, %v6591_v18  ;;  %v14954_v38 = vpack.c.b16 %v6754_v47, %v6754_v47  ;;  %v7083_v34 = vpop.f32.mrf.mxu1 }
 0x5e3   : > { %v7260_v60 = vpop.f32.mrf.mxu2  ;;  %v7084_v27 = vadd.f32 %v7083_v34, %v14851_v50 }
 0x5e4   : > { %6643 = vst [vmem:[#allocation3 + $0x64] sm:$0x1] %v6617_v15  ;;  %v7323_v11 = vadd.f32 %v7260_v60, %v7081_v19  ;;  %v6864_v54 = vshll.u32 %v14954_v38, 16  ;;  %v6868_v30 = vshrl.u32 %v14954_v38, 16  ;;  %v7186_v60 = vrot.slane %v14954_v38, 1 }
 0x5e5   : > { %7122 = vmatmul.bf16.gmra.mxu1 %v14758_v8  ;;  %v6670_v38 = vld [vmem:[#allocation3 + $0x60] sm:$0x7] }
 0x5e6   : > { %7685 = vmatmul.bf16.gmra.mxu3 %v7552_v48  ;;  %v6866_v3 = vrot.slane %v6864_v54, 1  ;;  %v14961_v43 = vadd.f32 %v7643_v45, %v7323_v11  ;;  %v14999_v2 = vpop.f32.mrf.mxu0  ;;  %v7187_v34 = vsel %vm968_vm2, %v7184_v52, %v7186_v60 }
 0x5e8   : > { %7302 = vmatmul.bf16.gmra.mxu2 %v7183_v59  ;;  %v6867_v36 = vsel %vm508_vm0, %v6862_v13, %v6866_v3  ;;  %v6870_v35 = vor.u32 %v6868_v30, %v6866_v3 }
 0x5e9   : > { %v7646_v26 = vpop.f32.mrf.mxu3  ;;  %6995 = vmatmul.bf16.gmra.mxu0 %v6867_v36 }
 0x5ea   : > { %v14971_v8 = vpop.f32.mrf.mxu1 }
 0x5eb   : > { %v7263_v9 = vpop.f32.mrf.mxu2  ;;  %v10959_v56 = vld [vmem:[#allocation3 + $0x60] sm:$0x10] }
 0x5ec   : > { %v7324_v37 = vadd.f32 %v7263_v9, %v7084_v27  ;;  %v14973_v53 = vor.u32 %v10959_v56, %v10318_v20  ;;  %v15773_v20 = vld [vmem:[#allocation12_spill] sm:$0xff] }
 0x5ee   : > { %v14975_v33 = vadd.f32 %v7646_v26, %v7324_v37  ;;  %v15565_v62 = vrot.slane %v14973_v53, 2  ;;  %v7563_v42 = vshrl.u32 %v14973_v53, 16  ;;  %v7566_v21 = vshll.u32 %v14973_v53, 16  ;;  %v6971_v11 = vpop.f32.mrf.mxu0 }
 0x5f0   : > { %v14985_v50 = vsel %vm1492_vm3, %v7772_v25, %v15565_v62  ;;  %v7565_v45 = vrot.slane %v7563_v42, 1 }
 0x5f1   : > { %v14978_v49 = vpop.f32.mrf.mxu3 }
 0x5f2   : > { %v7088_v14 = vpop.f32.mrf.mxu1 }
 0x5f3   : > { %v14989_v16 = vpop.f32.mrf.mxu2  ;;  %v7089_v22 = vadd.f32 %v7088_v14, %v14884_v10 }
 0x5f5   : > { %7127 = vmatmul.bf16.gmra.mxu1 %v14784_v55  ;;  %v7568_v55 = vrot.slane %v7566_v21, 2 }
 0x5f6   : > { %7690 = vmatmul.bf16.gmra.mxu3 %v7561_v58  ;;  %v15019_v36 = vpop.f32.mrf.mxu0 }
 0x5f7   : > { %v7569_v15 = vor.u32 %v7568_v55, %v7565_v45 }
 0x5f8   : > { %7307 = vmatmul.bf16.gmra.mxu2 %v7185_v51 }
 0x5f9   : > { %v7651_v25 = vpop.f32.mrf.mxu3  ;;  %7000 = vmatmul.bf16.gmra.mxu0 %v6870_v35  ;;  %v7570_v10 = vsel %vm1208_vm1, %v7560_v31, %v7569_v15 }
 0x5fa   : > { %v15001_v18 = vpop.f32.mrf.mxu1 }
 0x5fb   : > { %v7268_v32 = vpop.f32.mrf.mxu2 }
 0x5fc   : > { %v7326_v0 = vadd.f32 %v7268_v32, %v7089_v22 }
 0x5fe   : > { %v15003_v12 = vadd.f32 %v7651_v25, %v7326_v0  ;;  %v6976_v56 = vpop.f32.mrf.mxu0  ;;  %v15774_v25 = vld [vmem:[#allocation24_spill] sm:$0xff] }
 0x601   : > { %v15005_v47 = vpop.f32.mrf.mxu3 }
 0x602   : > { %v7093_v23 = vpop.f32.mrf.mxu1 }
 0x603   : > { %v15007_v19 = vpop.f32.mrf.mxu2  ;;  %v7094_v54 = vadd.f32 %v7093_v23, %v14932_v5 }
 0x605   : > { %7132 = vmatmul.bf16.gmra.mxu1 %v14890_v28  ;;  %v7006_v28 = vunpack.c.l.b16 %v6670_v38 }
 0x606   : > { %7695 = vmatmul.bf16.gmra.mxu3 %v7570_v10  ;;  %v6978_v30 = vpop.f32.mrf.mxu0  ;;  %v15775_v10 = vld [vmem:[#allocation29_spill] sm:$0xff] }
 0x607   : > { %v7007_v9 = vpack.c.b16 %v7006_v28, %v7006_v28 }
 0x608   : > { %7312 = vmatmul.bf16.gmra.mxu2 %v7187_v34 }
 0x609   : > { %v7656_v48 = vpop.f32.mrf.mxu3  ;;  %7845 = vmatmul.bf16.vlgmr.msra.gmra.mxu0 %v15772_v39 }
 0x60a   : > { %v15015_v59 = vpop.f32.mrf.mxu1 }
 0x60b   : > { %v7273_v13 = vpop.f32.mrf.mxu2 }
 0x60c   : > { %v7328_v3 = vadd.f32 %v7273_v13, %v7094_v54 }
 0x60e   : > { %v15017_v26 = vadd.f32 %v7656_v48, %v7328_v3  ;;  %v6981_v32 = vpop.f32.mrf.mxu0 }
 0x611   : > { %v15021_v24 = vpop.f32.mrf.mxu3 }
 0x612   : > { %v7098_v27 = vpop.f32.mrf.mxu1 }
 0x613   : > { %v15023_v63 = vpop.f32.mrf.mxu2  ;;  %v7099_v37 = vadd.f32 %v7098_v27, %v14949_v44 }
 0x615   : > { %7137 = vmatmul.bf16.gmra.mxu1 %v7007_v9  ;;  %v15776_v9 = vld [vmem:[#allocation19_spill] sm:$0xff] }
 0x616   : > { %7700 = vmatmul.bf16.gmra.mxu3 %v7569_v15 }
 0x618   : > { %7317 = vmatmul.bf16.gmra.mxu2 %v7186_v60  ;;  %v6983_v60 = vpop.f32.mrf.mxu0 }
 0x619   : > { %v7661_v5 = vpop.f32.mrf.mxu3  ;;  %7850 = vmatmul.bf16.gmra.mxu0 %v15773_v20 }
 0x61a   : > { %v15027_v31 = vpop.f32.mrf.mxu1 }
 0x61b   : > { %v7278_v46 = vpop.f32.mrf.mxu2 }
 0x61c   : > { %v7330_v57 = vadd.f32 %v7278_v46, %v7099_v37 }
 0x61e   : > { %v15029_v52 = vadd.f32 %v7661_v5, %v7330_v57 }
 0x620   : > { %v6986_v3 = vpop.f32.mrf.mxu0 }
 0x621   : > { %v15031_v14 = vpop.f32.mrf.mxu3 }
 0x622   : > { %v7103_v51 = vpop.f32.mrf.mxu1 }
 0x623   : > { %v15033_v58 = vpop.f32.mrf.mxu2  ;;  %v7104_v42 = vadd.f32 %v7103_v51, %v14987_v61 }
 0x628   : > { %v6988_v37 = vpop.f32.mrf.mxu0 }
 0x629   : > { %v7666_v35 = vpop.f32.mrf.mxu3  ;;  %7855 = vmatmul.bf16.gmra.mxu0 %v15774_v25 }
 0x62a   : > { %v15037_v44 = vpop.f32.mrf.mxu1 }
 0x62b   : > { %v7283_v21 = vpop.f32.mrf.mxu2 }
 0x62c   : > { %v7332_v22 = vadd.f32 %v7283_v21, %v7104_v42 }
 0x62e   : > { %v15039_v0 = vadd.f32 %v7666_v35, %v7332_v22 }
 0x631   : > { %v15041_v45 = vpop.f32.mrf.mxu3 }
 0x632   : > { %v7108_v15 = vpop.f32.mrf.mxu1 }
 0x633   : > { %v15043_v55 = vpop.f32.mrf.mxu2  ;;  %v7109_v34 = vadd.f32 %v7108_v15, %v6971_v11 }
 0x639   : > { %v7671_v23 = vpop.f32.mrf.mxu3  ;;  %7860 = vmatmul.bf16.gmra.mxu0 %v15775_v10  ;;  %v15777_v10 = vld [vmem:[#allocation31_spill] sm:$0xff] }
 0x63a   : > { %v15046_v61 = vpop.f32.mrf.mxu1  ;;  %v6991_v42 = vpop.f32.mrf.mxu0 }
 0x63b   : > { %v7288_v48 = vpop.f32.mrf.mxu2 }
 0x63c   : > { %v7334_v39 = vadd.f32 %v7288_v48, %v7109_v34 }
 0x63e   : > { %v15048_v54 = vadd.f32 %v7671_v23, %v7334_v39 }
 0x641   : > { %v15050_v13 = vpop.f32.mrf.mxu3 }
 0x642   : > { %v7113_v28 = vpop.f32.mrf.mxu1 }
 0x643   : > { %v15052_v38 = vpop.f32.mrf.mxu2  ;;  %v7114_v5 = vadd.f32 %v7113_v28, %v6976_v56  ;;  %v6993_v28 = vpop.f32.mrf.mxu0 }
 0x649   : > { %v7676_v27 = vpop.f32.mrf.mxu3  ;;  %7865 = vmatmul.bf16.gmra.mxu0 %v15776_v9 }
 0x64a   : > { %v7115_v11 = vpop.f32.mrf.mxu1 }
 0x64b   : > { %v7293_v20 = vpop.f32.mrf.mxu2  ;;  %v7116_v35 = vadd.f32 %v7115_v11, %v6978_v30 }
 0x64c   : > { %v7336_v46 = vadd.f32 %v7293_v20, %v7114_v5 }
 0x64e   : > { %v15055_v57 = vadd.f32 %v7676_v27, %v7336_v46 }
 0x651   : > { %v7678_v51 = vpop.f32.mrf.mxu3 }
 0x652   : > { %v7118_v22 = vpop.f32.mrf.mxu1 }
 0x653   : > { %v7295_v25 = vpop.f32.mrf.mxu2  ;;  %v7119_v34 = vadd.f32 %v7118_v22, %v6981_v32 }
 0x654   : > { %v7337_v21 = vadd.f32 %v7295_v25, %v7116_v35  ;;  %v15778_v25 = vld [vmem:[#allocation13_spill] sm:$0xff] }
 0x656   : > { %v15057_v15 = vadd.f32 %v7678_v51, %v7337_v21 }
 0x659   : > { %v7681_v23 = vpop.f32.mrf.mxu3  ;;  %7870 = vmatmul.bf16.gmra.mxu0 %v15777_v10 }
 0x65a   : > { %v7120_v39 = vpop.f32.mrf.mxu1 }
 0x65b   : > { %v7298_v48 = vpop.f32.mrf.mxu2  ;;  %v7121_v5 = vadd.f32 %v7120_v39, %v6983_v60  ;;  %v10984_v60 = vld [vmem:[%s15449_s3 + $0x38] sm:$0xff] }
 0x65c   : > { %v7338_v56 = vadd.f32 %v7298_v48, %v7119_v34  ;;  %8322 = vmatpush.bf16.msrb.mxu2 %v10984_v60 }
 0x65e   : > { %v15060_v9 = vadd.f32 %v7681_v23, %v7338_v56 }
 0x661   : > { %v7683_v27 = vpop.f32.mrf.mxu3 }
 0x662   : > { %v7123_v46 = vpop.f32.mrf.mxu1 }
 0x663   : > { %v7300_v20 = vpop.f32.mrf.mxu2  ;;  %v7124_v21 = vadd.f32 %v7123_v46, %v6986_v3  ;;  %v10992_v3 = vld [vmem:[%s15449_s3 + $0x78] sm:$0xff] }
 0x664   : > { %v7339_v30 = vadd.f32 %v7300_v20, %v7121_v5  ;;  %8248 = vmatpush.bf16.msrb.mxu1 %v10992_v3 }
 0x666   : > { %v6996_v11 = vpop.f32.mrf.mxu0  ;;  %v15062_v35 = vadd.f32 %v7683_v27, %v7339_v30 }
 0x669   : > { %v7686_v51 = vpop.f32.mrf.mxu3  ;;  %7875 = vmatmul.bf16.gmra.mxu0 %v15778_v25 }
 0x66a   : > { %v7125_v22 = vpop.f32.mrf.mxu1 }
 0x66b   : > { %v7303_v10 = vpop.f32.mrf.mxu2  ;;  %v7126_v56 = vadd.f32 %v7125_v22, %v6988_v37 }
 0x66c   : > { %v7340_v32 = vadd.f32 %v7303_v10, %v7124_v21 }
 0x66e   : > { %v6998_v34 = vpop.f32.mrf.mxu0  ;;  %v15065_v48 = vadd.f32 %v7686_v51, %v7340_v32  ;;  %v15779_v51 = vld [vmem:[#allocation34_spill] sm:$0xff] }
 0x671   : > { %v7688_v23 = vpop.f32.mrf.mxu3 }
 0x672   : > { %v7128_v5 = vpop.f32.mrf.mxu1 }
 0x673   : > { %v7305_v39 = vpop.f32.mrf.mxu2  ;;  %v7129_v20 = vadd.f32 %v7128_v5, %v6991_v42  ;;  %v15081_v5 = vld [vmem:[%s15450_s4 + $0x1] ss:$0 sm:$0xff] }
 0x674   : > { %v7341_v27 = vadd.f32 %v7305_v39, %v7126_v56 }
 0x676   : > { %v7001_v30 = vpop.f32.mrf.mxu0  ;;  %v15070_v25 = vadd.f32 %v7688_v23, %v7341_v27 }
 0x679   : > { %v7691_v46 = vpop.f32.mrf.mxu3  ;;  %7880 = vmatmul.bf16.gmra.mxu0 %v15779_v51 }
 0x67a   : > { %v7130_v32 = vpop.f32.mrf.mxu1 }
 0x67b   : > { %v7308_v21 = vpop.f32.mrf.mxu2  ;;  %v7131_v60 = vadd.f32 %v7130_v32, %v6993_v28  ;;  %v15089_v28 = vld [vmem:[%s15451_s5 + $0x1] ss:$0 sm:$0xff] }
 0x67c   : > { %v7342_v10 = vadd.f32 %v7308_v21, %v7129_v20 }
 0x67e   : > { %v7003_v37 = vpop.f32.mrf.mxu0  ;;  %v15076_v22 = vadd.f32 %v7691_v46, %v7342_v10 }
 0x680   : > { %15780 = vst [vmem:[#allocation20_spill] sm:$0xff] %v15076_v22 }
 0x681   : > { %v7693_v56 = vpop.f32.mrf.mxu3 }
 0x682   : > { %v7133_v23 = vpop.f32.mrf.mxu1 }
 0x683   : > { %v7310_v42 = vpop.f32.mrf.mxu2  ;;  %v7134_v27 = vadd.f32 %v7133_v23, %v6996_v11 }
 0x684   : > { %v7343_v39 = vadd.f32 %v7310_v42, %v7131_v60 }
 0x686   : > { %v7846_v62 = vpop.f32.mrf.mxu0  ;;  %v15083_v51 = vadd.f32 %v7693_v56, %v7343_v39 }
 0x687   : > { %v7910_v20 = vadd.f32 %v7846_v62, %v14951_v29 }
 0x688   : > { %15781 = vst [vmem:[#allocation22_spill] sm:$0xff] %v15083_v51 }
 0x689   : > { %v7696_v3 = vpop.f32.mrf.mxu3  ;;  %v7936_v46 = vmul.f32 %v15081_v5, %v7910_v20  ;;  %7885 = vmatmul.bf16.gmra.mxu0 %v14574_v4 }
 0x68a   : > { %v7135_v32 = vpop.f32.mrf.mxu1 }
 0x68b   : > { %v7962_v11 = vadd.f32 %v15089_v28, %v7936_v46  ;;  %v7313_v21 = vpop.f32.mrf.mxu2  ;;  %v7136_v37 = vadd.f32 %v7135_v32, %v6998_v34  ;;  %v7086_v34 = vadd.f32 %v14971_v8, %v14865_v41  ;;  %v10983_v41 = vld [vmem:[%s15449_s3 + $0x30] sm:$0xff] }
 0x68c   : > { %v7344_v10 = vadd.f32 %v7313_v21, %v7134_v27  ;;  %v10991_v8 = vld [vmem:[%s15449_s3 + $0x70] sm:$0xff]  ;;  %8323 = vmatpush.bf16.msrb.mxu2 %v10983_v41 }
 0x68d   : > { %v7987_v60 = vmax.f32 %v7962_v11, 0.0  ;;  %v7325_v11 = vadd.f32 %v14989_v16, %v7086_v34  ;;  %8249 = vmatpush.bf16.msrb.mxu1 %v10991_v8  ;;  %v10990_v34 = vld [vmem:[%s15449_s3 + $0x68] sm:$0xff] }
 0x68e   : > { %v7848_v56 = vpop.f32.mrf.mxu0  ;;  %v15094_v42 = vadd.f32 %v7696_v3, %v7344_v10 }
 0x68f   : > { %8012 = vst [vmem:[#allocation4] sm:$0xff] %v7987_v60  ;;  %v7911_v29 = vadd.f32 %v7848_v56, %v14961_v43  ;;  %v7708_v56 = vadd.f32 %v14978_v49, %v7325_v11 }
 0x691   : > { %v7698_v62 = vpop.f32.mrf.mxu3  ;;  %v7937_v39 = vmul.f32 %v15081_v5, %v7911_v29  ;;  %8250 = vmatpush.bf16.msrb.mxu1 %v10990_v34 }
 0x692   : > { %v7138_v51 = vpop.f32.mrf.mxu1 }
 0x693   : > { %v7963_v23 = vadd.f32 %v15089_v28, %v7937_v39  ;;  %v7315_v20 = vpop.f32.mrf.mxu2  ;;  %v7139_v22 = vadd.f32 %v7138_v51, %v7001_v30 }
 0x694   : > { %v7345_v4 = vadd.f32 %v7315_v20, %v7136_v37 }
 0x695   : > { %v7988_v46 = vmax.f32 %v7963_v23, 0.0 }
 0x696   : > { %v7851_v27 = vpop.f32.mrf.mxu0  ;;  %v15099_v21 = vadd.f32 %v7698_v62, %v7345_v4  ;;  %v7091_v4 = vadd.f32 %v15001_v18, %v14918_v40 }
 0x697   : > { %8013 = vst [vmem:[#allocation4 + $0x8] sm:$0xff] %v7988_v46  ;;  %v7912_v3 = vadd.f32 %v7851_v27, %v14975_v33  ;;  %v10982_v27 = vld [vmem:[%s15449_s3 + $0x28] sm:$0xff] }
 0x698   : > { %8324 = vmatpush.bf16.msrb.mxu2 %v10982_v27 }
 0x699   : > { %v7701_v43 = vpop.f32.mrf.mxu3  ;;  %v7938_v10 = vmul.f32 %v15081_v5, %v7912_v3  ;;  %7890 = vmatmul.bf16.gmra.mxu0 %v14792_v7  ;;  %v7327_v3 = vadd.f32 %v15007_v19, %v7091_v4 }
 0x69a   : > { %v7140_v51 = vpop.f32.mrf.mxu1 }
 0x69b   : > { %v7964_v32 = vadd.f32 %v15089_v28, %v7938_v10  ;;  %v7318_v60 = vpop.f32.mrf.mxu2  ;;  %v7096_v51 = vadd.f32 %v15015_v59, %v14941_v1  ;;  %v10980_v59 = vld [vmem:[%s15449_s3 + $0x18] sm:$0xff] }
 0x69c   : > { %v7346_v30 = vadd.f32 %v7318_v60, %v7139_v22  ;;  %v11000_v22 = vld [vmem:[%s15449_s3 + $0xb8] sm:$0xff] }
 0x69d   : > { %v7989_v37 = vmax.f32 %v7964_v32, 0.0  ;;  %8426 = vmatpush.bf16.msrb.mxu3 %v11000_v22 }
 0x69e   : > { %v7853_v33 = vpop.f32.mrf.mxu0  ;;  %v15115_v16 = vadd.f32 %v7701_v43, %v7346_v30 }
 0x69f   : > { %8014 = vst [vmem:[#allocation4 + $0x10] sm:$0xff] %v7989_v37  ;;  %v7913_v7 = vadd.f32 %v7853_v33, %v7708_v56  ;;  %v7329_v37 = vadd.f32 %v15023_v63, %v7096_v51  ;;  %v10979_v63 = vld [vmem:[%s15449_s3 + $0x10] sm:$0xff] }
 0x6a1   : > { %v7703_v49 = vpop.f32.mrf.mxu3  ;;  %v7939_v29 = vmul.f32 %v15081_v5, %v7913_v7  ;;  %v7712_v33 = vadd.f32 %v15021_v24, %v7329_v37  ;;  %v10999_v24 = vld [vmem:[%s15449_s3 + $0xb0] sm:$0xff] }
 0x6a2   : > { %8427 = vmatpush.bf16.msrb.mxu3 %v10999_v24 }
 0x6a3   : > { %v7965_v62 = vadd.f32 %v15089_v28, %v7939_v29  ;;  %v7320_v39 = vpop.f32.mrf.mxu2  ;;  %v10978_v29 = vld [vmem:[%s15449_s3 + $0x8] sm:$0xff] }
 0x6a5   : > { %v7990_v23 = vmax.f32 %v7965_v62, 0.0  ;;  %v7101_v62 = vadd.f32 %v15027_v31, %v14965_v17  ;;  %v10977_v17 = vld [vmem:[%s15449_s3] sm:$0xff] }
 0x6a6   : > { %v7856_v20 = vpop.f32.mrf.mxu0 }
 0x6a7   : > { %8015 = vst [vmem:[#allocation4 + $0x18] sm:$0xff] %v7990_v23  ;;  %v7914_v46 = vadd.f32 %v7856_v20, %v15003_v12  ;;  %v7710_v12 = vadd.f32 %v15005_v47, %v7327_v3  ;;  %v10981_v47 = vld [vmem:[%s15449_s3 + $0x20] sm:$0xff]  ;;  %v7331_v20 = vadd.f32 %v15033_v58, %v7101_v62  ;;  %v10998_v58 = vld [vmem:[%s15449_s3 + $0xa8] sm:$0xff]  ;;  %v7111_v62 = vadd.f32 %v15046_v61, %v15019_v36  ;;  %v10988_v36 = vld [vmem:[%s15449_s3 + $0x58] sm:$0xff] }
 0x6a8   : > { %8325 = vmatpush.bf16.msrb.mxu2 %v10981_v47  ;;  %v10989_v23 = vld [vmem:[%s15449_s3 + $0x60] sm:$0xff]  ;;  %8428 = vmatpush.bf16.msrb.mxu3 %v10998_v58  ;;  %v10987_v58 = vld [vmem:[%s15449_s3 + $0x50] sm:$0xff] }
 0x6a9   : > { %v7940_v43 = vmul.f32 %v15081_v5, %v7914_v46  ;;  %7895 = vmatmul.bf16.gmra.mxu0 %v14912_v6  ;;  %v15782_v46 = vrot.slane %v14973_v53, 2  ;;  %8251 = vmatpush.bf16.msrb.mxu1 %v10989_v23  ;;  %v7714_v27 = vadd.f32 %v15031_v14, %v7331_v20  ;;  %v7335_v20 = vadd.f32 %v15052_v38, %v7111_v62  ;;  %v10997_v38 = vld [vmem:[%s15449_s3 + $0xa0] sm:$0xff] }
 0x6ab   : > { %v7966_v40 = vadd.f32 %v15089_v28, %v7940_v43 }
 0x6ac   : > { %8326 = vmatpush.bf16.msrb.mxu2 %v10980_v59  ;;  %8429 = vmatpush.bf16.msrb.mxu3 %v10997_v38 }
 0x6ad   : > { %v7991_v18 = vmax.f32 %v7966_v40, 0.0  ;;  %8252 = vmatpush.bf16.msrb.mxu1 %v10988_v36 }
 0x6ae   : > { %v7858_v11 = vpop.f32.mrf.mxu0 }
 0x6af   : > { %8016 = vst [vmem:[#allocation4 + $0x20] sm:$0xff] %v7991_v18  ;;  %v7915_v10 = vadd.f32 %v7858_v11, %v7710_v12 }
 0x6b0   : > { %8327 = vmatpush.bf16.msrb.mxu2 %v10979_v63 }
 0x6b1   : > { %v7941_v32 = vmul.f32 %v15081_v5, %v7915_v10  ;;  %v7106_v10 = vadd.f32 %v15037_v44, %v14999_v2  ;;  %8253 = vmatpush.bf16.msrb.mxu1 %v10987_v58 }
 0x6b3   : > { %v7967_v60 = vadd.f32 %v15089_v28, %v7941_v32  ;;  %v7333_v32 = vadd.f32 %v15043_v55, %v7106_v10 }
 0x6b4   : > { %8328 = vmatpush.bf16.msrb.mxu2 %v10978_v29 }
 0x6b5   : > { %v7992_v30 = vmax.f32 %v7967_v60, 0.0 }
 0x6b6   : > { %v7861_v19 = vpop.f32.mrf.mxu0  ;;  %v8037_v18 = vld [vmem:[#allocation4] ss:$5 sm:$0xff]  ;;  %v8047_v12 = vld [vmem:[#allocation4 + $0x1] ss:$5 sm:$0xff] }
 0x6b7   : > { %8017 = vst [vmem:[#allocation4 + $0x28] sm:$0xff] %v7992_v30  ;;  %v7916_v6 = vadd.f32 %v7861_v19, %v15017_v26  ;;  %v8056_v60 = vmax.f32 %v8037_v18, %v8047_v12  ;;  %v8062_v51 = vld [vmem:[#allocation4 + $0x2] ss:$5 sm:$0xff]  ;;  %v8077_v44 = vld [vmem:[#allocation4 + $0x3] ss:$5 sm:$0xff] }
 0x6b8   : > { %8329 = vmatpush.bf16.msrb.mxu2 %v10977_v17 }
 0x6b9   : > { %v7942_v56 = vmul.f32 %v15081_v5, %v7916_v6  ;;  %7900 = vmatmul.bf16.gmra.mxu0 %v14985_v50  ;;  %v8071_v6 = vmax.f32 %v8056_v60, %v8062_v51 }
 0x6bb   : > { %v7968_v41 = vadd.f32 %v15089_v28, %v7942_v56  ;;  %v7716_v56 = vadd.f32 %v15041_v45, %v7333_v32 }
 0x6bd   : > { %v7993_v8 = vmax.f32 %v7968_v41, 0.0 }
 0x6be   : > { %v7863_v1 = vpop.f32.mrf.mxu0 }
 0x6bf   : > { %8018 = vst [vmem:[#allocation4 + $0x30] sm:$0xff] %v7993_v8  ;;  %v7917_v26 = vadd.f32 %v7863_v1, %v7712_v33  ;;  %v8086_v1 = vmax.f32 %v8071_v6, %v8077_v44 }
 0x6c1   : > { %v7943_v50 = vmul.f32 %v15081_v5, %v7917_v26 }
 0x6c3   : > { %v7969_v7 = vadd.f32 %v15089_v28, %v7943_v50 }
 0x6c5   : > { %v7994_v22 = vmax.f32 %v7969_v7, 0.0  ;;  %v8092_v7 = vld [vmem:[#allocation4 + $0x4] ss:$5 sm:$0xff] }
 0x6c6   : > { %v7866_v49 = vpop.f32.mrf.mxu0  ;;  %v8101_v24 = vmax.f32 %v8086_v1, %v8092_v7 }
 0x6c7   : > { %8019 = vst [vmem:[#allocation4 + $0x38] sm:$0xff] %v7994_v22  ;;  %v7918_v39 = vadd.f32 %v7866_v49, %v15029_v52 }
 0x6c9   : > { %v7944_v4 = vmul.f32 %v15081_v5, %v7918_v39  ;;  %7905 = vmatmul.bf16.gmra.mxu0 %v15782_v46 }
 0x6cb   : > { %v7970_v31 = vadd.f32 %v15089_v28, %v7944_v4 }
 0x6cd   : > { %v7995_v52 = vmax.f32 %v7970_v31, 0.0  ;;  %v7718_v31 = vadd.f32 %v15050_v13, %v7335_v20 }
 0x6ce   : > { %v7868_v34 = vpop.f32.mrf.mxu0 }
 0x6cf   : > { %8020 = vst [vmem:[#allocation4 + $0x40] sm:$0xff] %v7995_v52  ;;  %v7919_v3 = vadd.f32 %v7868_v34, %v7714_v27 }
 0x6d1   : > { %v7945_v53 = vmul.f32 %v15081_v5, %v7919_v3 }
 0x6d3   : > { %v7971_v43 = vadd.f32 %v15089_v28, %v7945_v53 }
 0x6d5   : > { %v7996_v40 = vmax.f32 %v7971_v43, 0.0 }
 0x6d6   : > { %v7871_v11 = vpop.f32.mrf.mxu0 }
 0x6d7   : > { %8021 = vst [vmem:[#allocation4 + $0x48] sm:$0xff] %v7996_v40  ;;  %v7920_v14 = vadd.f32 %v7871_v11, %v15039_v0 }
 0x6d9   : > { %v7946_v30 = vmul.f32 %v15081_v5, %v7920_v14 }
 0x6db   : > { %v7972_v19 = vadd.f32 %v15089_v28, %v7946_v30 }
 0x6dd   : > { %v7997_v37 = vmax.f32 %v7972_v19, 0.0 }
 0x6de   : > { %v8039_v47 = vld [vmem:[#allocation4 + $0x28] ss:$5 sm:$0xff]  ;;  %v8049_v41 = vld [vmem:[#allocation4 + $0x29] ss:$5 sm:$0xff]  ;;  %v7873_v8 = vpop.f32.mrf.mxu0 }
 0x6df   : > { %v8057_v33 = vmax.f32 %v8039_v47, %v8049_v41  ;;  %8022 = vst [vmem:[#allocation4 + $0x50] sm:$0xff] %v7997_v37  ;;  %v7921_v2 = vadd.f32 %v7873_v8, %v7716_v56  ;;  %v8064_v0 = vld [vmem:[#allocation4 + $0x2a] ss:$5 sm:$0xff]  ;;  %v8079_v26 = vld [vmem:[#allocation4 + $0x2b] ss:$5 sm:$0xff] }
 0x6e0   : > { %v8094_v22 = vld [vmem:[#allocation4 + $0x2c] ss:$5 sm:$0xff] }
 0x6e1   : > { %v8072_v55 = vmax.f32 %v8057_v33, %v8064_v0  ;;  %v7947_v59 = vmul.f32 %v15081_v5, %v7921_v2  ;;  %v10996_v8 = vld [vmem:[%s15449_s3 + $0x98] sm:$0xff]  ;;  %v10986_v33 = vld [vmem:[%s15449_s3 + $0x48] sm:$0xff] }
 0x6e2   : > { %8430 = vmatpush.bf16.msrb.mxu3 %v10996_v8  ;;  %8254 = vmatpush.bf16.msrb.mxu1 %v10986_v33  ;;  %v11007_v8 = vld [vmem:[%s15449_s3 + $0xf0] sm:$0xff] }
 0x6e3   : > { %v8087_v50 = vmax.f32 %v8072_v55, %v8079_v26  ;;  %v7973_v63 = vadd.f32 %v15089_v28, %v7947_v59  ;;  %v10994_v55 = vld [vmem:[%s15449_s3 + $0x88] sm:$0xff] }
 0x6e5   : > { %v8102_v45 = vmax.f32 %v8087_v50, %v8094_v22  ;;  %v7998_v49 = vmax.f32 %v7973_v63, 0.0  ;;  %v10993_v22 = vld [vmem:[%s15449_s3 + $0x80] sm:$0xff] }
 0x6e6   : > { %v7876_v29 = vpop.f32.mrf.mxu0 }
 0x6e7   : > { %8023 = vst [vmem:[#allocation4 + $0x58] sm:$0xff] %v7998_v49  ;;  %v7922_v39 = vadd.f32 %v7876_v29, %v15048_v54  ;;  %v15195_v23 = vpack.c.bf16 %v8102_v45, %v8101_v24  ;;  %v10985_v45 = vld [vmem:[%s15449_s3 + $0x40] sm:$0xff] }
 0x6e8   : > { %8255 = vmatpush.bf16.msrb.mxu1 %v10985_v45 }
 0x6e9   : > { %v7948_v4 = vmul.f32 %v15081_v5, %v7922_v39  ;;  %11117 = vst [vmem:[#allocation5] sm:$0xff] %v15195_v23   ;;  %8330 = vmatmul.bf16.vlgmr.msrb.gmra.mxu2 %v15195_v23 }
 0x6eb   : > { %v7974_v46 = vadd.f32 %v15089_v28, %v7948_v4 }
 0x6ed   : > { %v7999_v17 = vmax.f32 %v7974_v46, 0.0 }
 0x6ee   : > { %v7878_v61 = vpop.f32.mrf.mxu0 }
 0x6ef   : > { %8024 = vst [vmem:[#allocation4 + $0x60] sm:$0xff] %v7999_v17  ;;  %v7923_v54 = vadd.f32 %v7878_v61, %v7718_v31  ;;  %v15784_v61 = vld [vmem:[#allocation22_spill] sm:$0xff] }
 0x6f1   : > { %v7949_v52 = vmul.f32 %v15081_v5, %v7923_v54 }
 0x6f3   : > { %v7975_v27 = vadd.f32 %v15089_v28, %v7949_v52 }
 0x6f5   : > { %v8000_v34 = vmax.f32 %v7975_v27, 0.0 }
 0x6f6   : > { %v7881_v3 = vpop.f32.mrf.mxu0 }
 0x6f7   : > { %8025 = vst [vmem:[#allocation4 + $0x68] sm:$0xff] %v8000_v34  ;;  %v7924_v13 = vadd.f32 %v7881_v3, %v15055_v57 }
 0x6f9   : > { %v7950_v53 = vmul.f32 %v15081_v5, %v7924_v13 }
 0x6fb   : > { %v7976_v43 = vadd.f32 %v15089_v28, %v7950_v53 }
 0x6fd   : > { %v8001_v40 = vmax.f32 %v7976_v43, 0.0  ;;  %v8345_v43 = vld [vmem:[#allocation5] sm:$0xe] }
 0x6fe   : > { %v7883_v18 = vpop.f32.mrf.mxu0 }
 0x6ff   : > { %8026 = vst [vmem:[#allocation4 + $0x70] sm:$0xff] %v8001_v40  ;;  %v7925_v12 = vadd.f32 %v7883_v18, %v15057_v15 }
 0x701   : > { %v7951_v11 = vmul.f32 %v15081_v5, %v7925_v12 }
 0x703   : > { %v7977_v10 = vadd.f32 %v15089_v28, %v7951_v11 }
 0x705   : > { %v8002_v14 = vmax.f32 %v7977_v10, 0.0 }
 0x706   : > { %v7886_v57 = vpop.f32.mrf.mxu0  ;;  %v8041_v50 = vld [vmem:[#allocation4 + $0x50] ss:$5 sm:$0xff]  ;;  %v8051_v63 = vld [vmem:[#allocation4 + $0x51] ss:$5 sm:$0xff] }
 0x707   : > { %8027 = vst [vmem:[#allocation4 + $0x78] sm:$0xff] %v8002_v14  ;;  %v7926_v32 = vadd.f32 %v7886_v57, %v15060_v9  ;;  %v8058_v49 = vmax.f32 %v8041_v50, %v8051_v63  ;;  %v8066_v39 = vld [vmem:[#allocation4 + $0x52] ss:$5 sm:$0xff]  ;;  %v8081_v38 = vld [vmem:[#allocation4 + $0x53] ss:$5 sm:$0xff]  ;;  %v8366_v57 = vunpack.c.l.b16 %v8345_v43 }
 0x708   : > { %v8096_v40 = vld [vmem:[#allocation4 + $0x54] ss:$5 sm:$0xff] }
 0x709   : > { %v7952_v60 = vmul.f32 %v15081_v5, %v7926_v32  ;;  %v8073_v20 = vmax.f32 %v8058_v49, %v8066_v39  ;;  %v11014_v50 = vld [vmem:[%s15449_s3 + $0x128] sm:$0xff] }
 0x70b   : > { %v7978_v30 = vadd.f32 %v15089_v28, %v7952_v60  ;;  %v8088_v27 = vmax.f32 %v8073_v20, %v8081_v38 }
 0x70d   : > { %v8003_v19 = vmax.f32 %v7978_v30, 0.0  ;;  %v8103_v12 = vmax.f32 %v8088_v27, %v8096_v40  ;;  %v11126_v30 = vunpack.c.h.b16 %v15195_v23  ;;  %v11009_v40 = vld [vmem:[%s15449_s3 + $0x100] sm:$0xff] }
 0x70e   : > { %v7888_v51 = vpop.f32.mrf.mxu0 }
 0x70f   : > { %8028 = vst [vmem:[#allocation4 + $0x80] sm:$0xff] %v8003_v19  ;;  %v7927_v6 = vadd.f32 %v7888_v51, %v15062_v35  ;;  %v8368_v51 = vpack.c.b16 %v11126_v30, %v8366_v57 }
 0x711   : > { %v7953_v15 = vmul.f32 %v15081_v5, %v7927_v6  ;;  %v8472_v33 = vshrl.u32 %v8368_v51, 16 }
 0x713   : > { %v7979_v37 = vadd.f32 %v15089_v28, %v7953_v15  ;;  %v8177_v15 = vshll.u32 %v15195_v23, 16  ;;  %v8474_v63 = vrot.slane %v8472_v33, 1 }
 0x715   : > { %v8004_v56 = vmax.f32 %v7979_v37, 0.0 }
 0x716   : > { %v7891_v47 = vpop.f32.mrf.mxu0 }
 0x717   : > { %8029 = vst [vmem:[#allocation4 + $0x88] sm:$0xff] %v8004_v56  ;;  %v7928_v41 = vadd.f32 %v7891_v47, %v15065_v48  ;;  %v10995_v48 = vld [vmem:[%s15449_s3 + $0x90] sm:$0xff]  ;;  %v11016_v56 = vld [vmem:[%s15449_s3 + $0x138] sm:$0xff] }
 0x718   : > { %8431 = vmatpush.bf16.msrb.mxu3 %v10995_v48  ;;  %8652 = vmatpush.bf16.msra.mxu2 %v11016_v56  ;;  %v8175_v48 = vshrl.u32 %v15195_v23, 16 }
 0x719   : > { %v7954_v9 = vmul.f32 %v15081_v5, %v7928_v41 }
 0x71b   : > { %v7980_v35 = vadd.f32 %v15089_v28, %v7954_v9  ;;  %v11015_v9 = vld [vmem:[%s15449_s3 + $0x130] sm:$0xff] }
 0x71c   : > { %8432 = vmatpush.bf16.msrb.mxu3 %v10994_v55  ;;  %8653 = vmatpush.bf16.msra.mxu2 %v11015_v9 }
 0x71d   : > { %v8005_v2 = vmax.f32 %v7980_v35, 0.0  ;;  %v8475_v35 = vshll.u32 %v8368_v51, 16 }
 0x71e   : > { %v7893_v44 = vpop.f32.mrf.mxu0 }
 0x71f   : > { %8030 = vst [vmem:[#allocation4 + $0x90] sm:$0xff] %v8005_v2  ;;  %v7929_v0 = vadd.f32 %v7893_v44, %v15070_v25  ;;  %v15783_v25 = vld [vmem:[#allocation20_spill] sm:$0xff]  ;;  %v8179_v2 = vrot.slane %v8177_v15, 1 }
 0x720   : > { %8433 = vmatpush.bf16.msrb.mxu3 %v10993_v22  ;;  %8654 = vmatpush.bf16.msra.mxu2 %v11014_v50 }
 0x721   : > { %v7955_v1 = vmul.f32 %v15081_v5, %v7929_v0 }
 0x723   : > { %v7981_v59 = vadd.f32 %v15089_v28, %v7955_v1 }
 0x725   : > { %v8006_v26 = vmax.f32 %v7981_v59, 0.0 }
 0x726   : > { %v7896_v7 = vpop.f32.mrf.mxu0 }
 0x727   : > { %8031 = vst [vmem:[#allocation4 + $0x98] sm:$0xff] %v8006_v26  ;;  %v7930_v24 = vadd.f32 %v7896_v7, %v15783_v25  ;;  %v8477_v7 = vrot.slane %v8475_v35, 2  ;;  %v8180_v25 = vor.u32 %v8179_v2, %v8175_v48  ;;  %v8571_v2 = vld [vmem:[#allocation5] sm:$0xc] }
 0x729   : > { %v7956_v29 = vmul.f32 %v15081_v5, %v7930_v24 }
 0x72b   : > { %v7982_v62 = vadd.f32 %v15089_v28, %v7956_v29 }
 0x72d   : > { %v8007_v4 = vmax.f32 %v7982_v62, 0.0 }
 0x72e   : > { %v8043_v46 = vld [vmem:[#allocation4 + $0x78] ss:$5 sm:$0xff]  ;;  %v8053_v17 = vld [vmem:[#allocation4 + $0x79] ss:$5 sm:$0xff]  ;;  %v7898_v31 = vpop.f32.mrf.mxu0 }
 0x72f   : > { %v8059_v36 = vmax.f32 %v8043_v46, %v8053_v17  ;;  %8032 = vst [vmem:[#allocation4 + $0xa0] sm:$0xff] %v8007_v4  ;;  %v7931_v54 = vadd.f32 %v7898_v31, %v15784_v61  ;;  %v8068_v52 = vld [vmem:[#allocation4 + $0x7a] ss:$5 sm:$0xff]  ;;  %v8083_v13 = vld [vmem:[#allocation4 + $0x7b] ss:$5 sm:$0xff]  ;;  %v8478_v46 = vor.u32 %v8477_v7, %v8474_v63 }
 0x730   : > { %v8098_v18 = vld [vmem:[#allocation4 + $0x7c] ss:$5 sm:$0xff] }
 0x731   : > { %v8074_v34 = vmax.f32 %v8059_v36, %v8068_v52  ;;  %v7957_v3 = vmul.f32 %v15081_v5, %v7931_v54  ;;  %v11013_v4 = vld [vmem:[%s15449_s3 + $0x120] sm:$0xff]  ;;  %v11012_v54 = vld [vmem:[%s15449_s3 + $0x118] sm:$0xff] }
 0x732   : > { %8655 = vmatpush.bf16.msra.mxu2 %v11013_v4 }
 0x733   : > { %v8089_v58 = vmax.f32 %v8074_v34, %v8083_v13  ;;  %v7983_v53 = vadd.f32 %v15089_v28, %v7957_v3  ;;  %v11010_v3 = vld [vmem:[%s15449_s3 + $0x108] sm:$0xff]  ;;  %v11004_v13 = vld [vmem:[%s15449_s3 + $0xd8] sm:$0xff] }
 0x735   : > { %v8104_v11 = vmax.f32 %v8089_v58, %v8098_v18  ;;  %v8008_v10 = vmax.f32 %v7983_v53, 0.0 }
 0x736   : > { %v7901_v14 = vpop.f32.mrf.mxu0  ;;  %8656 = vmatpush.bf16.msra.mxu2 %v11012_v54 }
 0x737   : > { %v11121_v32 = vpack.c.bf16 %v8104_v11, %v8103_v12  ;;  %8033 = vst [vmem:[#allocation4 + $0xa8] sm:$0xff] %v8008_v10  ;;  %v7932_v60 = vadd.f32 %v7901_v14, %v15094_v42  ;;  %v11008_v42 = vld [vmem:[%s15449_s3 + $0xf8] sm:$0xff] }
 0x738   : > { %8543 = vmatpush.bf16.msra.mxu1 %v11008_v42  ;;  %v8118_v14 = vld [vmem:[#allocation5 + $0x10] sm:$0xf] }
 0x739   : > { %11144 = vst [vmem:[#allocation5 + $0x8] sm:$0xff] %v11121_v32   ;;  %v7958_v19 = vmul.f32 %v15081_v5, %v7932_v60  ;;  %v11003_v60 = vld [vmem:[%s15449_s3 + $0xd0] sm:$0xff] }
 0x73b   : > { %v7984_v6 = vadd.f32 %v15089_v28, %v7958_v19  ;;  %v11002_v19 = vld [vmem:[%s15449_s3 + $0xc8] sm:$0xff] }
 0x73c   : > { %8544 = vmatpush.bf16.msra.mxu1 %v11007_v8 }
 0x73d   : > { %v8009_v37 = vmax.f32 %v7984_v6, 0.0 }
 0x73e   : > { %v7903_v47 = vpop.f32.mrf.mxu0 }
 0x73f   : > { %8034 = vst [vmem:[#allocation4 + $0xb0] sm:$0xff] %v8009_v37  ;;  %v7933_v41 = vadd.f32 %v7903_v47, %v15099_v21  ;;  %v8370_v21 = vrot.slane %v8368_v51, 1  ;;  %v11001_v51 = vld [vmem:[%s15449_s3 + $0xc0] sm:$0xff] }
 0x740   : > { %v15276_v44 = vld [vmem:[#allocation5 + $0x8] sm:$0xff] }
 0x741   : > { %v7959_v0 = vmul.f32 %v15081_v5, %v7933_v41  ;;  %8335 = vmatmul.bf16.gmra.mxu2 %v15276_v44  ;;  %v8371_v1 = vrot.slane %v15276_v44, 1  ;;  %v8182_v55 = vshll.u32 %v15276_v44, 16  ;;  %v8186_v59 = vshrl.u32 %v15276_v44, 16 }
 0x743   : > { %v7985_v26 = vadd.f32 %v15089_v28, %v7959_v0  ;;  %v8372_v22 = vsel %vm968_vm2, %v8370_v21, %v8371_v1  ;;  %v15291_v24 = vrot.slane %v8182_v55, 1  ;;  %v8479_v45 = vrot.slane %v8186_v59, 1 }
 0x744   : > { %8434 = vmatmul.bf16.vlgmr.msrb.gmra.mxu3 %v8372_v22  ;;  %v8480_v29 = vrot.slane %v8182_v55, 2  ;;  %v8592_v0 = vunpack.c.l.b16 %v8571_v2  ;;  %v8597_v55 = vrot.slane %v15276_v44, 2 }
 0x745   : > { %v8010_v49 = vmax.f32 %v7985_v26, 0.0  ;;  %v8185_v39 = vsel %vm508_vm0, %v8180_v25, %v15291_v24  ;;  %v8188_v33 = vor.u32 %v8186_v59, %v15291_v24 }
 0x746   : > { %v7906_v62 = vpop.f32.mrf.mxu0  ;;  %8256 = vmatmul.bf16.vlgmr.msrb.gmra.mxu1 %v8185_v39  ;;  %v15301_v17 = vor.u32 %v8480_v29, %v8479_v45  ;;  %v8594_v21 = vpack.c.b16 %v11126_v30, %v8592_v0 }
 0x747   : > { %8035 = vst [vmem:[#allocation4 + $0xb8] sm:$0xff] %v8010_v49  ;;  %v7934_v20 = vadd.f32 %v7906_v62, %v15115_v16  ;;  %v11006_v16 = vld [vmem:[%s15449_s3 + $0xe8] sm:$0xff] }
 0x748   : > { %v15306_v36 = vsel %vm1208_vm1, %v8478_v46, %v15301_v17  ;;  %8545 = vmatpush.bf16.msra.mxu1 %v11006_v16  ;;  %v8596_v26 = vrot.slane %v8594_v21, 2 }
 0x749   : > { %v7960_v31 = vmul.f32 %v15081_v5, %v7934_v20  ;;  %v11011_v5 = vld [vmem:[%s15449_s3 + $0x110] sm:$0xff] }
 0x74a   : > { %8657 = vmatpush.bf16.msra.mxu2 %v11011_v5  ;;  %v8598_v50 = vsel %vm1492_vm3, %v8596_v26, %v8597_v55  ;;  %v11020_v26 = vld [vmem:[%s15452_s6 + $0x18] sm:$0xff] }
 0x74b   : > { %v7986_v61 = vadd.f32 %v15089_v28, %v7960_v31  ;;  %v11005_v28 = vld [vmem:[%s15449_s3 + $0xe0] sm:$0xff] }
 0x74c   : > { %8546 = vmatpush.bf16.msra.mxu1 %v11005_v28 }
 0x74d   : > { %v8011_v38 = vmax.f32 %v7986_v61, 0.0 }
 0x74e   : > { %v7908_v52 = vpop.f32.mrf.mxu0  ;;  %v8045_v27 = vld [vmem:[#allocation4 + $0xa0] ss:$5 sm:$0x7f]  ;;  %v8055_v34 = vld [vmem:[#allocation4 + $0xa1] ss:$5 sm:$0x7f]  ;;  %8658 = vmatpush.bf16.msra.mxu2 %v11010_v3 }
 0x74f   : > { %8036 = vst [vmem:[#allocation4 + $0xc0] sm:$0x3f] %v8011_v38  ;;  %v8060_v58 = vmax.f32 %v8045_v27, %v8055_v34 }
 0x750   : > { %8547 = vmatpush.bf16.msra.mxu1 %v11004_v13 }
 0x752   : > { %8659 = vmatpush.bf16.msra.mxu2 %v11009_v40 }
 0x754   : > { %8548 = vmatpush.bf16.msra.mxu1 %v11003_v60 }
 0x756   : > { %v8070_v53 = vld [vmem:[#allocation4 + $0xa2] ss:$5 sm:$0x7f]  ;;  %v8085_v18 = vld [vmem:[#allocation4 + $0xa3] ss:$5 sm:$0x7f] }
 0x757   : > { %v8075_v43 = vmax.f32 %v8060_v58, %v8070_v53  ;;  %v8100_v11 = vld [vmem:[#allocation4 + $0xa4] ss:$5 sm:$0x7f] }
 0x758   : > { %8549 = vmatpush.bf16.msra.mxu1 %v11002_v19  ;;  %v11023_v19 = vld [vmem:[%s15452_s6 + $0x30] sm:$0xff] }
 0x759   : > { %v8090_v12 = vmax.f32 %v8075_v43, %v8085_v18 }
 0x75b   : > { %v8105_v10 = vmax.f32 %v8090_v12, %v8100_v11  ;;  %v11213_v12 = vld [vmem:[%s15450_s4 + $0x2] ss:$0 sm:$0xff] }
 0x75c   : > { %8550 = vmatpush.bf16.msra.mxu1 %v11001_v51 }
 0x75d   : > { %v8110_v57 = vpack.c.bf16 %v8105_v10, %v8105_v10 }
 0x75f   : > { %v8119_v32 = vsel %vm8117_vm6, %v8110_v57, %v8118_v14  ;;  %v11214_v14 = vld [vmem:[%s15451_s5 + $0x2] ss:$0 sm:$0xff]  ;;  %v11024_v57 = vld [vmem:[%s15452_s6 + $0x38] sm:$0xff] }
 0x760   : > { %8120 = vst [vmem:[#allocation5 + $0x10] sm:$0xf] %v8119_v32  ;;  %8785 = vmatpush.bf16.msra.mxu3 %v11024_v57 }
 0x764   : > { %8786 = vmatpush.bf16.msra.mxu3 %v11023_v19  ;;  %v11025_v19 = vld [vmem:[%s15454_s8] sm:$0xff] }
 0x767   : > { %v8127_v6 = vld [vmem:[#allocation5 + $0x10] sm:$0x3] }
 0x768   : > { %v8346_v15 = vld [vmem:[#allocation5 + $0x10] sm:$0x7]  ;;  %v8170_v37 = vunpack.c.l.b16 %v8127_v6 }
 0x769   : > { %v8367_v56 = vunpack.c.l.b16 %v8346_v15 }
 0x76a   : > { %v8173_v42 = vpack.c.b16 %v8170_v37, %v8170_v37 }
 0x76b   : > { %v8369_v47 = vpack.c.b16 %v8367_v56, %v8367_v56 }
 0x76c   : > { %8340 = vmatmul.bf16.gmra.mxu2 %v8173_v42  ;;  %v8190_v9 = vshll.u32 %v8173_v42, 16  ;;  %v8194_v63 = vshrl.u32 %v8173_v42, 16  ;;  %v8331_v62 = vpop.f32.mrf.mxu2 }
 0x76d   : > { %v8373_v41 = vrot.slane %v8369_v47, 1  ;;  %v8484_v23 = vshrl.u32 %v8369_v47, 16  ;;  %v8487_v30 = vshll.u32 %v8369_v47, 16 }
 0x76e   : > { %v8192_v35 = vrot.slane %v8190_v9, 1 }
 0x76f   : > { %v8374_v8 = vsel %vm968_vm2, %v8371_v1, %v8373_v41  ;;  %v8572_v1 = vld [vmem:[#allocation5 + $0x10] sm:$0xf]  ;;  %v8486_v44 = vrot.slane %v8484_v23, 1  ;;  %v8489_v45 = vrot.slane %v8487_v30, 2 }
 0x770   : > { %8439 = vmatmul.bf16.gmra.mxu3 %v8374_v8  ;;  %v8193_v48 = vsel %vm508_vm0, %v8188_v33, %v8192_v35  ;;  %v8196_v59 = vor.u32 %v8194_v63, %v8192_v35  ;;  %v8593_v7 = vunpack.c.l.b16 %v8572_v1  ;;  %v11021_v33 = vld [vmem:[%s15452_s6 + $0x20] sm:$0xff] }
 0x771   : > { %8261 = vmatmul.bf16.gmra.mxu1 %v8193_v48  ;;  %v8490_v49 = vor.u32 %v8489_v45, %v8486_v44  ;;  %v11018_v44 = vld [vmem:[%s15452_s6 + $0x8] sm:$0xff] }
 0x772   : > { %v8595_v22 = vpack.c.b16 %v8593_v7, %v8593_v7 }
 0x773   : > { %v8491_v29 = vsel %vm1208_vm1, %v15301_v17, %v8490_v49 }
 0x774   : > { %v8599_v25 = vrot.slane %v8595_v22, 2  ;;  %v8333_v39 = vpop.f32.mrf.mxu2 }
 0x776   : > { %v8600_v24 = vsel %vm1492_vm3, %v8597_v55, %v8599_v25 }
 0x77c   : > { %8660 = vmatmul.bf16.vlgmr.msra.gmra.mxu2 %v8598_v50 }
 0x780   : > { %8444 = vmatmul.bf16.gmra.mxu3 %v8373_v41  ;;  %v11022_v41 = vld [vmem:[%s15452_s6 + $0x28] sm:$0xff] }
 0x781   : > { %8266 = vmatmul.bf16.gmra.mxu1 %v8196_v59  ;;  %8787 = vmatpush.bf16.msra.mxu3 %v11022_v41  ;;  %v11019_v59 = vld [vmem:[%s15452_s6 + $0x10] sm:$0xff] }
 0x785   : > { %8788 = vmatpush.bf16.msra.mxu3 %v11021_v33 }
 0x789   : > { %8789 = vmatpush.bf16.msra.mxu3 %v11020_v26 }
 0x78c   : > { %8665 = vmatmul.bf16.gmra.mxu2 %v8600_v24 }
 0x78d   : > { %8790 = vmatpush.bf16.msra.mxu3 %v11019_v59 }
 0x791   : > { %8551 = vmatmul.bf16.vlgmr.msra.gmra.mxu1 %v15306_v36  ;;  %8791 = vmatpush.bf16.msra.mxu3 %v11018_v44 }
 0x79c   : > { %8670 = vmatmul.bf16.gmra.mxu2 %v8599_v25 }
 0x7a1   : > { %8556 = vmatmul.bf16.gmra.mxu1 %v8491_v29 }
 0x7b1   : > { %8561 = vmatmul.bf16.gmra.mxu1 %v8490_v49 }
 0x7c3   : > { %v8257_v20 = vpop.f32.mrf.mxu1 }
 0x7c4   : > { %v8336_v4 = vpop.f32.mrf.mxu2  ;;  %v8332_v53 = vadd.f32 %v8331_v62, %v8257_v20  ;;  %v11017_v62 = vld [vmem:[%s15452_s6] sm:$0xff] }
 0x7c5   : > { %8792 = vmatpush.bf16.msra.mxu3 %v11017_v62 }
 0x7c7   : > { %v8435_v46 = vpop.f32.mrf.mxu3 }
 0x7c8   : > { %v8449_v43 = vadd.f32 %v8435_v46, %v8332_v53  ;;  %v11028_v53 = vld [vmem:[%s15454_s8 + $0x18] sm:$0xff] }
 0x7cb   : > { %v8259_v31 = vpop.f32.mrf.mxu1 }
 0x7cc   : > { %v8338_v61 = vpop.f32.mrf.mxu2  ;;  %v8334_v32 = vadd.f32 %v8333_v39, %v8259_v31 }
 0x7cf   : > { %v8437_v16 = vpop.f32.mrf.mxu3 }
 0x7d0   : > { %v8450_v51 = vadd.f32 %v8437_v16, %v8334_v32 }
 0x7ee   : > { %v8262_v36 = vpop.f32.mrf.mxu1 }
 0x7ef   : > { %v8341_v54 = vpop.f32.mrf.mxu2  ;;  %v8337_v9 = vadd.f32 %v8336_v4, %v8262_v36 }
 0x7f3   : > { %v8440_v38 = vpop.f32.mrf.mxu3 }
 0x7f4   : > { %v8451_v35 = vadd.f32 %v8440_v38, %v8337_v9 }
 0x7f6   : > { %v8264_v52 = vpop.f32.mrf.mxu1 }
 0x7f7   : > { %v8343_v5 = vpop.f32.mrf.mxu2  ;;  %v8339_v1 = vadd.f32 %v8338_v61, %v8264_v52 }
 0x7f8   : > { %v11031_v5 = vld [vmem:[%s15454_s8 + $0x30] sm:$0xff] }
 0x7fb   : > { %v8442_v28 = vpop.f32.mrf.mxu3 }
 0x7fc   : > { %v8452_v7 = vadd.f32 %v8442_v28, %v8339_v1  ;;  %v11030_v28 = vld [vmem:[%s15454_s8 + $0x28] sm:$0xff] }
 0x7fe   : > { %v8267_v27 = vpop.f32.mrf.mxu1 }
 0x7ff   : > { %v8661_v34 = vpop.f32.mrf.mxu2  ;;  %v8342_v49 = vadd.f32 %v8341_v54, %v8267_v27  ;;  %v11032_v54 = vld [vmem:[%s15454_s8 + $0x38] sm:$0xff] }
 0x800   : > { %8865 = vmatpush.bf16.msrb.mxu3 %v11032_v54 }
 0x803   : > { %v8445_v3 = vpop.f32.mrf.mxu3 }
 0x804   : > { %v8453_v39 = vadd.f32 %v8445_v3, %v8342_v49  ;;  %8866 = vmatpush.bf16.msrb.mxu3 %v11031_v5 }
 0x806   : > { %v8269_v17 = vpop.f32.mrf.mxu1 }
 0x807   : > { %v8663_v13 = vpop.f32.mrf.mxu2 }
 0x808   : > { %8867 = vmatpush.bf16.msrb.mxu3 %v11030_v28 }
 0x80b   : > { %v8447_v58 = vpop.f32.mrf.mxu3 }
 0x80e   : > { %v8552_v40 = vpop.f32.mrf.mxu1 }
 0x80f   : > { %v8566_v18 = vadd.f32 %v8552_v40, %v8449_v43  ;;  %v8666_v11 = vpop.f32.mrf.mxu2 }
 0x811   : > { %v8675_v10 = vadd.f32 %v8661_v34, %v8566_v18  ;;  %v11029_v34 = vld [vmem:[%s15454_s8 + $0x20] sm:$0xff]  ;;  %v11027_v18 = vld [vmem:[%s15454_s8 + $0x10] sm:$0xff] }
 0x812   : > { %8868 = vmatpush.bf16.msrb.mxu3 %v11029_v34 }
 0x813   : > { %v8681_v60 = vmul.f32 %v11213_v12, %v8675_v10 }
 0x815   : > { %v8687_v6 = vadd.f32 %v11214_v14, %v8681_v60  ;;  %v11026_v60 = vld [vmem:[%s15454_s8 + $0x8] sm:$0xff] }
 0x816   : > { %v8554_v15 = vpop.f32.mrf.mxu1  ;;  %8869 = vmatpush.bf16.msrb.mxu3 %v11028_v53 }
 0x817   : > { %v8692_v37 = vmax.f32 %v8687_v6, 0.0  ;;  %v8567_v56 = vadd.f32 %v8554_v15, %v8450_v51  ;;  %v8668_v42 = vpop.f32.mrf.mxu2  ;;  %v8736_v51 = vld [vmem:[%s15453_s7] sm:$0x1] }
 0x819   : > { %v8676_v47 = vadd.f32 %v8663_v13, %v8567_v56 }
 0x81a   : > { %8870 = vmatpush.bf16.msrb.mxu3 %v11027_v18 }
 0x81b   : > { %v8682_v8 = vmul.f32 %v11213_v12, %v8676_v47  ;;  %v8816_v47 = vld [vmem:[%s15455_s9] sm:$0x1] }
 0x81d   : > { %v8688_v2 = vadd.f32 %v11214_v14, %v8682_v8 }
 0x81e   : > { %v8557_v48 = vpop.f32.mrf.mxu1  ;;  %8871 = vmatpush.bf16.msrb.mxu3 %v11026_v60 }
 0x81f   : > { %v8693_v0 = vmax.f32 %v8688_v2, 0.0  ;;  %v8568_v21 = vadd.f32 %v8557_v48, %v8451_v35  ;;  %v8671_v55 = vpop.f32.mrf.mxu2 }
 0x821   : > { %v8677_v50 = vadd.f32 %v8666_v11, %v8568_v21 }
 0x822   : > { %8872 = vmatpush.bf16.msrb.mxu3 %v11025_v19 }
 0x823   : > { %v8683_v63 = vmul.f32 %v11213_v12, %v8677_v50 }
 0x825   : > { %v8689_v22 = vadd.f32 %v11214_v14, %v8683_v63 }
 0x826   : > { %v8559_v25 = vpop.f32.mrf.mxu1 }
 0x827   : > { %v8694_v24 = vmax.f32 %v8689_v22, 0.0  ;;  %v8569_v23 = vadd.f32 %v8559_v25, %v8452_v7  ;;  %v8673_v30 = vpop.f32.mrf.mxu2 }
 0x829   : > { %v8678_v45 = vadd.f32 %v8668_v42, %v8569_v23 }
 0x82b   : > { %v8684_v29 = vmul.f32 %v11213_v12, %v8678_v45 }
 0x82d   : > { %v8690_v20 = vadd.f32 %v11214_v14, %v8684_v29 }
 0x82e   : > { %v8562_v4 = vpop.f32.mrf.mxu1 }
 0x82f   : > { %v8695_v46 = vmax.f32 %v8690_v20, 0.0  ;;  %v8570_v31 = vadd.f32 %v8562_v4, %v8453_v39 }
 0x831   : > { %v8679_v61 = vadd.f32 %v8671_v55, %v8570_v31  ;;  %v8711_v58 = vmax.f32 %v8694_v24, %v8695_v46 }
 0x833   : > { %v8685_v16 = vmul.f32 %v11213_v12, %v8679_v61 }
 0x835   : > { %v8691_v36 = vadd.f32 %v11214_v14, %v8685_v16 }
 0x836   : > { %v8564_v38 = vpop.f32.mrf.mxu1 }
 0x837   : > { %v8696_v52 = vmax.f32 %v8691_v36, 0.0 }
 0x839   : > { %8701 = vst [vmem:[#allocation6 + $0x18] sm:$0x7] %v8696_v52 }
 0x840   : > { %v8706_v27 = vld [vmem:[#allocation6 + $0x18] sm:$0x7] }
 0x841   : > { %v8708_v3 = vsel %vm8707_vm7, %v8706_v27, -inf }
 0x842   : > { %v8709_v17 = vmax.f32 %v8692_v37, %v8708_v3 }
 0x844   : > { %v8710_v13 = vmax.f32 %v8709_v17, %v8693_v0 }
 0x846   : > { %v8712_v43 = vmax.f32 %v8710_v13, %v8711_v58 }
 0x848   : > { %v8713_v40 = vrot.slane %v8712_v43, 4 }
 0x84a   : > { %v8714_v12 = vmax.f32 %v8712_v43, %v8713_v40 }
 0x84c   : > { %v8715_v11 = vrot.slane %v8714_v12, 2 }
 0x84e   : > { %v8716_v10 = vmax.f32 %v8714_v12, %v8715_v11 }
 0x850   : > { %v8717_v14 = vrot.slane %v8716_v10, 1 }
 0x852   : > { %v8718_v57 = vmax.f32 %v8716_v10, %v8717_v14 }
 0x854   : > { %v8719_v32 = vpack.c.bf16 %v8718_v57, %v8718_v57 }
 0x856   : > { %8793 = vmatmul.bf16.vlgmr.msra.gmra.mxu3 %v8719_v32 }
 0x8d9   : > { %v8794_v6 = vpop.f32.mrf.mxu3 }
 0x8da   : > { %v8795_v15 = vadd.f32 %v8794_v6, %v8736_v51 }
 0x8dc   : > { %v8798_v37 = vmax.f32 %v8795_v15, 0.0 }
 0x8de   : > { %v8799_v56 = vpack.c.bf16 %v8798_v37, %v8798_v37 }
 0x8e0   : > { %8873 = vmatmul.bf16.vlgmr.msrb.gmra.mxu3 %v8799_v56 }
 0x8e1   : > { %v8796_v42 = vpop.f32.mrf.mxu3 }
 0x963   : > { %v8874_v41 = vpop.f32.mrf.mxu3 }
 0x964   : > { %v8875_v9 = vadd.f32 %v8874_v41, %v8816_v47 }
 0x966   : > { %8878 = vst [vmem:[%s351_s28] sm:$0x1] %v8875_v9 }
 0x967   : > { %11313 = shalt.err (!%p11310_p3)
}
 0x968   : > { %11170 = dma.vmem_to_hbm [thread:$0]  (%p11443_p5), %s8891_s29, 16, %s8893_s30, %s8880_s11  }
 0x96b   : > { %v8876_v8 = vpop.f32.mrf.mxu3 }
 0x96c PF: > { %p11176_p4 = scmp.ge.s32.totalorder %s11348_s16, 2  ;;  %s8904_s18 = sand.u32 1, %s11336_s13  }
 0x96d   : > { %s8905_s21 = scalar_lea.sflag [#allocation8], %s8904_s18 }
 0x96e   : > { %p11173_p7 = pnand %p11176_p4, %p11447_p6 }
 0x970   : > { %p11174_p8 = pneg %p11173_p7 }
 0x972   : > { %11331 = dma.done.wait (%p11174_p8), %s8905_s21, 16  }
 0x973   : > { %11333 = vsyncadd (%p11174_p8), %s8905_s21, 4294967280  ;;  %p20_p9 = scmp.ge.s32.totalorder %s11430_s19, 4   ;;  %s15785_s13 = smov %s11340_s14 }
 0x974   : > { %s15786_s14 = smov %s11344_s15  ;;  %s15787_s15 = smov %s11441_s22 }
 0x975   : > { %s15788_s16 = smov %s11430_s19  ;;  %22 = sbr.rel (!%p20_p9) target bundleno = 5 (0x5), region = 260 }
 0x97a   :  { %8910 = vsyncpa [#allocation8], 1 }
 0x97b   :  { %8912 = vsyncpa [#allocation8 + $0x1], 1 }

</bundles_post_ra>
